<compile_context>
chip_gen: v5e
topology: v5e:2x2
jax: 0.10.0
libtpu: 0.0.40
codegen_flags: <defaults>
</compile_context>

<pallas_src>
import functools

import numpy as np
import jax
import jax.numpy as jnp
from jax.experimental import pallas as pl
from jax.experimental.pallas import tpu as pltpu

# ---------------------------------------------------------------------------
# Static model dimensions implied by the PyTorch module (input must be 3x32x32
# so the flatten is 5*5*50 = 1250).
# ---------------------------------------------------------------------------
H0, W0, C0 = 32, 32, 3
K = 5
C1 = 20
H1, W1 = H0 - K + 1, W0 - K + 1          # 28, 28
HP1, WP1 = H1 // 2, W1 // 2              # 14, 14
C2 = 50
H2, W2 = HP1 - K + 1, WP1 - K + 1        # 10, 10
HP2, WP2 = H2 // 2, W2 // 2              # 5, 5
FC1_IN = HP2 * WP2 * C2                  # 1250 (HWC flatten order, see note at fc1)
FC1_OUT = 500
NCLASS = 10
NCLASS_PAD = 128                         # lane-dense padded logit width


# ---------------------------------------------------------------------------
# Fused Pallas kernel: whole network for one batch element per grid step.
# ---------------------------------------------------------------------------
def _net_kernel(x_ref, r1_ref, m1_ref, b1_ref, se1_ref, so1_ref, ca1_ref, cb1_ref,
                r2_ref, m2_ref, b2_ref, se2_ref, so2_ref, ca2_ref, cb2_ref,
                ef_ref, fc1w_ref, fc1b_ref, fc2w_ref, fc2b_ref, o_ref):
    dot = functools.partial(jnp.dot, preferred_element_type=jnp.float32)

    x2d = x_ref[0]                                           # (32, 96)  [h, w*Cin + c]

    # ---- conv1 + ReLU: banded matmuls, one per vertical tap ----
    y1 = dot(dot(r1_ref[0], x2d), m1_ref[0])
    for i in range(1, K):
        y1 = y1 + dot(dot(r1_ref[i], x2d), m1_ref[i])
    y1 = jnp.maximum(y1 + b1_ref[...], 0.0)                  # (28, 560) [h, w*C1 + f]

    # ---- 2x2 max-pool: row-pair max (left selectors) then col-pair max (right selectors) ----
    v1 = jnp.maximum(dot(se1_ref[...], y1), dot(so1_ref[...], y1))     # (14, 560)
    p1 = jnp.maximum(dot(v1, ca1_ref[...]), dot(v1, cb1_ref[...]))     # (14, 280)

    # ---- conv2 + ReLU ----
    y2 = dot(dot(r2_ref[0], p1), m2_ref[0])
    for i in range(1, K):
        y2 = y2 + dot(dot(r2_ref[i], p1), m2_ref[i])
    y2 = jnp.maximum(y2 + b2_ref[...], 0.0)                  # (10, 500)

    # ---- pool2 ----
    v2 = jnp.maximum(dot(se2_ref[...], y2), dot(so2_ref[...], y2))     # (5, 500)
    p2 = jnp.maximum(dot(v2, ca2_ref[...]), dot(v2, cb2_ref[...]))     # (5, 250) [hp, wp*C2 + f]

    # ---- fc1 + ReLU: contract the (5, 250) slab against the (5, 250, 500) weight blocks ----
    h1 = dot(dot(ef_ref[0], p2), fc1w_ref[0])
    for h in range(1, HP2):
        h1 = h1 + dot(dot(ef_ref[h], p2), fc1w_ref[h])
    h1 = jnp.maximum(h1 + fc1b_ref[...], 0.0)                # (1, 500)

    # ---- fc2 + log_softmax over 128 padded lanes (pad bias = -1e30 -> exp == 0) ----
    z = dot(h1, fc2w_ref[...]) + fc2b_ref[...]               # (1, 128)
    m = jnp.max(z, axis=-1, keepdims=True)
    s = z - m
    lse = jnp.log(jnp.sum(jnp.exp(s), axis=-1, keepdims=True))
    o_ref[0] = s - lse                                       # lane-dense (1, 128) store


# ---------------------------------------------------------------------------
# Weight preprocessing (one-time): banded conv matrices + pooling / shift selectors.
# ---------------------------------------------------------------------------
def _banded_conv_mats(w_oihw, w_in):
    """(Cout, Cin, kh, kw) -> (kh, w_in*Cin, wo*Cout) with
    M[i, (w+j)*Cin + c, w*Cout + f] = w_oihw[f, c, i, j]."""
    cout, cin, kh, kw = w_oihw.shape
    wo = w_in - kw + 1
    wt = jnp.transpose(w_oihw, (2, 3, 1, 0))                    # (kh, kw, Cin, Cout)
    d = np.arange(w_in)[:, None] - np.arange(wo)[None, :]       # j = input block - output block
    valid = ((d >= 0) & (d < kw)).astype(np.float32)
    dd = np.clip(d, 0, kw - 1)
    b = wt[:, dd, :, :]                                         # (kh, w_in, wo, Cin, Cout)
    b = b * jnp.asarray(valid)[None, :, :, None, None]
    return jnp.transpose(b, (0, 1, 3, 2, 4)).reshape(kh, w_in * cin, wo * cout)


def _row_select(n_out, stride, offset, n_in):
    """(n_out, n_in) 0/1 matrix picking input row stride*r + offset for output row r."""
    m = np.zeros((n_out, n_in), np.float32)
    m[np.arange(n_out), np.arange(n_out) * stride + offset] = 1.0
    return jnp.asarray(m)


def _col_pool_select(w_in, w_out, offset, c):
    """(w_in*c, w_out*c) selector: output column (wp, ch) <- input column (2*wp+offset, ch)."""
    sel = np.zeros((w_in, w_out), np.float32)
    sel[np.arange(w_out) * 2 + offset, np.arange(w_out)] = 1.0
    return jnp.asarray(np.kron(sel, np.eye(c, dtype=np.float32)))


def prepare_params(params):
    p = {}
    p["r1"] = jnp.stack([_row_select(H1, 1, i, H0) for i in range(K)])     # (5, 28, 32)
    p["m1"] = _banded_conv_mats(params["conv1_w"], W0)                     # (5, 96, 560)
    p["b1"] = jnp.tile(params["conv1_b"], W1).reshape(1, W1 * C1)          # (1, 560)
    p["se1"] = _row_select(HP1, 2, 0, H1)                                  # (14, 28)
    p["so1"] = _row_select(HP1, 2, 1, H1)
    p["ca1"] = _col_pool_select(W1, WP1, 0, C1)                            # (560, 280)
    p["cb1"] = _col_pool_select(W1, WP1, 1, C1)
    p["r2"] = jnp.stack([_row_select(H2, 1, i, HP1) for i in range(K)])    # (5, 10, 14)
    p["m2"] = _banded_conv_mats(params["conv2_w"], WP1)                    # (5, 280, 500)
    p["b2"] = jnp.tile(params["conv2_b"], W2).reshape(1, W2 * C2)          # (1, 500)
    p["se2"] = _row_select(HP2, 2, 0, H2)                                  # (5, 10)
    p["so2"] = _row_select(HP2, 2, 1, H2)
    p["ca2"] = _col_pool_select(W2, WP2, 0, C2)                            # (500, 250)
    p["cb2"] = _col_pool_select(W2, WP2, 1, C2)
    p["ef"] = jnp.stack([_row_select(1, 1, h, HP2) for h in range(HP2)])   # (5, 1, 5)
    # fc1 weights are defined for HWC flatten order (hp*250 + wp*50 + f); a real PyTorch
    # checkpoint (CHW flatten) would need its fc1 weight rows permuted accordingly.
    p["fc1w"] = params["fc1_w"].reshape(HP2, WP2 * C2, FC1_OUT)            # (5, 250, 500)
    p["fc1b"] = params["fc1_b"].reshape(1, FC1_OUT)
    p["fc2w"] = jnp.pad(params["fc2_w"], ((0, 0), (0, NCLASS_PAD - NCLASS)))
    p["fc2b"] = jnp.concatenate(
        [params["fc2_b"],
         jnp.full((NCLASS_PAD - NCLASS,), -1e30, jnp.float32)]).reshape(1, NCLASS_PAD)
    return p


_WEIGHT_ORDER = ["r1", "m1", "b1", "se1", "so1", "ca1", "cb1",
                 "r2", "m2", "b2", "se2", "so2", "ca2", "cb2",
                 "ef", "fc1w", "fc1b", "fc2w", "fc2b"]


def _resident_spec(a):
    nd = a.ndim
    return pl.BlockSpec(a.shape, lambda b, _nd=nd: (0,) * _nd)


def net_forward(prepped, x_nchw):
    n = x_nchw.shape[0]
    # NCHW -> NHWC -> (N, H, W*C) row-slab; pure input layout prep in the wrapper.
    x_slab = jnp.transpose(x_nchw, (0, 2, 3, 1)).astype(jnp.float32).reshape(n, H0, W0 * C0)
    weights = [prepped[k] for k in _WEIGHT_ORDER]

    in_specs = [pl.BlockSpec((1, H0, W0 * C0), lambda b: (b, 0, 0))]
    in_specs += [_resident_spec(a) for a in weights]
    out_specs = pl.BlockSpec((1, 1, NCLASS_PAD), lambda b: (b, 0, 0))

    out = pl.pallas_call(
        _net_kernel,
        grid=(n,),
        out_shape=jax.ShapeDtypeStruct((n, 1, NCLASS_PAD), jnp.float32),
        in_specs=in_specs,
        out_specs=out_specs,
        compiler_params=pltpu.CompilerParams(
            dimension_semantics=("parallel",),
            vmem_limit_bytes=32 * 1024 * 1024),
    )(x_slab, *weights)
    return out[:, 0, :NCLASS]


# ---------------------------------------------------------------------------
# Deterministic synthetic parameters (PyTorch-consistent shapes) + pure-JAX reference.
# ---------------------------------------------------------------------------
def init_params(key):
    ks = jax.random.split(key, 8)

    def u(k, shape, fan_in):
        bound = 1.0 / float(np.sqrt(fan_in))
        return jax.random.uniform(k, shape, jnp.float32, -bound, bound)

    return dict(
        conv1_w=u(ks[0], (C1, C0, K, K), C0 * K * K),
        conv1_b=u(ks[1], (C1,), C0 * K * K),
        conv2_w=u(ks[2], (C2, C1, K, K), C1 * K * K),
        conv2_b=u(ks[3], (C2,), C1 * K * K),
        fc1_w=u(ks[4], (FC1_IN, FC1_OUT), FC1_IN),
        fc1_b=u(ks[5], (FC1_OUT,), FC1_IN),
        fc2_w=u(ks[6], (FC1_OUT, NCLASS), FC1_OUT),
        fc2_b=u(ks[7], (NCLASS,), FC1_OUT),
    )


def reference_forward(params, x_nchw):
    x = jnp.transpose(x_nchw, (0, 2, 3, 1)).astype(jnp.float32)   # NHWC

    def conv_relu(x, w, b):
        y = jax.lax.conv_general_dilated(
            x, w, window_strides=(1, 1), padding="VALID",
            dimension_numbers=("NHWC", "OIHW", "NHWC"))
        return jnp.maximum(y + b, 0.0)

    def pool(x):
        return jax.lax.reduce_window(x, -jnp.inf, jax.lax.max,
                                     (1, 2, 2, 1), (1, 2, 2, 1), "VALID")

    x = pool(conv_relu(x, params["conv1_w"], params["conv1_b"]))
    x = pool(conv_relu(x, params["conv2_w"], params["conv2_b"]))
    x = x.reshape(x.shape[0], -1)                                 # HWC flatten order
    x = jnp.maximum(x @ params["fc1_w"] + params["fc1_b"], 0.0)
    z = x @ params["fc2_w"] + params["fc2_b"]
    return jax.nn.log_softmax(z, axis=-1)


if __name__ == "__main__":
    key = jax.random.PRNGKey(0)
    pkey, xkey = jax.random.split(key)
    params = init_params(pkey)
    # Forward pass requires 32x32 spatial input (32 -> 28 -> 14 -> 10 -> 5).
    x = jax.random.normal(xkey, (2, 3, 32, 32), jnp.float32)

    prepped = prepare_params(params)
    out = jax.block_until_ready(jax.jit(net_forward)(prepped, x))

    assert out.shape == (2, NCLASS), out.shape
    ref = np.asarray(reference_forward(params, x))
    np.testing.assert_allclose(np.asarray(out), ref, atol=5e-2, rtol=0)
    probs_sum = np.exp(np.asarray(out)).sum(axis=1)
    assert np.allclose(probs_sum, 1.0, atol=1e-3), probs_sum
    print("KERNEL_OK")
</pallas_src>

<mosaic_0001>
module attributes {stable_mosaic.version = 11 : i64} {
  func.func @_net_kernel(%arg0: i32, %arg1: memref<1x32x96xf32, #tpu.memory_space<vmem>>, %arg2: memref<5x28x32xf32, #tpu.memory_space<vmem>>, %arg3: memref<5x96x560xf32, #tpu.memory_space<vmem>>, %arg4: memref<1x560xf32, #tpu.memory_space<vmem>>, %arg5: memref<14x28xf32, #tpu.memory_space<vmem>>, %arg6: memref<14x28xf32, #tpu.memory_space<vmem>>, %arg7: memref<560x280xf32, #tpu.memory_space<vmem>>, %arg8: memref<560x280xf32, #tpu.memory_space<vmem>>, %arg9: memref<5x10x14xf32, #tpu.memory_space<vmem>>, %arg10: memref<5x280x500xf32, #tpu.memory_space<vmem>>, %arg11: memref<1x500xf32, #tpu.memory_space<vmem>>, %arg12: memref<5x10xf32, #tpu.memory_space<vmem>>, %arg13: memref<5x10xf32, #tpu.memory_space<vmem>>, %arg14: memref<500x250xf32, #tpu.memory_space<vmem>>, %arg15: memref<500x250xf32, #tpu.memory_space<vmem>>, %arg16: memref<5x1x5xf32, #tpu.memory_space<vmem>>, %arg17: memref<5x250x500xf32, #tpu.memory_space<vmem>>, %arg18: memref<1x500xf32, #tpu.memory_space<vmem>>, %arg19: memref<500x128xf32, #tpu.memory_space<vmem>>, %arg20: memref<1x128xf32, #tpu.memory_space<vmem>>, %arg21: memref<1x1x128xf32, #tpu.memory_space<vmem>>) attributes {dimension_semantics = [#tpu.dimension_semantics<parallel>], iteration_bounds = array<i64: 2>, scalar_prefetch = 0 : i64, scratch_operands = 0 : i64, tpu.core_type = #tpu.core_type<tc>, window_params = [{transform_indices = @transform_0, window_bounds = array<i64: 1, 32, 96>}, {pipeline_mode = #tpu.pipeline_mode<synchronous>, transform_indices = @transform_1, window_bounds = array<i64: 5, 28, 32>}, {pipeline_mode = #tpu.pipeline_mode<synchronous>, transform_indices = @transform_2, window_bounds = array<i64: 5, 96, 560>}, {pipeline_mode = #tpu.pipeline_mode<synchronous>, transform_indices = @transform_3, window_bounds = array<i64: 1, 560>}, {pipeline_mode = #tpu.pipeline_mode<synchronous>, transform_indices = @transform_4, window_bounds = array<i64: 14, 28>}, {pipeline_mode = #tpu.pipeline_mode<synchronous>, transform_indices = @transform_5, window_bounds = array<i64: 14, 28>}, {pipeline_mode = #tpu.pipeline_mode<synchronous>, transform_indices = @transform_6, window_bounds = array<i64: 560, 280>}, {pipeline_mode = #tpu.pipeline_mode<synchronous>, transform_indices = @transform_7, window_bounds = array<i64: 560, 280>}, {pipeline_mode = #tpu.pipeline_mode<synchronous>, transform_indices = @transform_8, window_bounds = array<i64: 5, 10, 14>}, {pipeline_mode = #tpu.pipeline_mode<synchronous>, transform_indices = @transform_9, window_bounds = array<i64: 5, 280, 500>}, {pipeline_mode = #tpu.pipeline_mode<synchronous>, transform_indices = @transform_10, window_bounds = array<i64: 1, 500>}, {pipeline_mode = #tpu.pipeline_mode<synchronous>, transform_indices = @transform_11, window_bounds = array<i64: 5, 10>}, {pipeline_mode = #tpu.pipeline_mode<synchronous>, transform_indices = @transform_12, window_bounds = array<i64: 5, 10>}, {pipeline_mode = #tpu.pipeline_mode<synchronous>, transform_indices = @transform_13, window_bounds = array<i64: 500, 250>}, {pipeline_mode = #tpu.pipeline_mode<synchronous>, transform_indices = @transform_14, window_bounds = array<i64: 500, 250>}, {pipeline_mode = #tpu.pipeline_mode<synchronous>, transform_indices = @transform_15, window_bounds = array<i64: 5, 1, 5>}, {pipeline_mode = #tpu.pipeline_mode<synchronous>, transform_indices = @transform_16, window_bounds = array<i64: 5, 250, 500>}, {pipeline_mode = #tpu.pipeline_mode<synchronous>, transform_indices = @transform_17, window_bounds = array<i64: 1, 500>}, {pipeline_mode = #tpu.pipeline_mode<synchronous>, transform_indices = @transform_18, window_bounds = array<i64: 500, 128>}, {pipeline_mode = #tpu.pipeline_mode<synchronous>, transform_indices = @transform_19, window_bounds = array<i64: 1, 128>}, {transform_indices = @transform_20, window_bounds = array<i64: 1, 1, 128>}]} {
    %c0 = arith.constant 0 : index
    %c0_0 = arith.constant 0 : index
    %c0_1 = arith.constant 0 : index
    %0 = vector.load %arg1[%c0, %c0_0, %c0_1] : memref<1x32x96xf32, #tpu.memory_space<vmem>>, vector<1x32x96xf32>
    %1 = vector.shape_cast %0 : vector<1x32x96xf32> to vector<32x96xf32>
    %c0_2 = arith.constant 0 : index
    %c0_3 = arith.constant 0 : index
    %c0_4 = arith.constant 0 : index
    %2 = vector.load %arg2[%c0_2, %c0_3, %c0_4] : memref<5x28x32xf32, #tpu.memory_space<vmem>>, vector<1x28x32xf32>
    %3 = vector.shape_cast %2 : vector<1x28x32xf32> to vector<28x32xf32>
    %cst = arith.constant dense<0.000000e+00> : vector<28x96xf32>
    %4 = tpu.matmul %3, %1, %cst {dimension_numbers = #tpu.dot_dimension_numbers<[1], [0], [0], [1], [0, 0, 1, 1], [], []>} : vector<28x32xf32>, vector<32x96xf32>, vector<28x96xf32> -> vector<28x96xf32>
    %c0_5 = arith.constant 0 : index
    %c0_6 = arith.constant 0 : index
    %c0_7 = arith.constant 0 : index
    %5 = vector.load %arg3[%c0_5, %c0_6, %c0_7] : memref<5x96x560xf32, #tpu.memory_space<vmem>>, vector<1x96x560xf32>
    %6 = vector.shape_cast %5 : vector<1x96x560xf32> to vector<96x560xf32>
    %cst_8 = arith.constant dense<0.000000e+00> : vector<28x560xf32>
    %7 = tpu.matmul %4, %6, %cst_8 {dimension_numbers = #tpu.dot_dimension_numbers<[1], [0], [0], [1], [0, 0, 1, 1], [], []>} : vector<28x96xf32>, vector<96x560xf32>, vector<28x560xf32> -> vector<28x560xf32>
    %c1 = arith.constant 1 : index
    %c0_9 = arith.constant 0 : index
    %c0_10 = arith.constant 0 : index
    %8 = vector.load %arg2[%c1, %c0_9, %c0_10] : memref<5x28x32xf32, #tpu.memory_space<vmem>>, vector<1x28x32xf32>
    %9 = vector.shape_cast %8 : vector<1x28x32xf32> to vector<28x32xf32>
    %cst_11 = arith.constant dense<0.000000e+00> : vector<28x96xf32>
    %10 = tpu.matmul %9, %1, %cst_11 {dimension_numbers = #tpu.dot_dimension_numbers<[1], [0], [0], [1], [0, 0, 1, 1], [], []>} : vector<28x32xf32>, vector<32x96xf32>, vector<28x96xf32> -> vector<28x96xf32>
    %c1_12 = arith.constant 1 : index
    %c0_13 = arith.constant 0 : index
    %c0_14 = arith.constant 0 : index
    %11 = vector.load %arg3[%c1_12, %c0_13, %c0_14] : memref<5x96x560xf32, #tpu.memory_space<vmem>>, vector<1x96x560xf32>
    %12 = vector.shape_cast %11 : vector<1x96x560xf32> to vector<96x560xf32>
    %cst_15 = arith.constant dense<0.000000e+00> : vector<28x560xf32>
    %13 = tpu.matmul %10, %12, %cst_15 {dimension_numbers = #tpu.dot_dimension_numbers<[1], [0], [0], [1], [0, 0, 1, 1], [], []>} : vector<28x96xf32>, vector<96x560xf32>, vector<28x560xf32> -> vector<28x560xf32>
    %14 = arith.addf %7, %13 : vector<28x560xf32>
    %c2 = arith.constant 2 : index
    %c0_16 = arith.constant 0 : index
    %c0_17 = arith.constant 0 : index
    %15 = vector.load %arg2[%c2, %c0_16, %c0_17] : memref<5x28x32xf32, #tpu.memory_space<vmem>>, vector<1x28x32xf32>
    %16 = vector.shape_cast %15 : vector<1x28x32xf32> to vector<28x32xf32>
    %cst_18 = arith.constant dense<0.000000e+00> : vector<28x96xf32>
    %17 = tpu.matmul %16, %1, %cst_18 {dimension_numbers = #tpu.dot_dimension_numbers<[1], [0], [0], [1], [0, 0, 1, 1], [], []>} : vector<28x32xf32>, vector<32x96xf32>, vector<28x96xf32> -> vector<28x96xf32>
    %c2_19 = arith.constant 2 : index
    %c0_20 = arith.constant 0 : index
    %c0_21 = arith.constant 0 : index
    %18 = vector.load %arg3[%c2_19, %c0_20, %c0_21] : memref<5x96x560xf32, #tpu.memory_space<vmem>>, vector<1x96x560xf32>
    %19 = vector.shape_cast %18 : vector<1x96x560xf32> to vector<96x560xf32>
    %cst_22 = arith.constant dense<0.000000e+00> : vector<28x560xf32>
    %20 = tpu.matmul %17, %19, %cst_22 {dimension_numbers = #tpu.dot_dimension_numbers<[1], [0], [0], [1], [0, 0, 1, 1], [], []>} : vector<28x96xf32>, vector<96x560xf32>, vector<28x560xf32> -> vector<28x560xf32>
    %21 = arith.addf %14, %20 : vector<28x560xf32>
    %c3 = arith.constant 3 : index
    %c0_23 = arith.constant 0 : index
    %c0_24 = arith.constant 0 : index
    %22 = vector.load %arg2[%c3, %c0_23, %c0_24] : memref<5x28x32xf32, #tpu.memory_space<vmem>>, vector<1x28x32xf32>
    %23 = vector.shape_cast %22 : vector<1x28x32xf32> to vector<28x32xf32>
    %cst_25 = arith.constant dense<0.000000e+00> : vector<28x96xf32>
    %24 = tpu.matmul %23, %1, %cst_25 {dimension_numbers = #tpu.dot_dimension_numbers<[1], [0], [0], [1], [0, 0, 1, 1], [], []>} : vector<28x32xf32>, vector<32x96xf32>, vector<28x96xf32> -> vector<28x96xf32>
    %c3_26 = arith.constant 3 : index
    %c0_27 = arith.constant 0 : index
    %c0_28 = arith.constant 0 : index
    %25 = vector.load %arg3[%c3_26, %c0_27, %c0_28] : memref<5x96x560xf32, #tpu.memory_space<vmem>>, vector<1x96x560xf32>
    %26 = vector.shape_cast %25 : vector<1x96x560xf32> to vector<96x560xf32>
    %cst_29 = arith.constant dense<0.000000e+00> : vector<28x560xf32>
    %27 = tpu.matmul %24, %26, %cst_29 {dimension_numbers = #tpu.dot_dimension_numbers<[1], [0], [0], [1], [0, 0, 1, 1], [], []>} : vector<28x96xf32>, vector<96x560xf32>, vector<28x560xf32> -> vector<28x560xf32>
    %28 = arith.addf %21, %27 : vector<28x560xf32>
    %c4 = arith.constant 4 : index
    %c0_30 = arith.constant 0 : index
    %c0_31 = arith.constant 0 : index
    %29 = vector.load %arg2[%c4, %c0_30, %c0_31] : memref<5x28x32xf32, #tpu.memory_space<vmem>>, vector<1x28x32xf32>
    %30 = vector.shape_cast %29 : vector<1x28x32xf32> to vector<28x32xf32>
    %cst_32 = arith.constant dense<0.000000e+00> : vector<28x96xf32>
    %31 = tpu.matmul %30, %1, %cst_32 {dimension_numbers = #tpu.dot_dimension_numbers<[1], [0], [0], [1], [0, 0, 1, 1], [], []>} : vector<28x32xf32>, vector<32x96xf32>, vector<28x96xf32> -> vector<28x96xf32>
    %c4_33 = arith.constant 4 : index
    %c0_34 = arith.constant 0 : index
    %c0_35 = arith.constant 0 : index
    %32 = vector.load %arg3[%c4_33, %c0_34, %c0_35] : memref<5x96x560xf32, #tpu.memory_space<vmem>>, vector<1x96x560xf32>
    %33 = vector.shape_cast %32 : vector<1x96x560xf32> to vector<96x560xf32>
    %cst_36 = arith.constant dense<0.000000e+00> : vector<28x560xf32>
    %34 = tpu.matmul %31, %33, %cst_36 {dimension_numbers = #tpu.dot_dimension_numbers<[1], [0], [0], [1], [0, 0, 1, 1], [], []>} : vector<28x96xf32>, vector<96x560xf32>, vector<28x560xf32> -> vector<28x560xf32>
    %35 = arith.addf %28, %34 : vector<28x560xf32>
    %c0_37 = arith.constant 0 : index
    %c0_38 = arith.constant 0 : index
    %36 = vector.load %arg4[%c0_37, %c0_38] : memref<1x560xf32, #tpu.memory_space<vmem>>, vector<1x560xf32>
    %37 = vector.broadcast %36 : vector<1x560xf32> to vector<28x560xf32>
    %38 = arith.addf %35, %37 : vector<28x560xf32>
    %cst_39 = arith.constant 0.000000e+00 : f32
    %39 = vector.broadcast %cst_39 : f32 to vector<28x560xf32>
    %40 = arith.maximumf %38, %39 : vector<28x560xf32>
    %c0_40 = arith.constant 0 : index
    %c0_41 = arith.constant 0 : index
    %41 = vector.load %arg5[%c0_40, %c0_41] : memref<14x28xf32, #tpu.memory_space<vmem>>, vector<14x28xf32>
    %cst_42 = arith.constant dense<0.000000e+00> : vector<14x560xf32>
    %42 = tpu.matmul %41, %40, %cst_42 {dimension_numbers = #tpu.dot_dimension_numbers<[1], [0], [0], [1], [0, 0, 1, 1], [], []>} : vector<14x28xf32>, vector<28x560xf32>, vector<14x560xf32> -> vector<14x560xf32>
    %c0_43 = arith.constant 0 : index
    %c0_44 = arith.constant 0 : index
    %43 = vector.load %arg6[%c0_43, %c0_44] : memref<14x28xf32, #tpu.memory_space<vmem>>, vector<14x28xf32>
    %cst_45 = arith.constant dense<0.000000e+00> : vector<14x560xf32>
    %44 = tpu.matmul %43, %40, %cst_45 {dimension_numbers = #tpu.dot_dimension_numbers<[1], [0], [0], [1], [0, 0, 1, 1], [], []>} : vector<14x28xf32>, vector<28x560xf32>, vector<14x560xf32> -> vector<14x560xf32>
    %45 = arith.maximumf %42, %44 : vector<14x560xf32>
    %c0_46 = arith.constant 0 : index
    %c0_47 = arith.constant 0 : index
    %46 = vector.load %arg7[%c0_46, %c0_47] : memref<560x280xf32, #tpu.memory_space<vmem>>, vector<560x280xf32>
    %cst_48 = arith.constant dense<0.000000e+00> : vector<14x280xf32>
    %47 = tpu.matmul %45, %46, %cst_48 {dimension_numbers = #tpu.dot_dimension_numbers<[1], [0], [0], [1], [0, 0, 1, 1], [], []>} : vector<14x560xf32>, vector<560x280xf32>, vector<14x280xf32> -> vector<14x280xf32>
    %c0_49 = arith.constant 0 : index
    %c0_50 = arith.constant 0 : index
    %48 = vector.load %arg8[%c0_49, %c0_50] : memref<560x280xf32, #tpu.memory_space<vmem>>, vector<560x280xf32>
    %cst_51 = arith.constant dense<0.000000e+00> : vector<14x280xf32>
    %49 = tpu.matmul %45, %48, %cst_51 {dimension_numbers = #tpu.dot_dimension_numbers<[1], [0], [0], [1], [0, 0, 1, 1], [], []>} : vector<14x560xf32>, vector<560x280xf32>, vector<14x280xf32> -> vector<14x280xf32>
    %50 = arith.maximumf %47, %49 : vector<14x280xf32>
    %c0_52 = arith.constant 0 : index
    %c0_53 = arith.constant 0 : index
    %c0_54 = arith.constant 0 : index
    %51 = vector.load %arg9[%c0_52, %c0_53, %c0_54] : memref<5x10x14xf32, #tpu.memory_space<vmem>>, vector<1x10x14xf32>
    %52 = vector.shape_cast %51 : vector<1x10x14xf32> to vector<10x14xf32>
    %cst_55 = arith.constant dense<0.000000e+00> : vector<10x280xf32>
    %53 = tpu.matmul %52, %50, %cst_55 {dimension_numbers = #tpu.dot_dimension_numbers<[1], [0], [0], [1], [0, 0, 1, 1], [], []>} : vector<10x14xf32>, vector<14x280xf32>, vector<10x280xf32> -> vector<10x280xf32>
    %c0_56 = arith.constant 0 : index
    %c0_57 = arith.constant 0 : index
    %c0_58 = arith.constant 0 : index
    %54 = vector.load %arg10[%c0_56, %c0_57, %c0_58] : memref<5x280x500xf32, #tpu.memory_space<vmem>>, vector<1x280x500xf32>
    %55 = vector.shape_cast %54 : vector<1x280x500xf32> to vector<280x500xf32>
    %cst_59 = arith.constant dense<0.000000e+00> : vector<10x500xf32>
    %56 = tpu.matmul %53, %55, %cst_59 {dimension_numbers = #tpu.dot_dimension_numbers<[1], [0], [0], [1], [0, 0, 1, 1], [], []>} : vector<10x280xf32>, vector<280x500xf32>, vector<10x500xf32> -> vector<10x500xf32>
    %c1_60 = arith.constant 1 : index
    %c0_61 = arith.constant 0 : index
    %c0_62 = arith.constant 0 : index
    %57 = vector.load %arg9[%c1_60, %c0_61, %c0_62] : memref<5x10x14xf32, #tpu.memory_space<vmem>>, vector<1x10x14xf32>
    %58 = vector.shape_cast %57 : vector<1x10x14xf32> to vector<10x14xf32>
    %cst_63 = arith.constant dense<0.000000e+00> : vector<10x280xf32>
    %59 = tpu.matmul %58, %50, %cst_63 {dimension_numbers = #tpu.dot_dimension_numbers<[1], [0], [0], [1], [0, 0, 1, 1], [], []>} : vector<10x14xf32>, vector<14x280xf32>, vector<10x280xf32> -> vector<10x280xf32>
    %c1_64 = arith.constant 1 : index
    %c0_65 = arith.constant 0 : index
    %c0_66 = arith.constant 0 : index
    %60 = vector.load %arg10[%c1_64, %c0_65, %c0_66] : memref<5x280x500xf32, #tpu.memory_space<vmem>>, vector<1x280x500xf32>
    %61 = vector.shape_cast %60 : vector<1x280x500xf32> to vector<280x500xf32>
    %cst_67 = arith.constant dense<0.000000e+00> : vector<10x500xf32>
    %62 = tpu.matmul %59, %61, %cst_67 {dimension_numbers = #tpu.dot_dimension_numbers<[1], [0], [0], [1], [0, 0, 1, 1], [], []>} : vector<10x280xf32>, vector<280x500xf32>, vector<10x500xf32> -> vector<10x500xf32>
    %63 = arith.addf %56, %62 : vector<10x500xf32>
    %c2_68 = arith.constant 2 : index
    %c0_69 = arith.constant 0 : index
    %c0_70 = arith.constant 0 : index
    %64 = vector.load %arg9[%c2_68, %c0_69, %c0_70] : memref<5x10x14xf32, #tpu.memory_space<vmem>>, vector<1x10x14xf32>
    %65 = vector.shape_cast %64 : vector<1x10x14xf32> to vector<10x14xf32>
    %cst_71 = arith.constant dense<0.000000e+00> : vector<10x280xf32>
    %66 = tpu.matmul %65, %50, %cst_71 {dimension_numbers = #tpu.dot_dimension_numbers<[1], [0], [0], [1], [0, 0, 1, 1], [], []>} : vector<10x14xf32>, vector<14x280xf32>, vector<10x280xf32> -> vector<10x280xf32>
    %c2_72 = arith.constant 2 : index
    %c0_73 = arith.constant 0 : index
    %c0_74 = arith.constant 0 : index
    %67 = vector.load %arg10[%c2_72, %c0_73, %c0_74] : memref<5x280x500xf32, #tpu.memory_space<vmem>>, vector<1x280x500xf32>
    %68 = vector.shape_cast %67 : vector<1x280x500xf32> to vector<280x500xf32>
    %cst_75 = arith.constant dense<0.000000e+00> : vector<10x500xf32>
    %69 = tpu.matmul %66, %68, %cst_75 {dimension_numbers = #tpu.dot_dimension_numbers<[1], [0], [0], [1], [0, 0, 1, 1], [], []>} : vector<10x280xf32>, vector<280x500xf32>, vector<10x500xf32> -> vector<10x500xf32>
    %70 = arith.addf %63, %69 : vector<10x500xf32>
    %c3_76 = arith.constant 3 : index
    %c0_77 = arith.constant 0 : index
    %c0_78 = arith.constant 0 : index
    %71 = vector.load %arg9[%c3_76, %c0_77, %c0_78] : memref<5x10x14xf32, #tpu.memory_space<vmem>>, vector<1x10x14xf32>
    %72 = vector.shape_cast %71 : vector<1x10x14xf32> to vector<10x14xf32>
    %cst_79 = arith.constant dense<0.000000e+00> : vector<10x280xf32>
    %73 = tpu.matmul %72, %50, %cst_79 {dimension_numbers = #tpu.dot_dimension_numbers<[1], [0], [0], [1], [0, 0, 1, 1], [], []>} : vector<10x14xf32>, vector<14x280xf32>, vector<10x280xf32> -> vector<10x280xf32>
    %c3_80 = arith.constant 3 : index
    %c0_81 = arith.constant 0 : index
    %c0_82 = arith.constant 0 : index
    %74 = vector.load %arg10[%c3_80, %c0_81, %c0_82] : memref<5x280x500xf32, #tpu.memory_space<vmem>>, vector<1x280x500xf32>
    %75 = vector.shape_cast %74 : vector<1x280x500xf32> to vector<280x500xf32>
    %cst_83 = arith.constant dense<0.000000e+00> : vector<10x500xf32>
    %76 = tpu.matmul %73, %75, %cst_83 {dimension_numbers = #tpu.dot_dimension_numbers<[1], [0], [0], [1], [0, 0, 1, 1], [], []>} : vector<10x280xf32>, vector<280x500xf32>, vector<10x500xf32> -> vector<10x500xf32>
    %77 = arith.addf %70, %76 : vector<10x500xf32>
    %c4_84 = arith.constant 4 : index
    %c0_85 = arith.constant 0 : index
    %c0_86 = arith.constant 0 : index
    %78 = vector.load %arg9[%c4_84, %c0_85, %c0_86] : memref<5x10x14xf32, #tpu.memory_space<vmem>>, vector<1x10x14xf32>
    %79 = vector.shape_cast %78 : vector<1x10x14xf32> to vector<10x14xf32>
    %cst_87 = arith.constant dense<0.000000e+00> : vector<10x280xf32>
    %80 = tpu.matmul %79, %50, %cst_87 {dimension_numbers = #tpu.dot_dimension_numbers<[1], [0], [0], [1], [0, 0, 1, 1], [], []>} : vector<10x14xf32>, vector<14x280xf32>, vector<10x280xf32> -> vector<10x280xf32>
    %c4_88 = arith.constant 4 : index
    %c0_89 = arith.constant 0 : index
    %c0_90 = arith.constant 0 : index
    %81 = vector.load %arg10[%c4_88, %c0_89, %c0_90] : memref<5x280x500xf32, #tpu.memory_space<vmem>>, vector<1x280x500xf32>
    %82 = vector.shape_cast %81 : vector<1x280x500xf32> to vector<280x500xf32>
    %cst_91 = arith.constant dense<0.000000e+00> : vector<10x500xf32>
    %83 = tpu.matmul %80, %82, %cst_91 {dimension_numbers = #tpu.dot_dimension_numbers<[1], [0], [0], [1], [0, 0, 1, 1], [], []>} : vector<10x280xf32>, vector<280x500xf32>, vector<10x500xf32> -> vector<10x500xf32>
    %84 = arith.addf %77, %83 : vector<10x500xf32>
    %c0_92 = arith.constant 0 : index
    %c0_93 = arith.constant 0 : index
    %85 = vector.load %arg11[%c0_92, %c0_93] : memref<1x500xf32, #tpu.memory_space<vmem>>, vector<1x500xf32>
    %86 = vector.broadcast %85 : vector<1x500xf32> to vector<10x500xf32>
    %87 = arith.addf %84, %86 : vector<10x500xf32>
    %cst_94 = arith.constant 0.000000e+00 : f32
    %88 = vector.broadcast %cst_94 : f32 to vector<10x500xf32>
    %89 = arith.maximumf %87, %88 : vector<10x500xf32>
    %c0_95 = arith.constant 0 : index
    %c0_96 = arith.constant 0 : index
    %90 = vector.load %arg12[%c0_95, %c0_96] : memref<5x10xf32, #tpu.memory_space<vmem>>, vector<5x10xf32>
    %cst_97 = arith.constant dense<0.000000e+00> : vector<5x500xf32>
    %91 = tpu.matmul %90, %89, %cst_97 {dimension_numbers = #tpu.dot_dimension_numbers<[1], [0], [0], [1], [0, 0, 1, 1], [], []>} : vector<5x10xf32>, vector<10x500xf32>, vector<5x500xf32> -> vector<5x500xf32>
    %c0_98 = arith.constant 0 : index
    %c0_99 = arith.constant 0 : index
    %92 = vector.load %arg13[%c0_98, %c0_99] : memref<5x10xf32, #tpu.memory_space<vmem>>, vector<5x10xf32>
    %cst_100 = arith.constant dense<0.000000e+00> : vector<5x500xf32>
    %93 = tpu.matmul %92, %89, %cst_100 {dimension_numbers = #tpu.dot_dimension_numbers<[1], [0], [0], [1], [0, 0, 1, 1], [], []>} : vector<5x10xf32>, vector<10x500xf32>, vector<5x500xf32> -> vector<5x500xf32>
    %94 = arith.maximumf %91, %93 : vector<5x500xf32>
    %c0_101 = arith.constant 0 : index
    %c0_102 = arith.constant 0 : index
    %95 = vector.load %arg14[%c0_101, %c0_102] : memref<500x250xf32, #tpu.memory_space<vmem>>, vector<500x250xf32>
    %cst_103 = arith.constant dense<0.000000e+00> : vector<5x250xf32>
    %96 = tpu.matmul %94, %95, %cst_103 {dimension_numbers = #tpu.dot_dimension_numbers<[1], [0], [0], [1], [0, 0, 1, 1], [], []>} : vector<5x500xf32>, vector<500x250xf32>, vector<5x250xf32> -> vector<5x250xf32>
    %c0_104 = arith.constant 0 : index
    %c0_105 = arith.constant 0 : index
    %97 = vector.load %arg15[%c0_104, %c0_105] : memref<500x250xf32, #tpu.memory_space<vmem>>, vector<500x250xf32>
    %cst_106 = arith.constant dense<0.000000e+00> : vector<5x250xf32>
    %98 = tpu.matmul %94, %97, %cst_106 {dimension_numbers = #tpu.dot_dimension_numbers<[1], [0], [0], [1], [0, 0, 1, 1], [], []>} : vector<5x500xf32>, vector<500x250xf32>, vector<5x250xf32> -> vector<5x250xf32>
    %99 = arith.maximumf %96, %98 : vector<5x250xf32>
    %c0_107 = arith.constant 0 : index
    %c0_108 = arith.constant 0 : index
    %c0_109 = arith.constant 0 : index
    %100 = vector.load %arg16[%c0_107, %c0_108, %c0_109] : memref<5x1x5xf32, #tpu.memory_space<vmem>>, vector<1x1x5xf32>
    %101 = vector.shape_cast %100 : vector<1x1x5xf32> to vector<1x5xf32>
    %cst_110 = arith.constant dense<0.000000e+00> : vector<1x250xf32>
    %102 = tpu.matmul %101, %99, %cst_110 {dimension_numbers = #tpu.dot_dimension_numbers<[1], [0], [0], [1], [0, 0, 1, 1], [], []>} : vector<1x5xf32>, vector<5x250xf32>, vector<1x250xf32> -> vector<1x250xf32>
    %c0_111 = arith.constant 0 : index
    %c0_112 = arith.constant 0 : index
    %c0_113 = arith.constant 0 : index
    %103 = vector.load %arg17[%c0_111, %c0_112, %c0_113] : memref<5x250x500xf32, #tpu.memory_space<vmem>>, vector<1x250x500xf32>
    %104 = vector.shape_cast %103 : vector<1x250x500xf32> to vector<250x500xf32>
    %cst_114 = arith.constant dense<0.000000e+00> : vector<1x500xf32>
    %105 = tpu.matmul %102, %104, %cst_114 {dimension_numbers = #tpu.dot_dimension_numbers<[1], [0], [0], [1], [0, 0, 1, 1], [], []>} : vector<1x250xf32>, vector<250x500xf32>, vector<1x500xf32> -> vector<1x500xf32>
    %c1_115 = arith.constant 1 : index
    %c0_116 = arith.constant 0 : index
    %c0_117 = arith.constant 0 : index
    %106 = vector.load %arg16[%c1_115, %c0_116, %c0_117] : memref<5x1x5xf32, #tpu.memory_space<vmem>>, vector<1x1x5xf32>
    %107 = vector.shape_cast %106 : vector<1x1x5xf32> to vector<1x5xf32>
    %cst_118 = arith.constant dense<0.000000e+00> : vector<1x250xf32>
    %108 = tpu.matmul %107, %99, %cst_118 {dimension_numbers = #tpu.dot_dimension_numbers<[1], [0], [0], [1], [0, 0, 1, 1], [], []>} : vector<1x5xf32>, vector<5x250xf32>, vector<1x250xf32> -> vector<1x250xf32>
    %c1_119 = arith.constant 1 : index
    %c0_120 = arith.constant 0 : index
    %c0_121 = arith.constant 0 : index
    %109 = vector.load %arg17[%c1_119, %c0_120, %c0_121] : memref<5x250x500xf32, #tpu.memory_space<vmem>>, vector<1x250x500xf32>
    %110 = vector.shape_cast %109 : vector<1x250x500xf32> to vector<250x500xf32>
    %cst_122 = arith.constant dense<0.000000e+00> : vector<1x500xf32>
    %111 = tpu.matmul %108, %110, %cst_122 {dimension_numbers = #tpu.dot_dimension_numbers<[1], [0], [0], [1], [0, 0, 1, 1], [], []>} : vector<1x250xf32>, vector<250x500xf32>, vector<1x500xf32> -> vector<1x500xf32>
    %112 = arith.addf %105, %111 : vector<1x500xf32>
    %c2_123 = arith.constant 2 : index
    %c0_124 = arith.constant 0 : index
    %c0_125 = arith.constant 0 : index
    %113 = vector.load %arg16[%c2_123, %c0_124, %c0_125] : memref<5x1x5xf32, #tpu.memory_space<vmem>>, vector<1x1x5xf32>
    %114 = vector.shape_cast %113 : vector<1x1x5xf32> to vector<1x5xf32>
    %cst_126 = arith.constant dense<0.000000e+00> : vector<1x250xf32>
    %115 = tpu.matmul %114, %99, %cst_126 {dimension_numbers = #tpu.dot_dimension_numbers<[1], [0], [0], [1], [0, 0, 1, 1], [], []>} : vector<1x5xf32>, vector<5x250xf32>, vector<1x250xf32> -> vector<1x250xf32>
    %c2_127 = arith.constant 2 : index
    %c0_128 = arith.constant 0 : index
    %c0_129 = arith.constant 0 : index
    %116 = vector.load %arg17[%c2_127, %c0_128, %c0_129] : memref<5x250x500xf32, #tpu.memory_space<vmem>>, vector<1x250x500xf32>
    %117 = vector.shape_cast %116 : vector<1x250x500xf32> to vector<250x500xf32>
    %cst_130 = arith.constant dense<0.000000e+00> : vector<1x500xf32>
    %118 = tpu.matmul %115, %117, %cst_130 {dimension_numbers = #tpu.dot_dimension_numbers<[1], [0], [0], [1], [0, 0, 1, 1], [], []>} : vector<1x250xf32>, vector<250x500xf32>, vector<1x500xf32> -> vector<1x500xf32>
    %119 = arith.addf %112, %118 : vector<1x500xf32>
    %c3_131 = arith.constant 3 : index
    %c0_132 = arith.constant 0 : index
    %c0_133 = arith.constant 0 : index
    %120 = vector.load %arg16[%c3_131, %c0_132, %c0_133] : memref<5x1x5xf32, #tpu.memory_space<vmem>>, vector<1x1x5xf32>
    %121 = vector.shape_cast %120 : vector<1x1x5xf32> to vector<1x5xf32>
    %cst_134 = arith.constant dense<0.000000e+00> : vector<1x250xf32>
    %122 = tpu.matmul %121, %99, %cst_134 {dimension_numbers = #tpu.dot_dimension_numbers<[1], [0], [0], [1], [0, 0, 1, 1], [], []>} : vector<1x5xf32>, vector<5x250xf32>, vector<1x250xf32> -> vector<1x250xf32>
    %c3_135 = arith.constant 3 : index
    %c0_136 = arith.constant 0 : index
    %c0_137 = arith.constant 0 : index
    %123 = vector.load %arg17[%c3_135, %c0_136, %c0_137] : memref<5x250x500xf32, #tpu.memory_space<vmem>>, vector<1x250x500xf32>
    %124 = vector.shape_cast %123 : vector<1x250x500xf32> to vector<250x500xf32>
    %cst_138 = arith.constant dense<0.000000e+00> : vector<1x500xf32>
    %125 = tpu.matmul %122, %124, %cst_138 {dimension_numbers = #tpu.dot_dimension_numbers<[1], [0], [0], [1], [0, 0, 1, 1], [], []>} : vector<1x250xf32>, vector<250x500xf32>, vector<1x500xf32> -> vector<1x500xf32>
    %126 = arith.addf %119, %125 : vector<1x500xf32>
    %c4_139 = arith.constant 4 : index
    %c0_140 = arith.constant 0 : index
    %c0_141 = arith.constant 0 : index
    %127 = vector.load %arg16[%c4_139, %c0_140, %c0_141] : memref<5x1x5xf32, #tpu.memory_space<vmem>>, vector<1x1x5xf32>
    %128 = vector.shape_cast %127 : vector<1x1x5xf32> to vector<1x5xf32>
    %cst_142 = arith.constant dense<0.000000e+00> : vector<1x250xf32>
    %129 = tpu.matmul %128, %99, %cst_142 {dimension_numbers = #tpu.dot_dimension_numbers<[1], [0], [0], [1], [0, 0, 1, 1], [], []>} : vector<1x5xf32>, vector<5x250xf32>, vector<1x250xf32> -> vector<1x250xf32>
    %c4_143 = arith.constant 4 : index
    %c0_144 = arith.constant 0 : index
    %c0_145 = arith.constant 0 : index
    %130 = vector.load %arg17[%c4_143, %c0_144, %c0_145] : memref<5x250x500xf32, #tpu.memory_space<vmem>>, vector<1x250x500xf32>
    %131 = vector.shape_cast %130 : vector<1x250x500xf32> to vector<250x500xf32>
    %cst_146 = arith.constant dense<0.000000e+00> : vector<1x500xf32>
    %132 = tpu.matmul %129, %131, %cst_146 {dimension_numbers = #tpu.dot_dimension_numbers<[1], [0], [0], [1], [0, 0, 1, 1], [], []>} : vector<1x250xf32>, vector<250x500xf32>, vector<1x500xf32> -> vector<1x500xf32>
    %133 = arith.addf %126, %132 : vector<1x500xf32>
    %c0_147 = arith.constant 0 : index
    %c0_148 = arith.constant 0 : index
    %134 = vector.load %arg18[%c0_147, %c0_148] : memref<1x500xf32, #tpu.memory_space<vmem>>, vector<1x500xf32>
    %135 = arith.addf %133, %134 : vector<1x500xf32>
    %cst_149 = arith.constant 0.000000e+00 : f32
    %136 = vector.broadcast %cst_149 : f32 to vector<1x500xf32>
    %137 = arith.maximumf %135, %136 : vector<1x500xf32>
    %c0_150 = arith.constant 0 : index
    %c0_151 = arith.constant 0 : index
    %138 = vector.load %arg19[%c0_150, %c0_151] : memref<500x128xf32, #tpu.memory_space<vmem>>, vector<500x128xf32>
    %cst_152 = arith.constant dense<0.000000e+00> : vector<1x128xf32>
    %139 = tpu.matmul %137, %138, %cst_152 {dimension_numbers = #tpu.dot_dimension_numbers<[1], [0], [0], [1], [0, 0, 1, 1], [], []>} : vector<1x500xf32>, vector<500x128xf32>, vector<1x128xf32> -> vector<1x128xf32>
    %c0_153 = arith.constant 0 : index
    %c0_154 = arith.constant 0 : index
    %140 = vector.load %arg20[%c0_153, %c0_154] : memref<1x128xf32, #tpu.memory_space<vmem>>, vector<1x128xf32>
    %141 = arith.addf %139, %140 : vector<1x128xf32>
    %cst_155 = arith.constant dense<0xFF800000> : vector<1xf32>
    %142 = vector.multi_reduction <maximumf>, %141, %cst_155 [1] : vector<1x128xf32> to vector<1xf32>
    %143 = vector.shape_cast %142 : vector<1xf32> to vector<1x1xf32>
    %144 = vector.broadcast %143 : vector<1x1xf32> to vector<1x128xf32>
    %145 = arith.subf %141, %144 : vector<1x128xf32>
    %146 = math.exp %145 : vector<1x128xf32>
    %cst_156 = arith.constant dense<0.000000e+00> : vector<1xf32>
    %147 = vector.multi_reduction <add>, %146, %cst_156 [1] : vector<1x128xf32> to vector<1xf32>
    %148 = vector.shape_cast %147 : vector<1xf32> to vector<1x1xf32>
    %149 = math.log %148 : vector<1x1xf32>
    %150 = vector.broadcast %149 : vector<1x1xf32> to vector<1x128xf32>
    %151 = arith.subf %145, %150 : vector<1x128xf32>
    %c0_157 = arith.constant 0 : index
    %c0_158 = arith.constant 0 : index
    %c0_159 = arith.constant 0 : index
    %152 = vector.load %arg21[%c0_157, %c0_158, %c0_159] : memref<1x1x128xf32, #tpu.memory_space<vmem>>, vector<1x1x128xf32>
    %153 = vector.shape_cast %152 : vector<1x1x128xf32> to vector<1x128xf32>
    %154 = vector.shape_cast %151 : vector<1x128xf32> to vector<1x1x128xf32>
    tpu.vector_store %arg21[%c0_157, %c0_158, %c0_159], %154 {strides = array<i32>} : memref<1x1x128xf32, #tpu.memory_space<vmem>>, vector<1x1x128xf32>,
    return
  }
  func.func @transform_0(%arg0: i32) -> (i32, i32, i32) {
    %c0_i32 = arith.constant 0 : i32
    %c0_i32_0 = arith.constant 0 : i32
    %c0_i32_1 = arith.constant 0 : i32
    return %arg0, %c0_i32, %c0_i32_0 : i32, i32, i32
  }
  func.func @transform_1(%arg0: i32) -> (i32, i32, i32) {
    %c0_i32 = arith.constant 0 : i32
    %c0_i32_0 = arith.constant 0 : i32
    %c0_i32_1 = arith.constant 0 : i32
    %c0_i32_2 = arith.constant 0 : i32
    return %c0_i32, %c0_i32_0, %c0_i32_1 : i32, i32, i32
  }
  func.func @transform_2(%arg0: i32) -> (i32, i32, i32) {
    %c0_i32 = arith.constant 0 : i32
    %c0_i32_0 = arith.constant 0 : i32
    %c0_i32_1 = arith.constant 0 : i32
    %c0_i32_2 = arith.constant 0 : i32
    return %c0_i32, %c0_i32_0, %c0_i32_1 : i32, i32, i32
  }
  func.func @transform_3(%arg0: i32) -> (i32, i32) {
    %c0_i32 = arith.constant 0 : i32
    %c0_i32_0 = arith.constant 0 : i32
    %c0_i32_1 = arith.constant 0 : i32
    return %c0_i32, %c0_i32_0 : i32, i32
  }
  func.func @transform_4(%arg0: i32) -> (i32, i32) {
    %c0_i32 = arith.constant 0 : i32
    %c0_i32_0 = arith.constant 0 : i32
    %c0_i32_1 = arith.constant 0 : i32
    return %c0_i32, %c0_i32_0 : i32, i32
  }
  func.func @transform_5(%arg0: i32) -> (i32, i32) {
    %c0_i32 = arith.constant 0 : i32
    %c0_i32_0 = arith.constant 0 : i32
    %c0_i32_1 = arith.constant 0 : i32
    return %c0_i32, %c0_i32_0 : i32, i32
  }
  func.func @transform_6(%arg0: i32) -> (i32, i32) {
    %c0_i32 = arith.constant 0 : i32
    %c0_i32_0 = arith.constant 0 : i32
    %c0_i32_1 = arith.constant 0 : i32
    return %c0_i32, %c0_i32_0 : i32, i32
  }
  func.func @transform_7(%arg0: i32) -> (i32, i32) {
    %c0_i32 = arith.constant 0 : i32
    %c0_i32_0 = arith.constant 0 : i32
    %c0_i32_1 = arith.constant 0 : i32
    return %c0_i32, %c0_i32_0 : i32, i32
  }
  func.func @transform_8(%arg0: i32) -> (i32, i32, i32) {
    %c0_i32 = arith.constant 0 : i32
    %c0_i32_0 = arith.constant 0 : i32
    %c0_i32_1 = arith.constant 0 : i32
    %c0_i32_2 = arith.constant 0 : i32
    return %c0_i32, %c0_i32_0, %c0_i32_1 : i32, i32, i32
  }
  func.func @transform_9(%arg0: i32) -> (i32, i32, i32) {
    %c0_i32 = arith.constant 0 : i32
    %c0_i32_0 = arith.constant 0 : i32
    %c0_i32_1 = arith.constant 0 : i32
    %c0_i32_2 = arith.constant 0 : i32
    return %c0_i32, %c0_i32_0, %c0_i32_1 : i32, i32, i32
  }
  func.func @transform_10(%arg0: i32) -> (i32, i32) {
    %c0_i32 = arith.constant 0 : i32
    %c0_i32_0 = arith.constant 0 : i32
    %c0_i32_1 = arith.constant 0 : i32
    return %c0_i32, %c0_i32_0 : i32, i32
  }
  func.func @transform_11(%arg0: i32) -> (i32, i32) {
    %c0_i32 = arith.constant 0 : i32
    %c0_i32_0 = arith.constant 0 : i32
    %c0_i32_1 = arith.constant 0 : i32
    return %c0_i32, %c0_i32_0 : i32, i32
  }
  func.func @transform_12(%arg0: i32) -> (i32, i32) {
    %c0_i32 = arith.constant 0 : i32
    %c0_i32_0 = arith.constant 0 : i32
    %c0_i32_1 = arith.constant 0 : i32
    return %c0_i32, %c0_i32_0 : i32, i32
  }
  func.func @transform_13(%arg0: i32) -> (i32, i32) {
    %c0_i32 = arith.constant 0 : i32
    %c0_i32_0 = arith.constant 0 : i32
    %c0_i32_1 = arith.constant 0 : i32
    return %c0_i32, %c0_i32_0 : i32, i32
  }
  func.func @transform_14(%arg0: i32) -> (i32, i32) {
    %c0_i32 = arith.constant 0 : i32
    %c0_i32_0 = arith.constant 0 : i32
    %c0_i32_1 = arith.constant 0 : i32
    return %c0_i32, %c0_i32_0 : i32, i32
  }
  func.func @transform_15(%arg0: i32) -> (i32, i32, i32) {
    %c0_i32 = arith.constant 0 : i32
    %c0_i32_0 = arith.constant 0 : i32
    %c0_i32_1 = arith.constant 0 : i32
    %c0_i32_2 = arith.constant 0 : i32
    return %c0_i32, %c0_i32_0, %c0_i32_1 : i32, i32, i32
  }
  func.func @transform_16(%arg0: i32) -> (i32, i32, i32) {
    %c0_i32 = arith.constant 0 : i32
    %c0_i32_0 = arith.constant 0 : i32
    %c0_i32_1 = arith.constant 0 : i32
    %c0_i32_2 = arith.constant 0 : i32
    return %c0_i32, %c0_i32_0, %c0_i32_1 : i32, i32, i32
  }
  func.func @transform_17(%arg0: i32) -> (i32, i32) {
    %c0_i32 = arith.constant 0 : i32
    %c0_i32_0 = arith.constant 0 : i32
    %c0_i32_1 = arith.constant 0 : i32
    return %c0_i32, %c0_i32_0 : i32, i32
  }
  func.func @transform_18(%arg0: i32) -> (i32, i32) {
    %c0_i32 = arith.constant 0 : i32
    %c0_i32_0 = arith.constant 0 : i32
    %c0_i32_1 = arith.constant 0 : i32
    return %c0_i32, %c0_i32_0 : i32, i32
  }
  func.func @transform_19(%arg0: i32) -> (i32, i32) {
    %c0_i32 = arith.constant 0 : i32
    %c0_i32_0 = arith.constant 0 : i32
    %c0_i32_1 = arith.constant 0 : i32
    return %c0_i32, %c0_i32_0 : i32, i32
  }
  func.func @transform_20(%arg0: i32) -> (i32, i32, i32) {
    %c0_i32 = arith.constant 0 : i32
    %c0_i32_0 = arith.constant 0 : i32
    %c0_i32_1 = arith.constant 0 : i32
    return %arg0, %c0_i32, %c0_i32_0 : i32, i32, i32
  }
}

</mosaic_0001>

<bundles_post_ra>
// kernel: net_forward.1
= control target key start
LH: loop header
LB: loop body
LE: loop exit
PB: predicated region body
PF: predicated region fallthrough
CT: control target
= control target key end

     0   :  { %s19626_s0 = inlined_call_operand.vmem [shape: f32[2,32,96], index: 0, kind: input, shape index: {}]   ;;  %s19627_s1 = inlined_call_operand.vmem [shape: f32[5,28,32], index: 1, kind: input, shape index: {}]   ;;  %s19628_s2 = inlined_call_operand.vmem [shape: f32[5,96,560], index: 2, kind: input, shape index: {}]   ;;  %s19629_s3 = inlined_call_operand.vmem [shape: f32[1,560], index: 3, kind: input, shape index: {}]   ;;  %s19630_s4 = inlined_call_operand.vmem [shape: f32[14,28], index: 4, kind: input, shape index: {}]   ;;  %s19631_s5 = inlined_call_operand.vmem [shape: f32[14,28], index: 5, kind: input, shape index: {}]   ;;  %s19632_s6 = inlined_call_operand.vmem [shape: f32[560,280], index: 6, kind: input, shape index: {}]   ;;  %s19633_s7 = inlined_call_operand.vmem [shape: f32[560,280], index: 7, kind: input, shape index: {}]   ;;  %s19634_s8 = inlined_call_operand.vmem [shape: f32[5,10,14], index: 8, kind: input, shape index: {}]   ;;  %s19635_s9 = inlined_call_operand.vmem [shape: f32[5,280,500], index: 9, kind: input, shape index: {}]   ;;  %s19636_s10 = inlined_call_operand.vmem [shape: f32[1,500], index: 10, kind: input, shape index: {}]   ;;  %s19637_s11 = inlined_call_operand.vmem [shape: f32[5,10], index: 11, kind: input, shape index: {}]   ;;  %s19638_s12 = inlined_call_operand.vmem [shape: f32[5,10], index: 12, kind: input, shape index: {}]   ;;  %s19639_s13 = inlined_call_operand.vmem [shape: f32[500,250], index: 13, kind: input, shape index: {}]   ;;  %s19640_s14 = inlined_call_operand.vmem [shape: f32[500,250], index: 14, kind: input, shape index: {}]   ;;  %s19641_s15 = inlined_call_operand.vmem [shape: f32[5,1,5], index: 15, kind: input, shape index: {}]   ;;  %s19642_s16 = inlined_call_operand.vmem [shape: f32[5,250,500], index: 16, kind: input, shape index: {}]   ;;  %s19643_s17 = inlined_call_operand.vmem [shape: f32[1,500], index: 17, kind: input, shape index: {}]   ;;  %s19644_s18 = inlined_call_operand.vmem [shape: f32[500,128], index: 18, kind: input, shape index: {}]   ;;  %s19645_s19 = inlined_call_operand.vmem [shape: f32[1,128], index: 19, kind: input, shape index: {}]   ;;  %s19646_s20 = inlined_call_operand.hbm [shape: f32[2,1,128], index: 20, kind: output, shape index: {}]  }
   0x1   :  { %19659 = sst [smem:[#allocation58_spill]] %s19626_s0 }
   0x2   :  { %19660 = sst [smem:[#allocation59_spill]] %s19627_s1 }
   0x3   :  { %19661 = sst [smem:[#allocation60_spill]] %s19628_s2 }
   0x4   :  { %19662 = sst [smem:[#allocation61_spill]] %s19629_s3 }
   0x5   :  { %19663 = sst [smem:[#allocation62_spill]] %s19630_s4 }
   0x6   :  { %19664 = sst [smem:[#allocation63_spill]] %s19631_s5 }
   0x7   :  { %19665 = sst [smem:[#allocation64_spill]] %s19632_s6 }
   0x8   :  { %19666 = sst [smem:[#allocation65_spill]] %s19633_s7 }
   0x9   :  { %25 = vsyncpa [#allocation3], 0 }
   0xa   :  { %27 = vsyncpa [#allocation3 + $0x1], 0  ;;  %s10712_s1 = smov 0   ;;  %s10714_s22 = smov 0  }
   0xb   :  { %s10716_s23 = smov 0   ;;  %s10718_s24 = smov 0  }
   0xc LB: > { %19667 = sst [smem:[#allocation5_spill]] %s10593_s1  ;;  %s10733_s2 = sadd.s32 4294967295, %s10605_s24   ;;  %s10605_s24 = sphi %s10718_s24, %s19841_s24   ;;  %s10601_s23 = sphi %s10716_s23, %s19843_s23   ;;  %s10597_s22 = sphi %s10714_s22, %s19845_s22   ;;  %s10593_s1 = sphi %s10712_s1, %s19844_s1  }
   0xd   : > { %19668 = sst [smem:[#allocation6_spill]] %s10601_s23  ;;  %s8814_s25 = sadd.s32 4294967294, %s10605_s24  }
   0xe   : > { %19669 = sst [smem:[#allocation7_spill]] %s10605_s24  ;;  %s10737_s3 = sadd.s32 1, %s10605_s24  }
   0xf   : > { %19670 = sst [smem:[#allocation8_spill]] %s10737_s3  ;;  %s465_s26 = sadd.s32 1, %s10601_s23 }
  0x10   : > { %s462_s27 = ssub.s32 %s10605_s24, %s10737_s3  ;;  %p475_p0 = scmp.ne.s32.totalorder %s10601_s23, %s10597_s22 }
  0x11   : > { %p463_p1 = scmp.eq.s32.totalorder %s462_s27, 0  ;;  %p476_p2 = scmp.eq.s32.totalorder %s10733_s2, 1 }
  0x12   : > { %p481_p3 = scmp.ne.s32.totalorder %s10597_s22, %s10593_s1  ;;  %p482_p4 = scmp.eq.s32.totalorder %s8814_s25, 1 }
  0x13   : > { %s10748_s28 = scalar_select %p463_p1, %s10601_s23, %s465_s26  }
  0x14   : > { %p10750_p5 = por %p476_p2, %p475_p0  ;;  %p10754_p6 = por %p482_p4, %p481_p3 }
  0x15   : > { %19671 = sst [smem:[#allocation9_spill]] %s10748_s28  ;;  %p8817_p7 = scmp.ge.s32.totalorder %s10605_s24, 1 }
  0x16   : > { %s19672_s4 = scalar_select %p10750_p5, 1, 0 }
  0x17   : > { %s19674_s29 = scalar_select %p10754_p6, 1, 0 }
  0x18   : > { %19673 = sst [smem:[#allocation10_spill]] %s19672_s4  ;;  %p565_p8 = scmp.lt.s32.totalorder %s10605_s24, 3 }
  0x19   : > { %19675 = sst [smem:[#allocation11_spill]] %s19674_s29 }
  0x1a   : > { %p566_p9 = pnand %p8817_p7, %p565_p8 }
  0x1c   : > { %569 = sbr.rel (%p566_p9) target bundleno = 3767 (0xeb7), region = 100 }
  0x21   : > { %p622_p10 = scmp.lt.s32.totalorder %s10733_s2, 1  ;;  %s19676_s26 = sld [smem:[#allocation58_spill]]  ;;  %vm635_vm0 = vcmask 261120   ;;  %vm844_vm1 = vcmask 785408   ;;  %vm2072_vm2 = vcmask 1043456   ;;  %vm2065_vm3 = vcmask 228352  }
  0x22   : > { %s19677_s23 = sld [smem:[#allocation60_spill]]  ;;  %vm2546_vm4 = vcmask 392192   ;;  %vm3468_vm5 = vcmask 1045504   ;;  %vm3461_vm6 = vcmask 113664   ;;  %vm3906_vm7 = vcmask 195584  }
  0x23   : > { %s623_s30 = scalar_select %p622_p10, %s10733_s2, 1  ;;  %vm6029_vm8 = vcmask 1041408   ;;  %vm6025_vm9 = vcmask 80896   ;;  %vm6336_vm10 = vcmask 949248   ;;  %vm6805_vm11 = vcmask 1044480  }
  0x24   : > { %s19713_s4 = sld [smem:[#allocation61_spill]]  ;;  %vm6801_vm12 = vcmask 39936   ;;  %vm7154_vm13 = vcmask 998400   ;;  %vm8732_vm14 = vcmask 1040384  }
  0x25   : > { %s10495_s0 = sshll.u32 %s623_s30, 5  ;;  %s19679_s30 = sld [smem:[#allocation59_spill]] }
  0x26   : > { %s19725_s21 = sld [smem:[#allocation62_spill]] }
  0x27   : > { %s10765_s27 = scalar_lea.vmem %s19676_s26, %s10495_s0  ;;  %s19738_s5 = sld [smem:[#allocation63_spill]] }
  0x28   : > { %v10768_v0 = vld [vmem:[%s10765_s27 + $0x18] sm:$0xff]  ;;  %v10771_v1 = vld [vmem:[%s10765_s27 + $0x10] sm:$0xff]  ;;  %v10776_v2 = vld [vmem:[%s10765_s27 + $0x8] sm:$0xff]  ;;  %s19678_s3 = smov %s19677_s23  ;;  %s19743_s6 = sld [smem:[#allocation64_spill]] }
  0x29   : > { %766 = vmatpush.msra.mxu1 %v10768_v0  ;;  %660 = vmatpush.msra.mxu0 %v10768_v0  ;;  %v8887_v3 = vld [vmem:[%s19677_s23 + $0x398] sm:$0xff]  ;;  %v8888_v4 = vld [vmem:[%s19678_s3 + $0x3a0] sm:$0xff]  ;;  %v8882_v6 = vld [vmem:[%s19678_s3 + $0x370] sm:$0xff]  ;;  %s19744_s7 = sld [smem:[#allocation65_spill]]  ;;  %s8755_s26 = scalar_lea.hbm %s19646_s20, %s10733_s2 }
  0x2a   : > { %v10787_v5 = vld [vmem:[%s10765_s27] sm:$0xff]  ;;  %861 = vmatpush.msra.mxu2 %v8887_v3  ;;  %890 = vmatpush.msra.mxu3 %v8888_v4  ;;  %v8883_v7 = vld [vmem:[%s19678_s3 + $0x378] sm:$0xff]  ;;  %v8889_v10 = vld [vmem:[%s19678_s3 + $0x3a8] sm:$0xff]  ;;  %s8759_s29 = sshll.u32 %s8755_s26, 4  ;;  %s10563_s2 = scalar_lea.hbm %s19646_s20, 2  ;;  %s8760_s29 = int_to_ptr.hbm [resolvable:$true] %s8759_s29 }
  0x2b   : > { %767 = vmatpush.msra.mxu1 %v10771_v1  ;;  %661 = vmatpush.msra.mxu0 %v10771_v1  ;;  %v8824_v8 = vld [vmem:[%s19679_s30 + $0x20] sm:$0xff]  ;;  %v8890_v11 = vld [vmem:[%s19678_s3 + $0x3b0] sm:$0xff]  ;;  %v8877_v12 = vld [vmem:[%s19678_s3 + $0x348] sm:$0xff] }
  0x2c   : > { %v631_v9 = vld [vmem:[%s19679_s30] sm:$0xff]  ;;  %862 = vmatpush.msra.mxu2 %v8882_v6  ;;  %891 = vmatpush.msra.mxu3 %v8883_v7  ;;  %v8878_v13 = vld [vmem:[%s19678_s3 + $0x350] sm:$0xff]  ;;  %v8885_v15 = vld [vmem:[%s19678_s3 + $0x388] sm:$0xff] }
  0x2d   : > { %768 = vmatpush.msra.mxu1 %v10776_v2  ;;  %662 = vmatpush.msra.mxu0 %v10776_v2  ;;  %v8884_v14 = vld [vmem:[%s19678_s3 + $0x380] sm:$0xff]  ;;  %v8873_v17 = vld [vmem:[%s19678_s3 + $0x328] sm:$0xff]  ;;  %v8879_v18 = vld [vmem:[%s19678_s3 + $0x358] sm:$0xff] }
  0x2e   : > { %v8872_v16 = vld [vmem:[%s19678_s3 + $0x320] sm:$0xff]  ;;  %863 = vmatpush.msra.mxu2 %v8877_v12  ;;  %892 = vmatpush.msra.mxu3 %v8878_v13  ;;  %v8867_v20 = vld [vmem:[%s19678_s3 + $0x2f8] sm:$0xff]  ;;  %v8874_v22 = vld [vmem:[%s19678_s3 + $0x330] sm:$0xff] }
  0x2f   : > { %769 = vmatpush.msra.mxu1 %v10787_v5  ;;  %663 = vmatpush.msra.mxu0 %v10787_v5  ;;  %v8880_v19 = vld [vmem:[%s19678_s3 + $0x360] sm:$0xff]  ;;  %v8875_v23 = vld [vmem:[%s19678_s3 + $0x338] sm:$0xff]  ;;  %v8825_v24 = vld [vmem:[%s19679_s30 + $0x28] sm:$0xff] }
  0x30   : > { %8828 = vmatmul.msk.f32.vlgmr.msra.gmra.mxu1 %vm635_vm0, %v8824_v8  ;;  %8820 = vmatmul.msk.f32.vlgmr.msra.gmra.mxu0 %vm635_vm0, %v631_v9  ;;  %v8868_v21 = vld [vmem:[%s19678_s3 + $0x300] sm:$0xff]  ;;  %v632_v25 = vld [vmem:[%s19679_s30 + $0x8] sm:$0xff]  ;;  %v8870_v27 = vld [vmem:[%s19678_s3 + $0x310] sm:$0xff] }
  0x31   : > { %919 = vmatpush.msrb.mxu0 %v8889_v10  ;;  %948 = vmatpush.msrb.mxu1 %v8890_v11  ;;  %v8869_v26 = vld [vmem:[%s19678_s3 + $0x308] sm:$0xff]  ;;  %v8862_v28 = vld [vmem:[%s19678_s3 + $0x2d0] sm:$0xff]  ;;  %v8863_v29 = vld [vmem:[%s19678_s3 + $0x2d8] sm:$0xff] }
  0x32   : > { %864 = vmatpush.msra.mxu2 %v8872_v16  ;;  %893 = vmatpush.msra.mxu3 %v8873_v17  ;;  %v8864_v30 = vld [vmem:[%s19678_s3 + $0x2e0] sm:$0xff]  ;;  %v8865_v31 = vld [vmem:[%s19678_s3 + $0x2e8] sm:$0xff]  ;;  %v8858_v33 = vld [vmem:[%s19678_s3 + $0x2b0] sm:$0xff] }
  0x33   : > { %920 = vmatpush.msrb.mxu0 %v8884_v14  ;;  %949 = vmatpush.msrb.mxu1 %v8885_v15  ;;  %v8857_v32 = vld [vmem:[%s19678_s3 + $0x2a8] sm:$0xff]  ;;  %v8859_v34 = vld [vmem:[%s19678_s3 + $0x2b8] sm:$0xff]  ;;  %v8860_v35 = vld [vmem:[%s19678_s3 + $0x2c0] sm:$0xff] }
  0x34   : > { %865 = vmatpush.msra.mxu2 %v8867_v20  ;;  %894 = vmatpush.msra.mxu3 %v8868_v21  ;;  %v8852_v36 = vld [vmem:[%s19678_s3 + $0x280] sm:$0xff]  ;;  %v8853_v37 = vld [vmem:[%s19678_s3 + $0x288] sm:$0xff]  ;;  %v8854_v38 = vld [vmem:[%s19678_s3 + $0x290] sm:$0xff] }
  0x35   : > { %921 = vmatpush.msrb.mxu0 %v8879_v18  ;;  %950 = vmatpush.msrb.mxu1 %v8880_v19  ;;  %v8855_v39 = vld [vmem:[%s19678_s3 + $0x298] sm:$0xff]  ;;  %v8826_v40 = vld [vmem:[%s19679_s30 + $0x30] sm:$0xff]  ;;  %v8848_v43 = vld [vmem:[%s19678_s3 + $0x260] sm:$0xff] }
  0x36   : > { %866 = vmatpush.msra.mxu2 %v8862_v28  ;;  %895 = vmatpush.msra.mxu3 %v8863_v29  ;;  %v633_v41 = vld [vmem:[%s19679_s30 + $0x10] sm:$0xff]  ;;  %v8847_v42 = vld [vmem:[%s19678_s3 + $0x258] sm:$0xff]  ;;  %v8849_v44 = vld [vmem:[%s19678_s3 + $0x268] sm:$0xff] }
  0x37   : > { %922 = vmatpush.msrb.mxu0 %v8874_v22  ;;  %951 = vmatpush.msrb.mxu1 %v8875_v23  ;;  %v8850_v45 = vld [vmem:[%s19678_s3 + $0x270] sm:$0xff]  ;;  %v8843_v47 = vld [vmem:[%s19678_s3 + $0x238] sm:$0xff]  ;;  %v8844_v48 = vld [vmem:[%s19678_s3 + $0x240] sm:$0xff] }
  0x38   : > { %8829 = vmatmul.msk.f32.gmra.mxu1 %vm635_vm0, %v8825_v24  ;;  %8821 = vmatmul.msk.f32.gmra.mxu0 %vm635_vm0, %v632_v25  ;;  %v8842_v46 = vld [vmem:[%s19678_s3 + $0x230] sm:$0xff]  ;;  %v8845_v49 = vld [vmem:[%s19678_s3 + $0x248] sm:$0xff]  ;;  %v8839_v52 = vld [vmem:[%s19678_s3 + $0x218] sm:$0xff] }
  0x39   : > { %923 = vmatpush.msrb.mxu0 %v8869_v26  ;;  %952 = vmatpush.msrb.mxu1 %v8870_v27  ;;  %v8837_v50 = vld [vmem:[%s19678_s3 + $0x208] sm:$0xff]  ;;  %v8838_v51 = vld [vmem:[%s19678_s3 + $0x210] sm:$0xff]  ;;  %v8840_v53 = vld [vmem:[%s19678_s3 + $0x220] sm:$0xff] }
  0x3a   : > { %867 = vmatpush.msra.mxu2 %v8857_v32  ;;  %896 = vmatpush.msra.mxu3 %v8858_v33  ;;  %v8827_v54 = vld [vmem:[%s19679_s30 + $0x38] sm:$0xf]  ;;  %v8832_v56 = vld [vmem:[%s19678_s3 + $0x1e0] sm:$0xff]  ;;  %v8833_v57 = vld [vmem:[%s19678_s3 + $0x1e8] sm:$0xff] }
  0x3b   : > { %924 = vmatpush.msrb.mxu0 %v8864_v30  ;;  %953 = vmatpush.msrb.mxu1 %v8865_v31  ;;  %v634_v55 = vld [vmem:[%s19679_s30 + $0x18] sm:$0xf]  ;;  %v8834_v58 = vld [vmem:[%s19678_s3 + $0x1f0] sm:$0xff]  ;;  %v733_v62 = vld [vmem:[%s19678_s3 + $0x1c0] sm:$0xff] }
  0x3c   : > { %868 = vmatpush.msra.mxu2 %v8852_v36  ;;  %897 = vmatpush.msra.mxu3 %v8853_v37  ;;  %v8835_v59 = vld [vmem:[%s19678_s3 + $0x1f8] sm:$0xff]  ;;  %v734_v63 = vld [vmem:[%s19678_s3 + $0x1c8] sm:$0xff]  ;;  %v8886_v3 = vld [vmem:[%s19678_s3 + $0x390] sm:$0xff] }
  0x3d   : > { %925 = vmatpush.msrb.mxu0 %v8859_v34  ;;  %954 = vmatpush.msrb.mxu1 %v8860_v35  ;;  %v8891_v60 = vld [vmem:[%s19678_s3 + $0x3b8] sm:$0xff]  ;;  %v727_v4 = vld [vmem:[%s19678_s3 + $0x190] sm:$0xff]  ;;  %v729_v7 = vld [vmem:[%s19678_s3 + $0x1a0] sm:$0xff] }
  0x3e   : > { %869 = vmatpush.msra.mxu2 %v8847_v42  ;;  %898 = vmatpush.msra.mxu3 %v8848_v43  ;;  %v732_v61 = vld [vmem:[%s19678_s3 + $0x1b8] sm:$0xff]  ;;  %v8881_v8 = vld [vmem:[%s19678_s3 + $0x368] sm:$0xff]  ;;  %v723_v10 = vld [vmem:[%s19678_s3 + $0x170] sm:$0xff] }
  0x3f   : > { %926 = vmatpush.msrb.mxu0 %v8854_v38  ;;  %955 = vmatpush.msrb.mxu1 %v8855_v39  ;;  %v728_v6 = vld [vmem:[%s19678_s3 + $0x198] sm:$0xff]  ;;  %v722_v9 = vld [vmem:[%s19678_s3 + $0x168] sm:$0xff]  ;;  %v8876_v12 = vld [vmem:[%s19678_s3 + $0x340] sm:$0xff] }
  0x40   : > { %8830 = vmatmul.msk.f32.gmra.mxu1 %vm635_vm0, %v8826_v40  ;;  %8822 = vmatmul.msk.f32.gmra.mxu0 %vm635_vm0, %v633_v41  ;;  %v724_v11 = vld [vmem:[%s19678_s3 + $0x178] sm:$0xff]  ;;  %v717_v13 = vld [vmem:[%s19678_s3 + $0x140] sm:$0xff]  ;;  %v718_v14 = vld [vmem:[%s19678_s3 + $0x148] sm:$0xff] }
  0x41   : > { %927 = vmatpush.msrb.mxu0 %v8849_v44  ;;  %956 = vmatpush.msrb.mxu1 %v8850_v45  ;;  %v719_v15 = vld [vmem:[%s19678_s3 + $0x150] sm:$0xff]  ;;  %v8871_v16 = vld [vmem:[%s19678_s3 + $0x318] sm:$0xff]  ;;  %v713_v18 = vld [vmem:[%s19678_s3 + $0x120] sm:$0xff] }
  0x42   : > { %870 = vmatpush.msra.mxu2 %v8842_v46  ;;  %899 = vmatpush.msra.mxu3 %v8843_v47  ;;  %v712_v17 = vld [vmem:[%s19678_s3 + $0x118] sm:$0xff]  ;;  %v714_v19 = vld [vmem:[%s19678_s3 + $0x128] sm:$0xff]  ;;  %v8866_v20 = vld [vmem:[%s19678_s3 + $0x2f0] sm:$0xff] }
  0x43   : > { %928 = vmatpush.msrb.mxu0 %v8844_v48  ;;  %957 = vmatpush.msrb.mxu1 %v8845_v49  ;;  %v707_v21 = vld [vmem:[%s19678_s3 + $0xf0] sm:$0xff]  ;;  %v708_v22 = vld [vmem:[%s19678_s3 + $0xf8] sm:$0xff]  ;;  %v709_v23 = vld [vmem:[%s19678_s3 + $0x100] sm:$0xff] }
  0x44   : > { %871 = vmatpush.msra.mxu2 %v8837_v50  ;;  %900 = vmatpush.msra.mxu3 %v8838_v51  ;;  %v8861_v24 = vld [vmem:[%s19678_s3 + $0x2c8] sm:$0xff]  ;;  %v703_v26 = vld [vmem:[%s19678_s3 + $0xd0] sm:$0xff]  ;;  %v704_v27 = vld [vmem:[%s19678_s3 + $0xd8] sm:$0xff] }
  0x45   : > { %929 = vmatpush.msrb.mxu0 %v8839_v52  ;;  %958 = vmatpush.msrb.mxu1 %v8840_v53  ;;  %v702_v25 = vld [vmem:[%s19678_s3 + $0xc8] sm:$0xff]  ;;  %v8856_v28 = vld [vmem:[%s19678_s3 + $0x2a0] sm:$0xff]  ;;  %v699_v31 = vld [vmem:[%s19678_s3 + $0xb0] sm:$0xff] }
  0x46   : > { %872 = vmatpush.msra.mxu2 %v8832_v56  ;;  %901 = vmatpush.msra.mxu3 %v8833_v57  ;;  %v697_v29 = vld [vmem:[%s19678_s3 + $0xa0] sm:$0xff]  ;;  %v698_v30 = vld [vmem:[%s19678_s3 + $0xa8] sm:$0xff]  ;;  %v8851_v32 = vld [vmem:[%s19678_s3 + $0x278] sm:$0xff] }
  0x47   : > { %930 = vmatpush.msrb.mxu0 %v8834_v58  ;;  %959 = vmatpush.msrb.mxu1 %v8835_v59  ;;  %v692_v33 = vld [vmem:[%s19678_s3 + $0x78] sm:$0xff]  ;;  %v693_v34 = vld [vmem:[%s19678_s3 + $0x80] sm:$0xff]  ;;  %v694_v35 = vld [vmem:[%s19678_s3 + $0x88] sm:$0xff] }
  0x48   : > { %8831 = vmatmul.msk.f32.gmra.mxu1 %vm635_vm0, %v8827_v54  ;;  %8823 = vmatmul.msk.f32.gmra.mxu0 %vm635_vm0, %v634_v55  ;;  %v8846_v36 = vld [vmem:[%s19678_s3 + $0x250] sm:$0xff]  ;;  %v688_v38 = vld [vmem:[%s19678_s3 + $0x58] sm:$0xff]  ;;  %v689_v39 = vld [vmem:[%s19678_s3 + $0x60] sm:$0xff] }
  0x49   : > { %977 = vmatpush.msrb.mxu2 %v8891_v60  ;;  %1018 = vmatpush.msrb.mxu3 %v732_v61  ;;  %v687_v37 = vld [vmem:[%s19678_s3 + $0x50] sm:$0xff]  ;;  %v8841_v40 = vld [vmem:[%s19678_s3 + $0x228] sm:$0xff]  ;;  %v684_v43 = vld [vmem:[%s19678_s3 + $0x38] sm:$0xff] }
  0x4a   : > { %1047 = vmatpush.msra.mxu0 %v733_v62  ;;  %1076 = vmatpush.msra.mxu1 %v734_v63  ;;  %v682_v41 = vld [vmem:[%s19678_s3 + $0x28] sm:$0xff]  ;;  %v683_v42 = vld [vmem:[%s19678_s3 + $0x30] sm:$0xff]  ;;  %v8836_v45 = vld [vmem:[%s19678_s3 + $0x200] sm:$0xff] }
  0x4b   : > { %978 = vmatpush.msrb.mxu2 %v8886_v3  ;;  %1019 = vmatpush.msrb.mxu3 %v727_v4  ;;  %v677_v46 = vld [vmem:[%s19678_s3] sm:$0xff]  ;;  %v678_v47 = vld [vmem:[%s19678_s3 + $0x8] sm:$0xff]  ;;  %v679_v48 = vld [vmem:[%s19678_s3 + $0x10] sm:$0xff] }
  0x4c   : > { %1048 = vmatpush.msra.mxu0 %v728_v6  ;;  %1077 = vmatpush.msra.mxu1 %v729_v7  ;;  %v735_v50 = vld [vmem:[%s19678_s3 + $0x1d0] sm:$0xff]  ;;  %v736_v51 = vld [vmem:[%s19678_s3 + $0x1d8] sm:$0xff]  ;;  %v730_v52 = vld [vmem:[%s19678_s3 + $0x1a8] sm:$0xff] }
  0x4d   : > { %979 = vmatpush.msrb.mxu2 %v8881_v8  ;;  %1020 = vmatpush.msrb.mxu3 %v722_v9  ;;  %v731_v53 = vld [vmem:[%s19678_s3 + $0x1b0] sm:$0xff]  ;;  %v725_v54 = vld [vmem:[%s19678_s3 + $0x180] sm:$0xff]  ;;  %v726_v55 = vld [vmem:[%s19678_s3 + $0x188] sm:$0xff] }
  0x4e   : > { %1049 = vmatpush.msra.mxu0 %v723_v10  ;;  %1078 = vmatpush.msra.mxu1 %v724_v11  ;;  %v720_v57 = vld [vmem:[%s19678_s3 + $0x158] sm:$0xff]  ;;  %v721_v58 = vld [vmem:[%s19678_s3 + $0x160] sm:$0xff]  ;;  %v715_v59 = vld [vmem:[%s19678_s3 + $0x130] sm:$0xff] }
  0x4f   : > { %980 = vmatpush.msrb.mxu2 %v8876_v12  ;;  %1021 = vmatpush.msrb.mxu3 %v717_v13  ;;  %v716_v60 = vld [vmem:[%s19678_s3 + $0x138] sm:$0xff]  ;;  %v710_v61 = vld [vmem:[%s19678_s3 + $0x108] sm:$0xff]  ;;  %v711_v62 = vld [vmem:[%s19678_s3 + $0x110] sm:$0xff] }
  0x50   : > { %1050 = vmatpush.msra.mxu0 %v718_v14  ;;  %1079 = vmatpush.msra.mxu1 %v719_v15  ;;  %v705_v4 = vld [vmem:[%s19678_s3 + $0xe0] sm:$0xff]  ;;  %v706_v6 = vld [vmem:[%s19678_s3 + $0xe8] sm:$0xff]  ;;  %v700_v7 = vld [vmem:[%s19678_s3 + $0xb8] sm:$0xff] }
  0x51   : > { %981 = vmatpush.msrb.mxu2 %v8871_v16  ;;  %1022 = vmatpush.msrb.mxu3 %v712_v17  ;;  %v701_v8 = vld [vmem:[%s19678_s3 + $0xc0] sm:$0xff]  ;;  %v695_v9 = vld [vmem:[%s19678_s3 + $0x90] sm:$0xff]  ;;  %v696_v10 = vld [vmem:[%s19678_s3 + $0x98] sm:$0xff] }
  0x52   : > { %1051 = vmatpush.msra.mxu0 %v713_v18  ;;  %1080 = vmatpush.msra.mxu1 %v714_v19  ;;  %v690_v11 = vld [vmem:[%s19678_s3 + $0x68] sm:$0xff]  ;;  %v691_v12 = vld [vmem:[%s19678_s3 + $0x70] sm:$0xff]  ;;  %v685_v14 = vld [vmem:[%s19678_s3 + $0x40] sm:$0xff] }
  0x53   : > { %982 = vmatpush.msrb.mxu2 %v8866_v20  ;;  %1023 = vmatpush.msrb.mxu3 %v707_v21  ;;  %v686_v15 = vld [vmem:[%s19678_s3 + $0x48] sm:$0xff]  ;;  %v680_v16 = vld [vmem:[%s19678_s3 + $0x18] sm:$0xff]  ;;  %v681_v17 = vld [vmem:[%s19678_s3 + $0x20] sm:$0xff] }
  0x54   : > { %1052 = vmatpush.msra.mxu0 %v708_v22  ;;  %1081 = vmatpush.msra.mxu1 %v709_v23  ;;  %v8932_v20 = vld [vmem:[%s19679_s30 + $0x40] sm:$0xff]  ;;  %v8933_v21 = vld [vmem:[%s19679_s30 + $0x48] sm:$0xff]  ;;  %v8934_v22 = vld [vmem:[%s19679_s30 + $0x50] sm:$0xff] }
  0x55   : > { %983 = vmatpush.msrb.mxu2 %v8861_v24  ;;  %1024 = vmatpush.msrb.mxu3 %v702_v25  ;;  %v8935_v23 = vld [vmem:[%s19679_s30 + $0x58] sm:$0xf] }
  0x56   : > { %1053 = vmatpush.msra.mxu0 %v703_v26  ;;  %1082 = vmatpush.msra.mxu1 %v704_v27  ;;  %v8995_v26 = vld [vmem:[%s19678_s3 + $0x578] sm:$0xff]  ;;  %v8996_v27 = vld [vmem:[%s19678_s3 + $0x580] sm:$0xff] }
  0x57   : > { %984 = vmatpush.msrb.mxu2 %v8856_v28  ;;  %1025 = vmatpush.msrb.mxu3 %v697_v29  ;;  %v8997_v28 = vld [vmem:[%s19678_s3 + $0x588] sm:$0xff]  ;;  %v8998_v29 = vld [vmem:[%s19678_s3 + $0x590] sm:$0xff] }
  0x58   : > { %1054 = vmatpush.msra.mxu0 %v698_v30  ;;  %1083 = vmatpush.msra.mxu1 %v699_v31  ;;  %v8990_v30 = vld [vmem:[%s19678_s3 + $0x550] sm:$0xff]  ;;  %v8991_v31 = vld [vmem:[%s19678_s3 + $0x558] sm:$0xff] }
  0x59   : > { %985 = vmatpush.msrb.mxu2 %v8851_v32  ;;  %1026 = vmatpush.msrb.mxu3 %v692_v33  ;;  %v8992_v32 = vld [vmem:[%s19678_s3 + $0x560] sm:$0xff]  ;;  %v8993_v33 = vld [vmem:[%s19678_s3 + $0x568] sm:$0xff] }
  0x5a   : > { %1055 = vmatpush.msra.mxu0 %v693_v34  ;;  %1084 = vmatpush.msra.mxu1 %v694_v35  ;;  %v8985_v34 = vld [vmem:[%s19678_s3 + $0x528] sm:$0xff]  ;;  %v8986_v35 = vld [vmem:[%s19678_s3 + $0x530] sm:$0xff] }
  0x5b   : > { %986 = vmatpush.msrb.mxu2 %v8846_v36  ;;  %1027 = vmatpush.msrb.mxu3 %v687_v37  ;;  %v8987_v36 = vld [vmem:[%s19678_s3 + $0x538] sm:$0xff]  ;;  %v8988_v37 = vld [vmem:[%s19678_s3 + $0x540] sm:$0xff] }
  0x5c   : > { %1056 = vmatpush.msra.mxu0 %v688_v38  ;;  %1085 = vmatpush.msra.mxu1 %v689_v39  ;;  %v8980_v38 = vld [vmem:[%s19678_s3 + $0x500] sm:$0xff]  ;;  %v8981_v39 = vld [vmem:[%s19678_s3 + $0x508] sm:$0xff] }
  0x5d   : > { %987 = vmatpush.msrb.mxu2 %v8841_v40  ;;  %1028 = vmatpush.msrb.mxu3 %v682_v41  ;;  %v8982_v40 = vld [vmem:[%s19678_s3 + $0x510] sm:$0xff] }
  0x5e   : > { %1057 = vmatpush.msra.mxu0 %v683_v42  ;;  %1086 = vmatpush.msra.mxu1 %v684_v43  ;;  %v8983_v42 = vld [vmem:[%s19678_s3 + $0x518] sm:$0xff] }
  0x5f   : > { %988 = vmatpush.msrb.mxu2 %v8836_v45  ;;  %1029 = vmatpush.msrb.mxu3 %v677_v46  ;;  %v8975_v43 = vld [vmem:[%s19678_s3 + $0x4d8] sm:$0xff]  ;;  %v8977_v45 = vld [vmem:[%s19678_s3 + $0x4e8] sm:$0xff]  ;;  %v8978_v46 = vld [vmem:[%s19678_s3 + $0x4f0] sm:$0xff] }
  0x60   : > { %1058 = vmatpush.msra.mxu0 %v678_v47  ;;  %1087 = vmatpush.msra.mxu1 %v679_v48  ;;  %v8970_v47 = vld [vmem:[%s19678_s3 + $0x4b0] sm:$0xff]  ;;  %v8971_v48 = vld [vmem:[%s19678_s3 + $0x4b8] sm:$0xff] }
  0xad   : > { %v11095_v44 = vpop.f32.mrf.mxu1  ;;  %v665_v3 = vpop.f32.mrf.mxu0 }
  0xae   : > { %8892 = vmatmul.msk.f32.vlgmr.msra.gmra.mxu2 %vm844_vm1, %v11095_v44  ;;  %8896 = vmatmul.msk.f32.vlgmr.msra.gmra.mxu3 %vm844_vm1, %v11095_v44 }
  0xaf   : > { %8900 = vmatmul.msk.f32.vlgmr.msrb.gmra.mxu0 %vm844_vm1, %v11095_v44  ;;  %8904 = vmatmul.msk.f32.vlgmr.msrb.gmra.mxu1 %vm844_vm1, %v11095_v44 }
  0xb0   : > { %1188 = vmatpush.msrb.mxu0 %v10768_v0  ;;  %1105 = vmatpush.msra.mxu2 %v735_v50  ;;  %v8973_v50 = vld [vmem:[%s19678_s3 + $0x4c8] sm:$0xff] }
  0xb1   : > { %1134 = vmatpush.msra.mxu3 %v736_v51  ;;  %1282 = vmatpush.msrb.mxu1 %v8995_v26  ;;  %v8965_v51 = vld [vmem:[%s19678_s3 + $0x488] sm:$0xff]  ;;  %v8959_v26 = vld [vmem:[%s19678_s3 + $0x458] sm:$0xff] }
  0xb2   : > { %1189 = vmatpush.msrb.mxu0 %v10771_v1  ;;  %1106 = vmatpush.msra.mxu2 %v730_v52  ;;  %v8966_v52 = vld [vmem:[%s19678_s3 + $0x490] sm:$0xff] }
  0xb3   : > { %1135 = vmatpush.msra.mxu3 %v731_v53  ;;  %1283 = vmatpush.msrb.mxu1 %v8990_v30  ;;  %v8967_v53 = vld [vmem:[%s19678_s3 + $0x498] sm:$0xff]  ;;  %v8944_v30 = vld [vmem:[%s19678_s3 + $0x3e0] sm:$0xff] }
  0xb4   : > { %1190 = vmatpush.msrb.mxu0 %v10776_v2  ;;  %1107 = vmatpush.msra.mxu2 %v725_v54  ;;  %v8968_v54 = vld [vmem:[%s19678_s3 + $0x4a0] sm:$0xff] }
  0xb5   : > { %v11119_v49 = vpop.f32.mrf.mxu1  ;;  %1136 = vmatpush.msra.mxu3 %v726_v55  ;;  %v668_v13 = vpop.f32.mrf.mxu0  ;;  %1284 = vmatpush.msrb.mxu1 %v8985_v34  ;;  %v8960_v55 = vld [vmem:[%s19678_s3 + $0x460] sm:$0xff] }
  0xb6   : > { %8893 = vmatmul.msk.f32.gmra.mxu2 %vm844_vm1, %v11119_v49  ;;  %8897 = vmatmul.msk.f32.gmra.mxu3 %vm844_vm1, %v11119_v49 }
  0xb7   : > { %8901 = vmatmul.msk.f32.gmra.mxu0 %vm844_vm1, %v11119_v49  ;;  %8905 = vmatmul.msk.f32.gmra.mxu1 %vm844_vm1, %v11119_v49 }
  0xb8   : > { %1191 = vmatpush.msrb.mxu0 %v10787_v5  ;;  %1108 = vmatpush.msra.mxu2 %v720_v57  ;;  %v8962_v57 = vld [vmem:[%s19678_s3 + $0x470] sm:$0xff] }
  0xb9   : > { %1137 = vmatpush.msra.mxu3 %v721_v58  ;;  %1285 = vmatpush.msrb.mxu1 %v8980_v38  ;;  %v9021_v38 = vld [vmem:[%s19679_s30 + $0x68] sm:$0xff] }
  0xba   : > { %1109 = vmatpush.msra.mxu2 %v715_v59  ;;  %v8963_v59 = vld [vmem:[%s19678_s3 + $0x478] sm:$0xff] }
  0xbb   : > { %1138 = vmatpush.msra.mxu3 %v716_v60  ;;  %1286 = vmatpush.msrb.mxu1 %v8975_v43  ;;  %v8955_v60 = vld [vmem:[%s19678_s3 + $0x438] sm:$0xff] }
  0xbc   : > { %1110 = vmatpush.msra.mxu2 %v710_v61  ;;  %v8956_v61 = vld [vmem:[%s19678_s3 + $0x440] sm:$0xff]  ;;  %v9023_v43 = vld [vmem:[%s19679_s30 + $0x78] sm:$0xf] }
  0xbd   : > { %v777_v56 = vpop.f32.mrf.mxu1  ;;  %1139 = vmatpush.msra.mxu3 %v711_v62  ;;  %v671_v18 = vpop.f32.mrf.mxu0  ;;  %1287 = vmatpush.msrb.mxu1 %v8970_v47  ;;  %v8957_v62 = vld [vmem:[%s19678_s3 + $0x448] sm:$0xff] }
  0xbe   : > { %8894 = vmatmul.msk.f32.gmra.mxu2 %vm844_vm1, %v777_v56  ;;  %8898 = vmatmul.msk.f32.gmra.mxu3 %vm844_vm1, %v777_v56 }
  0xbf   : > { %8902 = vmatmul.msk.f32.gmra.mxu0 %vm844_vm1, %v777_v56  ;;  %8906 = vmatmul.msk.f32.gmra.mxu1 %vm844_vm1, %v777_v56 }
  0xc0   : > { %1111 = vmatpush.msra.mxu2 %v705_v4  ;;  %1140 = vmatpush.msra.mxu3 %v706_v6  ;;  %v8951_v4 = vld [vmem:[%s19678_s3 + $0x418] sm:$0xff]  ;;  %v8952_v6 = vld [vmem:[%s19678_s3 + $0x420] sm:$0xff] }
  0xc1   : > { %1288 = vmatpush.msrb.mxu1 %v8965_v51  ;;  %v9085_v51 = vld [vmem:[%s19678_s3 + $0x768] sm:$0xff] }
  0xc2   : > { %1112 = vmatpush.msra.mxu2 %v700_v7  ;;  %1141 = vmatpush.msra.mxu3 %v701_v8  ;;  %v8953_v7 = vld [vmem:[%s19678_s3 + $0x428] sm:$0xff] }
  0xc3   : > { %1289 = vmatpush.msrb.mxu1 %v8960_v55  ;;  %v8945_v8 = vld [vmem:[%s19678_s3 + $0x3e8] sm:$0xff]  ;;  %v9080_v55 = vld [vmem:[%s19678_s3 + $0x740] sm:$0xff] }
  0xc4   : > { %1113 = vmatpush.msra.mxu2 %v695_v9  ;;  %1142 = vmatpush.msra.mxu3 %v696_v10  ;;  %v8946_v9 = vld [vmem:[%s19678_s3 + $0x3f0] sm:$0xff]  ;;  %v8947_v10 = vld [vmem:[%s19678_s3 + $0x3f8] sm:$0xff] }
  0xc5   : > { %v780_v63 = vpop.f32.mrf.mxu1  ;;  %v674_v19 = vpop.f32.mrf.mxu0  ;;  %1290 = vmatpush.msrb.mxu1 %v8955_v60 }
  0xc6   : > { %8895 = vmatmul.msk.f32.gmra.mxu2 %vm844_vm1, %v780_v63  ;;  %8899 = vmatmul.msk.f32.gmra.mxu3 %vm844_vm1, %v780_v63 }
  0xc7   : > { %8903 = vmatmul.msk.f32.gmra.mxu0 %vm844_vm1, %v780_v63  ;;  %8907 = vmatmul.msk.f32.gmra.mxu1 %vm844_vm1, %v780_v63 }
  0xc8   : > { %1114 = vmatpush.msra.mxu2 %v690_v11  ;;  %1143 = vmatpush.msra.mxu3 %v691_v12  ;;  %v8948_v11 = vld [vmem:[%s19678_s3 + $0x400] sm:$0xff] }
  0xc9   : > { %v8940_v12 = vld [vmem:[%s19678_s3 + $0x3c0] sm:$0xff] }
  0xca   : > { %1115 = vmatpush.msra.mxu2 %v685_v14  ;;  %1144 = vmatpush.msra.mxu3 %v686_v15  ;;  %v8942_v14 = vld [vmem:[%s19678_s3 + $0x3d0] sm:$0xff] }
  0xcc   : > { %1116 = vmatpush.msra.mxu2 %v680_v16  ;;  %1145 = vmatpush.msra.mxu3 %v681_v17  ;;  %v8943_v16 = vld [vmem:[%s19678_s3 + $0x3d8] sm:$0xff] }
  0xce   : > { %8908 = vmatmul.msk.f32.vlgmr.msrb.gmra.mxu2 %vm844_vm1, %v11095_v44  ;;  %8912 = vmatmul.msk.f32.vlgmr.msrb.gmra.mxu3 %vm844_vm1, %v665_v3  ;;  %v8976_v44 = vld [vmem:[%s19678_s3 + $0x4e0] sm:$0xff] }
  0xcf   : > { %8916 = vmatmul.msk.f32.vlgmr.msra.gmra.mxu0 %vm844_vm1, %v665_v3  ;;  %8920 = vmatmul.msk.f32.vlgmr.msra.gmra.mxu1 %vm844_vm1, %v665_v3 }
  0xd0   : > { %1311 = vmatpush.msrb.mxu2 %v8996_v27  ;;  %1340 = vmatpush.msrb.mxu3 %v8997_v28  ;;  %v8954_v27 = vld [vmem:[%s19678_s3 + $0x430] sm:$0xff]  ;;  %v8949_v28 = vld [vmem:[%s19678_s3 + $0x408] sm:$0xff] }
  0xd1   : > { %1369 = vmatpush.msra.mxu0 %v8998_v29 }
  0xd2   : > { %1312 = vmatpush.msrb.mxu2 %v8991_v31  ;;  %1341 = vmatpush.msrb.mxu3 %v8992_v32 }
  0xd3   : > { %1370 = vmatpush.msra.mxu0 %v8993_v33 }
  0xd4   : > { %1313 = vmatpush.msrb.mxu2 %v8986_v35  ;;  %1342 = vmatpush.msrb.mxu3 %v8987_v36  ;;  %v9020_v36 = vld [vmem:[%s19679_s30 + $0x60] sm:$0xff] }
  0xd5   : > { %1371 = vmatpush.msra.mxu0 %v8988_v37 }
  0xd6   : > { %8909 = vmatmul.msk.f32.gmra.mxu2 %vm844_vm1, %v11119_v49  ;;  %8913 = vmatmul.msk.f32.gmra.mxu3 %vm844_vm1, %v668_v13  ;;  %v8972_v49 = vld [vmem:[%s19678_s3 + $0x4c0] sm:$0xff] }
  0xd7   : > { %8917 = vmatmul.msk.f32.gmra.mxu0 %vm844_vm1, %v668_v13  ;;  %8921 = vmatmul.msk.f32.gmra.mxu1 %vm844_vm1, %v668_v13 }
  0xd8   : > { %1314 = vmatpush.msrb.mxu2 %v8981_v39  ;;  %1343 = vmatpush.msrb.mxu3 %v8982_v40  ;;  %v9022_v40 = vld [vmem:[%s19679_s30 + $0x70] sm:$0xff] }
  0xd9   : > { %1372 = vmatpush.msra.mxu0 %v8983_v42 }
  0xda   : > { %1315 = vmatpush.msrb.mxu2 %v8976_v44  ;;  %1344 = vmatpush.msrb.mxu3 %v8977_v45 }
  0xdb   : > { %1373 = vmatpush.msra.mxu0 %v8978_v46 }
  0xdc   : > { %1316 = vmatpush.msrb.mxu2 %v8971_v48  ;;  %1345 = vmatpush.msrb.mxu3 %v8972_v49  ;;  %v9083_v49 = vld [vmem:[%s19678_s3 + $0x758] sm:$0xff] }
  0xdd   : > { %1374 = vmatpush.msra.mxu0 %v8973_v50  ;;  %v9084_v50 = vld [vmem:[%s19678_s3 + $0x760] sm:$0xff] }
  0xde   : > { %8910 = vmatmul.msk.f32.gmra.mxu2 %vm844_vm1, %v777_v56  ;;  %8914 = vmatmul.msk.f32.gmra.mxu3 %vm844_vm1, %v671_v18  ;;  %v8961_v56 = vld [vmem:[%s19678_s3 + $0x468] sm:$0xff] }
  0xdf   : > { %8918 = vmatmul.msk.f32.gmra.mxu0 %vm844_vm1, %v671_v18  ;;  %8922 = vmatmul.msk.f32.gmra.mxu1 %vm844_vm1, %v671_v18 }
  0xe0   : > { %1317 = vmatpush.msrb.mxu2 %v8966_v52  ;;  %1346 = vmatpush.msrb.mxu3 %v8967_v53  ;;  %v9086_v52 = vld [vmem:[%s19678_s3 + $0x770] sm:$0xff] }
  0xe1   : > { %1375 = vmatpush.msra.mxu0 %v8968_v54  ;;  %v9078_v53 = vld [vmem:[%s19678_s3 + $0x730] sm:$0xff]  ;;  %v9079_v54 = vld [vmem:[%s19678_s3 + $0x738] sm:$0xff] }
  0xe2   : > { %1318 = vmatpush.msrb.mxu2 %v8961_v56  ;;  %1347 = vmatpush.msrb.mxu3 %v8962_v57  ;;  %v9081_v56 = vld [vmem:[%s19678_s3 + $0x748] sm:$0xff] }
  0xe3   : > { %1376 = vmatpush.msra.mxu0 %v8963_v59  ;;  %v9073_v57 = vld [vmem:[%s19678_s3 + $0x708] sm:$0xff]  ;;  %v9074_v59 = vld [vmem:[%s19678_s3 + $0x710] sm:$0xff] }
  0xe4   : > { %1319 = vmatpush.msrb.mxu2 %v8956_v61  ;;  %1348 = vmatpush.msrb.mxu3 %v8957_v62  ;;  %v9075_v61 = vld [vmem:[%s19678_s3 + $0x718] sm:$0xff]  ;;  %v9076_v62 = vld [vmem:[%s19678_s3 + $0x720] sm:$0xff] }
  0xe6   : > { %8911 = vmatmul.msk.f32.gmra.mxu2 %vm844_vm1, %v780_v63  ;;  %8915 = vmatmul.msk.f32.gmra.mxu3 %vm844_vm1, %v674_v19  ;;  %v8958_v63 = vld [vmem:[%s19678_s3 + $0x450] sm:$0xff] }
  0xe7   : > { %8919 = vmatmul.msk.f32.gmra.mxu0 %vm844_vm1, %v674_v19  ;;  %8923 = vmatmul.msk.f32.gmra.mxu1 %vm844_vm1, %v674_v19 }
  0xe8   : > { %1377 = vmatpush.msra.mxu0 %v8958_v63  ;;  %1320 = vmatpush.msrb.mxu2 %v8951_v4  ;;  %v9068_v63 = vld [vmem:[%s19678_s3 + $0x6e0] sm:$0xff]  ;;  %v9070_v4 = vld [vmem:[%s19678_s3 + $0x6f0] sm:$0xff] }
  0xe9   : > { %1349 = vmatpush.msrb.mxu3 %v8952_v6  ;;  %v9071_v6 = vld [vmem:[%s19678_s3 + $0x6f8] sm:$0xff] }
  0xea   : > { %1378 = vmatpush.msra.mxu0 %v8953_v7  ;;  %1321 = vmatpush.msrb.mxu2 %v8946_v9  ;;  %v9063_v7 = vld [vmem:[%s19678_s3 + $0x6b8] sm:$0xff]  ;;  %v9065_v9 = vld [vmem:[%s19678_s3 + $0x6c8] sm:$0xff] }
  0xeb   : > { %1350 = vmatpush.msrb.mxu3 %v8947_v10  ;;  %v9066_v10 = vld [vmem:[%s19678_s3 + $0x6d0] sm:$0xff] }
  0xec   : > { %1379 = vmatpush.msra.mxu0 %v8948_v11  ;;  %v9058_v11 = vld [vmem:[%s19678_s3 + $0x690] sm:$0xff] }
  0xed   : > { %1351 = vmatpush.msrb.mxu3 %v8942_v14  ;;  %v9061_v14 = vld [vmem:[%s19678_s3 + $0x6a8] sm:$0xff] }
  0xee   : > { %8924 = vmatmul.msk.f32.vlgmr.msra.gmra.mxu2 %vm844_vm1, %v665_v3  ;;  %8928 = vmatmul.msk.f32.vlgmr.msra.gmra.mxu3 %vm844_vm1, %v665_v3  ;;  %v8950_v3 = vld [vmem:[%s19678_s3 + $0x410] sm:$0xff] }
  0xef   : > { %8936 = vmatmul.msk.f32.vlgmr.msrb.gmra.mxu0 %vm635_vm0, %v8932_v20  ;;  %1291 = vmatpush.msrb.mxu1 %v8950_v3  ;;  %v8974_v20 = vld [vmem:[%s19678_s3 + $0x4d0] sm:$0xff]  ;;  %v9069_v3 = vld [vmem:[%s19678_s3 + $0x6e8] sm:$0xff] }
  0xf0   : > { %1380 = vmatpush.msra.mxu0 %v8943_v16  ;;  %1566 = vmatpush.msra.mxu3 %v9083_v49  ;;  %v9053_v16 = vld [vmem:[%s19678_s3 + $0x668] sm:$0xff] }
  0xf1   : > { %1292 = vmatpush.msrb.mxu1 %v8945_v8  ;;  %v9064_v8 = vld [vmem:[%s19678_s3 + $0x6c0] sm:$0xff] }
  0xf2   : > { %1595 = vmatpush.msrb.mxu0 %v9084_v50  ;;  %1567 = vmatpush.msra.mxu3 %v9078_v53  ;;  %v9028_v50 = vld [vmem:[%s19678_s3 + $0x5a0] sm:$0xff]  ;;  %v9031_v53 = vld [vmem:[%s19678_s3 + $0x5b8] sm:$0xff] }
  0xf3   : > { %1293 = vmatpush.msrb.mxu1 %v8940_v12  ;;  %v9059_v12 = vld [vmem:[%s19678_s3 + $0x698] sm:$0xff] }
  0xf4   : > { %1596 = vmatpush.msrb.mxu0 %v9079_v54  ;;  %1568 = vmatpush.msra.mxu3 %v9073_v57  ;;  %v10539_v54 = vld [vmem:[%s10765_s27 + $0x18] sm:$0xff] }
  0xf6   : > { %8925 = vmatmul.msk.f32.gmra.mxu2 %vm844_vm1, %v668_v13  ;;  %8929 = vmatmul.msk.f32.gmra.mxu3 %vm844_vm1, %v668_v13  ;;  %v8941_v13 = vld [vmem:[%s19678_s3 + $0x3c8] sm:$0xff] }
  0xf7   : > { %8937 = vmatmul.msk.f32.gmra.mxu0 %vm635_vm0, %v8933_v21  ;;  %1322 = vmatpush.msrb.mxu2 %v8941_v13  ;;  %v8969_v21 = vld [vmem:[%s19678_s3 + $0x4a8] sm:$0xff]  ;;  %v9060_v13 = vld [vmem:[%s19678_s3 + $0x6a0] sm:$0xff] }
  0xf8   : > { %1597 = vmatpush.msrb.mxu0 %v9074_v59  ;;  %1569 = vmatpush.msra.mxu3 %v9068_v63  ;;  %v10542_v59 = vld [vmem:[%s10765_s27] sm:$0xff]  ;;  %v9077_v63 = vld [vmem:[%s19678_s3 + $0x728] sm:$0xff] }
  0xf9   : > { %1472 = vmatpush.msra.mxu2 %v10768_v0  ;;  %v8989_v0 = vld [vmem:[%s19678_s3 + $0x548] sm:$0xff] }
  0xfa   : > { %1598 = vmatpush.msrb.mxu0 %v9069_v3  ;;  %1570 = vmatpush.msra.mxu3 %v9063_v7  ;;  %v9062_v7 = vld [vmem:[%s19678_s3 + $0x6b0] sm:$0xff] }
  0xfb   : > { %1473 = vmatpush.msra.mxu2 %v10771_v1 }
  0xfc   : > { %1599 = vmatpush.msrb.mxu0 %v9064_v8  ;;  %1571 = vmatpush.msra.mxu3 %v9058_v11  ;;  %v9057_v8 = vld [vmem:[%s19678_s3 + $0x688] sm:$0xff]  ;;  %v9047_v11 = vld [vmem:[%s19678_s3 + $0x638] sm:$0xff] }
  0xfd   : > { %1474 = vmatpush.msra.mxu2 %v10776_v2  ;;  %v8984_v2 = vld [vmem:[%s19678_s3 + $0x520] sm:$0xff] }
  0xfe   : > { %8926 = vmatmul.msk.f32.gmra.mxu2 %vm844_vm1, %v671_v18  ;;  %8930 = vmatmul.msk.f32.gmra.mxu3 %vm844_vm1, %v671_v18  ;;  %v8999_v18 = vld [vmem:[%s19678_s3 + $0x598] sm:$0xff] }
  0xff   : > { %8938 = vmatmul.msk.f32.gmra.mxu0 %vm635_vm0, %v8934_v22  ;;  %1475 = vmatpush.msra.mxu2 %v10787_v5  ;;  %v8979_v5 = vld [vmem:[%s19678_s3 + $0x4f8] sm:$0xff] }
 0x100   : > { %1398 = vmatpush.msra.mxu1 %v8999_v18  ;;  %1600 = vmatpush.msrb.mxu0 %v9059_v12  ;;  %v9054_v18 = vld [vmem:[%s19678_s3 + $0x670] sm:$0xff] }
 0x101   : > { %1572 = vmatpush.msra.mxu3 %v9053_v16  ;;  %v9042_v12 = vld [vmem:[%s19678_s3 + $0x610] sm:$0xff]  ;;  %v9032_v16 = vld [vmem:[%s19678_s3 + $0x5c0] sm:$0xff] }
 0x102   : > { %1601 = vmatpush.msrb.mxu0 %v9054_v18 }
 0x106   : > { %8927 = vmatmul.msk.f32.gmra.mxu2 %vm844_vm1, %v674_v19  ;;  %8931 = vmatmul.msk.f32.gmra.mxu3 %vm844_vm1, %v674_v19  ;;  %v8994_v19 = vld [vmem:[%s19678_s3 + $0x570] sm:$0xff] }
 0x107   : > { %8939 = vmatmul.msk.f32.gmra.mxu0 %vm635_vm0, %v8935_v23  ;;  %1399 = vmatpush.msra.mxu1 %v8994_v19  ;;  %v8964_v23 = vld [vmem:[%s19678_s3 + $0x480] sm:$0xff]  ;;  %v9055_v19 = vld [vmem:[%s19678_s3 + $0x678] sm:$0xff] }
 0x109   : > { %1400 = vmatpush.msra.mxu1 %v8989_v0  ;;  %v9056_v0 = vld [vmem:[%s19678_s3 + $0x680] sm:$0xff] }
 0x10b   : > { %1401 = vmatpush.msra.mxu1 %v8984_v2 }
 0x10d   : > { %1402 = vmatpush.msra.mxu1 %v8979_v5  ;;  %v9048_v5 = vld [vmem:[%s19678_s3 + $0x640] sm:$0xff] }
 0x10e   : > { %1573 = vmatpush.msra.mxu3 %v9048_v5  ;;  %v9108_v5 = vld [vmem:[%s19679_s30 + $0x80] sm:$0xff] }
 0x10f   : > { %1403 = vmatpush.msra.mxu1 %v8974_v20  ;;  %v9049_v20 = vld [vmem:[%s19678_s3 + $0x648] sm:$0xff] }
 0x110   : > { %1602 = vmatpush.msrb.mxu0 %v9049_v20  ;;  %v9109_v20 = vld [vmem:[%s19679_s30 + $0x88] sm:$0xff] }
 0x111   : > { %1404 = vmatpush.msra.mxu1 %v8969_v21  ;;  %v9050_v21 = vld [vmem:[%s19678_s3 + $0x650] sm:$0xff] }
 0x113   : > { %1405 = vmatpush.msra.mxu1 %v8964_v23  ;;  %v9051_v23 = vld [vmem:[%s19678_s3 + $0x658] sm:$0xff] }
 0x115   : > { %1406 = vmatpush.msra.mxu1 %v8959_v26  ;;  %v9043_v26 = vld [vmem:[%s19678_s3 + $0x618] sm:$0xff] }
 0x116   : > { %1574 = vmatpush.msra.mxu3 %v9043_v26 }
 0x117   : > { %1407 = vmatpush.msra.mxu1 %v8954_v27  ;;  %v9044_v27 = vld [vmem:[%s19678_s3 + $0x620] sm:$0xff] }
 0x118   : > { %1603 = vmatpush.msrb.mxu0 %v9044_v27 }
 0x119   : > { %1408 = vmatpush.msra.mxu1 %v8949_v28  ;;  %v9045_v28 = vld [vmem:[%s19678_s3 + $0x628] sm:$0xff] }
 0x11b   : > { %1409 = vmatpush.msra.mxu1 %v8944_v30  ;;  %v9038_v30 = vld [vmem:[%s19678_s3 + $0x5f0] sm:$0xff] }
 0x11c   : > { %1575 = vmatpush.msra.mxu3 %v9038_v30 }
 0x12c   : > { %v11253_v24 = vpop.f32.mrf.mxu0 }
 0x131   : > { %v11461_v32 = vpop.f32.mrf.mxu2  ;;  %v11739_v26 = vpop.f32.mrf.mxu3 }
 0x134   : > { %v11255_v25 = vpop.f32.mrf.mxu0 }
 0x139   : > { %v11467_v34 = vpop.f32.mrf.mxu2  ;;  %v11743_v27 = vpop.f32.mrf.mxu3 }
 0x13c   : > { %v11302_v41 = vpop.f32.mrf.mxu0 }
 0x141   : > { %v11478_v37 = vpop.f32.mrf.mxu2 }
 0x144   : > { %v11352_v58 = vpop.f32.mrf.mxu0 }
 0x149   : > { %v11485_v39 = vpop.f32.mrf.mxu2 }
 0x14c   : > { %v11402_v15 = vpop.f32.mrf.mxu0 }
 0x151   : > { %v11492_v42 = vpop.f32.mrf.mxu2 }
 0x152   : > { %19680 = vst [vmem:[#allocation12_spill] sm:$0xff] %v11492_v42 }
 0x154   : > { %v11410_v17 = vpop.f32.mrf.mxu0 }
 0x159   : > { %v11499_v44 = vpop.f32.mrf.mxu2 }
 0x15a   : > { %19681 = vst [vmem:[#allocation13_spill] sm:$0xff] %v11499_v44 }
 0x15c   : > { %v11422_v1 = vpop.f32.mrf.mxu0 }
 0x161   : > { %v11501_v45 = vpop.f32.mrf.mxu2 }
 0x162   : > { %19682 = vst [vmem:[#allocation14_spill] sm:$0xff] %v11501_v45 }
 0x164   : > { %v11436_v22 = vpop.f32.mrf.mxu0 }
 0x169   : > { %v11503_v46 = vpop.f32.mrf.mxu2 }
 0x16a   : > { %19683 = vst [vmem:[#allocation15_spill] sm:$0xff] %v11503_v46 }
 0x16c   : > { %v1193_v29 = vpop.f32.mrf.mxu0 }
 0x16d   : > { %9000 = vmatmul.msk.f32.vlgmr.msrb.gmra.mxu1 %vm844_vm1, %v1193_v29  ;;  %9004 = vmatmul.msk.f32.vlgmr.msrb.gmra.mxu2 %vm844_vm1, %v1193_v29 }
 0x16e   : > { %9008 = vmatmul.msk.f32.vlgmr.msrb.gmra.mxu3 %vm844_vm1, %v1193_v29  ;;  %9012 = vmatmul.msk.f32.vlgmr.msra.gmra.mxu0 %vm844_vm1, %v1193_v29 }
 0x16f   : > { %1624 = vmatpush.msrb.mxu1 %v9085_v51  ;;  %1653 = vmatpush.msrb.mxu2 %v9086_v52  ;;  %v9029_v51 = vld [vmem:[%s19678_s3 + $0x5a8] sm:$0xff]  ;;  %v9030_v52 = vld [vmem:[%s19678_s3 + $0x5b0] sm:$0xff] }
 0x171   : > { %v11505_v47 = vpop.f32.mrf.mxu2  ;;  %1625 = vmatpush.msrb.mxu1 %v9080_v55  ;;  %1654 = vmatpush.msrb.mxu2 %v9081_v56  ;;  %v10540_v55 = vld [vmem:[%s10765_s27 + $0x10] sm:$0xff]  ;;  %v10541_v56 = vld [vmem:[%s10765_s27 + $0x8] sm:$0xff] }
 0x173   : > { %1626 = vmatpush.msrb.mxu1 %v9075_v61  ;;  %1655 = vmatpush.msrb.mxu2 %v9076_v62  ;;  %v9087_v61 = vld [vmem:[%s19678_s3 + $0x778] sm:$0xff]  ;;  %v9082_v62 = vld [vmem:[%s19678_s3 + $0x750] sm:$0xff] }
 0x174   : > { %v1196_v31 = vpop.f32.mrf.mxu0 }
 0x175   : > { %9001 = vmatmul.msk.f32.gmra.mxu1 %vm844_vm1, %v1196_v31  ;;  %9005 = vmatmul.msk.f32.gmra.mxu2 %vm844_vm1, %v1196_v31 }
 0x176   : > { %9009 = vmatmul.msk.f32.gmra.mxu3 %vm844_vm1, %v1196_v31  ;;  %9013 = vmatmul.msk.f32.gmra.mxu0 %vm844_vm1, %v1196_v31 }
 0x177   : > { %1627 = vmatpush.msrb.mxu1 %v9070_v4  ;;  %1656 = vmatpush.msrb.mxu2 %v9071_v6  ;;  %v9072_v4 = vld [vmem:[%s19678_s3 + $0x700] sm:$0xff]  ;;  %v9067_v6 = vld [vmem:[%s19678_s3 + $0x6d8] sm:$0xff] }
 0x179   : > { %v11507_v48 = vpop.f32.mrf.mxu2  ;;  %1628 = vmatpush.msrb.mxu1 %v9065_v9  ;;  %1657 = vmatpush.msrb.mxu2 %v9066_v10  ;;  %v9052_v10 = vld [vmem:[%s19678_s3 + $0x660] sm:$0xff] }
 0x17b   : > { %1629 = vmatpush.msrb.mxu1 %v9060_v13  ;;  %1658 = vmatpush.msrb.mxu2 %v9061_v14  ;;  %v9037_v13 = vld [vmem:[%s19678_s3 + $0x5e8] sm:$0xff] }
 0x17c   : > { %v1199_v33 = vpop.f32.mrf.mxu0 }
 0x17d   : > { %9002 = vmatmul.msk.f32.gmra.mxu1 %vm844_vm1, %v1199_v33  ;;  %9006 = vmatmul.msk.f32.gmra.mxu2 %vm844_vm1, %v1199_v33 }
 0x17e   : > { %9010 = vmatmul.msk.f32.gmra.mxu3 %vm844_vm1, %v1199_v33  ;;  %9014 = vmatmul.msk.f32.gmra.mxu0 %vm844_vm1, %v1199_v33 }
 0x17f   : > { %1630 = vmatpush.msrb.mxu1 %v9055_v19  ;;  %1659 = vmatpush.msrb.mxu2 %v9056_v0 }
 0x181   : > { %v11539_v60 = vpop.f32.mrf.mxu2  ;;  %1631 = vmatpush.msrb.mxu1 %v9050_v21  ;;  %1660 = vmatpush.msrb.mxu2 %v9051_v23  ;;  %v9110_v21 = vld [vmem:[%s19679_s30 + $0x90] sm:$0xff]  ;;  %v9111_v23 = vld [vmem:[%s19679_s30 + $0x98] sm:$0xf] }
 0x183   : > { %1632 = vmatpush.msrb.mxu1 %v9045_v28  ;;  %v11745_v28 = vpop.f32.mrf.mxu3 }
 0x184   : > { %v1202_v35 = vpop.f32.mrf.mxu0 }
 0x185   : > { %9003 = vmatmul.msk.f32.gmra.mxu1 %vm844_vm1, %v1202_v35  ;;  %9007 = vmatmul.msk.f32.gmra.mxu2 %vm844_vm1, %v1202_v35 }
 0x186   : > { %9011 = vmatmul.msk.f32.gmra.mxu3 %vm844_vm1, %v1202_v35  ;;  %9015 = vmatmul.msk.f32.gmra.mxu0 %vm844_vm1, %v1202_v35 }
 0x189   : > { %v11595_v2 = vpop.f32.mrf.mxu2 }
 0x18d   : > { %9016 = vmatmul.msk.f32.vlgmr.msra.gmra.mxu1 %vm844_vm1, %v1193_v29  ;;  %9024 = vmatmul.msk.f32.vlgmr.msra.gmra.mxu2 %vm635_vm0, %v9020_v36  ;;  %v9046_v29 = vld [vmem:[%s19678_s3 + $0x630] sm:$0xff]  ;;  %v9033_v36 = vld [vmem:[%s19678_s3 + $0x5c8] sm:$0xff] }
 0x18e   : > { %1661 = vmatpush.msrb.mxu2 %v9046_v29  ;;  %1576 = vmatpush.msra.mxu3 %v9033_v36  ;;  %v11747_v29 = vpop.f32.mrf.mxu3 }
 0x190   : > { %1577 = vmatpush.msra.mxu3 %v9028_v50  ;;  %v9174_v50 = vld [vmem:[%s19678_s3 + $0x950] sm:$0xff] }
 0x192   : > { %1682 = vmatpush.msrb.mxu3 %v9087_v61  ;;  %v9162_v61 = vld [vmem:[%s19678_s3 + $0x8f0] sm:$0xff] }
 0x194   : > { %1683 = vmatpush.msrb.mxu3 %v9082_v62  ;;  %v9163_v62 = vld [vmem:[%s19678_s3 + $0x8f8] sm:$0xff] }
 0x195   : > { %9017 = vmatmul.msk.f32.gmra.mxu1 %vm844_vm1, %v1196_v31  ;;  %9025 = vmatmul.msk.f32.gmra.mxu2 %vm635_vm0, %v9021_v38  ;;  %v9039_v31 = vld [vmem:[%s19678_s3 + $0x5f8] sm:$0xff]  ;;  %v9034_v38 = vld [vmem:[%s19678_s3 + $0x5d0] sm:$0xff] }
 0x196   : > { %1604 = vmatpush.msrb.mxu0 %v9039_v31  ;;  %1684 = vmatpush.msrb.mxu3 %v9077_v63  ;;  %v11751_v31 = vpop.f32.mrf.mxu1  ;;  %v9164_v63 = vld [vmem:[%s19678_s3 + $0x900] sm:$0xff] }
 0x198   : > { %1605 = vmatpush.msrb.mxu0 %v9034_v38  ;;  %1685 = vmatpush.msrb.mxu3 %v9072_v4  ;;  %v9171_v38 = vld [vmem:[%s19678_s3 + $0x938] sm:$0xff] }
 0x19a   : > { %1606 = vmatpush.msrb.mxu0 %v9029_v51  ;;  %1686 = vmatpush.msrb.mxu3 %v9067_v6  ;;  %v9166_v51 = vld [vmem:[%s19678_s3 + $0x910] sm:$0xff]  ;;  %v9156_v6 = vld [vmem:[%s19678_s3 + $0x8c0] sm:$0xff] }
 0x19c   : > { %1756 = vmatpush.msra.mxu0 %v10539_v54  ;;  %1687 = vmatpush.msrb.mxu3 %v9062_v7  ;;  %v9169_v54 = vld [vmem:[%s19678_s3 + $0x928] sm:$0xff] }
 0x19d   : > { %9018 = vmatmul.msk.f32.gmra.mxu1 %vm844_vm1, %v1199_v33  ;;  %9026 = vmatmul.msk.f32.gmra.mxu2 %vm635_vm0, %v9022_v40  ;;  %v9040_v33 = vld [vmem:[%s19678_s3 + $0x600] sm:$0xff]  ;;  %v9035_v40 = vld [vmem:[%s19678_s3 + $0x5d8] sm:$0xff]  ;;  %v9157_v7 = vld [vmem:[%s19678_s3 + $0x8c8] sm:$0xff] }
 0x19e   : > { %1633 = vmatpush.msrb.mxu1 %v9040_v33  ;;  %1757 = vmatpush.msra.mxu0 %v10540_v55  ;;  %v11753_v33 = vpop.f32.mrf.mxu3  ;;  %v11757_v36 = vpop.f32.mrf.mxu1 }
 0x19f   : > { %1688 = vmatpush.msrb.mxu3 %v9057_v8  ;;  %v9158_v8 = vld [vmem:[%s19678_s3 + $0x8d0] sm:$0xff] }
 0x1a0   : > { %1634 = vmatpush.msrb.mxu1 %v9035_v40  ;;  %1758 = vmatpush.msra.mxu0 %v10541_v56  ;;  %v9172_v40 = vld [vmem:[%s19678_s3 + $0x940] sm:$0xff] }
 0x1a1   : > { %1689 = vmatpush.msrb.mxu3 %v9052_v10  ;;  %v9159_v10 = vld [vmem:[%s19678_s3 + $0x8d8] sm:$0xff] }
 0x1a2   : > { %1635 = vmatpush.msrb.mxu1 %v9030_v52  ;;  %1759 = vmatpush.msra.mxu0 %v10542_v59  ;;  %v9167_v52 = vld [vmem:[%s19678_s3 + $0x918] sm:$0xff]  ;;  %v9161_v59 = vld [vmem:[%s19678_s3 + $0x8e8] sm:$0xff] }
 0x1a3   : > { %1690 = vmatpush.msrb.mxu3 %v9047_v11  ;;  %v9151_v11 = vld [vmem:[%s19678_s3 + $0x898] sm:$0xff] }
 0x1a4   : > { %1850 = vmatpush.msra.mxu1 %v9171_v38  ;;  %v9144_v38 = vld [vmem:[%s19678_s3 + $0x860] sm:$0xff] }
 0x1a5   : > { %9019 = vmatmul.msk.f32.gmra.mxu1 %vm844_vm1, %v1202_v35  ;;  %9027 = vmatmul.msk.f32.gmra.mxu2 %vm635_vm0, %v9023_v43  ;;  %v9041_v35 = vld [vmem:[%s19678_s3 + $0x608] sm:$0xff]  ;;  %v9036_v43 = vld [vmem:[%s19678_s3 + $0x5e0] sm:$0xff] }
 0x1a6   : > { %1662 = vmatpush.msrb.mxu2 %v9041_v35  ;;  %1691 = vmatpush.msrb.mxu3 %v9042_v12  ;;  %v11783_v55 = vpop.f32.mrf.mxu3  ;;  %v11799_v4 = vpop.f32.mrf.mxu1  ;;  %v9152_v12 = vld [vmem:[%s19678_s3 + $0x8a0] sm:$0xff] }
 0x1a7   : > { %1851 = vmatpush.msra.mxu1 %v9166_v51  ;;  %v9138_v51 = vld [vmem:[%s19678_s3 + $0x830] sm:$0xff] }
 0x1a8   : > { %1663 = vmatpush.msrb.mxu2 %v9036_v43  ;;  %1692 = vmatpush.msrb.mxu3 %v9037_v13  ;;  %v9173_v43 = vld [vmem:[%s19678_s3 + $0x948] sm:$0xff] }
 0x1a9   : > { %1852 = vmatpush.msra.mxu1 %v9161_v59  ;;  %v9153_v13 = vld [vmem:[%s19678_s3 + $0x8a8] sm:$0xff]  ;;  %v9132_v59 = vld [vmem:[%s19678_s3 + $0x800] sm:$0xff] }
 0x1aa   : > { %1664 = vmatpush.msrb.mxu2 %v9031_v53  ;;  %1693 = vmatpush.msrb.mxu3 %v9032_v16  ;;  %v9168_v53 = vld [vmem:[%s19678_s3 + $0x920] sm:$0xff]  ;;  %v9146_v16 = vld [vmem:[%s19678_s3 + $0x870] sm:$0xff] }
 0x1ab   : > { %1853 = vmatpush.msra.mxu1 %v9156_v6  ;;  %v9127_v6 = vld [vmem:[%s19678_s3 + $0x7d8] sm:$0xff] }
 0x1ac   : > { %1879 = vmatpush.msra.mxu2 %v9172_v40 }
 0x1ad   : > { %1854 = vmatpush.msra.mxu1 %v9151_v11  ;;  %v9122_v11 = vld [vmem:[%s19678_s3 + $0x7b0] sm:$0xff] }
 0x1ae   : > { %1880 = vmatpush.msra.mxu2 %v9167_v52  ;;  %v9139_v52 = vld [vmem:[%s19678_s3 + $0x838] sm:$0xff] }
 0x1af   : > { %1855 = vmatpush.msra.mxu1 %v9146_v16  ;;  %v9116_v16 = vld [vmem:[%s19678_s3 + $0x780] sm:$0xff] }
 0x1b0   : > { %1881 = vmatpush.msra.mxu2 %v9162_v61  ;;  %v9133_v61 = vld [vmem:[%s19678_s3 + $0x808] sm:$0xff] }
 0x1b2   : > { %1882 = vmatpush.msra.mxu2 %v9157_v7  ;;  %v9128_v7 = vld [vmem:[%s19678_s3 + $0x7e0] sm:$0xff] }
 0x1b4   : > { %1883 = vmatpush.msra.mxu2 %v9152_v12  ;;  %v9123_v12 = vld [vmem:[%s19678_s3 + $0x7b8] sm:$0xff] }
 0x1eb   : > { %v11749_v30 = vpop.f32.mrf.mxu0 }
 0x1f0   : > { %v11645_v49 = vpop.f32.mrf.mxu2 }
 0x1f3   : > { %v11755_v35 = vpop.f32.mrf.mxu0 }
 0x1f8   : > { %v11662_v57 = vpop.f32.mrf.mxu2 }
 0x1fb   : > { %v11785_v56 = vpop.f32.mrf.mxu0 }
 0x200   : > { %v11674_v3 = vpop.f32.mrf.mxu2 }
 0x203   : > { %v11851_v40 = vpop.f32.mrf.mxu0 }
 0x208   : > { %v11688_v9 = vpop.f32.mrf.mxu2 }
 0x210   : > { %v1477_v14 = vpop.f32.mrf.mxu2 }
 0x211   : > { %9088 = vmatmul.msk.f32.vlgmr.msra.gmra.mxu3 %vm844_vm1, %v1477_v14  ;;  %9092 = vmatmul.msk.f32.vlgmr.msrb.gmra.mxu0 %vm844_vm1, %v1477_v14 }
 0x212   : > { %9096 = vmatmul.msk.f32.vlgmr.msrb.gmra.mxu1 %vm844_vm1, %v1477_v14  ;;  %9100 = vmatmul.msk.f32.vlgmr.msrb.gmra.mxu2 %vm844_vm1, %v1477_v14 }
 0x213   : > { %1908 = vmatpush.msra.mxu3 %v9173_v43  ;;  %1937 = vmatpush.msrb.mxu0 %v9174_v50  ;;  %v9136_v43 = vld [vmem:[%s19678_s3 + $0x820] sm:$0xff]  ;;  %v9137_v50 = vld [vmem:[%s19678_s3 + $0x828] sm:$0xff] }
 0x215   : > { %1909 = vmatpush.msra.mxu3 %v9168_v53  ;;  %1938 = vmatpush.msrb.mxu0 %v9169_v54  ;;  %v11865_v53 = vpop.f32.mrf.mxu1  ;;  %v9131_v54 = vld [vmem:[%s19678_s3 + $0x7f8] sm:$0xff] }
 0x217   : > { %1910 = vmatpush.msra.mxu3 %v9163_v62  ;;  %1939 = vmatpush.msrb.mxu0 %v9164_v63  ;;  %v9134_v62 = vld [vmem:[%s19678_s3 + $0x810] sm:$0xff] }
 0x218   : > { %v1480_v18 = vpop.f32.mrf.mxu2  ;;  %v9126_v63 = vld [vmem:[%s19678_s3 + $0x7d0] sm:$0xff] }
 0x219   : > { %9089 = vmatmul.msk.f32.gmra.mxu3 %vm844_vm1, %v1480_v18  ;;  %9093 = vmatmul.msk.f32.gmra.mxu0 %vm844_vm1, %v1480_v18 }
 0x21a   : > { %9097 = vmatmul.msk.f32.gmra.mxu1 %vm844_vm1, %v1480_v18  ;;  %9101 = vmatmul.msk.f32.gmra.mxu2 %vm844_vm1, %v1480_v18 }
 0x21b   : > { %1911 = vmatpush.msra.mxu3 %v9158_v8  ;;  %1940 = vmatpush.msrb.mxu0 %v9159_v10  ;;  %v9129_v8 = vld [vmem:[%s19678_s3 + $0x7e8] sm:$0xff] }
 0x21c   : > { %v9121_v10 = vld [vmem:[%s19678_s3 + $0x7a8] sm:$0xff] }
 0x21d   : > { %1912 = vmatpush.msra.mxu3 %v9153_v13  ;;  %v9124_v13 = vld [vmem:[%s19678_s3 + $0x7c0] sm:$0xff] }
 0x220   : > { %v1483_v19 = vpop.f32.mrf.mxu2 }
 0x221   : > { %9090 = vmatmul.msk.f32.gmra.mxu3 %vm844_vm1, %v1483_v19  ;;  %9094 = vmatmul.msk.f32.gmra.mxu0 %vm844_vm1, %v1483_v19 }
 0x222   : > { %9098 = vmatmul.msk.f32.gmra.mxu1 %vm844_vm1, %v1483_v19  ;;  %9102 = vmatmul.msk.f32.gmra.mxu2 %vm844_vm1, %v1483_v19 }
 0x228   : > { %v1486_v0 = vpop.f32.mrf.mxu2 }
 0x229   : > { %9091 = vmatmul.msk.f32.gmra.mxu3 %vm844_vm1, %v1486_v0  ;;  %9095 = vmatmul.msk.f32.gmra.mxu0 %vm844_vm1, %v1486_v0 }
 0x22a   : > { %9099 = vmatmul.msk.f32.gmra.mxu1 %vm844_vm1, %v1486_v0  ;;  %9103 = vmatmul.msk.f32.gmra.mxu2 %vm844_vm1, %v1486_v0 }
 0x231   : > { %9104 = vmatmul.msk.f32.vlgmr.msrb.gmra.mxu3 %vm844_vm1, %v1477_v14  ;;  %9112 = vmatmul.msk.f32.vlgmr.msra.gmra.mxu0 %vm635_vm0, %v9108_v5  ;;  %v9154_v14 = vld [vmem:[%s19678_s3 + $0x8b0] sm:$0xff]  ;;  %v9141_v5 = vld [vmem:[%s19678_s3 + $0x848] sm:$0xff] }
 0x232   : > { %1941 = vmatpush.msrb.mxu0 %v9154_v14  ;;  %1856 = vmatpush.msra.mxu1 %v9141_v5  ;;  %v9119_v5 = vld [vmem:[%s19678_s3 + $0x798] sm:$0xff] }
 0x234   : > { %1857 = vmatpush.msra.mxu1 %v9136_v43  ;;  %v9170_v43 = vld [vmem:[%s19678_s3 + $0x930] sm:$0xff] }
 0x236   : > { %1858 = vmatpush.msra.mxu1 %v9131_v54 }
 0x238   : > { %1859 = vmatpush.msra.mxu1 %v9126_v63 }
 0x239   : > { %9105 = vmatmul.msk.f32.gmra.mxu3 %vm844_vm1, %v1480_v18  ;;  %9113 = vmatmul.msk.f32.gmra.mxu0 %vm635_vm0, %v9109_v20  ;;  %v9147_v18 = vld [vmem:[%s19678_s3 + $0x878] sm:$0xff]  ;;  %v9142_v20 = vld [vmem:[%s19678_s3 + $0x850] sm:$0xff] }
 0x23a   : > { %1884 = vmatpush.msra.mxu2 %v9147_v18  ;;  %1860 = vmatpush.msra.mxu1 %v9121_v10  ;;  %v9117_v18 = vld [vmem:[%s19678_s3 + $0x788] sm:$0xff]  ;;  %v9140_v10 = vld [vmem:[%s19678_s3 + $0x840] sm:$0xff] }
 0x23c   : > { %1885 = vmatpush.msra.mxu2 %v9142_v20  ;;  %1861 = vmatpush.msra.mxu1 %v9116_v16  ;;  %v11919_v20 = vpop.f32.mrf.mxu1 }
 0x23e   : > { %1886 = vmatpush.msra.mxu2 %v9137_v50 }
 0x240   : > { %1887 = vmatpush.msra.mxu2 %v9132_v59  ;;  %v9160_v59 = vld [vmem:[%s19678_s3 + $0x8e0] sm:$0xff] }
 0x241   : > { %9106 = vmatmul.msk.f32.gmra.mxu3 %vm844_vm1, %v1483_v19  ;;  %9114 = vmatmul.msk.f32.gmra.mxu0 %vm635_vm0, %v9110_v21  ;;  %v9148_v19 = vld [vmem:[%s19678_s3 + $0x880] sm:$0xff]  ;;  %v9143_v21 = vld [vmem:[%s19678_s3 + $0x858] sm:$0xff] }
 0x242   : > { %1913 = vmatpush.msra.mxu3 %v9148_v19  ;;  %1888 = vmatpush.msra.mxu2 %v9127_v6  ;;  %v9118_v19 = vld [vmem:[%s19678_s3 + $0x790] sm:$0xff]  ;;  %v9145_v6 = vld [vmem:[%s19678_s3 + $0x868] sm:$0xff] }
 0x244   : > { %1914 = vmatpush.msra.mxu3 %v9143_v21  ;;  %1889 = vmatpush.msra.mxu2 %v9122_v11  ;;  %v9135_v11 = vld [vmem:[%s19678_s3 + $0x818] sm:$0xff] }
 0x246   : > { %1915 = vmatpush.msra.mxu3 %v9138_v51  ;;  %1890 = vmatpush.msra.mxu2 %v9117_v18  ;;  %v11931_v51 = vpop.f32.mrf.mxu1 }
 0x248   : > { %1916 = vmatpush.msra.mxu3 %v9133_v61  ;;  %v9155_v61 = vld [vmem:[%s19678_s3 + $0x8b8] sm:$0xff] }
 0x249   : > { %9107 = vmatmul.msk.f32.gmra.mxu3 %vm844_vm1, %v1486_v0  ;;  %9115 = vmatmul.msk.f32.gmra.mxu0 %vm635_vm0, %v9111_v23  ;;  %v9149_v0 = vld [vmem:[%s19678_s3 + $0x888] sm:$0xff]  ;;  %v11846_v23 = vpop.f32.mrf.mxu3 }
 0x24a   : > { %1942 = vmatpush.msrb.mxu0 %v9149_v0  ;;  %1917 = vmatpush.msra.mxu3 %v9128_v7 }
 0x24c   : > { %1943 = vmatpush.msrb.mxu0 %v9144_v38  ;;  %1918 = vmatpush.msra.mxu3 %v9123_v12  ;;  %v9175_v38 = vld [vmem:[%s19678_s3 + $0x958] sm:$0xff]  ;;  %v9130_v12 = vld [vmem:[%s19678_s3 + $0x7f0] sm:$0xff] }
 0x24d   : > { %1966 = vmatpush.msrb.mxu1 %v9175_v38 }
 0x24e   : > { %1944 = vmatpush.msrb.mxu0 %v9139_v52  ;;  %1919 = vmatpush.msra.mxu3 %v9118_v19  ;;  %v9165_v52 = vld [vmem:[%s19678_s3 + $0x908] sm:$0xff]  ;;  %v11952_v7 = vpop.f32.mrf.mxu1  ;;  %v9120_v19 = vld [vmem:[%s19678_s3 + $0x7a0] sm:$0xff] }
 0x24f   : > { %1967 = vmatpush.msrb.mxu1 %v9170_v43 }
 0x250   : > { %1945 = vmatpush.msrb.mxu0 %v9134_v62  ;;  %v9150_v62 = vld [vmem:[%s19678_s3 + $0x890] sm:$0xff] }
 0x251   : > { %v11914_v0 = vpop.f32.mrf.mxu3  ;;  %1968 = vmatpush.msrb.mxu1 %v9165_v52 }
 0x252   : > { %1946 = vmatpush.msrb.mxu0 %v9129_v8 }
 0x253   : > { %1969 = vmatpush.msrb.mxu1 %v9160_v59 }
 0x254   : > { %1947 = vmatpush.msrb.mxu0 %v9124_v13  ;;  %v9125_v13 = vld [vmem:[%s19678_s3 + $0x7c8] sm:$0xff]  ;;  %s10557_s3 = sshra.s32 %s8760_s29, 4  ;;  %s10558_s3 = int_to_ptr.hbm [resolvable:$true] %s10557_s3 }
 0x255   : > { %1970 = vmatpush.msrb.mxu1 %v9155_v61  ;;  %s10559_s28 = scalar_lea.hbm %s10558_s3, 1  ;;  %p10564_p0 = scmp.lt.s32.totalorder %s10558_s3, %s19646_s20 }
 0x256   : > { %1948 = vmatpush.msrb.mxu0 %v9119_v5  ;;  %v11975_v5 = vpop.f32.mrf.mxu1  ;;  %p10560_p11 = scmp.ne.s32.totalorder %s10558_s3, %s10559_s28  ;;  %p10565_p1 = scmp.lt.s32.totalorder %s10563_s2, %s10559_s28 }
 0x257   : > { %1971 = vmatpush.msrb.mxu1 %v9150_v62 }
 0x258   : > { %p10561_p12 = pnand %p10560_p11, %p10750_p5  ;;  %p10566_p2 = por %p10565_p1, %p10564_p0 }
 0x259   : > { %v11929_v50 = vpop.f32.mrf.mxu3  ;;  %1972 = vmatpush.msrb.mxu1 %v9145_v6 }
 0x25a   : > { %19686 = vst [vmem:[#allocation18_spill] sm:$0xff] %v11929_v50  ;;  %p10562_p13 = pneg %p10561_p12 }
 0x25b   : > { %1973 = vmatpush.msrb.mxu1 %v9140_v10 }
 0x25c   : > { %p10567_p3 = pnand %p10566_p2, %p10562_p13 }
 0x25d   : > { %1974 = vmatpush.msrb.mxu1 %v9135_v11 }
 0x25e   : > { %v11983_v52 = vpop.f32.mrf.mxu1 }
 0x25f   : > { %1975 = vmatpush.msrb.mxu1 %v9130_v12 }
 0x261   : > { %v11947_v63 = vpop.f32.mrf.mxu3  ;;  %1976 = vmatpush.msrb.mxu1 %v9125_v13 }
 0x262   : > { %19688 = vst [vmem:[#allocation20_spill] sm:$0xff] %v11947_v63 }
 0x263   : > { %1977 = vmatpush.msrb.mxu1 %v9120_v19 }
 0x266   : > { %v11993_v62 = vpop.f32.mrf.mxu1 }
 0x269   : > { %v11968_v16 = vpop.f32.mrf.mxu3 }
 0x26a   : > { %19690 = vst [vmem:[#allocation22_spill] sm:$0xff] %v11968_v16 }
 0x26e   : > { %v1301_v11 = vpop.f32.mrf.mxu1 }
 0x271   : > { %v11979_v43 = vpop.f32.mrf.mxu3 }
 0x272   : > { %19691 = vst [vmem:[#allocation23_spill] sm:$0xff] %v11979_v43 }
 0x276   : > { %v12002_v13 = vpop.f32.mrf.mxu1 }
 0x279   : > { %v11987_v61 = vpop.f32.mrf.mxu3 }
 0x27e   : > { %v12008_v50 = vpop.f32.mrf.mxu1 }
 0x27f   : > { %19692 = vst [vmem:[#allocation24_spill] sm:$0xff] %v12008_v50 }
 0x281   : > { %v1356_v10 = vpop.f32.mrf.mxu3 }
 0x286   : > { %v12013_v43 = vpop.f32.mrf.mxu1 }
 0x287   : > { %19694 = vst [vmem:[#allocation26_spill] sm:$0xff] %v12013_v43 }
 0x289   : > { %v12000_v12 = vpop.f32.mrf.mxu3 }
 0x28e   : > { %v11903_v14 = vpop.f32.mrf.mxu0 }
 0x28f   : > { %19684 = vst [vmem:[#allocation16_spill] sm:$0xff] %v11903_v14 }
 0x291   : > { %v12005_v19 = vpop.f32.mrf.mxu3 }
 0x295   : > { %v1666_v45 = vpop.f32.mrf.mxu2 }
 0x296   : > { %v11921_v21 = vpop.f32.mrf.mxu0 }
 0x297   : > { %19685 = vst [vmem:[#allocation17_spill] sm:$0xff] %v11921_v21 }
 0x299   : > { %v12010_v42 = vpop.f32.mrf.mxu3 }
 0x29a   : > { %19693 = vst [vmem:[#allocation25_spill] sm:$0xff] %v12010_v42 }
 0x29e   : > { %v11936_v54 = vpop.f32.mrf.mxu0 }
 0x29f   : > { %19687 = vst [vmem:[#allocation19_spill] sm:$0xff] %v11936_v54 }
 0x2a1   : > { %v12015_v46 = vpop.f32.mrf.mxu3 }
 0x2a2   : > { %19695 = vst [vmem:[#allocation27_spill] sm:$0xff] %v12015_v46 }
 0x2a6   : > { %v11954_v8 = vpop.f32.mrf.mxu0 }
 0x2a7   : > { %19689 = vst [vmem:[#allocation21_spill] sm:$0xff] %v11954_v8  ;;  %v12025_v8 = vpop.f32.mrf.mxu2 }
 0x2a8   : > { %19700 = vst [vmem:[#allocation32_spill] sm:$0xff] %v12025_v8 }
 0x2a9   : > { %v1585_v63 = vpop.f32.mrf.mxu3 }
 0x2ae   : > { %v1761_v18 = vpop.f32.mrf.mxu0 }
 0x2af   : > { %9176 = vmatmul.msk.f32.vlgmr.msra.gmra.mxu1 %vm844_vm1, %v1761_v18  ;;  %9180 = vmatmul.msk.f32.vlgmr.msra.gmra.mxu2 %vm844_vm1, %v1761_v18  ;;  %v1672_v43 = vpop.f32.mrf.mxu2 }
 0x2b0   : > { %9184 = vmatmul.msk.f32.vlgmr.msra.gmra.mxu3 %vm844_vm1, %v1761_v18  ;;  %9188 = vmatmul.msk.f32.vlgmr.msrb.gmra.mxu0 %vm844_vm1, %v1761_v18 }
 0x2b6   : > { %v1764_v38 = vpop.f32.mrf.mxu0 }
 0x2b7   : > { %9177 = vmatmul.msk.f32.gmra.mxu1 %vm844_vm1, %v1764_v38  ;;  %9181 = vmatmul.msk.f32.gmra.mxu2 %vm844_vm1, %v1764_v38  ;;  %v1675_v21 = vpop.f32.mrf.mxu2 }
 0x2b8   : > { %9185 = vmatmul.msk.f32.gmra.mxu3 %vm844_vm1, %v1764_v38  ;;  %9189 = vmatmul.msk.f32.gmra.mxu0 %vm844_vm1, %v1764_v38 }
 0x2be   : > { %v1767_v59 = vpop.f32.mrf.mxu0 }
 0x2bf   : > { %9178 = vmatmul.msk.f32.gmra.mxu1 %vm844_vm1, %v1767_v59  ;;  %9182 = vmatmul.msk.f32.gmra.mxu2 %vm844_vm1, %v1767_v59 }
 0x2c0   : > { %9186 = vmatmul.msk.f32.gmra.mxu3 %vm844_vm1, %v1767_v59  ;;  %9190 = vmatmul.msk.f32.gmra.mxu0 %vm844_vm1, %v1767_v59 }
 0x2c6   : > { %v1770_v6 = vpop.f32.mrf.mxu0 }
 0x2c7   : > { %9179 = vmatmul.msk.f32.gmra.mxu1 %vm844_vm1, %v1770_v6  ;;  %9183 = vmatmul.msk.f32.gmra.mxu2 %vm844_vm1, %v1770_v6 }
 0x2c8   : > { %9187 = vmatmul.msk.f32.gmra.mxu3 %vm844_vm1, %v1770_v6  ;;  %9191 = vmatmul.msk.f32.gmra.mxu0 %vm844_vm1, %v1770_v6 }
 0x2cf   : > { %9192 = vmatmul.msk.f32.vlgmr.msrb.gmra.mxu1 %vm844_vm1, %v1761_v18  ;;  %v12017_v18 = vpop.f32.mrf.mxu1 }
 0x2d0   : > { %19696 = vst [vmem:[#allocation28_spill] sm:$0xff] %v12017_v18 }
 0x2d7   : > { %9193 = vmatmul.msk.f32.gmra.mxu1 %vm844_vm1, %v1764_v38  ;;  %v12019_v44 = vpop.f32.mrf.mxu1  ;;  %v12021_v38 = vpop.f32.mrf.mxu3 }
 0x2d8   : > { %19697 = vst [vmem:[#allocation29_spill] sm:$0xff] %v12019_v44 }
 0x2d9   : > { %19698 = vst [vmem:[#allocation30_spill] sm:$0xff] %v12021_v38 }
 0x2df   : > { %9194 = vmatmul.msk.f32.gmra.mxu1 %vm844_vm1, %v1767_v59  ;;  %v1637_v16 = vpop.f32.mrf.mxu1  ;;  %v12023_v59 = vpop.f32.mrf.mxu3 }
 0x2e0   : > { %19699 = vst [vmem:[#allocation31_spill] sm:$0xff] %v12023_v59 }
 0x2e7   : > { %9195 = vmatmul.msk.f32.gmra.mxu1 %vm844_vm1, %v1770_v6  ;;  %v1640_v50 = vpop.f32.mrf.mxu1  ;;  %v12027_v54 = vpop.f32.mrf.mxu3 }
 0x2e8   : > { %19701 = vst [vmem:[#allocation33_spill] sm:$0xff] %v12027_v54 }
 0x2ef   : > { %v12029_v6 = vpop.f32.mrf.mxu1  ;;  %v12031_v46 = vpop.f32.mrf.mxu3 }
 0x2f0   : > { %19702 = vst [vmem:[#allocation34_spill] sm:$0xff] %v12029_v6  ;;  %v1061_v6 = vadd.f32 %v11402_v15, %v11739_v26  ;;  %v1038_v15 = vadd.f32 %v11846_v23, %v11478_v37  ;;  %v1125_v37 = vadd.f32 %v11539_v60, %v11799_v4  ;;  %v19710_v4 = vld [vmem:[#allocation16_spill] sm:$0xff] }
 0x2f1   : > { %19703 = vst [vmem:[#allocation35_spill] sm:$0xff] %v12031_v46  ;;  %v1090_v46 = vadd.f32 %v11919_v20, %v11253_v24  ;;  %v1096_v24 = vadd.f32 %v11952_v7, %v11302_v41  ;;  %v1122_v41 = vadd.f32 %v11507_v48, %v11757_v36 }
 0x2f2   : > { %v1436_v36 = vadd.f32 %v11785_v56, %v1125_v37  ;;  %v19712_v56 = vld [vmem:[#allocation17_spill] sm:$0xff] }
 0x2f3   : > { %v1431_v48 = vadd.f32 %v11755_v35, %v1122_v41 }
 0x2f7   : > { %v12033_v18 = vpop.f32.mrf.mxu1  ;;  %v12035_v44 = vpop.f32.mrf.mxu3 }
 0x2f8   : > { %19704 = vst [vmem:[#allocation36_spill] sm:$0xff] %v12033_v18 }
 0x2f9   : > { %19705 = vst [vmem:[#allocation37_spill] sm:$0xff] %v12035_v44  ;;  %v1032_v44 = vadd.f32 %v11753_v33, %v11461_v32  ;;  %v1433_v33 = vadd.f32 %v1301_v11, %v1038_v15 }
 0x32c   : > { %v12037_v38 = vpop.f32.mrf.mxu1 }
 0x32d   : > { %19706 = vst [vmem:[#allocation38_spill] sm:$0xff] %v12037_v38  ;;  %v12039_v42 = vpop.f32.mrf.mxu0  ;;  %v1064_v38 = vadd.f32 %v11410_v17, %v11743_v27  ;;  %v1070_v17 = vadd.f32 %v11436_v22, %v11747_v29  ;;  %v1128_v22 = vadd.f32 %v11595_v2, %v11865_v53  ;;  %v1425_v29 = vadd.f32 %v11987_v61, %v1090_v46  ;;  %v19711_v53 = vld [vmem:[#allocation25_spill] sm:$0xff] }
 0x32e   : > { %19707 = vst [vmem:[#allocation39_spill] sm:$0xff] %v12039_v42  ;;  %v1067_v42 = vadd.f32 %v11422_v1, %v11745_v28  ;;  %v1041_v1 = vadd.f32 %v11914_v0, %v11485_v39  ;;  %v1424_v28 = vadd.f32 %v11645_v49, %v1061_v6 }
 0x32f   : > { %v1441_v49 = vadd.f32 %v11851_v40, %v1128_v22  ;;  %v1439_v46 = vadd.f32 %v11688_v9, %v1070_v17  ;;  %v1709_v23 = vadd.f32 %v1637_v16, %v1425_v29  ;;  %v19714_v9 = vld [vmem:[#allocation27_spill] sm:$0xff] }
 0x330   : > { %v1434_v2 = vadd.f32 %v11674_v3, %v1067_v42  ;;  %v1708_v35 = vadd.f32 %v19710_v4, %v1424_v28  ;;  %v1720_v42 = vadd.f32 %v1672_v43, %v1436_v36  ;;  %v12103_v3 = vld [vmem:[%s19713_s4] sm:$0x1f]  ;;  %s620_s4 = sand.u32 1, %s10597_s22  }
 0x331   : > { %v1725_v11 = vadd.f32 %v1675_v21, %v1441_v49  ;;  %v2016_v17 = vperm.slane %v12103_v3, 3  ;;  %s621_s1 = scalar_lea.vmem [#allocation2], %s620_s4  ;;  %s8747_s23 = scalar_lea.sflag [#allocation3], %s620_s4 }
 0x332   : > { %v12041_v59 = vpop.f32.mrf.mxu2  ;;  %s8757_s27 = sshll.u32 %s621_s1, 4  ;;  %s8758_s27 = int_to_ptr.vmem [resolvable:$true] %s8757_s27 }
 0x333   : > { %19708 = vst [vmem:[#allocation40_spill] sm:$0xff] %v12041_v59  ;;  %v12043_v14 = vpop.f32.mrf.mxu3  ;;  %v1093_v59 = vadd.f32 %v11931_v51, %v11255_v25  ;;  %v1119_v25 = vadd.f32 %v11505_v47, %v11751_v31  ;;  %v1423_v47 = vadd.f32 %v11983_v52, %v1032_v44  ;;  %v1429_v31 = vadd.f32 %v11662_v57, %v1064_v38 }
 0x334   : > { %19709 = vst [vmem:[#allocation41_spill] sm:$0xff] %v12043_v14  ;;  %v1866_v8 = vpop.f32.mrf.mxu1  ;;  %v1035_v14 = vadd.f32 %v11783_v55, %v11467_v34  ;;  %v1099_v34 = vadd.f32 %v11975_v5, %v11352_v58  ;;  %v1435_v44 = vadd.f32 %v12000_v12, %v1096_v24  ;;  %v1717_v57 = vadd.f32 %v1585_v63, %v1433_v33  ;;  %v19715_v5 = vld [vmem:[#allocation30_spill] sm:$0xff]  ;;  %v19716_v63 = vld [vmem:[#allocation32_spill] sm:$0xff]  ;;  %v19719_v24 = vld [vmem:[#allocation21_spill] sm:$0xff] }
 0x335   : > { %v12045_v54 = vpop.f32.mrf.mxu0  ;;  %v1426_v27 = vadd.f32 %v11749_v30, %v1119_v25  ;;  %v1430_v60 = vadd.f32 %v1356_v10, %v1093_v59  ;;  %v1438_v30 = vadd.f32 %v12002_v13, %v1041_v1  ;;  %v1713_v20 = vadd.f32 %v19712_v56, %v1429_v31  ;;  %v19717_v10 = vld [vmem:[#allocation19_spill] sm:$0xff]  ;;  %v19718_v13 = vld [vmem:[#allocation34_spill] sm:$0xff]  ;;  %v19720_v1 = vld [vmem:[#allocation36_spill] sm:$0xff] }
 0x336   : > { %v1428_v39 = vadd.f32 %v11993_v62, %v1035_v14  ;;  %v1440_v55 = vadd.f32 %v12005_v19, %v1099_v34  ;;  %v1707_v14 = vadd.f32 %v19711_v53, %v1423_v47  ;;  %v1715_v62 = vadd.f32 %v19716_v63, %v1431_v48  ;;  %v19721_v37 = vld [vmem:[#allocation38_spill] sm:$0xff]  ;;  %v19722_v47 = vld [vmem:[#allocation39_spill] sm:$0xff] }
 0x337   : > { %v1710_v0 = vadd.f32 %v1666_v45, %v1426_v27  ;;  %v1714_v51 = vadd.f32 %v1640_v50, %v1430_v60  ;;  %v1722_v52 = vadd.f32 %v19715_v5, %v1438_v30  ;;  %v1718_v45 = vadd.f32 %v19717_v10, %v1434_v2 }
 0x338   : > { %v1712_v7 = vadd.f32 %v19714_v9, %v1428_v39  ;;  %v1719_v19 = vadd.f32 %v19718_v13, %v1435_v44  ;;  %v2013_v38 = vperm.slane %v12103_v3, 0  ;;  %v1723_v15 = vadd.f32 %v19719_v24, %v1439_v46  ;;  %v19727_v24 = vld [vmem:[#allocation22_spill] sm:$0xff] }
 0x339   : > { %v1999_v25 = vadd.f32 %v12045_v54, %v1715_v62  ;;  %v1724_v41 = vadd.f32 %v19720_v1, %v1440_v55  ;;  %v1991_v21 = vadd.f32 %v19721_v37, %v1707_v14  ;;  %v1994_v27 = vadd.f32 %v19722_v47, %v1710_v0  ;;  %v19730_v1 = vld [vmem:[#allocation15_spill] sm:$0xff]  ;;  %v19734_v47 = vld [vmem:[#allocation18_spill] sm:$0xff] }
 0x33a   : > { %v12061_v18 = vpop.f32.mrf.mxu2  ;;  %v1996_v59 = vadd.f32 %v1866_v8, %v1712_v7  ;;  %v2015_v48 = vperm.slane %v12103_v3, 2  ;;  %v19723_v14 = vld [vmem:[#allocation40_spill] sm:$0xff] }
 0x33b   : > { %v12071_v32 = vpop.f32.mrf.mxu3  ;;  %v12130_v31 = vadd.f32 %v2016_v17, %v1999_v25  ;;  %v12133_v2 = vadd.f32 %v2013_v38, %v1991_v21  ;;  %v1997_v44 = vadd.f32 %v12061_v18, %v1713_v20  ;;  %v12140_v55 = vadd.f32 %v2016_v17, %v1994_v27  ;;  %v19729_v25 = vld [vmem:[#allocation20_spill] sm:$0xff] }
 0x33c   : > { %v1869_v26 = vpop.f32.mrf.mxu1  ;;  %v12126_v29 = vadd.f32 %v2013_v38, %v1996_v59  ;;  %v1998_v4 = vadd.f32 %v12071_v32, %v1714_v51  ;;  %v1992_v0 = vadd.f32 %v19723_v14, %v1708_v35  ;;  %v12180_v59 = vld [vmem:[%s19725_s21 + $0x8] sm:$0x3f] }
 0x33d   : > { %v1956_v58 = vpop.f32.mrf.mxu0  ;;  %v2001_v61 = vadd.f32 %v1869_v26, %v1717_v57  ;;  %v2051_v51 = vmax.f32 %v12130_v31, 0.0  ;;  %v2046_v63 = vmax.f32 %v12140_v55, 0.0  ;;  %v19732_v21 = vld [vmem:[#allocation28_spill] sm:$0xff] }
 0x33e   : > { %v2004_v12 = vadd.f32 %v1956_v58, %v1720_v42  ;;  %v2014_v58 = vperm.slane %v12103_v3, 1  ;;  %v2048_v42 = vmax.f32 %v12126_v29, 0.0  ;;  %v2030_v35 = vadd.f32 %v2015_v48, %v1998_v4  ;;  %v2408_v31 = vld [vmem:[%s19743_s6 + $0x240] sm:$0xff]  ;;  %v2405_v55 = vld [vmem:[%s19743_s6 + $0x228] sm:$0xff] }
 0x33f   : > { %v12116_v26 = vadd.f32 %v2013_v38, %v2001_v61  ;;  %v2043_v61 = vmax.f32 %v12133_v2, 0.0  ;;  %v19739_v2 = vld [vmem:[#allocation24_spill] sm:$0xff] }
 0x340   : > { %v12121_v8 = vadd.f32 %v2016_v17, %v2004_v12  ;;  %v2029_v5 = vadd.f32 %v2014_v58, %v1997_v44  ;;  %v2024_v62 = vadd.f32 %v2014_v58, %v1992_v0  ;;  %v2050_v13 = vmax.f32 %v2030_v35, 0.0  ;;  %v19742_v0 = vld [vmem:[#allocation31_spill] sm:$0xff] }
 0x341   : > { %v2053_v46 = vmax.f32 %v12116_v26, 0.0 }
 0x342   : > { %v1898_v40 = vpop.f32.mrf.mxu2  ;;  %v2056_v18 = vmax.f32 %v12121_v8, 0.0  ;;  %v2049_v12 = vmax.f32 %v2029_v5, 0.0  ;;  %v2477_v8 = vld [vmem:[%s19743_s6 + $0x468] sm:$0xff] }
 0x343   : > { %v1927_v16 = vpop.f32.mrf.mxu3  ;;  %v2002_v54 = vadd.f32 %v1898_v40, %v1718_v45  ;;  %v19724_v40 = vld [vmem:[#allocation41_spill] sm:$0xff] }
 0x344   : > { %v1872_v43 = vpop.f32.mrf.mxu1  ;;  %v2003_v60 = vadd.f32 %v1927_v16, %v1719_v19  ;;  %v1993_v9 = vadd.f32 %v19724_v40, %v1709_v23  ;;  %v12162_v23 = vld [vmem:[%s19725_s21] sm:$0xff]  ;;  %v2044_v19 = vmax.f32 %v2024_v62, 0.0  ;;  %v2426_v62 = vld [vmem:[%s19743_s6 + $0x2d0] sm:$0xff] }
 0x345   : > { %v2006_v6 = vadd.f32 %v1872_v43, %v1722_v52  ;;  %v1959_v50 = vpop.f32.mrf.mxu0  ;;  %v2034_v56 = vadd.f32 %v2014_v58, %v2002_v54  ;;  %v19736_v54 = vld [vmem:[#allocation29_spill] sm:$0xff] }
 0x346   : > { %v2009_v34 = vadd.f32 %v1959_v50, %v1725_v11  ;;  %v2035_v7 = vadd.f32 %v2015_v48, %v2003_v60  ;;  %v2025_v45 = vadd.f32 %v2015_v48, %v1993_v9  ;;  %v19726_v50 = vld [vmem:[#allocation14_spill] sm:$0xff] }
 0x347   : > { %v12118_v22 = vadd.f32 %v2013_v38, %v2006_v6  ;;  %v2054_v10 = vmax.f32 %v2034_v56, 0.0 }
 0x348   : > { %v12123_v28 = vadd.f32 %v2016_v17, %v2009_v34  ;;  %v2055_v11 = vmax.f32 %v2035_v7, 0.0  ;;  %v2045_v38 = vmax.f32 %v2025_v45, 0.0  ;;  %v19728_v17 = vld [vmem:[#allocation13_spill] sm:$0xff]  ;;  %v2423_v45 = vld [vmem:[%s19743_s6 + $0x2b8] sm:$0xff] }
 0x349   : > { %v2058_v39 = vmax.f32 %v12118_v22, 0.0  ;;  %v1151_v34 = vadd.f32 %v19729_v25, %v19728_v17  ;;  %v19733_v22 = vld [vmem:[#allocation12_spill] sm:$0xff]  ;;  %v2522_v25 = vld [vmem:[%s19743_s6 + $0x5d0] sm:$0xff] }
 0x34a   : > { %v2061_v33 = vmax.f32 %v12123_v28, 0.0  ;;  %v1901_v36 = vpop.f32.mrf.mxu2  ;;  %v1148_v27 = vadd.f32 %v19734_v47, %v19733_v22  ;;  %v2411_v28 = vld [vmem:[%s19743_s6 + $0x258] sm:$0xff]  ;;  %v2369_v17 = vld [vmem:[%s19743_s6 + $0x108] sm:$0xff] }
 0x34b   : > { %v2007_v30 = vadd.f32 %v1901_v36, %v1723_v15  ;;  %v1930_v49 = vpop.f32.mrf.mxu3  ;;  %9196 = vmatpush.msk.msrb.mxu2 %vm2072_vm2, %v2058_v39  ;;  %v1154_v15 = vadd.f32 %v19727_v24, %v19726_v50  ;;  %v12207_v36 = vld [vmem:[%s19738_s5] sm:$0xff]  ;;  %v2525_v50 = vld [vmem:[%s19743_s6 + $0x5e8] sm:$0xff]  ;;  %v2387_v22 = vld [vmem:[%s19743_s6 + $0x198] sm:$0xff] }
 0x34c   : > { %v2008_v57 = vadd.f32 %v1930_v49, %v1724_v41  ;;  %9205 = vmatpush.msk.msra.mxu1 %vm2072_vm2, %v2061_v33  ;;  %v12146_v53 = vpop.f32.mrf.mxu1  ;;  %v19731_v41 = vld [vmem:[#allocation23_spill] sm:$0xff]  ;;  %v1427_v44 = vadd.f32 %v19739_v2, %v1148_v27  ;;  %v2453_v47 = vld [vmem:[%s19743_s6 + $0x3a8] sm:$0xff] }
 0x34d   : > { %v2039_v20 = vadd.f32 %v2014_v58, %v2007_v30  ;;  %2101 = vmatpush.msrb.mxu2 %v2053_v46  ;;  %v1157_v37 = vadd.f32 %v19731_v41, %v19730_v1  ;;  %v1437_v26 = vadd.f32 %v19732_v21, %v1154_v15  ;;  %v19735_v58 = vld [vmem:[#allocation26_spill] sm:$0xff]  ;;  %v19740_v30 = vld [vmem:[#allocation33_spill] sm:$0xff]  ;;  %v2396_v24 = vld [vmem:[%s19743_s6 + $0x1e0] sm:$0xff] }
 0x34e   : > { %v2040_v32 = vadd.f32 %v2015_v48, %v2008_v57  ;;  %2170 = vmatpush.msra.mxu1 %v2056_v18  ;;  %v1432_v29 = vadd.f32 %v19735_v58, %v1151_v34  ;;  %v19737_v48 = vld [vmem:[#allocation35_spill] sm:$0xff]  ;;  %v1711_v56 = vadd.f32 %v19742_v0, %v1427_v44  ;;  %v2462_v15 = vld [vmem:[%s19743_s6 + $0x3f0] sm:$0xff]  ;;  %v2393_v34 = vld [vmem:[%s19743_s6 + $0x1c8] sm:$0xff] }
 0x34f   : > { %v2059_v52 = vmax.f32 %v2039_v20, 0.0  ;;  %2102 = vmatpush.msrb.mxu2 %v2048_v42  ;;  %v1721_v60 = vadd.f32 %v19737_v48, %v1437_v26  ;;  %v2017_v20 = vperm.slane %v12103_v3, 4  ;;  %v2459_v1 = vld [vmem:[%s19743_s6 + $0x3d8] sm:$0xff]  ;;  %v2366_v41 = vld [vmem:[%s19743_s6 + $0xf0] sm:$0xff]  ;;  %v2456_v26 = vld [vmem:[%s19743_s6 + $0x3c0] sm:$0xff] }
 0x350   : > { %v2060_v16 = vmax.f32 %v2040_v32, 0.0  ;;  %2171 = vmatpush.msra.mxu1 %v2051_v51  ;;  %v1716_v49 = vadd.f32 %v19740_v30, %v1432_v29  ;;  %v1995_v9 = vadd.f32 %v12146_v53, %v1711_v56  ;;  %v2390_v21 = vld [vmem:[%s19743_s6 + $0x1b0] sm:$0xff]  ;;  %v2384_v27 = vld [vmem:[%s19743_s6 + $0x180] sm:$0xff]  ;;  %v2441_v48 = vld [vmem:[%s19743_s6 + $0x348] sm:$0xff] }
 0x351   : > { %2103 = vmatpush.msrb.mxu2 %v2043_v61  ;;  %9199 = vmatpush.msk.msrb.mxu3 %vm2072_vm2, %v2059_v52  ;;  %v2450_v58 = vld [vmem:[%s19743_s6 + $0x390] sm:$0xff]  ;;  %v2432_v2 = vld [vmem:[%s19743_s6 + $0x300] sm:$0xff]  ;;  %v2427_v30 = vld [vmem:[%s19743_s6 + $0x2d8] sm:$0xff] }
 0x352   : > { %9202 = vmatpush.msk.msra.mxu0 %vm2072_vm2, %v2060_v16  ;;  %2172 = vmatpush.msra.mxu1 %v2046_v63  ;;  %v2027_v3 = vadd.f32 %v2017_v20, %v1995_v9  ;;  %v2382_v29 = vld [vmem:[%s19743_s6 + $0x170] sm:$0xff]  ;;  %v2363_v0 = vld [vmem:[%s19743_s6 + $0xd8] sm:$0xff]  ;;  %v2516_v56 = vld [vmem:[%s19743_s6 + $0x5a0] sm:$0xff] }
 0x353   : > { %9206 = vmatmul.msk.f32.vlgmr.msra.gmra.mxu1 %vm2065_vm3, %v12162_v23  ;;  %2124 = vmatpush.msrb.mxu3 %v2054_v10  ;;  %v2430_v44 = vld [vmem:[%s19743_s6 + $0x2f0] sm:$0xff]  ;;  %v2513_v9 = vld [vmem:[%s19743_s6 + $0x588] sm:$0xff] }
 0x354   : > { %9217 = vmatpush.msk.msrb.mxu1 %vm2072_vm2, %v2060_v16  ;;  %2147 = vmatpush.msra.mxu0 %v2055_v11  ;;  %v1982_v43 = vpop.f32.mrf.mxu1  ;;  %v2429_v16 = vld [vmem:[%s19743_s6 + $0x2e8] sm:$0xff] }
 0x355   : > { %2125 = vmatpush.msrb.mxu3 %v2049_v12  ;;  %9197 = vmatmul.msk.f32.vlgmr.msrb.gmra.mxu2 %vm2065_vm3, %v12162_v23 }
 0x356   : > { %2270 = vmatpush.msrb.mxu1 %v2055_v11  ;;  %2148 = vmatpush.msra.mxu0 %v2050_v13  ;;  %v2420_v11 = vld [vmem:[%s19743_s6 + $0x2a0] sm:$0xff] }
 0x357   : > { %2126 = vmatpush.msrb.mxu3 %v2044_v19 }
 0x358   : > { %2271 = vmatpush.msrb.mxu1 %v2050_v13  ;;  %2149 = vmatpush.msra.mxu0 %v2045_v38  ;;  %v2468_v13 = vld [vmem:[%s19743_s6 + $0x420] sm:$0xff] }
 0x359   : > { %9200 = vmatmul.msk.f32.vlgmr.msrb.gmra.mxu3 %vm2065_vm3, %v12162_v23  ;;  %9203 = vmatmul.msk.f32.vlgmr.msra.gmra.mxu0 %vm2065_vm3, %v12162_v23 }
 0x35a   : > { %9211 = vmatpush.msk.msra.mxu3 %vm2072_vm2, %v2058_v39  ;;  %9214 = vmatpush.msk.msrb.mxu0 %vm2072_vm2, %v2059_v52  ;;  %v1442_v39 = vadd.f32 %v19736_v54, %v1157_v37  ;;  %v2519_v37 = vld [vmem:[%s19743_s6 + $0x5b8] sm:$0xff] }
 0x35b   : > { %2272 = vmatpush.msrb.mxu1 %v2045_v38  ;;  %v2399_v38 = vld [vmem:[%s19743_s6 + $0x1f8] sm:$0xff] }
 0x35c   : > { %9207 = vmatmul.msk.f32.gmra.mxu1 %vm2065_vm3, %v12180_v59  ;;  %2224 = vmatpush.msra.mxu3 %v2053_v46  ;;  %v1985_v6 = vpop.f32.mrf.mxu1  ;;  %v19741_v46 = vld [vmem:[#allocation37_spill] sm:$0xff]  ;;  %v2447_v54 = vld [vmem:[%s19743_s6 + $0x378] sm:$0xff] }
 0x35d   : > { %2247 = vmatpush.msrb.mxu0 %v2054_v10  ;;  %9198 = vmatmul.msk.f32.gmra.mxu2 %vm2065_vm3, %v12180_v59  ;;  %v1726_v4 = vadd.f32 %v19741_v46, %v1442_v39  ;;  %v2005_v57 = vadd.f32 %v1985_v6, %v1721_v60  ;;  %v2047_v10 = vmax.f32 %v2027_v3, 0.0  ;;  %v2372_v6 = vld [vmem:[%s19743_s6 + $0x120] sm:$0xff]  ;;  %v2438_v60 = vld [vmem:[%s19743_s6 + $0x330] sm:$0xff]  ;;  %v2421_v46 = vld [vmem:[%s19743_s6 + $0x2a8] sm:$0xff] }
 0x35e   : > { %2225 = vmatpush.msra.mxu3 %v2048_v42  ;;  %v2000_v42 = vadd.f32 %v1982_v43, %v1716_v49  ;;  %2576 = vmatpush.msra.mxu1 %v2429_v16  ;;  %v2414_v43 = vld [vmem:[%s19743_s6 + $0x270] sm:$0xff]  ;;  %v2444_v39 = vld [vmem:[%s19743_s6 + $0x360] sm:$0xff]  ;;  %v2403_v3 = vld [vmem:[%s19743_s6 + $0x218] sm:$0xff] }
 0x35f   : > { %2248 = vmatpush.msrb.mxu0 %v2049_v12  ;;  %v2037_v7 = vadd.f32 %v2017_v20, %v2005_v57  ;;  %v2417_v12 = vld [vmem:[%s19743_s6 + $0x288] sm:$0xff]  ;;  %v2424_v49 = vld [vmem:[%s19743_s6 + $0x2c0] sm:$0xff]  ;;  %v2415_v57 = vld [vmem:[%s19743_s6 + $0x278] sm:$0xff] }
 0x360   : > { %2226 = vmatpush.msra.mxu3 %v2043_v61  ;;  %v2032_v5 = vadd.f32 %v2017_v20, %v2000_v42  ;;  %v12224_v61 = vld [vmem:[%s19738_s5 + $0x8] sm:$0x3f]  ;;  %2577 = vmatpush.msra.mxu1 %v2426_v62  ;;  %v2370_v16 = vld [vmem:[%s19743_s6 + $0x110] sm:$0xff]  ;;  %v2400_v62 = vld [vmem:[%s19743_s6 + $0x200] sm:$0xff] }
 0x361   : > { %2249 = vmatpush.msrb.mxu0 %v2044_v19  ;;  %9201 = vmatmul.msk.f32.gmra.mxu3 %vm2065_vm3, %v12180_v59  ;;  %v2057_v53 = vmax.f32 %v2037_v7, 0.0  ;;  %v2375_v19 = vld [vmem:[%s19743_s6 + $0x138] sm:$0xff]  ;;  %v2409_v42 = vld [vmem:[%s19743_s6 + $0x248] sm:$0xff]  ;;  %v2376_v7 = vld [vmem:[%s19743_s6 + $0x140] sm:$0xff] }
 0x362   : > { %9204 = vmatmul.msk.f32.gmra.mxu0 %vm2065_vm3, %v12180_v59  ;;  %v2052_v35 = vmax.f32 %v2032_v5, 0.0  ;;  %2578 = vmatpush.msra.mxu1 %v2423_v45  ;;  %v2357_v5 = vld [vmem:[%s19743_s6 + $0xa8] sm:$0xff]  ;;  %v2504_v45 = vld [vmem:[%s19743_s6 + $0x540] sm:$0xff] }
 0x364   : > { %9218 = vmatmul.msk.f32.vlgmr.msrb.gmra.mxu1 %vm2065_vm3, %v12207_v36  ;;  %v1988_v14 = vpop.f32.mrf.mxu1 }
 0x365   : > { %v2010_v40 = vadd.f32 %v1988_v14, %v1726_v4  ;;  %2579 = vmatpush.msra.mxu1 %v2420_v11  ;;  %v2418_v4 = vld [vmem:[%s19743_s6 + $0x290] sm:$0xff]  ;;  %v2412_v14 = vld [vmem:[%s19743_s6 + $0x260] sm:$0xff]  ;;  %v2367_v11 = vld [vmem:[%s19743_s6 + $0xf8] sm:$0xff] }
 0x367   : > { %v2042_v32 = vadd.f32 %v2017_v20, %v2010_v40  ;;  %2580 = vmatpush.msra.mxu1 %v2417_v12  ;;  %v2379_v20 = vld [vmem:[%s19743_s6 + $0x158] sm:$0xff]  ;;  %v2360_v40 = vld [vmem:[%s19743_s6 + $0xc0] sm:$0xff]  ;;  %v2397_v12 = vld [vmem:[%s19743_s6 + $0x1e8] sm:$0xff] }
 0x369   : > { %v2062_v52 = vmax.f32 %v2042_v32, 0.0  ;;  %9212 = vmatmul.msk.f32.vlgmr.msra.gmra.mxu3 %vm2065_vm3, %v12207_v36  ;;  %2581 = vmatpush.msra.mxu1 %v2414_v43  ;;  %v2406_v32 = vld [vmem:[%s19743_s6 + $0x230] sm:$0xff]  ;;  %v2348_v43 = vld [vmem:[%s19743_s6 + $0x60] sm:$0xff] }
 0x36a   : > { %9215 = vmatmul.msk.f32.vlgmr.msrb.gmra.mxu0 %vm2065_vm3, %v12207_v36 }
 0x36b   : > { %9208 = vmatpush.msk.msra.mxu2 %vm2072_vm2, %v2062_v52  ;;  %9223 = vmatpush.msk.msrb.mxu3 %vm2072_vm2, %v2062_v52  ;;  %v2510_v52 = vld [vmem:[%s19743_s6 + $0x570] sm:$0xff] }
 0x36c   : > { %9219 = vmatmul.msk.f32.gmra.mxu1 %vm2065_vm3, %v12224_v61 }
 0x36d   : > { %2193 = vmatpush.msra.mxu2 %v2057_v53  ;;  %2316 = vmatpush.msrb.mxu3 %v2057_v53  ;;  %v2354_v53 = vld [vmem:[%s19743_s6 + $0x90] sm:$0xff] }
 0x36e   : > { %2582 = vmatpush.msra.mxu1 %v2411_v28  ;;  %v2501_v28 = vld [vmem:[%s19743_s6 + $0x528] sm:$0xff] }
 0x36f   : > { %2194 = vmatpush.msra.mxu2 %v2052_v35  ;;  %2317 = vmatpush.msrb.mxu3 %v2052_v35  ;;  %v2507_v35 = vld [vmem:[%s19743_s6 + $0x558] sm:$0xff] }
 0x370   : > { %2583 = vmatpush.msra.mxu1 %v2408_v31  ;;  %v2394_v31 = vld [vmem:[%s19743_s6 + $0x1d0] sm:$0xff] }
 0x371   : > { %9213 = vmatmul.msk.f32.gmra.mxu3 %vm2065_vm3, %v12224_v61  ;;  %2195 = vmatpush.msra.mxu2 %v2047_v10 }
 0x372   : > { %9216 = vmatmul.msk.f32.gmra.mxu0 %vm2065_vm3, %v12224_v61  ;;  %2318 = vmatpush.msrb.mxu3 %v2047_v10  ;;  %v2351_v10 = vld [vmem:[%s19743_s6 + $0x78] sm:$0xff] }
 0x373   : > { %9209 = vmatmul.msk.f32.vlgmr.msra.gmra.mxu2 %vm2065_vm3, %v12162_v23  ;;  %v2402_v23 = vld [vmem:[%s19743_s6 + $0x210] sm:$0xff]  ;;  %2584 = vmatpush.msra.mxu1 %v2405_v55  ;;  %v2361_v55 = vld [vmem:[%s19743_s6 + $0xc8] sm:$0xff] }
 0x374   : > { %9220 = vmatpush.msk.msrb.mxu2 %vm2072_vm2, %v2061_v33  ;;  %v2474_v33 = vld [vmem:[%s19743_s6 + $0x450] sm:$0xff]  ;;  %2622 = vmatpush.msra.mxu3 %v2525_v50  ;;  %v2385_v50 = vld [vmem:[%s19743_s6 + $0x188] sm:$0xff] }
 0x375   : > { %2585 = vmatpush.msra.mxu1 %v2402_v23  ;;  %v2495_v23 = vld [vmem:[%s19743_s6 + $0x4f8] sm:$0xff] }
 0x376   : > { %2293 = vmatpush.msrb.mxu2 %v2056_v18  ;;  %v2381_v18 = vld [vmem:[%s19743_s6 + $0x168] sm:$0xff]  ;;  %2623 = vmatpush.msra.mxu3 %v2522_v25  ;;  %v2543_v25 = vld [vmem:[%s19743_s6 + $0x678] sm:$0xff] }
 0x377   : > { %2553 = vmatpush.msra.mxu0 %v2381_v18  ;;  %2586 = vmatpush.msra.mxu1 %v2399_v38  ;;  %v2498_v18 = vld [vmem:[%s19743_s6 + $0x510] sm:$0xff]  ;;  %v2339_v38 = vld [vmem:[%s19743_s6 + $0x18] sm:$0xff] }
 0x378   : > { %2294 = vmatpush.msrb.mxu2 %v2051_v51  ;;  %v2471_v51 = vld [vmem:[%s19743_s6 + $0x438] sm:$0xff]  ;;  %2624 = vmatpush.msra.mxu3 %v2519_v37 }
 0x379   : > { %9224 = vmatmul.msk.f32.vlgmr.msrb.gmra.mxu3 %vm2065_vm3, %v12207_v36  ;;  %2587 = vmatpush.msra.mxu1 %v2396_v24  ;;  %v2336_v24 = vld [vmem:[%s19743_s6] sm:$0xff]  ;;  %v2483_v37 = vld [vmem:[%s19743_s6 + $0x498] sm:$0xff] }
 0x37a   : > { %2295 = vmatpush.msrb.mxu2 %v2046_v63  ;;  %v2378_v63 = vld [vmem:[%s19743_s6 + $0x150] sm:$0xff]  ;;  %2625 = vmatpush.msra.mxu3 %v2516_v56 }
 0x37b   : > { %9210 = vmatmul.msk.f32.gmra.mxu2 %vm2065_vm3, %v12180_v59  ;;  %2554 = vmatpush.msra.mxu0 %v2378_v63  ;;  %v2465_v59 = vld [vmem:[%s19743_s6 + $0x408] sm:$0xff]  ;;  %v2342_v63 = vld [vmem:[%s19743_s6 + $0x30] sm:$0xff] }
 0x37c   : > { %2599 = vmatpush.msra.mxu2 %v2477_v8  ;;  %2588 = vmatpush.msra.mxu1 %v2393_v34  ;;  %v2364_v8 = vld [vmem:[%s19743_s6 + $0xe0] sm:$0xff]  ;;  %v2486_v34 = vld [vmem:[%s19743_s6 + $0x4b0] sm:$0xff] }
 0x37d   : > { %2555 = vmatpush.msra.mxu0 %v2375_v19  ;;  %2626 = vmatpush.msra.mxu3 %v2513_v9  ;;  %v2388_v19 = vld [vmem:[%s19743_s6 + $0x1a0] sm:$0xff] }
 0x37e   : > { %2600 = vmatpush.msra.mxu2 %v2474_v33  ;;  %2589 = vmatpush.msra.mxu1 %v2390_v21  ;;  %v2345_v33 = vld [vmem:[%s19743_s6 + $0x48] sm:$0xff]  ;;  %v2346_v21 = vld [vmem:[%s19743_s6 + $0x50] sm:$0xff] }
 0x37f   : > { %2556 = vmatpush.msra.mxu0 %v2372_v6  ;;  %2627 = vmatpush.msra.mxu3 %v2510_v52  ;;  %v2355_v6 = vld [vmem:[%s19743_s6 + $0x98] sm:$0xff]  ;;  %v2445_v52 = vld [vmem:[%s19743_s6 + $0x368] sm:$0xff] }
 0x380   : > { %2601 = vmatpush.msra.mxu2 %v2471_v51  ;;  %2590 = vmatpush.msra.mxu1 %v2387_v22  ;;  %v2391_v51 = vld [vmem:[%s19743_s6 + $0x1b8] sm:$0xff]  ;;  %v2480_v22 = vld [vmem:[%s19743_s6 + $0x480] sm:$0xff] }
 0x381   : > { %9225 = vmatmul.msk.f32.gmra.mxu3 %vm2065_vm3, %v12224_v61  ;;  %2557 = vmatpush.msra.mxu0 %v2369_v17  ;;  %v2352_v17 = vld [vmem:[%s19743_s6 + $0x80] sm:$0xff] }
 0x382   : > { %2602 = vmatpush.msra.mxu2 %v2468_v13  ;;  %2591 = vmatpush.msra.mxu1 %v2384_v27  ;;  %v2358_v13 = vld [vmem:[%s19743_s6 + $0xb0] sm:$0xff] }
 0x383   : > { %9221 = vmatmul.msk.f32.vlgmr.msrb.gmra.mxu2 %vm2065_vm3, %v12207_v36  ;;  %2558 = vmatpush.msra.mxu0 %v2366_v41  ;;  %v2435_v36 = vld [vmem:[%s19743_s6 + $0x318] sm:$0xff]  ;;  %v2540_v41 = vld [vmem:[%s19743_s6 + $0x660] sm:$0xff]  ;;  %v2534_v27 = vld [vmem:[%s19743_s6 + $0x630] sm:$0xff] }
 0x384   : > { %2603 = vmatpush.msra.mxu2 %v2465_v59  ;;  %2668 = vmatpush.msrb.mxu1 %v2382_v29  ;;  %v2492_v59 = vld [vmem:[%s19743_s6 + $0x4e0] sm:$0xff] }
 0x385   : > { %2559 = vmatpush.msra.mxu0 %v2363_v0  ;;  %2628 = vmatpush.msra.mxu3 %v2507_v35  ;;  %v2340_v29 = vld [vmem:[%s19743_s6 + $0x20] sm:$0xff]  ;;  %v2454_v0 = vld [vmem:[%s19743_s6 + $0x3b0] sm:$0xff]  ;;  %v2377_v35 = vld [vmem:[%s19743_s6 + $0x148] sm:$0xff] }
 0x386   : > { %2604 = vmatpush.msra.mxu2 %v2462_v15  ;;  %2669 = vmatpush.msrb.mxu1 %v2379_v20  ;;  %v2489_v15 = vld [vmem:[%s19743_s6 + $0x4c8] sm:$0xff]  ;;  %v2451_v20 = vld [vmem:[%s19743_s6 + $0x398] sm:$0xff] }
 0x387   : > { %2560 = vmatpush.msra.mxu0 %v2360_v40  ;;  %2629 = vmatpush.msra.mxu3 %v2504_v45  ;;  %v2448_v40 = vld [vmem:[%s19743_s6 + $0x380] sm:$0xff]  ;;  %v2374_v45 = vld [vmem:[%s19743_s6 + $0x130] sm:$0xff] }
 0x388   : > { %2605 = vmatpush.msra.mxu2 %v2459_v1  ;;  %2670 = vmatpush.msrb.mxu1 %v2376_v7  ;;  %v2349_v1 = vld [vmem:[%s19743_s6 + $0x68] sm:$0xff] }
 0x389   : > { %2561 = vmatpush.msra.mxu0 %v2357_v5  ;;  %2630 = vmatpush.msra.mxu3 %v2501_v28 }
 0x38a   : > { %2606 = vmatpush.msra.mxu2 %v2456_v26  ;;  %v2537_v26 = vld [vmem:[%s19743_s6 + $0x648] sm:$0xff] }
 0x38b   : > { %9222 = vmatmul.msk.f32.gmra.mxu2 %vm2065_vm3, %v12224_v61  ;;  %v2373_v61 = vld [vmem:[%s19743_s6 + $0x128] sm:$0xff]  ;;  %2562 = vmatpush.msra.mxu0 %v2354_v53  ;;  %v2442_v53 = vld [vmem:[%s19743_s6 + $0x350] sm:$0xff] }
 0x38c   : > { %2607 = vmatpush.msra.mxu2 %v2453_v47  ;;  %2671 = vmatpush.msrb.mxu1 %v2373_v61  ;;  %v2343_v47 = vld [vmem:[%s19743_s6 + $0x38] sm:$0xff] }
 0x38d   : > { %2563 = vmatpush.msra.mxu0 %v2351_v10  ;;  %2631 = vmatpush.msra.mxu3 %v2498_v18 }
 0x38e   : > { %2608 = vmatpush.msra.mxu2 %v2450_v58  ;;  %2672 = vmatpush.msrb.mxu1 %v2370_v16  ;;  %v2478_v58 = vld [vmem:[%s19743_s6 + $0x470] sm:$0xff]  ;;  %v2439_v16 = vld [vmem:[%s19743_s6 + $0x338] sm:$0xff] }
 0x38f   : > { %2564 = vmatpush.msra.mxu0 %v2348_v43  ;;  %2632 = vmatpush.msra.mxu3 %v2495_v23  ;;  %v2526_v23 = vld [vmem:[%s19743_s6 + $0x5f0] sm:$0xff] }
 0x390   : > { %2609 = vmatpush.msra.mxu2 %v2447_v54  ;;  %2673 = vmatpush.msrb.mxu1 %v2367_v11  ;;  %v2531_v54 = vld [vmem:[%s19743_s6 + $0x618] sm:$0xff]  ;;  %v2544_v11 = vld [vmem:[%s19743_s6 + $0x680] sm:$0xff] }
 0x391   : > { %2565 = vmatpush.msra.mxu0 %v2345_v33  ;;  %2633 = vmatpush.msra.mxu3 %v2492_v59  ;;  %v2433_v33 = vld [vmem:[%s19743_s6 + $0x308] sm:$0xff]  ;;  %v2523_v59 = vld [vmem:[%s19743_s6 + $0x5d8] sm:$0xff] }
 0x392   : > { %2610 = vmatpush.msra.mxu2 %v2444_v39  ;;  %2674 = vmatpush.msrb.mxu1 %v2364_v8  ;;  %v2475_v39 = vld [vmem:[%s19743_s6 + $0x458] sm:$0xff] }
 0x393   : > { %2566 = vmatpush.msra.mxu0 %v2342_v63  ;;  %2634 = vmatpush.msra.mxu3 %v2489_v15  ;;  %v2371_v8 = vld [vmem:[%s19743_s6 + $0x118] sm:$0xff]  ;;  %v2520_v15 = vld [vmem:[%s19743_s6 + $0x5c0] sm:$0xff] }
 0x394   : > { %2611 = vmatpush.msra.mxu2 %v2441_v48  ;;  %2675 = vmatpush.msrb.mxu1 %v2361_v55  ;;  %v2337_v48 = vld [vmem:[%s19743_s6 + $0x8] sm:$0xff]  ;;  %v2368_v55 = vld [vmem:[%s19743_s6 + $0x100] sm:$0xff] }
 0x395   : > { %2567 = vmatpush.msra.mxu0 %v2339_v38  ;;  %2635 = vmatpush.msra.mxu3 %v2486_v34  ;;  %v2517_v34 = vld [vmem:[%s19743_s6 + $0x5a8] sm:$0xff] }
 0x396   : > { %2612 = vmatpush.msra.mxu2 %v2438_v60  ;;  %2676 = vmatpush.msrb.mxu1 %v2358_v13  ;;  %v2528_v60 = vld [vmem:[%s19743_s6 + $0x600] sm:$0xff]  ;;  %v2538_v13 = vld [vmem:[%s19743_s6 + $0x650] sm:$0xff] }
 0x397   : > { %2568 = vmatpush.msra.mxu0 %v2336_v24  ;;  %2636 = vmatpush.msra.mxu3 %v2483_v37  ;;  %v2535_v24 = vld [vmem:[%s19743_s6 + $0x638] sm:$0xff] }
 0x398   : > { %2613 = vmatpush.msra.mxu2 %v2435_v36  ;;  %2677 = vmatpush.msrb.mxu1 %v2355_v6  ;;  %v2472_v36 = vld [vmem:[%s19743_s6 + $0x440] sm:$0xff] }
 0x399   : > { %2655 = vmatpush.msrb.mxu0 %v2543_v25  ;;  %2637 = vmatpush.msra.mxu3 %v2480_v22  ;;  %v2532_v25 = vld [vmem:[%s19743_s6 + $0x620] sm:$0xff] }
 0x39a   : > { %2614 = vmatpush.msra.mxu2 %v2432_v2  ;;  %2678 = vmatpush.msrb.mxu1 %v2352_v17  ;;  %v2359_v17 = vld [vmem:[%s19743_s6 + $0xb8] sm:$0xff] }
 0x39b   : > { %2656 = vmatpush.msrb.mxu0 %v2540_v41  ;;  %2714 = vmatpush.msrb.mxu3 %v2478_v58  ;;  %v2356_v41 = vld [vmem:[%s19743_s6 + $0xa0] sm:$0xff]  ;;  %v2350_v58 = vld [vmem:[%s19743_s6 + $0x70] sm:$0xff] }
 0x39c   : > { %2691 = vmatpush.msrb.mxu2 %v2430_v44  ;;  %2679 = vmatpush.msrb.mxu1 %v2349_v1  ;;  %v2469_v44 = vld [vmem:[%s19743_s6 + $0x428] sm:$0xff] }
 0x39d   : > { %2657 = vmatpush.msrb.mxu0 %v2537_v26  ;;  %2715 = vmatpush.msrb.mxu3 %v2475_v39  ;;  %v2529_v26 = vld [vmem:[%s19743_s6 + $0x608] sm:$0xff]  ;;  %v2347_v39 = vld [vmem:[%s19743_s6 + $0x58] sm:$0xff] }
 0x39e   : > { %2692 = vmatpush.msrb.mxu2 %v2427_v30  ;;  %2680 = vmatpush.msrb.mxu1 %v2346_v21  ;;  %v2466_v30 = vld [vmem:[%s19743_s6 + $0x410] sm:$0xff] }
 0x39f   : > { %2658 = vmatpush.msrb.mxu0 %v2534_v27  ;;  %2716 = vmatpush.msrb.mxu3 %v2472_v36  ;;  %v2514_v21 = vld [vmem:[%s19743_s6 + $0x590] sm:$0xff]  ;;  %v2511_v27 = vld [vmem:[%s19743_s6 + $0x578] sm:$0xff] }
 0x3a0   : > { %2693 = vmatpush.msrb.mxu2 %v2424_v49  ;;  %2681 = vmatpush.msrb.mxu1 %v2343_v47  ;;  %v2463_v49 = vld [vmem:[%s19743_s6 + $0x3f8] sm:$0xff]  ;;  %v2353_v47 = vld [vmem:[%s19743_s6 + $0x88] sm:$0xff] }
 0x3a1   : > { %2659 = vmatpush.msrb.mxu0 %v2531_v54  ;;  %2717 = vmatpush.msrb.mxu3 %v2469_v44  ;;  %v2508_v54 = vld [vmem:[%s19743_s6 + $0x560] sm:$0xff] }
 0x3a2   : > { %2694 = vmatpush.msrb.mxu2 %v2421_v46  ;;  %2682 = vmatpush.msrb.mxu1 %v2340_v29  ;;  %v2527_v29 = vld [vmem:[%s19743_s6 + $0x5f8] sm:$0xff]  ;;  %v2344_v44 = vld [vmem:[%s19743_s6 + $0x40] sm:$0xff] }
 0x3a3   : > { %2660 = vmatpush.msrb.mxu0 %v2528_v60  ;;  %2718 = vmatpush.msrb.mxu3 %v2466_v30  ;;  %v2505_v60 = vld [vmem:[%s19743_s6 + $0x548] sm:$0xff] }
 0x3a4   : > { %2695 = vmatpush.msrb.mxu2 %v2418_v4  ;;  %2683 = vmatpush.msrb.mxu1 %v2337_v48  ;;  %v2460_v4 = vld [vmem:[%s19743_s6 + $0x3e0] sm:$0xff]  ;;  %v2521_v30 = vld [vmem:[%s19743_s6 + $0x5c8] sm:$0xff] }
 0x3a5   : > { %2719 = vmatpush.msrb.mxu3 %v2463_v49  ;;  %v2524_v48 = vld [vmem:[%s19743_s6 + $0x5e0] sm:$0xff] }
 0x3a6   : > { %2696 = vmatpush.msrb.mxu2 %v2415_v57 }
 0x3a7   : > { %2720 = vmatpush.msrb.mxu3 %v2460_v4  ;;  %v2502_v4 = vld [vmem:[%s19743_s6 + $0x530] sm:$0xff] }
 0x3a8   : > { %2697 = vmatpush.msrb.mxu2 %v2412_v14  ;;  %v2457_v14 = vld [vmem:[%s19743_s6 + $0x3c8] sm:$0xff] }
 0x3a9   : > { %2721 = vmatpush.msrb.mxu3 %v2457_v14  ;;  %v2341_v14 = vld [vmem:[%s19743_s6 + $0x28] sm:$0xff] }
 0x3aa   : > { %2698 = vmatpush.msrb.mxu2 %v2409_v42 }
 0x3ab   : > { %2722 = vmatpush.msrb.mxu3 %v2454_v0  ;;  %v2518_v0 = vld [vmem:[%s19743_s6 + $0x5b0] sm:$0xff] }
 0x3ac   : > { %2699 = vmatpush.msrb.mxu2 %v2406_v32  ;;  %v2383_v32 = vld [vmem:[%s19743_s6 + $0x178] sm:$0xff] }
 0x3ad   : > { %2723 = vmatpush.msrb.mxu3 %v2451_v20  ;;  %v2338_v20 = vld [vmem:[%s19743_s6 + $0x10] sm:$0xff] }
 0x3ae   : > { %2700 = vmatpush.msrb.mxu2 %v2403_v3  ;;  %v2380_v3 = vld [vmem:[%s19743_s6 + $0x160] sm:$0xff] }
 0x3af   : > { %2724 = vmatpush.msrb.mxu3 %v2448_v40  ;;  %v2545_v40 = vld [vmem:[%s19743_s6 + $0x688] sm:$0xff] }
 0x3b0   : > { %2701 = vmatpush.msrb.mxu2 %v2400_v62 }
 0x3b1   : > { %2725 = vmatpush.msrb.mxu3 %v2445_v52  ;;  %v2542_v52 = vld [vmem:[%s19743_s6 + $0x670] sm:$0xff] }
 0x3b2   : > { %2702 = vmatpush.msrb.mxu2 %v2397_v12  ;;  %v2436_v12 = vld [vmem:[%s19743_s6 + $0x320] sm:$0xff] }
 0x3b3   : > { %2726 = vmatpush.msrb.mxu3 %v2442_v53  ;;  %v2509_v53 = vld [vmem:[%s19743_s6 + $0x568] sm:$0xff] }
 0x3b4   : > { %2703 = vmatpush.msrb.mxu2 %v2394_v31  ;;  %v2541_v31 = vld [vmem:[%s19743_s6 + $0x668] sm:$0xff] }
 0x3b5   : > { %2727 = vmatpush.msrb.mxu3 %v2439_v16  ;;  %v2539_v16 = vld [vmem:[%s19743_s6 + $0x658] sm:$0xff] }
 0x3b6   : > { %2704 = vmatpush.msrb.mxu2 %v2391_v51 }
 0x3b7   : > { %2728 = vmatpush.msrb.mxu3 %v2436_v12  ;;  %v2536_v12 = vld [vmem:[%s19743_s6 + $0x640] sm:$0xff] }
 0x3b8   : > { %2705 = vmatpush.msrb.mxu2 %v2388_v19  ;;  %v2365_v19 = vld [vmem:[%s19743_s6 + $0xe8] sm:$0xff] }
 0x3b9   : > { %2729 = vmatpush.msrb.mxu3 %v2433_v33  ;;  %v2484_v33 = vld [vmem:[%s19743_s6 + $0x4a0] sm:$0xff] }
 0x3ba   : > { %2706 = vmatpush.msrb.mxu2 %v2385_v50  ;;  %v2362_v50 = vld [vmem:[%s19743_s6 + $0xd0] sm:$0xff] }
 0x3d0   : > { %v12572_v2 = vpop.f32.mrf.mxu1 }
 0x3d6   : > { %v2151_v46 = vpop.f32.mrf.mxu0 }
 0x3d8   : > { %v2105_v5 = vpop.f32.mrf.mxu2 }
 0x3d9   : > { %v12586_v57 = vpop.f32.mrf.mxu1 }
 0x3dc   : > { %v2128_v56 = vpop.f32.mrf.mxu3 }
 0x3df   : > { %v2154_v42 = vpop.f32.mrf.mxu0 }
 0x3e0   : > { %v2108_v51 = vpop.f32.mrf.mxu2 }
 0x3e1   : > { %v2274_v9 = vpop.f32.mrf.mxu1 }
 0x3e2   : > { %v12600_v7 = vmax.f32 %v2151_v46, %v2274_v9  ;;  %v2496_v9 = vld [vmem:[%s19743_s6 + $0x500] sm:$0xff] }
 0x3e4   : > { %2615 = vmatmul.f32.vlgmr.msra.gmra.mxu2 %v12600_v7  ;;  %v2131_v61 = vpop.f32.mrf.mxu3 }
 0x3e5   : > { %2783 = vmatpush.msra.mxu2 %v2383_v32  ;;  %v2512_v32 = vld [vmem:[%s19743_s6 + $0x580] sm:$0xff] }
 0x3e7   : > { %2784 = vmatpush.msra.mxu2 %v2380_v3  ;;  %v2251_v62 = vpop.f32.mrf.mxu0 }
 0x3e8   : > { %v12621_v10 = vmax.f32 %v2128_v56, %v2251_v62  ;;  %v2499_v56 = vld [vmem:[%s19743_s6 + $0x518] sm:$0xff]  ;;  %v2490_v62 = vld [vmem:[%s19743_s6 + $0x4d0] sm:$0xff] }
 0x3e9   : > { %2785 = vmatpush.msra.mxu2 %v2377_v35  ;;  %v2277_v43 = vpop.f32.mrf.mxu1 }
 0x3ea   : > { %v12632_v28 = vmax.f32 %v2154_v42, %v2277_v43  ;;  %2592 = vmatmul.f32.vlgmr.msra.gmra.mxu1 %v12621_v10  ;;  %v2515_v42 = vld [vmem:[%s19743_s6 + $0x598] sm:$0xff] }
 0x3eb   : > { %2786 = vmatpush.msra.mxu2 %v2374_v45  ;;  %2770 = vmatpush.msra.mxu1 %v2544_v11  ;;  %v2506_v11 = vld [vmem:[%s19743_s6 + $0x550] sm:$0xff]  ;;  %v2487_v43 = vld [vmem:[%s19743_s6 + $0x4b8] sm:$0xff] }
 0x3ec   : > { %2618 = vmatmul.f32.gmra.mxu2 %v12632_v28  ;;  %v2228_v18 = vpop.f32.mrf.mxu3 }
 0x3ed   : > { %2787 = vmatpush.msra.mxu2 %v2371_v8  ;;  %v12648_v63 = vmax.f32 %v2105_v5, %v2228_v18  ;;  %2771 = vmatpush.msra.mxu1 %v2541_v31  ;;  %v2503_v8 = vld [vmem:[%s19743_s6 + $0x538] sm:$0xff]  ;;  %v2533_v31 = vld [vmem:[%s19743_s6 + $0x628] sm:$0xff]  ;;  %v2428_v18 = vld [vmem:[%s19743_s6 + $0x2e0] sm:$0xff] }
 0x3ef   : > { %2788 = vmatpush.msra.mxu2 %v2368_v55  ;;  %v2254_v38 = vpop.f32.mrf.mxu0  ;;  %2569 = vmatmul.f32.vlgmr.msra.gmra.mxu0 %v12648_v63  ;;  %v2500_v55 = vld [vmem:[%s19743_s6 + $0x520] sm:$0xff] }
 0x3f0   : > { %v12663_v6 = vmax.f32 %v2131_v61, %v2254_v38  ;;  %2737 = vmatpush.msra.mxu0 %v2526_v23  ;;  %2772 = vmatpush.msra.mxu1 %v2538_v13  ;;  %v2493_v61 = vld [vmem:[%s19743_s6 + $0x4e8] sm:$0xff] }
 0x3f1   : > { %2789 = vmatpush.msra.mxu2 %v2365_v19  ;;  %v2481_v23 = vld [vmem:[%s19743_s6 + $0x488] sm:$0xff] }
 0x3f2   : > { %2595 = vmatmul.f32.gmra.mxu1 %v12663_v6  ;;  %2738 = vmatpush.msra.mxu0 %v2523_v59  ;;  %v2425_v13 = vld [vmem:[%s19743_s6 + $0x2c8] sm:$0xff] }
 0x3f3   : > { %2790 = vmatpush.msra.mxu2 %v2362_v50  ;;  %2773 = vmatpush.msra.mxu1 %v2535_v24  ;;  %v2497_v19 = vld [vmem:[%s19743_s6 + $0x508] sm:$0xff]  ;;  %v2479_v50 = vld [vmem:[%s19743_s6 + $0x478] sm:$0xff]  ;;  %v2422_v24 = vld [vmem:[%s19743_s6 + $0x2b0] sm:$0xff] }
 0x3f4   : > { %2707 = vmatmul.f32.vlgmr.msrb.gmra.mxu2 %v12621_v10  ;;  %2739 = vmatpush.msra.mxu0 %v2520_v15  ;;  %v2231_v1 = vpop.f32.mrf.mxu3  ;;  %v3087_v59 = vld [vmem:[%s19744_s7 + $0x5e8] sm:$0xff] }
 0x3f5   : > { %2791 = vmatpush.msra.mxu2 %v2359_v17  ;;  %v12688_v37 = vmax.f32 %v2108_v51, %v2231_v1  ;;  %2774 = vmatpush.msra.mxu1 %v2532_v25  ;;  %v2530_v51 = vld [vmem:[%s19743_s6 + $0x610] sm:$0xff]  ;;  %v2491_v1 = vld [vmem:[%s19743_s6 + $0x4d8] sm:$0xff] }
 0x3f6   : > { %2740 = vmatpush.msra.mxu0 %v2517_v34  ;;  %v2197_v22 = vpop.f32.mrf.mxu2  ;;  %v2494_v17 = vld [vmem:[%s19743_s6 + $0x4f0] sm:$0xff]  ;;  %v2476_v34 = vld [vmem:[%s19743_s6 + $0x460] sm:$0xff] }
 0x3f7   : > { %2792 = vmatpush.msra.mxu2 %v2356_v41  ;;  %2572 = vmatmul.f32.gmra.mxu0 %v12688_v37  ;;  %v3084_v25 = vld [vmem:[%s19744_s7 + $0x5d0] sm:$0xff]  ;;  %v3081_v41 = vld [vmem:[%s19744_s7 + $0x5b8] sm:$0xff] }
 0x3f8   : > { %2741 = vmatpush.msra.mxu0 %v2514_v21  ;;  %2775 = vmatpush.msra.mxu1 %v2529_v26  ;;  %v2473_v21 = vld [vmem:[%s19743_s6 + $0x448] sm:$0xff]  ;;  %v2416_v26 = vld [vmem:[%s19743_s6 + $0x280] sm:$0xff] }
 0x3f9   : > { %2793 = vmatpush.msra.mxu2 %v2353_v47  ;;  %v3078_v47 = vld [vmem:[%s19744_s7 + $0x5a0] sm:$0xff] }
 0x3fa   : > { %2684 = vmatmul.f32.vlgmr.msrb.gmra.mxu1 %v12648_v63  ;;  %2742 = vmatpush.msra.mxu0 %v2511_v27  ;;  %v2470_v27 = vld [vmem:[%s19743_s6 + $0x430] sm:$0xff] }
 0x3fb   : > { %2794 = vmatpush.msra.mxu2 %v2350_v58  ;;  %2852 = vmatpush.msrb.mxu1 %v2527_v29  ;;  %v2413_v58 = vld [vmem:[%s19743_s6 + $0x268] sm:$0xff] }
 0x3fc   : > { %2710 = vmatmul.f32.gmra.mxu2 %v12663_v6  ;;  %2743 = vmatpush.msra.mxu0 %v2508_v54  ;;  %v2320_v36 = vpop.f32.mrf.mxu3  ;;  %v2485_v29 = vld [vmem:[%s19743_s6 + $0x4a8] sm:$0xff] }
 0x3fd   : > { %2795 = vmatpush.msra.mxu2 %v2347_v39  ;;  %2853 = vmatpush.msrb.mxu1 %v2524_v48  ;;  %v12729_v49 = vmax.f32 %v2197_v22, %v2320_v36  ;;  %v2488_v22 = vld [vmem:[%s19743_s6 + $0x4c0] sm:$0xff]  ;;  %v3075_v54 = vld [vmem:[%s19744_s7 + $0x588] sm:$0xff]  ;;  %v2467_v39 = vld [vmem:[%s19743_s6 + $0x418] sm:$0xff] }
 0x3fe   : > { %2744 = vmatpush.msra.mxu0 %v2505_v60  ;;  %v2200_v46 = vpop.f32.mrf.mxu2  ;;  %v2410_v48 = vld [vmem:[%s19743_s6 + $0x250] sm:$0xff] }
 0x3ff   : > { %2796 = vmatpush.msra.mxu2 %v2344_v44  ;;  %2854 = vmatpush.msrb.mxu1 %v2521_v30  ;;  %v2482_v60 = vld [vmem:[%s19743_s6 + $0x490] sm:$0xff]  ;;  %v2464_v44 = vld [vmem:[%s19743_s6 + $0x400] sm:$0xff]  ;;  %v3039_v30 = vld [vmem:[%s19744_s7 + $0x468] sm:$0xff] }
 0x400   : > { %9226 = vmatmul.msk.f32.vlgmr.msrb.gmra.mxu0 %vm2546_vm4, %v12729_v49  ;;  %v3072_v36 = vld [vmem:[%s19744_s7 + $0x570] sm:$0xff] }
 0x401   : > { %2745 = vmatpush.msra.mxu0 %v2502_v4  ;;  %2797 = vmatpush.msra.mxu2 %v2341_v14  ;;  %v3069_v4 = vld [vmem:[%s19744_s7 + $0x558] sm:$0xff]  ;;  %v2461_v14 = vld [vmem:[%s19743_s6 + $0x3e8] sm:$0xff] }
 0x402   : > { %2855 = vmatpush.msrb.mxu1 %v2518_v0  ;;  %v3036_v0 = vld [vmem:[%s19744_s7 + $0x450] sm:$0xff] }
 0x403   : > { %2687 = vmatmul.f32.gmra.mxu1 %v12688_v37  ;;  %2746 = vmatpush.msra.mxu0 %v2499_v56  ;;  %v2404_v56 = vld [vmem:[%s19743_s6 + $0x220] sm:$0xff] }
 0x404   : > { %2798 = vmatpush.msra.mxu2 %v2338_v20  ;;  %2856 = vmatpush.msrb.mxu1 %v2515_v42  ;;  %v2323_v5 = vpop.f32.mrf.mxu3  ;;  %v3066_v20 = vld [vmem:[%s19744_s7 + $0x540] sm:$0xff]  ;;  %v2458_v42 = vld [vmem:[%s19743_s6 + $0x3d0] sm:$0xff] }
 0x405   : > { %2747 = vmatpush.msra.mxu0 %v2496_v9  ;;  %v12767_v3 = vmax.f32 %v2200_v46, %v2323_v5  ;;  %2799 = vmatmul.f32.vlgmr.msra.gmra.mxu2 %v12648_v63  ;;  %v2407_v46 = vld [vmem:[%s19743_s6 + $0x238] sm:$0xff]  ;;  %v2401_v9 = vld [vmem:[%s19743_s6 + $0x208] sm:$0xff] }
 0x406   : > { %2885 = vmatpush.msrb.mxu2 %v2545_v40  ;;  %2857 = vmatpush.msrb.mxu1 %v2512_v32  ;;  %v2297_v35 = vpop.f32.mrf.mxu2  ;;  %v3033_v40 = vld [vmem:[%s19744_s7 + $0x438] sm:$0xff]  ;;  %v3063_v32 = vld [vmem:[%s19744_s7 + $0x528] sm:$0xff] }
 0x407   : > { %2748 = vmatpush.msra.mxu0 %v2493_v61  ;;  %v12780_v45 = vmax.f32 %v12572_v2, %v2297_v35  ;;  %v2431_v2 = vld [vmem:[%s19743_s6 + $0x2f8] sm:$0xff]  ;;  %v2398_v61 = vld [vmem:[%s19743_s6 + $0x1f0] sm:$0xff]  ;;  %v2452_v35 = vld [vmem:[%s19743_s6 + $0x3a0] sm:$0xff] }
 0x408   : > { %2886 = vmatpush.msrb.mxu2 %v2542_v52  ;;  %2858 = vmatpush.msrb.mxu1 %v2509_v53  ;;  %v2455_v5 = vld [vmem:[%s19743_s6 + $0x3b8] sm:$0xff]  ;;  %v3030_v52 = vld [vmem:[%s19744_s7 + $0x420] sm:$0xff]  ;;  %v3060_v53 = vld [vmem:[%s19744_s7 + $0x510] sm:$0xff] }
 0x409   : > { %9227 = vmatmul.msk.f32.gmra.mxu0 %vm2546_vm4, %v12767_v3  ;;  %2638 = vmatmul.f32.vlgmr.msra.gmra.mxu3 %v12780_v45 }
 0x40a   : > { %2887 = vmatpush.msrb.mxu2 %v2539_v16  ;;  %2749 = vmatpush.msra.mxu0 %v2490_v62  ;;  %v3027_v16 = vld [vmem:[%s19744_s7 + $0x408] sm:$0xff]  ;;  %v2395_v62 = vld [vmem:[%s19743_s6 + $0x1d8] sm:$0xff] }
 0x40b   : > { %2859 = vmatpush.msrb.mxu1 %v2506_v11  ;;  %2806 = vmatpush.msra.mxu3 %v2431_v2  ;;  %v3057_v11 = vld [vmem:[%s19744_s7 + $0x4f8] sm:$0xff]  ;;  %v2392_v2 = vld [vmem:[%s19743_s6 + $0x1c0] sm:$0xff] }
 0x40c   : > { %2888 = vmatpush.msrb.mxu2 %v2536_v12  ;;  %2750 = vmatpush.msra.mxu0 %v2487_v43  ;;  %v2449_v12 = vld [vmem:[%s19743_s6 + $0x388] sm:$0xff]  ;;  %v3024_v43 = vld [vmem:[%s19744_s7 + $0x3f0] sm:$0xff] }
 0x40d   : > { %9228 = vmatmul.msk.f32.vlgmr.msra.gmra.mxu1 %vm2546_vm4, %v12729_v49  ;;  %2802 = vmatmul.f32.gmra.mxu2 %v12688_v37 }
 0x40e   : > { %2860 = vmatpush.msrb.mxu1 %v2503_v8  ;;  %2889 = vmatpush.msrb.mxu2 %v2533_v31  ;;  %v2300_v38 = vpop.f32.mrf.mxu2  ;;  %v3054_v8 = vld [vmem:[%s19744_s7 + $0x4e0] sm:$0xff]  ;;  %v2446_v31 = vld [vmem:[%s19743_s6 + $0x370] sm:$0xff] }
 0x40f   : > { %2751 = vmatpush.msra.mxu0 %v2484_v33  ;;  %2807 = vmatpush.msra.mxu3 %v2428_v18  ;;  %v12837_v15 = vmax.f32 %v12586_v57, %v2300_v38  ;;  %v2419_v57 = vld [vmem:[%s19743_s6 + $0x298] sm:$0xff]  ;;  %v2389_v18 = vld [vmem:[%s19743_s6 + $0x1a8] sm:$0xff]  ;;  %v2440_v38 = vld [vmem:[%s19743_s6 + $0x340] sm:$0xff] }
 0x410   : > { %2861 = vmatpush.msrb.mxu1 %v2500_v55  ;;  %2890 = vmatpush.msrb.mxu2 %v2530_v51  ;;  %v3021_v33 = vld [vmem:[%s19744_s7 + $0x3d8] sm:$0xff]  ;;  %v3051_v55 = vld [vmem:[%s19744_s7 + $0x4c8] sm:$0xff] }
 0x411   : > { %2752 = vmatpush.msra.mxu0 %v2481_v23  ;;  %2808 = vmatpush.msra.mxu3 %v2425_v13  ;;  %v2443_v51 = vld [vmem:[%s19743_s6 + $0x358] sm:$0xff]  ;;  %v3018_v23 = vld [vmem:[%s19744_s7 + $0x3c0] sm:$0xff]  ;;  %v2386_v13 = vld [vmem:[%s19743_s6 + $0x190] sm:$0xff] }
 0x412   : > { %2862 = vmatpush.msrb.mxu1 %v2497_v19  ;;  %3177 = vmatpush.msra.mxu2 %v3087_v59  ;;  %v3048_v19 = vld [vmem:[%s19744_s7 + $0x4b0] sm:$0xff]  ;;  %v2943_v59 = vld [vmem:[%s19744_s7 + $0x168] sm:$0xff] }
 0x413   : > { %2829 = vmatpush.msrb.mxu0 %v2479_v50  ;;  %2809 = vmatpush.msra.mxu3 %v2422_v24  ;;  %v3015_v50 = vld [vmem:[%s19744_s7 + $0x3a8] sm:$0xff]  ;;  %v3045_v24 = vld [vmem:[%s19744_s7 + $0x498] sm:$0xff] }
 0x414   : > { %2753 = vmatmul.f32.vlgmr.msra.gmra.mxu0 %v12780_v45  ;;  %2863 = vmatpush.msrb.mxu1 %v2494_v17  ;;  %v2437_v17 = vld [vmem:[%s19743_s6 + $0x328] sm:$0xff] }
 0x415   : > { %3178 = vmatpush.msra.mxu2 %v3084_v25  ;;  %2830 = vmatpush.msrb.mxu0 %v2476_v34  ;;  %v2940_v25 = vld [vmem:[%s19744_s7 + $0x150] sm:$0xff] }
 0x416   : > { %2641 = vmatmul.f32.gmra.mxu3 %v12837_v15  ;;  %9229 = vmatmul.msk.f32.gmra.mxu1 %vm2546_vm4, %v12767_v3  ;;  %v3012_v34 = vld [vmem:[%s19744_s7 + $0x390] sm:$0xff] }
 0x417   : > { %2810 = vmatpush.msra.mxu3 %v2419_v57  ;;  %2864 = vmatpush.msrb.mxu1 %v2491_v1  ;;  %v3042_v57 = vld [vmem:[%s19744_s7 + $0x480] sm:$0xff]  ;;  %v2434_v1 = vld [vmem:[%s19743_s6 + $0x310] sm:$0xff] }
 0x418   : > { %3179 = vmatpush.msra.mxu2 %v3081_v41  ;;  %2831 = vmatpush.msrb.mxu0 %v2473_v21  ;;  %v2937_v41 = vld [vmem:[%s19744_s7 + $0x138] sm:$0xff] }
 0x419   : > { %2811 = vmatpush.msra.mxu3 %v2416_v26  ;;  %2865 = vmatpush.msrb.mxu1 %v2488_v22  ;;  %v3009_v21 = vld [vmem:[%s19744_s7 + $0x378] sm:$0xff]  ;;  %v3040_v26 = vld [vmem:[%s19744_s7 + $0x470] sm:$0xff]  ;;  %v2991_v22 = vld [vmem:[%s19744_s7 + $0x2e8] sm:$0xff] }
 0x41a   : > { %9230 = vmatmul.msk.f32.vlgmr.msrb.gmra.mxu2 %vm2546_vm4, %v12729_v49  ;;  %2832 = vmatpush.msrb.mxu0 %v2470_v27  ;;  %v3006_v27 = vld [vmem:[%s19744_s7 + $0x360] sm:$0xff] }
 0x41b   : > { %3180 = vmatpush.msra.mxu2 %v3078_v47  ;;  %2812 = vmatpush.msra.mxu3 %v2413_v58  ;;  %v2934_v47 = vld [vmem:[%s19744_s7 + $0x120] sm:$0xff]  ;;  %v3037_v58 = vld [vmem:[%s19744_s7 + $0x458] sm:$0xff] }
 0x41c   : > { %2866 = vmatpush.msrb.mxu1 %v2485_v29  ;;  %2833 = vmatpush.msrb.mxu0 %v2467_v39  ;;  %v2988_v29 = vld [vmem:[%s19744_s7 + $0x2d0] sm:$0xff]  ;;  %v3003_v39 = vld [vmem:[%s19744_s7 + $0x348] sm:$0xff] }
 0x41d   : > { %3181 = vmatpush.msra.mxu2 %v3075_v54  ;;  %2756 = vmatmul.f32.gmra.mxu0 %v12837_v15  ;;  %v2931_v54 = vld [vmem:[%s19744_s7 + $0x108] sm:$0xff] }
 0x41e   : > { %2813 = vmatpush.msra.mxu3 %v2410_v48  ;;  %2867 = vmatpush.msrb.mxu1 %v2482_v60  ;;  %v3034_v48 = vld [vmem:[%s19744_s7 + $0x440] sm:$0xff]  ;;  %v2985_v60 = vld [vmem:[%s19744_s7 + $0x2b8] sm:$0xff] }
 0x41f   : > { %3182 = vmatpush.msra.mxu2 %v3072_v36  ;;  %2834 = vmatpush.msrb.mxu0 %v2464_v44  ;;  %v2928_v36 = vld [vmem:[%s19744_s7 + $0xf0] sm:$0xff] }
 0x420   : > { %3154 = vmatpush.msra.mxu1 %v3039_v30  ;;  %2730 = vmatmul.f32.vlgmr.msrb.gmra.mxu3 %v12600_v7  ;;  %v3000_v44 = vld [vmem:[%s19744_s7 + $0x330] sm:$0xff]  ;;  %v3031_v30 = vld [vmem:[%s19744_s7 + $0x428] sm:$0xff] }
 0x421   : > { %2868 = vmatmul.f32.vlgmr.msrb.gmra.mxu1 %v12780_v45  ;;  %2814 = vmatpush.msra.mxu3 %v2407_v46  ;;  %v2982_v46 = vld [vmem:[%s19744_s7 + $0x2a0] sm:$0xff] }
 0x422   : > { %3183 = vmatpush.msra.mxu2 %v3069_v4  ;;  %2835 = vmatpush.msrb.mxu0 %v2461_v14  ;;  %v2925_v4 = vld [vmem:[%s19744_s7 + $0xd8] sm:$0xff] }
 0x423   : > { %3155 = vmatpush.msra.mxu1 %v3036_v0  ;;  %2815 = vmatpush.msra.mxu3 %v2404_v56  ;;  %v2997_v14 = vld [vmem:[%s19744_s7 + $0x318] sm:$0xff]  ;;  %v3028_v0 = vld [vmem:[%s19744_s7 + $0x410] sm:$0xff]  ;;  %v2979_v56 = vld [vmem:[%s19744_s7 + $0x288] sm:$0xff] }
 0x424   : > { %9231 = vmatmul.msk.f32.gmra.mxu2 %vm2546_vm4, %v12767_v3  ;;  %2836 = vmatpush.msrb.mxu0 %v2458_v42  ;;  %v2994_v42 = vld [vmem:[%s19744_s7 + $0x300] sm:$0xff] }
 0x425   : > { %3184 = vmatpush.msra.mxu2 %v3066_v20  ;;  %3156 = vmatpush.msra.mxu1 %v3033_v40  ;;  %v2922_v20 = vld [vmem:[%s19744_s7 + $0xc0] sm:$0xff]  ;;  %v3025_v40 = vld [vmem:[%s19744_s7 + $0x3f8] sm:$0xff] }
 0x426   : > { %2816 = vmatpush.msra.mxu3 %v2401_v9  ;;  %2837 = vmatpush.msrb.mxu0 %v2455_v5  ;;  %v2976_v9 = vld [vmem:[%s19744_s7 + $0x270] sm:$0xff] }
 0x427   : > { %3185 = vmatpush.msra.mxu2 %v3063_v32  ;;  %3157 = vmatpush.msra.mxu1 %v3030_v52  ;;  %v2919_v32 = vld [vmem:[%s19744_s7 + $0xa8] sm:$0xff]  ;;  %v2992_v5 = vld [vmem:[%s19744_s7 + $0x2f0] sm:$0xff]  ;;  %v3022_v52 = vld [vmem:[%s19744_s7 + $0x3e0] sm:$0xff] }
 0x428   : > { %2817 = vmatpush.msra.mxu3 %v2398_v61  ;;  %2838 = vmatpush.msrb.mxu0 %v2452_v35  ;;  %v2973_v61 = vld [vmem:[%s19744_s7 + $0x258] sm:$0xff] }
 0x429   : > { %3186 = vmatpush.msra.mxu2 %v3060_v53  ;;  %3158 = vmatpush.msra.mxu1 %v3027_v16  ;;  %v2916_v53 = vld [vmem:[%s19744_s7 + $0x90] sm:$0xff]  ;;  %v2989_v35 = vld [vmem:[%s19744_s7 + $0x2d8] sm:$0xff]  ;;  %v3019_v16 = vld [vmem:[%s19744_s7 + $0x3c8] sm:$0xff] }
 0x42a   : > { %2733 = vmatmul.f32.gmra.mxu3 %v12632_v28  ;;  %2871 = vmatmul.f32.gmra.mxu1 %v12837_v15 }
 0x42b   : > { %2818 = vmatpush.msra.mxu3 %v2395_v62  ;;  %3187 = vmatpush.msra.mxu2 %v3057_v11  ;;  %v2970_v62 = vld [vmem:[%s19744_s7 + $0x240] sm:$0xff]  ;;  %v2913_v11 = vld [vmem:[%s19744_s7 + $0x78] sm:$0xff] }
 0x42c   : > { %2839 = vmatpush.msrb.mxu0 %v2449_v12  ;;  %3159 = vmatpush.msra.mxu1 %v3024_v43  ;;  %v2986_v12 = vld [vmem:[%s19744_s7 + $0x2c0] sm:$0xff]  ;;  %v3016_v43 = vld [vmem:[%s19744_s7 + $0x3b0] sm:$0xff] }
 0x42d   : > { %2819 = vmatpush.msra.mxu3 %v2392_v2  ;;  %3188 = vmatpush.msra.mxu2 %v3054_v8  ;;  %v2967_v2 = vld [vmem:[%s19744_s7 + $0x228] sm:$0xff]  ;;  %v2910_v8 = vld [vmem:[%s19744_s7 + $0x60] sm:$0xff] }
 0x42e   : > { %2840 = vmatpush.msrb.mxu0 %v2446_v31  ;;  %3160 = vmatpush.msra.mxu1 %v3021_v33  ;;  %v2983_v31 = vld [vmem:[%s19744_s7 + $0x2a8] sm:$0xff]  ;;  %v3013_v33 = vld [vmem:[%s19744_s7 + $0x398] sm:$0xff] }
 0x42f   : > { %2820 = vmatpush.msra.mxu3 %v2389_v18  ;;  %3189 = vmatpush.msra.mxu2 %v3051_v55  ;;  %v2964_v18 = vld [vmem:[%s19744_s7 + $0x210] sm:$0xff] }
 0x430   : > { %2841 = vmatpush.msrb.mxu0 %v2443_v51  ;;  %3161 = vmatpush.msra.mxu1 %v3018_v23  ;;  %v2980_v55 = vld [vmem:[%s19744_s7 + $0x290] sm:$0xff]  ;;  %v2907_v51 = vld [vmem:[%s19744_s7 + $0x48] sm:$0xff]  ;;  %v3010_v23 = vld [vmem:[%s19744_s7 + $0x380] sm:$0xff] }
 0x431   : > { %2821 = vmatpush.msra.mxu3 %v2386_v13  ;;  %3190 = vmatpush.msra.mxu2 %v3048_v19  ;;  %v2961_v13 = vld [vmem:[%s19744_s7 + $0x1f8] sm:$0xff] }
 0x432   : > { %2842 = vmatpush.msrb.mxu0 %v2440_v38  ;;  %3162 = vmatpush.msra.mxu1 %v3015_v50  ;;  %v2977_v19 = vld [vmem:[%s19744_s7 + $0x278] sm:$0xff]  ;;  %v2904_v38 = vld [vmem:[%s19744_s7 + $0x30] sm:$0xff]  ;;  %v2958_v50 = vld [vmem:[%s19744_s7 + $0x1e0] sm:$0xff] }
 0x433   : > { %3108 = vmatpush.msrb.mxu3 %v2943_v59  ;;  %3191 = vmatpush.msra.mxu2 %v3045_v24  ;;  %v3007_v59 = vld [vmem:[%s19744_s7 + $0x368] sm:$0xff]  ;;  %v2974_v24 = vld [vmem:[%s19744_s7 + $0x260] sm:$0xff] }
 0x434   : > { %2822 = vmatmul.f32.vlgmr.msra.gmra.mxu3 %v12621_v10  ;;  %2843 = vmatpush.msrb.mxu0 %v2437_v17  ;;  %v2901_v17 = vld [vmem:[%s19744_s7 + $0x18] sm:$0xff] }
 0x435   : > { %3109 = vmatpush.msrb.mxu3 %v2940_v25  ;;  %3163 = vmatpush.msra.mxu1 %v3012_v34  ;;  %v3004_v25 = vld [vmem:[%s19744_s7 + $0x350] sm:$0xff]  ;;  %v2955_v34 = vld [vmem:[%s19744_s7 + $0x1c8] sm:$0xff] }
 0x436   : > { %3192 = vmatpush.msra.mxu2 %v3042_v57  ;;  %2844 = vmatpush.msrb.mxu0 %v2434_v1  ;;  %v2971_v57 = vld [vmem:[%s19744_s7 + $0x248] sm:$0xff]  ;;  %v2898_v1 = vld [vmem:[%s19744_s7] sm:$0xff] }
 0x437   : > { %3110 = vmatpush.msrb.mxu3 %v2937_v41  ;;  %3164 = vmatpush.msra.mxu1 %v3009_v21  ;;  %v3001_v41 = vld [vmem:[%s19744_s7 + $0x338] sm:$0xff]  ;;  %v2952_v21 = vld [vmem:[%s19744_s7 + $0x1b0] sm:$0xff] }
 0x438   : > { %3193 = vmatmul.f32.vlgmr.msra.gmra.mxu2 %v12780_v45  ;;  %2845 = vmatmul.f32.vlgmr.msrb.gmra.mxu0 %v12600_v7 }
 0x439   : > { %3269 = vmatpush.msrb.mxu2 %v3040_v26  ;;  %3131 = vmatpush.msra.mxu0 %v2991_v22  ;;  %v3105_v26 = vld [vmem:[%s19744_s7 + $0x678] sm:$0xff]  ;;  %v2968_v22 = vld [vmem:[%s19744_s7 + $0x230] sm:$0xff] }
 0x43a   : > { %3111 = vmatpush.msrb.mxu3 %v2934_v47  ;;  %3165 = vmatpush.msra.mxu1 %v3006_v27  ;;  %v2998_v47 = vld [vmem:[%s19744_s7 + $0x320] sm:$0xff]  ;;  %v2949_v27 = vld [vmem:[%s19744_s7 + $0x198] sm:$0xff] }
 0x43b   : > { %3270 = vmatpush.msrb.mxu2 %v3037_v58  ;;  %3132 = vmatpush.msra.mxu0 %v2988_v29  ;;  %v3102_v58 = vld [vmem:[%s19744_s7 + $0x660] sm:$0xff]  ;;  %v2965_v29 = vld [vmem:[%s19744_s7 + $0x218] sm:$0xff] }
 0x43c   : > { %3112 = vmatpush.msrb.mxu3 %v2931_v54  ;;  %3166 = vmatpush.msra.mxu1 %v3003_v39  ;;  %v2995_v54 = vld [vmem:[%s19744_s7 + $0x308] sm:$0xff]  ;;  %v2946_v39 = vld [vmem:[%s19744_s7 + $0x180] sm:$0xff] }
 0x43d   : > { %3271 = vmatpush.msrb.mxu2 %v3034_v48  ;;  %2825 = vmatmul.f32.gmra.mxu3 %v12663_v6  ;;  %v3099_v48 = vld [vmem:[%s19744_s7 + $0x648] sm:$0xff] }
 0x43e   : > { %3133 = vmatpush.msra.mxu0 %v2985_v60  ;;  %3113 = vmatpush.msrb.mxu3 %v2928_v36  ;;  %v2962_v60 = vld [vmem:[%s19744_s7 + $0x200] sm:$0xff]  ;;  %v2993_v36 = vld [vmem:[%s19744_s7 + $0x2f8] sm:$0xff] }
 0x43f   : > { %3167 = vmatpush.msra.mxu1 %v3000_v44  ;;  %3272 = vmatpush.msrb.mxu2 %v3031_v30  ;;  %v2944_v44 = vld [vmem:[%s19744_s7 + $0x170] sm:$0xff] }
 0x440   : > { %3134 = vmatpush.msra.mxu0 %v2982_v46  ;;  %3114 = vmatpush.msrb.mxu3 %v2925_v4  ;;  %v3096_v30 = vld [vmem:[%s19744_s7 + $0x630] sm:$0xff]  ;;  %v2959_v46 = vld [vmem:[%s19744_s7 + $0x1e8] sm:$0xff]  ;;  %v2990_v4 = vld [vmem:[%s19744_s7 + $0x2e0] sm:$0xff] }
 0x441   : > { %3168 = vmatpush.msra.mxu1 %v2997_v14  ;;  %3196 = vmatmul.f32.gmra.mxu2 %v12837_v15  ;;  %v2941_v14 = vld [vmem:[%s19744_s7 + $0x158] sm:$0xff] }
 0x442   : > { %2848 = vmatmul.f32.gmra.mxu0 %v12632_v28  ;;  %3273 = vmatpush.msrb.mxu2 %v3028_v0  ;;  %v3093_v0 = vld [vmem:[%s19744_s7 + $0x618] sm:$0xff] }
 0x443   : > { %3135 = vmatpush.msra.mxu0 %v2979_v56  ;;  %3115 = vmatpush.msrb.mxu3 %v2922_v20  ;;  %v2956_v56 = vld [vmem:[%s19744_s7 + $0x1d0] sm:$0xff]  ;;  %v2987_v20 = vld [vmem:[%s19744_s7 + $0x2c8] sm:$0xff] }
 0x444   : > { %3169 = vmatpush.msra.mxu1 %v2994_v42  ;;  %3274 = vmatpush.msrb.mxu2 %v3025_v40  ;;  %v2938_v42 = vld [vmem:[%s19744_s7 + $0x140] sm:$0xff] }
 0x445   : > { %3136 = vmatpush.msra.mxu0 %v2976_v9  ;;  %3170 = vmatmul.f32.vlgmr.msra.gmra.mxu1 %v12600_v7  ;;  %v3090_v40 = vld [vmem:[%s19744_s7 + $0x600] sm:$0xff]  ;;  %v2953_v9 = vld [vmem:[%s19744_s7 + $0x1b8] sm:$0xff] }
 0x446   : > { %3116 = vmatpush.msrb.mxu3 %v2919_v32  ;;  %3246 = vmatpush.msrb.mxu1 %v2992_v5  ;;  %v2984_v32 = vld [vmem:[%s19744_s7 + $0x2b0] sm:$0xff]  ;;  %v2935_v5 = vld [vmem:[%s19744_s7 + $0x128] sm:$0xff] }
 0x447   : > { %3275 = vmatpush.msrb.mxu2 %v3022_v52  ;;  %3137 = vmatpush.msra.mxu0 %v2973_v61  ;;  %v3088_v52 = vld [vmem:[%s19744_s7 + $0x5f0] sm:$0xff]  ;;  %v2950_v61 = vld [vmem:[%s19744_s7 + $0x1a0] sm:$0xff] }
 0x448   : > { %3117 = vmatpush.msrb.mxu3 %v2916_v53  ;;  %3247 = vmatpush.msrb.mxu1 %v2989_v35  ;;  %v2981_v53 = vld [vmem:[%s19744_s7 + $0x298] sm:$0xff]  ;;  %v2932_v35 = vld [vmem:[%s19744_s7 + $0x110] sm:$0xff] }
 0x449   : > { %3276 = vmatpush.msrb.mxu2 %v3019_v16  ;;  %3138 = vmatpush.msra.mxu0 %v2970_v62  ;;  %v3085_v16 = vld [vmem:[%s19744_s7 + $0x5d8] sm:$0xff]  ;;  %v2947_v62 = vld [vmem:[%s19744_s7 + $0x188] sm:$0xff] }
 0x44a   : > { %3118 = vmatpush.msrb.mxu3 %v2913_v11  ;;  %3248 = vmatpush.msrb.mxu1 %v2986_v12  ;;  %v2978_v11 = vld [vmem:[%s19744_s7 + $0x280] sm:$0xff]  ;;  %v2929_v12 = vld [vmem:[%s19744_s7 + $0xf8] sm:$0xff] }
 0x44b   : > { %3277 = vmatpush.msrb.mxu2 %v3016_v43  ;;  %3139 = vmatpush.msra.mxu0 %v2967_v2  ;;  %v3082_v43 = vld [vmem:[%s19744_s7 + $0x5c0] sm:$0xff]  ;;  %v2945_v2 = vld [vmem:[%s19744_s7 + $0x178] sm:$0xff] }
 0x44c   : > { %3119 = vmatpush.msrb.mxu3 %v2910_v8  ;;  %3249 = vmatpush.msrb.mxu1 %v2983_v31  ;;  %v2975_v8 = vld [vmem:[%s19744_s7 + $0x268] sm:$0xff]  ;;  %v2926_v31 = vld [vmem:[%s19744_s7 + $0xe0] sm:$0xff] }
 0x44d   : > { %3278 = vmatpush.msrb.mxu2 %v3013_v33  ;;  %3140 = vmatpush.msra.mxu0 %v2964_v18  ;;  %v3079_v33 = vld [vmem:[%s19744_s7 + $0x5a8] sm:$0xff]  ;;  %v2942_v18 = vld [vmem:[%s19744_s7 + $0x160] sm:$0xff] }
 0x44e   : > { %3173 = vmatmul.f32.gmra.mxu1 %v12632_v28  ;;  %3120 = vmatpush.msrb.mxu3 %v2907_v51  ;;  %v2923_v51 = vld [vmem:[%s19744_s7 + $0xc8] sm:$0xff] }
 0x44f   : > { %3250 = vmatpush.msrb.mxu1 %v2980_v55  ;;  %3279 = vmatpush.msrb.mxu2 %v3010_v23  ;;  %v2972_v55 = vld [vmem:[%s19744_s7 + $0x250] sm:$0xff] }
 0x450   : > { %3141 = vmatpush.msra.mxu0 %v2961_v13  ;;  %3121 = vmatpush.msrb.mxu3 %v2904_v38  ;;  %v3076_v23 = vld [vmem:[%s19744_s7 + $0x590] sm:$0xff]  ;;  %v2939_v13 = vld [vmem:[%s19744_s7 + $0x148] sm:$0xff] }
 0x451   : > { %3251 = vmatpush.msrb.mxu1 %v2977_v19  ;;  %3280 = vmatpush.msrb.mxu2 %v3007_v59  ;;  %v2969_v19 = vld [vmem:[%s19744_s7 + $0x238] sm:$0xff]  ;;  %v2920_v38 = vld [vmem:[%s19744_s7 + $0xb0] sm:$0xff] }
 0x452   : > { %3142 = vmatpush.msra.mxu0 %v2958_v50  ;;  %3122 = vmatpush.msrb.mxu3 %v2901_v17  ;;  %v3073_v59 = vld [vmem:[%s19744_s7 + $0x578] sm:$0xff]  ;;  %v2936_v50 = vld [vmem:[%s19744_s7 + $0x130] sm:$0xff] }
 0x453   : > { %3252 = vmatpush.msrb.mxu1 %v2974_v24  ;;  %3281 = vmatpush.msrb.mxu2 %v3004_v25  ;;  %v2966_v24 = vld [vmem:[%s19744_s7 + $0x220] sm:$0xff]  ;;  %v2917_v17 = vld [vmem:[%s19744_s7 + $0x98] sm:$0xff] }
 0x454   : > { %3143 = vmatpush.msra.mxu0 %v2955_v34  ;;  %3123 = vmatpush.msrb.mxu3 %v2898_v1  ;;  %v3070_v25 = vld [vmem:[%s19744_s7 + $0x560] sm:$0xff]  ;;  %v2933_v34 = vld [vmem:[%s19744_s7 + $0x118] sm:$0xff] }
 0x455   : > { %3253 = vmatpush.msrb.mxu1 %v2971_v57  ;;  %3282 = vmatpush.msrb.mxu2 %v3001_v41  ;;  %v2963_v57 = vld [vmem:[%s19744_s7 + $0x208] sm:$0xff]  ;;  %v2914_v1 = vld [vmem:[%s19744_s7 + $0x80] sm:$0xff] }
 0x456   : > { %3124 = vmatmul.f32.vlgmr.msrb.gmra.mxu3 %v12648_v63  ;;  %3144 = vmatpush.msra.mxu0 %v2952_v21  ;;  %v3067_v41 = vld [vmem:[%s19744_s7 + $0x548] sm:$0xff]  ;;  %v2930_v21 = vld [vmem:[%s19744_s7 + $0x100] sm:$0xff] }
 0x457   : > { %3210 = vmatpush.msra.mxu3 %v3105_v26  ;;  %3254 = vmatpush.msrb.mxu1 %v2968_v22  ;;  %v2960_v26 = vld [vmem:[%s19744_s7 + $0x1f0] sm:$0xff]  ;;  %v2911_v22 = vld [vmem:[%s19744_s7 + $0x68] sm:$0xff] }
 0x458   : > { %3283 = vmatpush.msrb.mxu2 %v2998_v47  ;;  %3145 = vmatpush.msra.mxu0 %v2949_v27  ;;  %v3064_v47 = vld [vmem:[%s19744_s7 + $0x530] sm:$0xff]  ;;  %v2927_v27 = vld [vmem:[%s19744_s7 + $0xe8] sm:$0xff] }
 0x459   : > { %3211 = vmatpush.msra.mxu3 %v3102_v58  ;;  %3255 = vmatpush.msrb.mxu1 %v2965_v29  ;;  %v2957_v58 = vld [vmem:[%s19744_s7 + $0x1d8] sm:$0xff]  ;;  %v2908_v29 = vld [vmem:[%s19744_s7 + $0x50] sm:$0xff] }
 0x45a   : > { %3284 = vmatpush.msrb.mxu2 %v2995_v54  ;;  %3146 = vmatpush.msra.mxu0 %v2946_v39  ;;  %v3061_v54 = vld [vmem:[%s19744_s7 + $0x518] sm:$0xff]  ;;  %v2924_v39 = vld [vmem:[%s19744_s7 + $0xd0] sm:$0xff] }
 0x45b   : > { %3212 = vmatpush.msra.mxu3 %v3099_v48  ;;  %3256 = vmatpush.msrb.mxu1 %v2962_v60  ;;  %v2954_v48 = vld [vmem:[%s19744_s7 + $0x1c0] sm:$0xff]  ;;  %v2905_v60 = vld [vmem:[%s19744_s7 + $0x38] sm:$0xff] }
 0x45c   : > { %3285 = vmatmul.f32.vlgmr.msrb.gmra.mxu2 %v12600_v7  ;;  %3147 = vmatmul.f32.vlgmr.msra.gmra.mxu0 %v12621_v10 }
 0x45d   : > { %3361 = vmatpush.msra.mxu2 %v2993_v36  ;;  %3223 = vmatpush.msrb.mxu0 %v2944_v44  ;;  %v3058_v36 = vld [vmem:[%s19744_s7 + $0x500] sm:$0xff]  ;;  %v2921_v44 = vld [vmem:[%s19744_s7 + $0xb8] sm:$0xff] }
 0x45e   : > { %3213 = vmatpush.msra.mxu3 %v3096_v30  ;;  %3257 = vmatpush.msrb.mxu1 %v2959_v46  ;;  %v2951_v30 = vld [vmem:[%s19744_s7 + $0x1a8] sm:$0xff]  ;;  %v2902_v46 = vld [vmem:[%s19744_s7 + $0x20] sm:$0xff] }
 0x45f   : > { %3362 = vmatpush.msra.mxu2 %v2990_v4  ;;  %3224 = vmatpush.msrb.mxu0 %v2941_v14  ;;  %v3055_v4 = vld [vmem:[%s19744_s7 + $0x4e8] sm:$0xff]  ;;  %v2918_v14 = vld [vmem:[%s19744_s7 + $0xa0] sm:$0xff] }
 0x460   : > { %3127 = vmatmul.f32.gmra.mxu3 %v12688_v37  ;;  %3258 = vmatpush.msrb.mxu1 %v2956_v56  ;;  %v2899_v56 = vld [vmem:[%s19744_s7 + $0x8] sm:$0xff] }
 0x461   : > { %3214 = vmatpush.msra.mxu3 %v3093_v0  ;;  %3363 = vmatpush.msra.mxu2 %v2987_v20  ;;  %v2948_v0 = vld [vmem:[%s19744_s7 + $0x190] sm:$0xff] }
 0x462   : > { %3225 = vmatpush.msrb.mxu0 %v2938_v42  ;;  %3259 = vmatpush.msrb.mxu1 %v2953_v9  ;;  %v3052_v20 = vld [vmem:[%s19744_s7 + $0x4d0] sm:$0xff]  ;;  %v2915_v42 = vld [vmem:[%s19744_s7 + $0x88] sm:$0xff]  ;;  %v3049_v9 = vld [vmem:[%s19744_s7 + $0x4b8] sm:$0xff] }
 0x463   : > { %3215 = vmatpush.msra.mxu3 %v3090_v40  ;;  %3364 = vmatpush.msra.mxu2 %v2984_v32  ;;  %v3106_v40 = vld [vmem:[%s19744_s7 + $0x680] sm:$0xff]  ;;  %v2912_v32 = vld [vmem:[%s19744_s7 + $0x70] sm:$0xff] }
 0x464   : > { %3226 = vmatpush.msrb.mxu0 %v2935_v5  ;;  %3260 = vmatpush.msrb.mxu1 %v2950_v61  ;;  %v3103_v5 = vld [vmem:[%s19744_s7 + $0x668] sm:$0xff]  ;;  %v2909_v61 = vld [vmem:[%s19744_s7 + $0x58] sm:$0xff] }
 0x465   : > { %3292 = vmatpush.msrb.mxu3 %v3088_v52  ;;  %3288 = vmatmul.f32.gmra.mxu2 %v12632_v28  ;;  %v3046_v52 = vld [vmem:[%s19744_s7 + $0x4a0] sm:$0xff] }
 0x466   : > { %3150 = vmatmul.f32.gmra.mxu0 %v12663_v6  ;;  %3365 = vmatpush.msra.mxu2 %v2981_v53  ;;  %v3043_v53 = vld [vmem:[%s19744_s7 + $0x488] sm:$0xff] }
 0x467   : > { %3227 = vmatpush.msrb.mxu0 %v2932_v35  ;;  %3293 = vmatpush.msrb.mxu3 %v3085_v16  ;;  %v2906_v35 = vld [vmem:[%s19744_s7 + $0x40] sm:$0xff]  ;;  %v3097_v16 = vld [vmem:[%s19744_s7 + $0x638] sm:$0xff] }
 0x468   : > { %3261 = vmatpush.msrb.mxu1 %v2947_v62  ;;  %3366 = vmatpush.msra.mxu2 %v2978_v11  ;;  %v3041_v62 = vld [vmem:[%s19744_s7 + $0x478] sm:$0xff]  ;;  %v2903_v11 = vld [vmem:[%s19744_s7 + $0x28] sm:$0xff] }
 0x469   : > { %3228 = vmatpush.msrb.mxu0 %v2929_v12  ;;  %3262 = vmatmul.f32.vlgmr.msrb.gmra.mxu1 %v12621_v10  ;;  %v3038_v12 = vld [vmem:[%s19744_s7 + $0x460] sm:$0xff] }
 0x46a   : > { %3294 = vmatpush.msrb.mxu3 %v3082_v43  ;;  %3338 = vmatpush.msra.mxu1 %v2945_v2  ;;  %v3094_v43 = vld [vmem:[%s19744_s7 + $0x620] sm:$0xff]  ;;  %v2900_v2 = vld [vmem:[%s19744_s7 + $0x10] sm:$0xff] }
 0x46b   : > { %9232 = vmatmul.msk.f32.vlgmr.msra.gmra.mxu3 %vm2546_vm4, %v12729_v49  ;;  %3367 = vmatpush.msra.mxu2 %v2975_v8  ;;  %v3035_v8 = vld [vmem:[%s19744_s7 + $0x448] sm:$0xff] }
 0x46c   : > { %3229 = vmatpush.msrb.mxu0 %v2926_v31  ;;  %3295 = vmatpush.msrb.mxu3 %v3079_v33  ;;  %v3091_v31 = vld [vmem:[%s19744_s7 + $0x608] sm:$0xff] }
 0x46d   : > { %3339 = vmatpush.msra.mxu1 %v2942_v18  ;;  %3368 = vmatpush.msra.mxu2 %v2972_v55  ;;  %v3107_v33 = vld [vmem:[%s19744_s7 + $0x688] sm:$0xff]  ;;  %v3032_v18 = vld [vmem:[%s19744_s7 + $0x430] sm:$0xff] }
 0x46e   : > { %3230 = vmatpush.msrb.mxu0 %v2923_v51  ;;  %3296 = vmatpush.msrb.mxu3 %v3076_v23  ;;  %v3104_v55 = vld [vmem:[%s19744_s7 + $0x670] sm:$0xff]  ;;  %v3086_v51 = vld [vmem:[%s19744_s7 + $0x5e0] sm:$0xff]  ;;  %v3029_v23 = vld [vmem:[%s19744_s7 + $0x418] sm:$0xff] }
 0x46f   : > { %3340 = vmatpush.msra.mxu1 %v2939_v13  ;;  %3369 = vmatpush.msra.mxu2 %v2969_v19  ;;  %v3083_v13 = vld [vmem:[%s19744_s7 + $0x5c8] sm:$0xff]  ;;  %v3026_v19 = vld [vmem:[%s19744_s7 + $0x400] sm:$0xff] }
 0x470   : > { %3231 = vmatpush.msrb.mxu0 %v2920_v38  ;;  %3297 = vmatpush.msrb.mxu3 %v3073_v59  ;;  %v3098_v38 = vld [vmem:[%s19744_s7 + $0x640] sm:$0xff]  ;;  %v3080_v59 = vld [vmem:[%s19744_s7 + $0x5b0] sm:$0xff] }
 0x471   : > { %3341 = vmatpush.msra.mxu1 %v2936_v50  ;;  %3370 = vmatpush.msra.mxu2 %v2966_v24  ;;  %v3023_v50 = vld [vmem:[%s19744_s7 + $0x3e8] sm:$0xff] }
 0x472   : > { %3232 = vmatpush.msrb.mxu0 %v2917_v17  ;;  %3265 = vmatmul.f32.gmra.mxu1 %v12663_v6  ;;  %v3095_v24 = vld [vmem:[%s19744_s7 + $0x628] sm:$0xff]  ;;  %v3077_v17 = vld [vmem:[%s19744_s7 + $0x598] sm:$0xff] }
 0x473   : > { %3298 = vmatpush.msrb.mxu3 %v3070_v25  ;;  %3342 = vmatpush.msra.mxu1 %v2933_v34  ;;  %v3020_v25 = vld [vmem:[%s19744_s7 + $0x3d0] sm:$0xff] }
 0x474   : > { %9233 = vmatmul.msk.f32.gmra.mxu3 %vm2546_vm4, %v12767_v3  ;;  %3371 = vmatpush.msra.mxu2 %v2963_v57  ;;  %v3092_v34 = vld [vmem:[%s19744_s7 + $0x610] sm:$0xff]  ;;  %v13548_v57 = vpop.f32.mrf.mxu0 }
 0x475   : > { %3233 = vmatpush.msrb.mxu0 %v2914_v1  ;;  %3299 = vmatpush.msrb.mxu3 %v3067_v41  ;;  %v3074_v1 = vld [vmem:[%s19744_s7 + $0x580] sm:$0xff]  ;;  %v3071_v41 = vld [vmem:[%s19744_s7 + $0x568] sm:$0xff] }
 0x476   : > { %3343 = vmatpush.msra.mxu1 %v2930_v21  ;;  %3372 = vmatpush.msra.mxu2 %v2960_v26  ;;  %v3014_v21 = vld [vmem:[%s19744_s7 + $0x3a0] sm:$0xff]  ;;  %v13562_v26 = vpop.f32.mrf.mxu1 }
 0x477   : > { %3234 = vmatpush.msrb.mxu0 %v2911_v22  ;;  %3300 = vmatpush.msrb.mxu3 %v3064_v47  ;;  %v3068_v22 = vld [vmem:[%s19744_s7 + $0x550] sm:$0xff]  ;;  %v3011_v47 = vld [vmem:[%s19744_s7 + $0x388] sm:$0xff] }
 0x478   : > { %3344 = vmatpush.msra.mxu1 %v2927_v27  ;;  %3373 = vmatpush.msra.mxu2 %v2957_v58  ;;  %v3065_v27 = vld [vmem:[%s19744_s7 + $0x538] sm:$0xff]  ;;  %v3008_v58 = vld [vmem:[%s19744_s7 + $0x370] sm:$0xff] }
 0x479   : > { %3235 = vmatpush.msrb.mxu0 %v2908_v29  ;;  %3301 = vmatpush.msrb.mxu3 %v3061_v54  ;;  %v13580_v29 = vpop.f32.mrf.mxu2  ;;  %v3062_v54 = vld [vmem:[%s19744_s7 + $0x520] sm:$0xff] }
 0x47a   : > { %3345 = vmatpush.msra.mxu1 %v2924_v39  ;;  %3374 = vmatpush.msra.mxu2 %v2954_v48  ;;  %v3005_v39 = vld [vmem:[%s19744_s7 + $0x358] sm:$0xff] }
 0x47b   : > { %3236 = vmatpush.msrb.mxu0 %v2905_v60  ;;  %3302 = vmatpush.msrb.mxu3 %v3058_v36  ;;  %v3002_v60 = vld [vmem:[%s19744_s7 + $0x340] sm:$0xff] }
 0x47c   : > { %3346 = vmatpush.msra.mxu1 %v2921_v44  ;;  %3375 = vmatpush.msra.mxu2 %v2951_v30  ;;  %v2573_v48 = vpop.f32.mrf.mxu0  ;;  %v3056_v44 = vld [vmem:[%s19744_s7 + $0x4f0] sm:$0xff]  ;;  %v2999_v30 = vld [vmem:[%s19744_s7 + $0x328] sm:$0xff] }
 0x47d   : > { %3237 = vmatpush.msrb.mxu0 %v2902_v46  ;;  %3303 = vmatpush.msrb.mxu3 %v3055_v4  ;;  %v3053_v4 = vld [vmem:[%s19744_s7 + $0x4d8] sm:$0xff] }
 0x47e   : > { %3347 = vmatpush.msra.mxu1 %v2918_v14  ;;  %3376 = vmatpush.msra.mxu2 %v2948_v0  ;;  %v2596_v46 = vpop.f32.mrf.mxu1  ;;  %v2996_v14 = vld [vmem:[%s19744_s7 + $0x310] sm:$0xff]  ;;  %v3050_v0 = vld [vmem:[%s19744_s7 + $0x4c0] sm:$0xff] }
 0x47f   : > { %3238 = vmatpush.msrb.mxu0 %v2899_v56  ;;  %3304 = vmatpush.msrb.mxu3 %v3052_v20  ;;  %v3047_v20 = vld [vmem:[%s19744_s7 + $0x4a8] sm:$0xff] }
 0x480   : > { %3348 = vmatpush.msra.mxu1 %v2915_v42  ;;  %3377 = vmatmul.f32.vlgmr.msra.gmra.mxu2 %v12621_v10  ;;  %v3100_v10 = vld [vmem:[%s19744_s7 + $0x650] sm:$0xff] }
 0x481   : > { %3239 = vmatmul.f32.vlgmr.msrb.gmra.mxu0 %v12648_v63  ;;  %3305 = vmatpush.msrb.mxu3 %v3049_v9  ;;  %v2619_v56 = vpop.f32.mrf.mxu2  ;;  %v3044_v42 = vld [vmem:[%s19744_s7 + $0x490] sm:$0xff] }
 0x482   : > { %3325 = vmatpush.msra.mxu0 %v3106_v40  ;;  %3349 = vmatpush.msra.mxu1 %v2912_v32 }
 0x483   : > { %3306 = vmatpush.msrb.mxu3 %v3046_v52 }
 0x484   : > { %3326 = vmatpush.msra.mxu0 %v3103_v5  ;;  %3350 = vmatpush.msra.mxu1 %v2909_v61 }
 0x485   : > { %3307 = vmatpush.msrb.mxu3 %v3043_v53 }
 0x486   : > { %3327 = vmatpush.msra.mxu0 %v3100_v10  ;;  %3351 = vmatpush.msra.mxu1 %v2906_v35  ;;  %v13620_v9 = vpop.f32.mrf.mxu1 }
 0x487   : > { %3308 = vmatmul.f32.vlgmr.msrb.gmra.mxu3 %v12780_v45 }
 0x488   : > { %3328 = vmatpush.msra.mxu0 %v3097_v16  ;;  %3384 = vmatpush.msra.mxu3 %v3041_v62 }
 0x489   : > { %3352 = vmatpush.msra.mxu1 %v2903_v11  ;;  %3380 = vmatmul.f32.gmra.mxu2 %v12663_v6  ;;  %v3089_v6 = vld [vmem:[%s19744_s7 + $0x5f8] sm:$0xff]  ;;  %v13624_v32 = vpop.f32.mrf.mxu2 }
 0x48a   : > { %3242 = vmatmul.f32.gmra.mxu0 %v12688_v37  ;;  %3385 = vmatpush.msra.mxu3 %v3038_v12 }
 0x48b   : > { %3329 = vmatpush.msra.mxu0 %v3094_v43  ;;  %3353 = vmatpush.msra.mxu1 %v2900_v2 }
 0x48c   : > { %3354 = vmatmul.f32.vlgmr.msra.gmra.mxu1 %v12648_v63  ;;  %3386 = vmatpush.msra.mxu3 %v3035_v8  ;;  %v3101_v63 = vld [vmem:[%s19744_s7 + $0x658] sm:$0xff]  ;;  %v13594_v36 = vpop.f32.mrf.mxu3 }
 0x48d   : > { %3330 = vmatpush.msra.mxu0 %v3091_v31  ;;  %3440 = vmatpush.msrb.mxu1 %v3107_v33 }
 0x48e   : > { %3387 = vmatpush.msra.mxu3 %v3032_v18 }
 0x48f   : > { %3407 = vmatpush.msrb.mxu0 %v3089_v6  ;;  %3311 = vmatmul.f32.gmra.mxu3 %v12837_v15 }
 0x490   : > { %3441 = vmatpush.msrb.mxu1 %v3104_v55  ;;  %3388 = vmatpush.msra.mxu3 %v3029_v23 }
 0x491   : > { %3408 = vmatpush.msrb.mxu0 %v3086_v51  ;;  %v13631_v61 = vpop.f32.mrf.mxu2 }
 0x492   : > { %3442 = vmatpush.msrb.mxu1 %v3101_v63  ;;  %3389 = vmatpush.msra.mxu3 %v3026_v19 }
 0x493   : > { %3409 = vmatpush.msrb.mxu0 %v3083_v13  ;;  %v2597_v13 = vadd.f32 %v2596_v46, %v2573_v48 }
 0x494   : > { %9234 = vmatmul.msk.f32.vlgmr.msra.gmra.mxu0 %vm2546_vm4, %v12729_v49  ;;  %3443 = vmatpush.msrb.mxu1 %v3098_v38 }
 0x495   : > { %3410 = vmatpush.msrb.mxu0 %v3080_v59  ;;  %3357 = vmatmul.f32.gmra.mxu1 %v12688_v37  ;;  %v3017_v37 = vld [vmem:[%s19744_s7 + $0x3b8] sm:$0xff] }
 0x496   : > { %3390 = vmatpush.msra.mxu3 %v3023_v50  ;;  %3444 = vmatpush.msrb.mxu1 %v3095_v24  ;;  %v2594_v50 = vadd.f32 %v13562_v26, %v13548_v57  ;;  %v13678_v26 = vld [vmem:[%s19634_s8] sm:$0xff] }
 0x497   : > { %3411 = vmatpush.msrb.mxu0 %v3077_v17  ;;  %v2620_v17 = vadd.f32 %v2619_v56, %v2597_v13 }
 0x498   : > { %3391 = vmatpush.msra.mxu3 %v3020_v25  ;;  %3445 = vmatpush.msrb.mxu1 %v3092_v34 }
 0x499   : > { %3412 = vmatpush.msrb.mxu0 %v3074_v1  ;;  %v2642_v40 = vpop.f32.mrf.mxu3  ;;  %v2617_v1 = vadd.f32 %v13580_v29, %v2594_v50  ;;  %v13683_v29 = vld [vmem:[%s19634_s8 + $0x10] sm:$0xff] }
 0x49a   : > { %3392 = vmatpush.msra.mxu3 %v3017_v37  ;;  %v2643_v37 = vadd.f32 %v2642_v40, %v2620_v17 }
 0x49b   : > { %3413 = vmatpush.msrb.mxu0 %v3071_v41 }
 0x49c   : > { %9235 = vmatmul.msk.f32.gmra.mxu0 %vm2546_vm4, %v12767_v3  ;;  %3393 = vmatpush.msra.mxu3 %v3014_v21  ;;  %v2640_v21 = vadd.f32 %v13594_v36, %v2617_v1  ;;  %v13694_v36 = vld [vmem:[%s19634_s8 + $0x8] sm:$0x3] }
 0x49d   : > { %3414 = vmatpush.msrb.mxu0 %v3068_v22  ;;  %9236 = vmatmul.msk.f32.vlgmr.msrb.gmra.mxu1 %vm2546_vm4, %v12729_v49  ;;  %v3059_v49 = vld [vmem:[%s19744_s7 + $0x508] sm:$0xff] }
 0x49e   : > { %3394 = vmatpush.msra.mxu3 %v3011_v47 }
 0x49f   : > { %3415 = vmatpush.msrb.mxu0 %v3065_v27 }
 0x4a0   : > { %3395 = vmatpush.msra.mxu3 %v3008_v58 }
 0x4a1   : > { %3416 = vmatpush.msrb.mxu0 %v3062_v54 }
 0x4a2   : > { %3396 = vmatpush.msra.mxu3 %v3005_v39 }
 0x4a3   : > { %3417 = vmatpush.msrb.mxu0 %v3059_v49  ;;  %v13626_v52 = vpop.f32.mrf.mxu3 }
 0x4a4   : > { %3397 = vmatpush.msra.mxu3 %v3002_v60 }
 0x4a5   : > { %3418 = vmatpush.msrb.mxu0 %v3056_v44  ;;  %9237 = vmatmul.msk.f32.gmra.mxu1 %vm2546_vm4, %v12767_v3  ;;  %v2662_v3 = vpop.f32.mrf.mxu0  ;;  %v13699_v44 = vld [vmem:[%s19634_s8 + $0x18] sm:$0x3] }
 0x4a6   : > { %3398 = vmatpush.msra.mxu3 %v2999_v30  ;;  %v2663_v48 = vadd.f32 %v2662_v3, %v2640_v21  ;;  %v2709_v3 = vadd.f32 %v13624_v32, %v13620_v9 }
 0x4a7   : > { %3419 = vmatpush.msrb.mxu0 %v3053_v4 }
 0x4a8   : > { %3399 = vmatpush.msra.mxu3 %v2996_v14 }
 0x4a9   : > { %3400 = vmatmul.f32.vlgmr.msra.gmra.mxu3 %v12600_v7  ;;  %3420 = vmatpush.msrb.mxu0 %v3050_v0  ;;  %v13629_v7 = vpop.f32.mrf.mxu1 }
 0x4aa   : > { %v2712_v0 = vadd.f32 %v13631_v61, %v13629_v7 }
 0x4ab   : > { %3421 = vmatpush.msrb.mxu0 %v3047_v20 }
 0x4ad   : > { %3422 = vmatpush.msrb.mxu0 %v3044_v42  ;;  %v2665_v5 = vpop.f32.mrf.mxu0  ;;  %v13635_v53 = vpop.f32.mrf.mxu3 }
 0x4ae   : > { %3423 = vmatmul.f32.vlgmr.msrb.gmra.mxu0 %v12780_v45  ;;  %v13639_v45 = vpop.f32.mrf.mxu2  ;;  %v2666_v58 = vadd.f32 %v2665_v5, %v2643_v37  ;;  %v2735_v42 = vadd.f32 %v13635_v53, %v2712_v0  ;;  %v9366_v0 = vld [vmem:[%s19635_s9 + $0x7c0] sm:$0xff] }
 0x4b1   : > { %3403 = vmatmul.f32.gmra.mxu3 %v12632_v28  ;;  %v13637_v35 = vpop.f32.mrf.mxu1 }
 0x4b5   : > { %v13633_v10 = vpop.f32.mrf.mxu0 }
 0x4b6   : > { %3426 = vmatmul.f32.gmra.mxu0 %v12837_v15  ;;  %v13647_v11 = vpop.f32.mrf.mxu2 }
 0x4b7   : > { %v13643_v16 = vpop.f32.mrf.mxu3 }
 0x4b9   : > { %v13645_v62 = vpop.f32.mrf.mxu1 }
 0x4bd   : > { %v13641_v28 = vpop.f32.mrf.mxu0 }
 0x4be   : > { %v13655_v2 = vpop.f32.mrf.mxu2 }
 0x4c0   : > { %v13651_v12 = vpop.f32.mrf.mxu3 }
 0x4c1   : > { %v13653_v43 = vpop.f32.mrf.mxu1 }
 0x4c5   : > { %v13649_v15 = vpop.f32.mrf.mxu0 }
 0x4c6   : > { %v13661_v18 = vpop.f32.mrf.mxu2 }
 0x4c9   : > { %v13659_v33 = vpop.f32.mrf.mxu1 }
 0x4cd   : > { %v13657_v8 = vpop.f32.mrf.mxu0 }
 0x4ce   : > { %v3194_v23 = vpop.f32.mrf.mxu2 }
 0x4d1   : > { %v3171_v51 = vpop.f32.mrf.mxu1 }
 0x4d6   : > { %v3197_v41 = vpop.f32.mrf.mxu2 }
 0x4d9   : > { %v3125_v31 = vpop.f32.mrf.mxu3  ;;  %v3148_v6 = vpop.f32.mrf.mxu0 }
 0x4da   : > { %v3149_v19 = vadd.f32 %v3148_v6, %v3125_v31  ;;  %v3174_v24 = vpop.f32.mrf.mxu1  ;;  %v2732_v31 = vadd.f32 %v13626_v52, %v2709_v3  ;;  %v9295_v3 = vld [vmem:[%s19635_s9 + $0x588] sm:$0xff] }
 0x4dc   : > { %v3172_v25 = vadd.f32 %v3171_v51, %v3149_v19  ;;  %v2758_v51 = vadd.f32 %v13641_v28, %v2735_v42  ;;  %v2755_v13 = vadd.f32 %v13633_v10, %v2732_v31  ;;  %v9354_v42 = vld [vmem:[%s19635_s9 + $0x760] sm:$0xff]  ;;  %v9283_v31 = vld [vmem:[%s19635_s9 + $0x528] sm:$0xff] }
 0x4de   : > { %v3195_v22 = vadd.f32 %v3194_v23, %v3172_v25  ;;  %v2781_v9 = vadd.f32 %v13645_v62, %v2758_v51  ;;  %v2778_v53 = vadd.f32 %v13637_v35, %v2755_v13  ;;  %v2824_v25 = vadd.f32 %v13643_v16, %v13639_v45  ;;  %v9342_v51 = vld [vmem:[%s19635_s9 + $0x700] sm:$0xff]  ;;  %v9271_v13 = vld [vmem:[%s19635_s9 + $0x4c8] sm:$0xff] }
 0x4df   : > { %v3286_v4 = vpop.f32.mrf.mxu2 }
 0x4e0   : > { %v2847_v21 = vadd.f32 %v13649_v15, %v2824_v25  ;;  %v9312_v25 = vld [vmem:[%s19635_s9 + $0x610] sm:$0xff] }
 0x4e3   : > { %v3128_v55 = vpop.f32.mrf.mxu3  ;;  %v3151_v63 = vpop.f32.mrf.mxu0 }
 0x4e4   : > { %v3152_v38 = vadd.f32 %v3151_v63, %v3128_v55 }
 0x4e6   : > { %v3175_v34 = vadd.f32 %v3174_v24, %v3152_v38  ;;  %v3263_v30 = vpop.f32.mrf.mxu1  ;;  %v2827_v24 = vadd.f32 %v13651_v12, %v13647_v11  ;;  %v2870_v11 = vadd.f32 %v13653_v43, %v2847_v21  ;;  %v9319_v43 = vld [vmem:[%s19635_s9 + $0x648] sm:$0xff]  ;;  %v9304_v21 = vld [vmem:[%s19635_s9 + $0x5d0] sm:$0xff] }
 0x4e8   : > { %v3198_v47 = vadd.f32 %v3197_v41, %v3175_v34  ;;  %v3289_v6 = vpop.f32.mrf.mxu2  ;;  %v2850_v1 = vadd.f32 %v13657_v8, %v2827_v24  ;;  %v2893_v8 = vadd.f32 %v13655_v2, %v2870_v11  ;;  %v9382_v2 = vld [vmem:[%s19635_s9 + $0x840] sm:$0xff]  ;;  %v9372_v24 = vld [vmem:[%s19635_s9 + $0x7f0] sm:$0xff] }
 0x4e9   : > { %v9296_v11 = vld [vmem:[%s19635_s9 + $0x590] sm:$0xff] }
 0x4ee   : > { %v3217_v59 = vpop.f32.mrf.mxu3 }
 0x4ef   : > { %v3218_v54 = vadd.f32 %v3217_v59, %v3195_v22  ;;  %v3266_v56 = vpop.f32.mrf.mxu1 }
 0x4f1   : > { %v13669_v57 = vmax.f32 %v2663_v48, %v3218_v54 }
 0x4f7   : > { %v3220_v27 = vpop.f32.mrf.mxu3 }
 0x4f8   : > { %v3221_v39 = vadd.f32 %v3220_v27, %v3198_v47  ;;  %v2873_v27 = vadd.f32 %v13659_v33, %v2850_v1  ;;  %v9315_v33 = vld [vmem:[%s19635_s9 + $0x628] sm:$0xff]  ;;  %v9308_v1 = vld [vmem:[%s19635_s9 + $0x5f0] sm:$0xff] }
 0x4fa   : > { %v13667_v49 = vmax.f32 %v2666_v58, %v3221_v39  ;;  %v2896_v45 = vadd.f32 %v13661_v18, %v2873_v27  ;;  %v9378_v18 = vld [vmem:[%s19635_s9 + $0x820] sm:$0xff]  ;;  %v9300_v27 = vld [vmem:[%s19635_s9 + $0x5b0] sm:$0xff] }
 0x4fc   : > { %9238 = vmatpush.msk.msrb.mxu2 %vm3468_vm5, %v13667_v49  ;;  %9249 = vmatpush.msk.msra.mxu1 %vm3468_vm5, %v13667_v49 }
 0x4fe   : > { %v3240_v60 = vpop.f32.mrf.mxu0  ;;  %3493 = vmatpush.msrb.mxu2 %v13669_v57  ;;  %3711 = vmatpush.msra.mxu1 %v13669_v57 }
 0x4ff   : > { %9239 = vmatmul.msk.f32.vlgmr.msrb.gmra.mxu2 %vm3461_vm6, %v13678_v26  ;;  %9250 = vmatmul.msk.f32.vlgmr.msra.gmra.mxu1 %vm3461_vm6, %v13683_v29  ;;  %v3264_v40 = vadd.f32 %v3263_v30, %v3240_v60 }
 0x500   : > { %3936 = vmatpush.msrb.mxu1 %v9382_v2  ;;  %v9390_v2 = vld [vmem:[%s19635_s9 + $0x880] sm:$0xff] }
 0x501   : > { %v3287_v23 = vadd.f32 %v3286_v4, %v3264_v40  ;;  %v9370_v4 = vld [vmem:[%s19635_s9 + $0x7e0] sm:$0xff]  ;;  %v9287_v40 = vld [vmem:[%s19635_s9 + $0x548] sm:$0xff] }
 0x502   : > { %3937 = vmatpush.msrb.mxu1 %v9378_v18  ;;  %v9284_v18 = vld [vmem:[%s19635_s9 + $0x530] sm:$0xff] }
 0x503   : > { %v3378_v35 = vpop.f32.mrf.mxu2 }
 0x507   : > { %v3243_v46 = vpop.f32.mrf.mxu0  ;;  %9240 = vmatmul.msk.f32.gmra.mxu2 %vm3461_vm6, %v13694_v36  ;;  %9251 = vmatmul.msk.f32.gmra.mxu1 %vm3461_vm6, %v13699_v44 }
 0x508   : > { %v3267_v5 = vadd.f32 %v3266_v56, %v3243_v46  ;;  %v9311_v46 = vld [vmem:[%s19635_s9 + $0x608] sm:$0xff] }
 0x509   : > { %v3355_v38 = vpop.f32.mrf.mxu1  ;;  %v9299_v56 = vld [vmem:[%s19635_s9 + $0x5a8] sm:$0xff] }
 0x50a   : > { %v3309_v14 = vpop.f32.mrf.mxu3  ;;  %v3290_v63 = vadd.f32 %v3289_v6, %v3267_v5  ;;  %v3379_v34 = vadd.f32 %v3378_v35, %v3355_v38  ;;  %v9350_v5 = vld [vmem:[%s19635_s9 + $0x740] sm:$0xff]  ;;  %v9263_v38 = vld [vmem:[%s19635_s9 + $0x488] sm:$0xff]  ;;  %v9320_v35 = vld [vmem:[%s19635_s9 + $0x650] sm:$0xff] }
 0x50b   : > { %v3310_v7 = vadd.f32 %v3309_v14, %v3287_v23  ;;  %v9303_v14 = vld [vmem:[%s19635_s9 + $0x5c8] sm:$0xff]  ;;  %v9346_v6 = vld [vmem:[%s19635_s9 + $0x720] sm:$0xff] }
 0x50c   : > { %v3381_v41 = vpop.f32.mrf.mxu2  ;;  %v9275_v23 = vld [vmem:[%s19635_s9 + $0x4e8] sm:$0xff] }
 0x511   : > { %v3332_v20 = vpop.f32.mrf.mxu0 }
 0x512   : > { %v3312_v55 = vpop.f32.mrf.mxu3  ;;  %v3333_v59 = vadd.f32 %v3332_v20, %v3310_v7  ;;  %v3358_v10 = vpop.f32.mrf.mxu1  ;;  %v9362_v20 = vld [vmem:[%s19635_s9 + $0x7a0] sm:$0xff] }
 0x513   : > { %v3313_v61 = vadd.f32 %v3312_v55, %v3290_v63  ;;  %v3382_v22 = vadd.f32 %v3381_v41, %v3358_v10  ;;  %v9279_v55 = vld [vmem:[%s19635_s9 + $0x508] sm:$0xff]  ;;  %v9338_v63 = vld [vmem:[%s19635_s9 + $0x6e0] sm:$0xff]  ;;  %v9380_v10 = vld [vmem:[%s19635_s9 + $0x830] sm:$0xff] }
 0x514   : > { %v13717_v52 = vmax.f32 %v2778_v53, %v3333_v59  ;;  %v9334_v7 = vld [vmem:[%s19635_s9 + $0x6c0] sm:$0xff] }
 0x515   : > { %v9326_v59 = vld [vmem:[%s19635_s9 + $0x680] sm:$0xff] }
 0x516   : > { %v9322_v53 = vld [vmem:[%s19635_s9 + $0x660] sm:$0xff] }
 0x517   : > { %v9310_v41 = vld [vmem:[%s19635_s9 + $0x600] sm:$0xff] }
 0x519   : > { %v3335_v19 = vpop.f32.mrf.mxu0 }
 0x51a   : > { %v3336_v32 = vadd.f32 %v3335_v19, %v3313_v61  ;;  %v3447_v17 = vpop.f32.mrf.mxu1  ;;  %v9267_v61 = vld [vmem:[%s19635_s9 + $0x4a8] sm:$0xff]  ;;  %v9330_v19 = vld [vmem:[%s19635_s9 + $0x6a0] sm:$0xff] }
 0x51c   : > { %v13715_v50 = vmax.f32 %v2781_v9, %v3336_v32  ;;  %v9259_v9 = vld [vmem:[%s19635_s9 + $0x468] sm:$0xff]  ;;  %v9384_v32 = vld [vmem:[%s19635_s9 + $0x850] sm:$0xff] }
 0x51e   : > { %9241 = vmatpush.msk.msrb.mxu3 %vm3468_vm5, %v13715_v50  ;;  %9252 = vmatpush.msk.msra.mxu2 %vm3468_vm5, %v13715_v50 }
 0x520   : > { %3516 = vmatpush.msrb.mxu3 %v13717_v52  ;;  %3734 = vmatpush.msra.mxu2 %v13717_v52 }
 0x521   : > { %9253 = vmatmul.msk.f32.vlgmr.msra.gmra.mxu2 %vm3461_vm6, %v13683_v29  ;;  %9242 = vmatmul.msk.f32.vlgmr.msrb.gmra.mxu3 %vm3461_vm6, %v13678_v26 }
 0x522   : > { %v3450_v48 = vpop.f32.mrf.mxu1 }
 0x529   : > { %9254 = vmatmul.msk.f32.gmra.mxu2 %vm3461_vm6, %v13699_v44  ;;  %9243 = vmatmul.msk.f32.gmra.mxu3 %vm3461_vm6, %v13694_v36 }
 0x52b   : > { %v3424_v28 = vpop.f32.mrf.mxu0 }
 0x52c   : > { %v3401_v62 = vpop.f32.mrf.mxu3 }
 0x52d   : > { %v3402_v37 = vadd.f32 %v3401_v62, %v3379_v34  ;;  %v9376_v62 = vld [vmem:[%s19635_s9 + $0x810] sm:$0xff]  ;;  %v9314_v34 = vld [vmem:[%s19635_s9 + $0x620] sm:$0xff] }
 0x52f   : > { %v3425_v58 = vadd.f32 %v3424_v28, %v3402_v37  ;;  %v9316_v28 = vld [vmem:[%s19635_s9 + $0x630] sm:$0xff] }
 0x530   : > { %v9368_v37 = vld [vmem:[%s19635_s9 + $0x7d0] sm:$0xff] }
 0x531   : > { %v3448_v16 = vadd.f32 %v3447_v17, %v3425_v58  ;;  %v9318_v17 = vld [vmem:[%s19635_s9 + $0x640] sm:$0xff]  ;;  %v9360_v58 = vld [vmem:[%s19635_s9 + $0x790] sm:$0xff] }
 0x533   : > { %v3427_v39 = vpop.f32.mrf.mxu0  ;;  %v13745_v15 = vmax.f32 %v2893_v8, %v3448_v16  ;;  %v9394_v16 = vld [vmem:[%s19635_s9 + $0x8a0] sm:$0xff]  ;;  %v9288_v8 = vld [vmem:[%s19635_s9 + $0x550] sm:$0xff] }
 0x534   : > { %v3404_v47 = vpop.f32.mrf.mxu3  ;;  %3972 = vmatpush.msrb.mxu2 %v9394_v16  ;;  %v9395_v16 = vld [vmem:[%s19635_s9 + $0x8a8] sm:$0xff] }
 0x535   : > { %v3405_v54 = vadd.f32 %v3404_v47, %v3382_v22  ;;  %v9364_v22 = vld [vmem:[%s19635_s9 + $0x7b0] sm:$0xff]  ;;  %v9306_v47 = vld [vmem:[%s19635_s9 + $0x5e0] sm:$0xff] }
 0x536   : > { %3973 = vmatpush.msrb.mxu2 %v9390_v2  ;;  %v9335_v2 = vld [vmem:[%s19635_s9 + $0x6c8] sm:$0xff] }
 0x537   : > { %v3428_v12 = vadd.f32 %v3427_v39, %v3405_v54  ;;  %v9356_v54 = vld [vmem:[%s19635_s9 + $0x770] sm:$0xff]  ;;  %v9302_v39 = vld [vmem:[%s19635_s9 + $0x5c0] sm:$0xff] }
 0x539   : > { %v3451_v60 = vadd.f32 %v3450_v48, %v3428_v12  ;;  %v9298_v12 = vld [vmem:[%s19635_s9 + $0x5a0] sm:$0xff]  ;;  %v9292_v48 = vld [vmem:[%s19635_s9 + $0x570] sm:$0xff] }
 0x53b   : > { %v13743_v30 = vmax.f32 %v2896_v45, %v3451_v60  ;;  %v9352_v45 = vld [vmem:[%s19635_s9 + $0x750] sm:$0xff]  ;;  %v9294_v60 = vld [vmem:[%s19635_s9 + $0x580] sm:$0xff] }
 0x53d   : > { %9244 = vmatpush.msk.msra.mxu0 %vm3468_vm5, %v13743_v30  ;;  %9255 = vmatpush.msk.msra.mxu3 %vm3468_vm5, %v13743_v30 }
 0x53f   : > { %3539 = vmatpush.msra.mxu0 %v13745_v15  ;;  %3757 = vmatpush.msra.mxu3 %v13745_v15 }
 0x540   : > { %9256 = vmatmul.msk.f32.vlgmr.msra.gmra.mxu3 %vm3461_vm6, %v13683_v29  ;;  %9245 = vmatmul.msk.f32.vlgmr.msra.gmra.mxu0 %vm3461_vm6, %v13678_v26  ;;  %v9374_v29 = vld [vmem:[%s19635_s9 + $0x800] sm:$0xff]  ;;  %v9307_v26 = vld [vmem:[%s19635_s9 + $0x5e8] sm:$0xff] }
 0x541   : > { %3982 = vmatpush.msrb.mxu3 %v9319_v43  ;;  %3938 = vmatpush.msrb.mxu1 %v9374_v29  ;;  %v9348_v43 = vld [vmem:[%s19635_s9 + $0x730] sm:$0xff] }
 0x542   : > { %3913 = vmatpush.msrb.mxu0 %v9318_v17  ;;  %v9340_v29 = vld [vmem:[%s19635_s9 + $0x6f0] sm:$0xff]  ;;  %v9363_v17 = vld [vmem:[%s19635_s9 + $0x7a8] sm:$0xff] }
 0x543   : > { %3983 = vmatpush.msrb.mxu3 %v9315_v33  ;;  %3939 = vmatpush.msrb.mxu1 %v9370_v4  ;;  %v9290_v33 = vld [vmem:[%s19635_s9 + $0x560] sm:$0xff]  ;;  %v9332_v4 = vld [vmem:[%s19635_s9 + $0x6b0] sm:$0xff] }
 0x544   : > { %3914 = vmatpush.msrb.mxu0 %v9314_v34  ;;  %v3571_v34 = vld [vmem:[%s19635_s9 + $0xc0] sm:$0xff] }
 0x545   : > { %3984 = vmatpush.msrb.mxu3 %v9311_v46  ;;  %3940 = vmatpush.msrb.mxu1 %v9366_v0  ;;  %v9344_v46 = vld [vmem:[%s19635_s9 + $0x710] sm:$0xff] }
 0x546   : > { %3915 = vmatpush.msrb.mxu0 %v9310_v41  ;;  %v9324_v0 = vld [vmem:[%s19635_s9 + $0x670] sm:$0xff] }
 0x547   : > { %3985 = vmatpush.msrb.mxu3 %v9307_v26  ;;  %3941 = vmatpush.msrb.mxu1 %v9362_v20  ;;  %v9336_v26 = vld [vmem:[%s19635_s9 + $0x6d0] sm:$0xff]  ;;  %v3607_v20 = vld [vmem:[%s19635_s9 + $0x1e0] sm:$0xff] }
 0x548   : > { %9257 = vmatmul.msk.f32.gmra.mxu3 %vm3461_vm6, %v13699_v44  ;;  %9246 = vmatmul.msk.f32.gmra.mxu0 %vm3461_vm6, %v13694_v36  ;;  %v9358_v44 = vld [vmem:[%s19635_s9 + $0x780] sm:$0xff]  ;;  %v9291_v36 = vld [vmem:[%s19635_s9 + $0x568] sm:$0xff] }
 0x549   : > { %3986 = vmatpush.msrb.mxu3 %v9303_v14  ;;  %3942 = vmatpush.msrb.mxu1 %v9358_v44  ;;  %v9328_v14 = vld [vmem:[%s19635_s9 + $0x690] sm:$0xff]  ;;  %v3599_v44 = vld [vmem:[%s19635_s9 + $0x1a0] sm:$0xff] }
 0x54a   : > { %3916 = vmatpush.msrb.mxu0 %v9306_v47  ;;  %v9355_v47 = vld [vmem:[%s19635_s9 + $0x768] sm:$0xff] }
 0x54b   : > { %3987 = vmatpush.msrb.mxu3 %v9299_v56  ;;  %3943 = vmatpush.msrb.mxu1 %v9354_v42  ;;  %v9386_v42 = vld [vmem:[%s19635_s9 + $0x860] sm:$0xff] }
 0x54c   : > { %3917 = vmatpush.msrb.mxu0 %v9302_v39  ;;  %3974 = vmatpush.msrb.mxu2 %v9386_v42  ;;  %v9347_v39 = vld [vmem:[%s19635_s9 + $0x728] sm:$0xff]  ;;  %v9389_v42 = vld [vmem:[%s19635_s9 + $0x878] sm:$0xff] }
 0x54d   : > { %3988 = vmatpush.msrb.mxu3 %v9295_v3  ;;  %3944 = vmatpush.msrb.mxu1 %v9350_v5  ;;  %v3603_v3 = vld [vmem:[%s19635_s9 + $0x1c0] sm:$0xff]  ;;  %v9383_v5 = vld [vmem:[%s19635_s9 + $0x848] sm:$0xff] }
 0x54e   : > { %3918 = vmatpush.msrb.mxu0 %v9298_v12  ;;  %4005 = vmatpush.msra.mxu2 %v9383_v5  ;;  %v9343_v12 = vld [vmem:[%s19635_s9 + $0x708] sm:$0xff] }
 0x54f   : > { %3989 = vmatpush.msrb.mxu3 %v9291_v36  ;;  %3945 = vmatpush.msrb.mxu1 %v9346_v6  ;;  %v3595_v36 = vld [vmem:[%s19635_s9 + $0x180] sm:$0xff] }
 0x550   : > { %3919 = vmatpush.msrb.mxu0 %v9294_v60  ;;  %v3591_v6 = vld [vmem:[%s19635_s9 + $0x160] sm:$0xff]  ;;  %v9339_v60 = vld [vmem:[%s19635_s9 + $0x6e8] sm:$0xff] }
 0x551   : > { %3990 = vmatpush.msrb.mxu3 %v9287_v40  ;;  %3946 = vmatpush.msrb.mxu1 %v9342_v51  ;;  %v9286_v40 = vld [vmem:[%s19635_s9 + $0x540] sm:$0xff] }
 0x552   : > { %3920 = vmatpush.msrb.mxu0 %v9290_v33  ;;  %v9282_v51 = vld [vmem:[%s19635_s9 + $0x520] sm:$0xff]  ;;  %v9387_v33 = vld [vmem:[%s19635_s9 + $0x868] sm:$0xff] }
 0x553   : > { %3991 = vmatpush.msrb.mxu3 %v9283_v31  ;;  %3947 = vmatpush.msrb.mxu1 %v9338_v63  ;;  %v9280_v31 = vld [vmem:[%s19635_s9 + $0x510] sm:$0xff] }
 0x554   : > { %3921 = vmatpush.msrb.mxu0 %v9286_v40  ;;  %v9276_v63 = vld [vmem:[%s19635_s9 + $0x4f0] sm:$0xff]  ;;  %v3676_v40 = vld [vmem:[%s19635_s9 + $0x408] sm:$0xff] }
 0x555   : > { %3992 = vmatpush.msrb.mxu3 %v9279_v55  ;;  %3948 = vmatpush.msrb.mxu1 %v9334_v7  ;;  %v3587_v7 = vld [vmem:[%s19635_s9 + $0x140] sm:$0xff] }
 0x556   : > { %3922 = vmatpush.msrb.mxu0 %v9282_v51  ;;  %v3673_v51 = vld [vmem:[%s19635_s9 + $0x3f0] sm:$0xff] }
 0x557   : > { %3993 = vmatpush.msrb.mxu3 %v9275_v23  ;;  %3949 = vmatpush.msrb.mxu1 %v9330_v19  ;;  %v9379_v23 = vld [vmem:[%s19635_s9 + $0x828] sm:$0xff]  ;;  %v9272_v19 = vld [vmem:[%s19635_s9 + $0x4d0] sm:$0xff] }
 0x558   : > { %4006 = vmatpush.msra.mxu2 %v9379_v23  ;;  %v3667_v23 = vld [vmem:[%s19635_s9 + $0x3c0] sm:$0xff] }
 0x559   : > { %3994 = vmatpush.msrb.mxu3 %v9271_v13  ;;  %3950 = vmatpush.msrb.mxu1 %v9326_v59  ;;  %v9278_v13 = vld [vmem:[%s19635_s9 + $0x500] sm:$0xff] }
 0x55a   : > { %v3583_v59 = vld [vmem:[%s19635_s9 + $0x120] sm:$0xff]  ;;  %3923 = vmatpush.msrb.mxu0 %v9278_v13 }
 0x55b   : > { %3995 = vmatpush.msrb.mxu3 %v9267_v61  ;;  %3951 = vmatpush.msrb.mxu1 %v9322_v53  ;;  %v9375_v61 = vld [vmem:[%s19635_s9 + $0x808] sm:$0xff]  ;;  %v3579_v53 = vld [vmem:[%s19635_s9 + $0x100] sm:$0xff] }
 0x55c   : > { %4007 = vmatpush.msra.mxu2 %v9375_v61  ;;  %v3663_v13 = vld [vmem:[%s19635_s9 + $0x3a0] sm:$0xff] }
 0x55d   : > { %3996 = vmatpush.msrb.mxu3 %v9263_v38  ;;  %4051 = vmatpush.msra.mxu1 %v9320_v35  ;;  %v9274_v38 = vld [vmem:[%s19635_s9 + $0x4e0] sm:$0xff]  ;;  %v9367_v35 = vld [vmem:[%s19635_s9 + $0x7c8] sm:$0xff] }
 0x55e   : > { %3924 = vmatpush.msrb.mxu0 %v9274_v38  ;;  %v3661_v38 = vld [vmem:[%s19635_s9 + $0x390] sm:$0xff] }
 0x55f   : > { %3997 = vmatpush.msrb.mxu3 %v9259_v9  ;;  %4052 = vmatpush.msra.mxu1 %v9316_v28  ;;  %v9371_v9 = vld [vmem:[%s19635_s9 + $0x7e8] sm:$0xff]  ;;  %v9264_v28 = vld [vmem:[%s19635_s9 + $0x490] sm:$0xff] }
 0x560   : > { %4008 = vmatpush.msra.mxu2 %v9371_v9  ;;  %v3657_v9 = vld [vmem:[%s19635_s9 + $0x370] sm:$0xff] }
 0x561   : > { %4074 = vmatpush.msra.mxu3 %v9384_v32  ;;  %4053 = vmatpush.msra.mxu1 %v9312_v25  ;;  %v9268_v32 = vld [vmem:[%s19635_s9 + $0x4b0] sm:$0xff] }
 0x562   : > { %4009 = vmatpush.msra.mxu2 %v9367_v35  ;;  %v9260_v25 = vld [vmem:[%s19635_s9 + $0x470] sm:$0xff] }
 0x563   : > { %4075 = vmatpush.msra.mxu3 %v9380_v10  ;;  %4054 = vmatpush.msra.mxu1 %v9308_v1  ;;  %v9270_v10 = vld [vmem:[%s19635_s9 + $0x4c0] sm:$0xff]  ;;  %v3649_v35 = vld [vmem:[%s19635_s9 + $0x330] sm:$0xff] }
 0x564   : > { %3925 = vmatpush.msrb.mxu0 %v9270_v10  ;;  %v9262_v1 = vld [vmem:[%s19635_s9 + $0x480] sm:$0xff]  ;;  %4010 = vmatpush.msra.mxu2 %v9363_v17  ;;  %v9321_v17 = vld [vmem:[%s19635_s9 + $0x658] sm:$0xff] }
 0x565   : > { %4076 = vmatpush.msra.mxu3 %v9376_v62  ;;  %4055 = vmatpush.msra.mxu1 %v9304_v21  ;;  %v3575_v62 = vld [vmem:[%s19635_s9 + $0xe0] sm:$0xff] }
 0x566   : > { %v9258_v21 = vld [vmem:[%s19635_s9 + $0x460] sm:$0xff] }
 0x567   : > { %4077 = vmatpush.msra.mxu3 %v9372_v24  ;;  %4056 = vmatpush.msra.mxu1 %v9300_v27  ;;  %v9266_v24 = vld [vmem:[%s19635_s9 + $0x4a0] sm:$0xff] }
 0x568   : > { %3926 = vmatpush.msrb.mxu0 %v9266_v24  ;;  %v3563_v27 = vld [vmem:[%s19635_s9 + $0x80] sm:$0xff] }
 0x569   : > { %4078 = vmatpush.msra.mxu3 %v9368_v37  ;;  %4057 = vmatpush.msra.mxu1 %v9296_v11  ;;  %v9359_v37 = vld [vmem:[%s19635_s9 + $0x788] sm:$0xff]  ;;  %v3555_v11 = vld [vmem:[%s19635_s9 + $0x40] sm:$0xff] }
 0x56a   : > { %3927 = vmatpush.msrb.mxu0 %v9262_v1  ;;  %4011 = vmatpush.msra.mxu2 %v9359_v37  ;;  %v3647_v10 = vld [vmem:[%s19635_s9 + $0x320] sm:$0xff]  ;;  %v3641_v37 = vld [vmem:[%s19635_s9 + $0x2f0] sm:$0xff] }
 0x56b   : > { %4079 = vmatpush.msra.mxu3 %v9364_v22  ;;  %4058 = vmatpush.msra.mxu1 %v9292_v48  ;;  %v3567_v22 = vld [vmem:[%s19635_s9 + $0xa0] sm:$0xff] }
 0x56c   : > { %3928 = vmatpush.msrb.mxu0 %v9258_v21  ;;  %4012 = vmatpush.msra.mxu2 %v9355_v47  ;;  %v3551_v48 = vld [vmem:[%s19635_s9 + $0x20] sm:$0xff]  ;;  %v9317_v21 = vld [vmem:[%s19635_s9 + $0x638] sm:$0xff] }
 0x56d   : > { %4080 = vmatpush.msra.mxu3 %v9360_v58  ;;  %4059 = vmatpush.msra.mxu1 %v9288_v8  ;;  %v9351_v58 = vld [vmem:[%s19635_s9 + $0x748] sm:$0xff]  ;;  %v3547_v8 = vld [vmem:[%s19635_s9] sm:$0xff] }
 0x56e   : > { %4013 = vmatpush.msra.mxu2 %v9351_v58  ;;  %4041 = vmatpush.msra.mxu0 %v9395_v16  ;;  %v3639_v1 = vld [vmem:[%s19635_s9 + $0x2e0] sm:$0xff]  ;;  %v9313_v58 = vld [vmem:[%s19635_s9 + $0x618] sm:$0xff] }
 0x56f   : > { %4081 = vmatpush.msra.mxu3 %v9356_v54  ;;  %4060 = vmatpush.msra.mxu1 %v9284_v18  ;;  %v3559_v54 = vld [vmem:[%s19635_s9 + $0x60] sm:$0xff]  ;;  %v9331_v18 = vld [vmem:[%s19635_s9 + $0x6a8] sm:$0xff] }
 0x570   : > { %4014 = vmatpush.msra.mxu2 %v9347_v39  ;;  %v3635_v47 = vld [vmem:[%s19635_s9 + $0x2c0] sm:$0xff] }
 0x571   : > { %4082 = vmatpush.msra.mxu3 %v9352_v45  ;;  %4061 = vmatpush.msra.mxu1 %v9280_v31  ;;  %v3631_v39 = vld [vmem:[%s19635_s9 + $0x2a0] sm:$0xff] }
 0x572   : > { %4015 = vmatpush.msra.mxu2 %v9343_v12  ;;  %v9309_v12 = vld [vmem:[%s19635_s9 + $0x5f8] sm:$0xff]  ;;  %v3627_v16 = vld [vmem:[%s19635_s9 + $0x280] sm:$0xff] }
 0x573   : > { %4083 = vmatpush.msra.mxu3 %v9348_v43  ;;  %4062 = vmatpush.msra.mxu1 %v9276_v63  ;;  %v9391_v43 = vld [vmem:[%s19635_s9 + $0x888] sm:$0xff]  ;;  %v3669_v63 = vld [vmem:[%s19635_s9 + $0x3d0] sm:$0xff] }
 0x574   : > { %4016 = vmatpush.msra.mxu2 %v9339_v60  ;;  %4042 = vmatpush.msra.mxu0 %v9391_v43  ;;  %v3629_v60 = vld [vmem:[%s19635_s9 + $0x290] sm:$0xff]  ;;  %v9305_v43 = vld [vmem:[%s19635_s9 + $0x5d8] sm:$0xff] }
 0x575   : > { %4084 = vmatpush.msra.mxu3 %v9344_v46  ;;  %4063 = vmatpush.msra.mxu1 %v9272_v19  ;;  %v9396_v46 = vld [vmem:[%s19635_s9 + $0x8b0] sm:$0xff]  ;;  %v3659_v19 = vld [vmem:[%s19635_s9 + $0x380] sm:$0xff] }
 0x576   : > { %4017 = vmatpush.msra.mxu2 %v9335_v2  ;;  %4043 = vmatpush.msra.mxu0 %v9387_v33  ;;  %v9369_v2 = vld [vmem:[%s19635_s9 + $0x7d8] sm:$0xff] }
 0x577   : > { %4085 = vmatpush.msra.mxu3 %v9340_v29  ;;  %4064 = vmatpush.msra.mxu1 %v9268_v32  ;;  %v9327_v29 = vld [vmem:[%s19635_s9 + $0x688] sm:$0xff]  ;;  %v3651_v32 = vld [vmem:[%s19635_s9 + $0x340] sm:$0xff] }
 0x578   : > { %4018 = vmatpush.msra.mxu2 %v9331_v18  ;;  %v3623_v18 = vld [vmem:[%s19635_s9 + $0x260] sm:$0xff] }
 0x579   : > { %4086 = vmatpush.msra.mxu3 %v9336_v26  ;;  %4065 = vmatpush.msra.mxu1 %v9264_v28  ;;  %v9392_v26 = vld [vmem:[%s19635_s9 + $0x890] sm:$0xff]  ;;  %v3643_v28 = vld [vmem:[%s19635_s9 + $0x300] sm:$0xff] }
 0x57a   : > { %4019 = vmatpush.msra.mxu2 %v9327_v29  ;;  %v9301_v29 = vld [vmem:[%s19635_s9 + $0x5b8] sm:$0xff] }
 0x57b   : > { %4087 = vmatpush.msra.mxu3 %v9332_v4  ;;  %4066 = vmatpush.msra.mxu1 %v9260_v25  ;;  %v9397_v4 = vld [vmem:[%s19635_s9 + $0x8b8] sm:$0xff] }
 0x57c   : > { %v13965_v56 = vpop.f32.mrf.mxu1  ;;  %v9385_v25 = vld [vmem:[%s19635_s9 + $0x858] sm:$0xff] }
 0x57d   : > { %4088 = vmatpush.msra.mxu3 %v9328_v14  ;;  %3929 = vmatmul.f32.vlgmr.msrb.gmra.mxu0 %v13965_v56  ;;  %v3684_v14 = vld [vmem:[%s19635_s9 + $0x448] sm:$0xff] }
 0x57e   : > { %3998 = vmatmul.f32.vlgmr.msrb.gmra.mxu3 %v13965_v56  ;;  %4110 = vmatpush.msrb.mxu0 %v9396_v46  ;;  %v3625_v46 = vld [vmem:[%s19635_s9 + $0x270] sm:$0xff] }
 0x57f   : > { %4089 = vmatpush.msra.mxu3 %v9324_v0 }
 0x580   : > { %4111 = vmatpush.msrb.mxu0 %v9392_v26  ;;  %v9365_v26 = vld [vmem:[%s19635_s9 + $0x7b8] sm:$0xff] }
 0x581   : > { %4195 = vmatpush.msrb.mxu3 %v3607_v20  ;;  %v9323_v20 = vld [vmem:[%s19635_s9 + $0x668] sm:$0xff] }
 0x582   : > { %v14064_v41 = vpop.f32.mrf.mxu2  ;;  %4020 = vmatpush.msra.mxu2 %v9323_v20  ;;  %v9297_v20 = vld [vmem:[%s19635_s9 + $0x598] sm:$0xff] }
 0x583   : > { %4196 = vmatpush.msrb.mxu3 %v3603_v3  ;;  %v9388_v3 = vld [vmem:[%s19635_s9 + $0x870] sm:$0xff] }
 0x584   : > { %v13995_v55 = vpop.f32.mrf.mxu1  ;;  %4112 = vmatpush.msrb.mxu0 %v9388_v3  ;;  %v9361_v3 = vld [vmem:[%s19635_s9 + $0x798] sm:$0xff] }
 0x585   : > { %4197 = vmatpush.msrb.mxu3 %v3599_v44  ;;  %3932 = vmatmul.f32.gmra.mxu0 %v13995_v55  ;;  %v9393_v44 = vld [vmem:[%s19635_s9 + $0x898] sm:$0xff] }
 0x586   : > { %4001 = vmatmul.f32.gmra.mxu3 %v13995_v55 }
 0x587   : > { %4198 = vmatpush.msrb.mxu3 %v3595_v36  ;;  %v3680_v36 = vld [vmem:[%s19635_s9 + $0x428] sm:$0xff] }
 0x589   : > { %4199 = vmatpush.msrb.mxu3 %v3591_v6  ;;  %v3671_v6 = vld [vmem:[%s19635_s9 + $0x3e0] sm:$0xff] }
 0x58a   : > { %v14097_v45 = vpop.f32.mrf.mxu2 }
 0x58b   : > { %4200 = vmatpush.msrb.mxu3 %v3587_v7  ;;  %v3665_v7 = vld [vmem:[%s19635_s9 + $0x3b0] sm:$0xff] }
 0x58d   : > { %4201 = vmatpush.msrb.mxu3 %v3583_v59  ;;  %v3655_v59 = vld [vmem:[%s19635_s9 + $0x360] sm:$0xff] }
 0x58f   : > { %4202 = vmatpush.msrb.mxu3 %v3579_v53  ;;  %v3653_v53 = vld [vmem:[%s19635_s9 + $0x350] sm:$0xff] }
 0x591   : > { %4203 = vmatpush.msrb.mxu3 %v3575_v62  ;;  %v3645_v62 = vld [vmem:[%s19635_s9 + $0x310] sm:$0xff] }
 0x593   : > { %4204 = vmatpush.msrb.mxu3 %v3571_v34 }
 0x595   : > { %4205 = vmatpush.msrb.mxu3 %v3567_v22  ;;  %v9381_v22 = vld [vmem:[%s19635_s9 + $0x838] sm:$0xff] }
 0x597   : > { %4206 = vmatpush.msrb.mxu3 %v3563_v27  ;;  %v3637_v27 = vld [vmem:[%s19635_s9 + $0x2d0] sm:$0xff] }
 0x599   : > { %4207 = vmatpush.msrb.mxu3 %v3559_v54  ;;  %v9377_v54 = vld [vmem:[%s19635_s9 + $0x818] sm:$0xff] }
 0x59b   : > { %4208 = vmatpush.msrb.mxu3 %v3555_v11  ;;  %v3633_v11 = vld [vmem:[%s19635_s9 + $0x2b0] sm:$0xff] }
 0x59d   : > { %4209 = vmatpush.msrb.mxu3 %v3551_v48  ;;  %v9373_v48 = vld [vmem:[%s19635_s9 + $0x7f8] sm:$0xff] }
 0x59f   : > { %4210 = vmatpush.msrb.mxu3 %v3547_v8 }
 0x5a4   : > { %v14136_v0 = vpop.f32.mrf.mxu2  ;;  %v14162_v31 = vpop.f32.mrf.mxu3 }
 0x5a5   : > { %3952 = vmatmul.f32.vlgmr.msrb.gmra.mxu1 %v14136_v0  ;;  %4090 = vmatmul.f32.vlgmr.msra.gmra.mxu3 %v14136_v0 }
 0x5a6   : > { %4179 = vmatpush.msrb.mxu1 %v9397_v4  ;;  %4323 = vmatpush.msra.mxu3 %v3684_v14  ;;  %v3619_v4 = vld [vmem:[%s19635_s9 + $0x240] sm:$0xff]  ;;  %v3621_v14 = vld [vmem:[%s19635_s9 + $0x250] sm:$0xff] }
 0x5a8   : > { %4180 = vmatpush.msrb.mxu1 %v9393_v44  ;;  %4324 = vmatpush.msra.mxu3 %v3680_v36  ;;  %v3615_v44 = vld [vmem:[%s19635_s9 + $0x220] sm:$0xff]  ;;  %v3617_v36 = vld [vmem:[%s19635_s9 + $0x230] sm:$0xff] }
 0x5aa   : > { %4181 = vmatpush.msrb.mxu1 %v9389_v42  ;;  %4325 = vmatpush.msra.mxu3 %v3676_v40  ;;  %v9293_v42 = vld [vmem:[%s19635_s9 + $0x578] sm:$0xff] }
 0x5ab   : > { %v9357_v40 = vld [vmem:[%s19635_s9 + $0x778] sm:$0xff] }
 0x5ac   : > { %v14158_v5 = vpop.f32.mrf.mxu2  ;;  %v14184_v61 = vpop.f32.mrf.mxu3 }
 0x5ad   : > { %3955 = vmatmul.f32.gmra.mxu1 %v14158_v5  ;;  %4093 = vmatmul.f32.gmra.mxu3 %v14158_v5 }
 0x5b5   : > { %4067 = vmatmul.f32.vlgmr.msra.gmra.mxu1 %v13965_v56  ;;  %4211 = vmatmul.f32.vlgmr.msrb.gmra.mxu3 %v14064_v41 }
 0x5b6   : > { %4218 = vmatpush.msra.mxu1 %v3671_v6  ;;  %4356 = vmatpush.msrb.mxu3 %v3673_v51  ;;  %v3611_v6 = vld [vmem:[%s19635_s9 + $0x200] sm:$0xff]  ;;  %v3613_v51 = vld [vmem:[%s19635_s9 + $0x210] sm:$0xff] }
 0x5b8   : > { %4219 = vmatpush.msra.mxu1 %v3667_v23  ;;  %4357 = vmatpush.msrb.mxu3 %v3669_v63  ;;  %v9289_v23 = vld [vmem:[%s19635_s9 + $0x558] sm:$0xff] }
 0x5b9   : > { %v9353_v63 = vld [vmem:[%s19635_s9 + $0x758] sm:$0xff] }
 0x5ba   : > { %4220 = vmatpush.msra.mxu1 %v3663_v13  ;;  %4358 = vmatpush.msrb.mxu3 %v3665_v7  ;;  %v3609_v13 = vld [vmem:[%s19635_s9 + $0x1f0] sm:$0xff]  ;;  %v9285_v7 = vld [vmem:[%s19635_s9 + $0x538] sm:$0xff] }
 0x5bc   : > { %4221 = vmatpush.msra.mxu1 %v3659_v19  ;;  %4359 = vmatpush.msrb.mxu3 %v3661_v38  ;;  %v9349_v19 = vld [vmem:[%s19635_s9 + $0x738] sm:$0xff]  ;;  %v3605_v38 = vld [vmem:[%s19635_s9 + $0x1d0] sm:$0xff] }
 0x5bd   : > { %4070 = vmatmul.f32.gmra.mxu1 %v13995_v55  ;;  %4214 = vmatmul.f32.gmra.mxu3 %v14097_v45  ;;  %v14226_v34 = vpop.f32.mrf.mxu0 }
 0x5be   : > { %4222 = vmatpush.msra.mxu1 %v3655_v59  ;;  %4360 = vmatpush.msrb.mxu3 %v3657_v9  ;;  %v9281_v59 = vld [vmem:[%s19635_s9 + $0x518] sm:$0xff] }
 0x5bf   : > { %v9345_v9 = vld [vmem:[%s19635_s9 + $0x718] sm:$0xff] }
 0x5c0   : > { %4223 = vmatpush.msra.mxu1 %v3651_v32  ;;  %4361 = vmatpush.msrb.mxu3 %v3653_v53  ;;  %v3601_v32 = vld [vmem:[%s19635_s9 + $0x1b0] sm:$0xff]  ;;  %v9277_v53 = vld [vmem:[%s19635_s9 + $0x4f8] sm:$0xff] }
 0x5c2   : > { %4224 = vmatpush.msra.mxu1 %v3647_v10  ;;  %4362 = vmatpush.msrb.mxu3 %v3649_v35  ;;  %v9341_v10 = vld [vmem:[%s19635_s9 + $0x6f8] sm:$0xff]  ;;  %v3597_v35 = vld [vmem:[%s19635_s9 + $0x190] sm:$0xff] }
 0x5c3   : > { %v14218_v24 = vpop.f32.mrf.mxu3 }
 0x5c4   : > { %4225 = vmatpush.msra.mxu1 %v3643_v28  ;;  %4363 = vmatpush.msrb.mxu3 %v3645_v62  ;;  %v9273_v28 = vld [vmem:[%s19635_s9 + $0x4d8] sm:$0xff] }
 0x5c5   : > { %9398 = vmatmul.msk.f32.vlgmr.msrb.gmra.mxu2 %vm3906_vm7, %v14218_v24  ;;  %9400 = vmatmul.msk.f32.vlgmr.msra.gmra.mxu0 %vm3906_vm7, %v14218_v24  ;;  %v14286_v33 = vpop.f32.mrf.mxu0  ;;  %v9337_v62 = vld [vmem:[%s19635_s9 + $0x6d8] sm:$0xff] }
 0x5c6   : > { %4120 = vmatpush.msrb.mxu2 %v9321_v17  ;;  %4143 = vmatpush.msra.mxu0 %v9385_v25  ;;  %v9269_v17 = vld [vmem:[%s19635_s9 + $0x4b8] sm:$0xff] }
 0x5c7   : > { %9404 = vmatmul.msk.f32.vlgmr.msrb.gmra.mxu1 %vm3906_vm7, %v14218_v24  ;;  %9408 = vmatmul.msk.f32.vlgmr.msra.gmra.mxu3 %vm3906_vm7, %v14226_v34  ;;  %v9333_v25 = vld [vmem:[%s19635_s9 + $0x6b8] sm:$0xff] }
 0x5c8   : > { %4226 = vmatpush.msra.mxu1 %v3639_v1  ;;  %4364 = vmatpush.msrb.mxu3 %v3641_v37  ;;  %v3589_v1 = vld [vmem:[%s19635_s9 + $0x150] sm:$0xff]  ;;  %v9265_v37 = vld [vmem:[%s19635_s9 + $0x498] sm:$0xff] }
 0x5c9   : > { %4121 = vmatpush.msrb.mxu2 %v9317_v21  ;;  %4144 = vmatpush.msra.mxu0 %v9381_v22  ;;  %v9329_v21 = vld [vmem:[%s19635_s9 + $0x698] sm:$0xff]  ;;  %v3585_v22 = vld [vmem:[%s19635_s9 + $0x130] sm:$0xff] }
 0x5ca   : > { %4227 = vmatpush.msra.mxu1 %v3635_v47  ;;  %4365 = vmatpush.msrb.mxu3 %v3637_v27  ;;  %v9261_v47 = vld [vmem:[%s19635_s9 + $0x478] sm:$0xff] }
 0x5cb   : > { %4122 = vmatpush.msrb.mxu2 %v9313_v58  ;;  %4145 = vmatpush.msra.mxu0 %v9377_v54  ;;  %v14278_v8 = vpop.f32.mrf.mxu3  ;;  %v9325_v27 = vld [vmem:[%s19635_s9 + $0x678] sm:$0xff]  ;;  %v3581_v58 = vld [vmem:[%s19635_s9 + $0x110] sm:$0xff]  ;;  %v3683_v54 = vld [vmem:[%s19635_s9 + $0x440] sm:$0xff] }
 0x5cc   : > { %4228 = vmatpush.msra.mxu1 %v3631_v39  ;;  %4366 = vmatpush.msrb.mxu3 %v3633_v11  ;;  %v3608_v39 = vld [vmem:[%s19635_s9 + $0x1e8] sm:$0xff]  ;;  %v3577_v11 = vld [vmem:[%s19635_s9 + $0xf0] sm:$0xff] }
 0x5cd   : > { %4123 = vmatpush.msrb.mxu2 %v9309_v12  ;;  %4146 = vmatpush.msra.mxu0 %v9373_v48  ;;  %v3679_v12 = vld [vmem:[%s19635_s9 + $0x420] sm:$0xff]  ;;  %v3604_v48 = vld [vmem:[%s19635_s9 + $0x1c8] sm:$0xff] }
 0x5ce   : > { %4229 = vmatpush.msra.mxu1 %v3627_v16  ;;  %4367 = vmatpush.msrb.mxu3 %v3629_v60  ;;  %v14442_v16 = vld [vmem:[%s19634_s8 + $0x20] sm:$0xff]  ;;  %v3573_v60 = vld [vmem:[%s19635_s9 + $0xd0] sm:$0xff] }
 0x5cf   : > { %9399 = vmatmul.msk.f32.gmra.mxu2 %vm3906_vm7, %v14278_v8  ;;  %9401 = vmatmul.msk.f32.gmra.mxu0 %vm3906_vm7, %v14278_v8 }
 0x5d0   : > { %4124 = vmatpush.msrb.mxu2 %v9305_v43  ;;  %4147 = vmatpush.msra.mxu0 %v9369_v2  ;;  %v3672_v43 = vld [vmem:[%s19635_s9 + $0x3e8] sm:$0xff]  ;;  %v3569_v2 = vld [vmem:[%s19635_s9 + $0xb0] sm:$0xff] }
 0x5d1   : > { %9405 = vmatmul.msk.f32.gmra.mxu1 %vm3906_vm7, %v14278_v8  ;;  %9409 = vmatmul.msk.f32.gmra.mxu3 %vm3906_vm7, %v14286_v33 }
 0x5d2   : > { %4230 = vmatpush.msra.mxu1 %v3623_v18  ;;  %4368 = vmatpush.msrb.mxu3 %v3625_v46  ;;  %v3668_v18 = vld [vmem:[%s19635_s9 + $0x3c8] sm:$0xff]  ;;  %v3565_v46 = vld [vmem:[%s19635_s9 + $0x90] sm:$0xff] }
 0x5d3   : > { %4125 = vmatpush.msrb.mxu2 %v9301_v29  ;;  %4148 = vmatpush.msra.mxu0 %v9365_v26  ;;  %v3592_v29 = vld [vmem:[%s19635_s9 + $0x168] sm:$0xff] }
 0x5d4   : > { %4231 = vmatpush.msra.mxu1 %v3619_v4  ;;  %4369 = vmatpush.msrb.mxu3 %v3621_v14  ;;  %v3664_v26 = vld [vmem:[%s19635_s9 + $0x3a8] sm:$0xff]  ;;  %v3561_v4 = vld [vmem:[%s19635_s9 + $0x70] sm:$0xff] }
 0x5d5   : > { %4126 = vmatpush.msrb.mxu2 %v9297_v20  ;;  %4149 = vmatpush.msra.mxu0 %v9361_v3  ;;  %v3588_v14 = vld [vmem:[%s19635_s9 + $0x148] sm:$0xff] }
 0x5d6   : > { %4232 = vmatpush.msra.mxu1 %v3615_v44  ;;  %4370 = vmatpush.msrb.mxu3 %v3617_v36  ;;  %v3660_v20 = vld [vmem:[%s19635_s9 + $0x388] sm:$0xff]  ;;  %v3557_v44 = vld [vmem:[%s19635_s9 + $0x50] sm:$0xff] }
 0x5d7   : > { %4127 = vmatpush.msrb.mxu2 %v9293_v42  ;;  %4150 = vmatpush.msra.mxu0 %v9357_v40  ;;  %v14490_v3 = vld [vmem:[%s19634_s8 + $0x28] sm:$0x3] }
 0x5d8   : > { %4233 = vmatpush.msra.mxu1 %v3611_v6  ;;  %4371 = vmatpush.msrb.mxu3 %v3613_v51  ;;  %v3656_v36 = vld [vmem:[%s19635_s9 + $0x368] sm:$0xff]  ;;  %v3549_v6 = vld [vmem:[%s19635_s9 + $0x10] sm:$0xff] }
 0x5d9   : > { %4021 = vmatmul.f32.vlgmr.msra.gmra.mxu2 %v14136_v0  ;;  %9402 = vmatmul.msk.f32.vlgmr.msrb.gmra.mxu0 %vm3906_vm7, %v14218_v24  ;;  %v3593_v24 = vld [vmem:[%s19635_s9 + $0x170] sm:$0xff]  ;;  %v3580_v42 = vld [vmem:[%s19635_s9 + $0x108] sm:$0xff] }
 0x5da   : > { %4128 = vmatpush.msrb.mxu2 %v9289_v23  ;;  %4151 = vmatpush.msra.mxu0 %v9353_v63  ;;  %v3652_v40 = vld [vmem:[%s19635_s9 + $0x348] sm:$0xff]  ;;  %v3686_v23 = vld [vmem:[%s19635_s9 + $0x458] sm:$0xff] }
 0x5db   : > { %4333 = vmatpush.msrb.mxu1 %v3609_v13  ;;  %9416 = vmatpush.msk.msra.mxu3 %vm3468_vm5, %v13667_v49  ;;  %v3576_v51 = vld [vmem:[%s19635_s9 + $0xe8] sm:$0xff] }
 0x5dc   : > { %4234 = vmatmul.f32.vlgmr.msra.gmra.mxu1 %v14162_v31  ;;  %4372 = vmatmul.f32.vlgmr.msrb.gmra.mxu3 %v14162_v31  ;;  %v3648_v63 = vld [vmem:[%s19635_s9 + $0x328] sm:$0xff] }
 0x5dd   : > { %4129 = vmatpush.msrb.mxu2 %v9285_v7  ;;  %4152 = vmatpush.msra.mxu0 %v9349_v19  ;;  %v3572_v13 = vld [vmem:[%s19635_s9 + $0xc8] sm:$0xff]  ;;  %v3682_v7 = vld [vmem:[%s19635_s9 + $0x438] sm:$0xff] }
 0x5de   : > { %4334 = vmatpush.msrb.mxu1 %v3605_v38  ;;  %4495 = vmatpush.msra.mxu3 %v13669_v57  ;;  %v3644_v19 = vld [vmem:[%s19635_s9 + $0x308] sm:$0xff] }
 0x5df   : > { %4130 = vmatpush.msrb.mxu2 %v9281_v59  ;;  %4153 = vmatpush.msra.mxu0 %v9345_v9  ;;  %v3568_v38 = vld [vmem:[%s19635_s9 + $0xa8] sm:$0xff]  ;;  %v3678_v59 = vld [vmem:[%s19635_s9 + $0x418] sm:$0xff] }
 0x5e0   : > { %4335 = vmatpush.msrb.mxu1 %v3601_v32  ;;  %v3640_v9 = vld [vmem:[%s19635_s9 + $0x2e8] sm:$0xff] }
 0x5e1   : > { %4131 = vmatpush.msrb.mxu2 %v9277_v53  ;;  %4154 = vmatpush.msra.mxu0 %v9341_v10  ;;  %v3564_v32 = vld [vmem:[%s19635_s9 + $0x88] sm:$0xff] }
 0x5e2   : > { %4336 = vmatpush.msrb.mxu1 %v3597_v35  ;;  %4024 = vmatmul.f32.gmra.mxu2 %v14158_v5  ;;  %v3636_v53 = vld [vmem:[%s19635_s9 + $0x2c8] sm:$0xff] }
 0x5e3   : > { %9403 = vmatmul.msk.f32.gmra.mxu0 %vm3906_vm7, %v14278_v8  ;;  %4132 = vmatpush.msrb.mxu2 %v9273_v28  ;;  %v3675_v8 = vld [vmem:[%s19635_s9 + $0x400] sm:$0xff]  ;;  %v3560_v10 = vld [vmem:[%s19635_s9 + $0x68] sm:$0xff] }
 0x5e4   : > { %4155 = vmatpush.msra.mxu0 %v9337_v62  ;;  %4337 = vmatpush.msrb.mxu1 %v3593_v24  ;;  %v3632_v35 = vld [vmem:[%s19635_s9 + $0x2a8] sm:$0xff] }
 0x5e5   : > { %4237 = vmatmul.f32.gmra.mxu1 %v14184_v61  ;;  %4375 = vmatmul.f32.gmra.mxu3 %v14184_v61  ;;  %v3556_v28 = vld [vmem:[%s19635_s9 + $0x48] sm:$0xff] }
 0x5e6   : > { %4133 = vmatpush.msrb.mxu2 %v9269_v17  ;;  %4156 = vmatpush.msra.mxu0 %v9333_v25  ;;  %v3628_v62 = vld [vmem:[%s19635_s9 + $0x288] sm:$0xff] }
 0x5e7   : > { %4338 = vmatpush.msrb.mxu1 %v3589_v1  ;;  %v3552_v24 = vld [vmem:[%s19635_s9 + $0x28] sm:$0xff] }
 0x5e8   : > { %4134 = vmatpush.msrb.mxu2 %v9265_v37  ;;  %4157 = vmatpush.msra.mxu0 %v9329_v21  ;;  %v3624_v17 = vld [vmem:[%s19635_s9 + $0x268] sm:$0xff]  ;;  %v3685_v37 = vld [vmem:[%s19635_s9 + $0x450] sm:$0xff] }
 0x5e9   : > { %4339 = vmatpush.msrb.mxu1 %v3585_v22  ;;  %v3548_v25 = vld [vmem:[%s19635_s9 + $0x8] sm:$0xff]  ;;  %v3681_v22 = vld [vmem:[%s19635_s9 + $0x430] sm:$0xff] }
 0x5ea   : > { %4135 = vmatpush.msrb.mxu2 %v9261_v47  ;;  %4158 = vmatpush.msra.mxu0 %v9325_v27  ;;  %v3620_v1 = vld [vmem:[%s19635_s9 + $0x248] sm:$0xff]  ;;  %v3677_v27 = vld [vmem:[%s19635_s9 + $0x410] sm:$0xff] }
 0x5eb   : > { %4340 = vmatpush.msrb.mxu1 %v3581_v58  ;;  %4136 = vmatmul.f32.vlgmr.msrb.gmra.mxu2 %v13965_v56  ;;  %v3600_v56 = vld [vmem:[%s19635_s9 + $0x1a8] sm:$0xff]  ;;  %v3674_v58 = vld [vmem:[%s19635_s9 + $0x3f8] sm:$0xff] }
 0x5ec   : > { %4254 = vmatpush.msra.mxu2 %v3683_v54  ;;  %4264 = vmatpush.msrb.mxu0 %v3608_v39  ;;  %v3616_v21 = vld [vmem:[%s19635_s9 + $0x228] sm:$0xff]  ;;  %v3610_v54 = vld [vmem:[%s19635_s9 + $0x1f8] sm:$0xff] }
 0x5ed   : > { %4159 = vmatmul.f32.vlgmr.msra.gmra.mxu0 %v14136_v0  ;;  %4341 = vmatpush.msrb.mxu1 %v3577_v11  ;;  %v3596_v0 = vld [vmem:[%s19635_s9 + $0x188] sm:$0xff]  ;;  %v3670_v39 = vld [vmem:[%s19635_s9 + $0x3d8] sm:$0xff] }
 0x5ee   : > { %4255 = vmatpush.msra.mxu2 %v3679_v12  ;;  %4265 = vmatpush.msrb.mxu0 %v3604_v48  ;;  %v3612_v47 = vld [vmem:[%s19635_s9 + $0x208] sm:$0xff]  ;;  %v3606_v11 = vld [vmem:[%s19635_s9 + $0x1d8] sm:$0xff] }
 0x5ef   : > { %9417 = vmatmul.msk.f32.vlgmr.msra.gmra.mxu3 %vm3461_vm6, %v14442_v16  ;;  %4342 = vmatpush.msrb.mxu1 %v3573_v60  ;;  %v3666_v12 = vld [vmem:[%s19635_s9 + $0x3b8] sm:$0xff] }
 0x5f0   : > { %4256 = vmatpush.msra.mxu2 %v3675_v8  ;;  %4266 = vmatpush.msrb.mxu0 %v3600_v56  ;;  %v3602_v48 = vld [vmem:[%s19635_s9 + $0x1b8] sm:$0xff] }
 0x5f1   : > { %4343 = vmatpush.msrb.mxu1 %v3569_v2  ;;  %v3662_v8 = vld [vmem:[%s19635_s9 + $0x398] sm:$0xff] }
 0x5f2   : > { %4287 = vmatpush.msrb.mxu2 %v3672_v43  ;;  %4267 = vmatpush.msrb.mxu0 %v3596_v0  ;;  %v3598_v56 = vld [vmem:[%s19635_s9 + $0x198] sm:$0xff] }
 0x5f3   : > { %4344 = vmatpush.msrb.mxu1 %v3565_v46  ;;  %4139 = vmatmul.f32.gmra.mxu2 %v13995_v55  ;;  %v3584_v55 = vld [vmem:[%s19635_s9 + $0x128] sm:$0xff]  ;;  %v3658_v43 = vld [vmem:[%s19635_s9 + $0x378] sm:$0xff] }
 0x5f4   : > { %4288 = vmatpush.msrb.mxu2 %v3668_v18  ;;  %4268 = vmatpush.msrb.mxu0 %v3592_v29  ;;  %v3594_v2 = vld [vmem:[%s19635_s9 + $0x178] sm:$0xff] }
 0x5f5   : > { %4162 = vmatmul.f32.gmra.mxu0 %v14158_v5  ;;  %4345 = vmatpush.msrb.mxu1 %v3561_v4  ;;  %v3553_v5 = vld [vmem:[%s19635_s9 + $0x30] sm:$0xff]  ;;  %v3654_v0 = vld [vmem:[%s19635_s9 + $0x358] sm:$0xff] }
 0x5f6   : > { %4289 = vmatpush.msrb.mxu2 %v3664_v26  ;;  %4269 = vmatpush.msrb.mxu0 %v3588_v14  ;;  %v3590_v18 = vld [vmem:[%s19635_s9 + $0x158] sm:$0xff] }
 0x5f7   : > { %9418 = vmatmul.msk.f32.gmra.mxu3 %vm3461_vm6, %v14490_v3  ;;  %4346 = vmatpush.msrb.mxu1 %v3557_v44  ;;  %v3650_v46 = vld [vmem:[%s19635_s9 + $0x338] sm:$0xff] }
 0x5f8   : > { %4290 = vmatpush.msrb.mxu2 %v3660_v20  ;;  %4270 = vmatpush.msrb.mxu0 %v3584_v55  ;;  %v3586_v29 = vld [vmem:[%s19635_s9 + $0x138] sm:$0xff] }
 0x5f9   : > { %4347 = vmatpush.msrb.mxu1 %v3553_v5  ;;  %v3646_v26 = vld [vmem:[%s19635_s9 + $0x318] sm:$0xff] }
 0x5fa   : > { %4291 = vmatpush.msrb.mxu2 %v3656_v36  ;;  %4271 = vmatpush.msrb.mxu0 %v3580_v42  ;;  %v3582_v4 = vld [vmem:[%s19635_s9 + $0x118] sm:$0xff] }
 0x5fb   : > { %4348 = vmatpush.msrb.mxu1 %v3549_v6  ;;  %9406 = vmatmul.msk.f32.vlgmr.msra.gmra.mxu2 %vm3906_vm7, %v14226_v34  ;;  %v3642_v20 = vld [vmem:[%s19635_s9 + $0x2f8] sm:$0xff] }
 0x5fc   : > { %4292 = vmatpush.msrb.mxu2 %v3652_v40  ;;  %4272 = vmatpush.msrb.mxu0 %v3576_v51  ;;  %v3638_v44 = vld [vmem:[%s19635_s9 + $0x2d8] sm:$0xff] }
 0x5fd   : > { %4349 = vmatmul.f32.vlgmr.msrb.gmra.mxu1 %v14064_v41  ;;  %v3574_v55 = vld [vmem:[%s19635_s9 + $0xd8] sm:$0xff] }
 0x5fe   : > { %4461 = vmatpush.msra.mxu1 %v3686_v23  ;;  %4293 = vmatpush.msrb.mxu2 %v3648_v63  ;;  %v3634_v36 = vld [vmem:[%s19635_s9 + $0x2b8] sm:$0xff] }
 0x5ff   : > { %4273 = vmatpush.msrb.mxu0 %v3572_v13  ;;  %v3570_v5 = vld [vmem:[%s19635_s9 + $0xb8] sm:$0xff] }
 0x600   : > { %4462 = vmatpush.msra.mxu1 %v3682_v7  ;;  %4294 = vmatpush.msrb.mxu2 %v3644_v19  ;;  %v3630_v42 = vld [vmem:[%s19635_s9 + $0x298] sm:$0xff] }
 0x601   : > { %4274 = vmatpush.msrb.mxu0 %v3568_v38  ;;  %v14619_v60 = vpop.f32.mrf.mxu3  ;;  %v3566_v40 = vld [vmem:[%s19635_s9 + $0x98] sm:$0xff] }
 0x602   : > { %4463 = vmatpush.msra.mxu1 %v3678_v59  ;;  %4295 = vmatpush.msrb.mxu2 %v3640_v9  ;;  %v3626_v6 = vld [vmem:[%s19635_s9 + $0x278] sm:$0xff] }
 0x603   : > { %4275 = vmatpush.msrb.mxu0 %v3564_v32  ;;  %9407 = vmatmul.msk.f32.gmra.mxu2 %vm3906_vm7, %v14286_v33  ;;  %v3622_v23 = vld [vmem:[%s19635_s9 + $0x258] sm:$0xff]  ;;  %v9486_v32 = vld [vmem:[%s19635_s9 + $0xaa8] sm:$0xff] }
 0x604   : > { %9419 = vmatpush.msk.msrb.mxu1 %vm3468_vm5, %v13715_v50  ;;  %4296 = vmatpush.msrb.mxu2 %v3636_v53  ;;  %v3558_v63 = vld [vmem:[%s19635_s9 + $0x58] sm:$0xff]  ;;  %v9482_v53 = vld [vmem:[%s19635_s9 + $0xa88] sm:$0xff] }
 0x605   : > { %4276 = vmatpush.msrb.mxu0 %v3560_v10  ;;  %4352 = vmatmul.f32.gmra.mxu1 %v14097_v45  ;;  %v3618_v13 = vld [vmem:[%s19635_s9 + $0x238] sm:$0xff] }
 0x606   : > { %4518 = vmatpush.msrb.mxu1 %v13717_v52  ;;  %4297 = vmatpush.msrb.mxu2 %v3632_v35  ;;  %v3554_v19 = vld [vmem:[%s19635_s9 + $0x38] sm:$0xff]  ;;  %v9474_v35 = vld [vmem:[%s19635_s9 + $0xa48] sm:$0xff] }
 0x607   : > { %4277 = vmatpush.msrb.mxu0 %v3556_v28  ;;  %v3614_v38 = vld [vmem:[%s19635_s9 + $0x218] sm:$0xff]  ;;  %v9470_v28 = vld [vmem:[%s19635_s9 + $0xa28] sm:$0xff] }
 0x608   : > { %4298 = vmatpush.msrb.mxu2 %v3628_v62  ;;  %v3550_v59 = vld [vmem:[%s19635_s9 + $0x18] sm:$0xff]  ;;  %v9466_v62 = vld [vmem:[%s19635_s9 + $0xa08] sm:$0xff] }
 0x609   : > { %4278 = vmatpush.msrb.mxu0 %v3552_v24  ;;  %v14659_v14 = vpop.f32.mrf.mxu3 }
 0x60a   : > { %4299 = vmatpush.msrb.mxu2 %v3624_v17  ;;  %v9458_v17 = vld [vmem:[%s19635_s9 + $0x9c8] sm:$0xff] }
 0x60b   : > { %4279 = vmatpush.msrb.mxu0 %v3548_v25  ;;  %v9454_v25 = vld [vmem:[%s19635_s9 + $0x9a8] sm:$0xff] }
 0x60c   : > { %4280 = vmatmul.f32.vlgmr.msrb.gmra.mxu0 %v14064_v41  ;;  %4300 = vmatpush.msrb.mxu2 %v3620_v1  ;;  %v9450_v1 = vld [vmem:[%s19635_s9 + $0x988] sm:$0xff] }
 0x60d   : > { %4392 = vmatpush.msra.mxu0 %v3685_v37  ;;  %9412 = vmatmul.msk.f32.vlgmr.msra.gmra.mxu1 %vm3906_vm7, %v14226_v34  ;;  %v9446_v37 = vld [vmem:[%s19635_s9 + $0x968] sm:$0xff] }
 0x60e   : > { %4301 = vmatpush.msrb.mxu2 %v3616_v21 }
 0x60f   : > { %4393 = vmatpush.msra.mxu0 %v3681_v22  ;;  %v9442_v22 = vld [vmem:[%s19635_s9 + $0x948] sm:$0xff] }
 0x610   : > { %4302 = vmatpush.msrb.mxu2 %v3612_v47  ;;  %v9545_v47 = vld [vmem:[%s19635_s9 + $0xc80] sm:$0xff] }
 0x611   : > { %4394 = vmatpush.msra.mxu0 %v3677_v27  ;;  %4303 = vmatmul.f32.vlgmr.msrb.gmra.mxu2 %v14162_v31 }
 0x612   : > { %4402 = vmatpush.msra.mxu2 %v3610_v54  ;;  %v9434_v54 = vld [vmem:[%s19635_s9 + $0x908] sm:$0xff] }
 0x613   : > { %4425 = vmatpush.msrb.mxu0 %v3674_v58  ;;  %v9438_v58 = vld [vmem:[%s19635_s9 + $0x928] sm:$0xff] }
 0x614   : > { %4403 = vmatpush.msra.mxu2 %v3606_v11  ;;  %4283 = vmatmul.f32.gmra.mxu0 %v14097_v45  ;;  %v9430_v11 = vld [vmem:[%s19635_s9 + $0x8e8] sm:$0xff] }
 0x615   : > { %4426 = vmatpush.msrb.mxu0 %v3670_v39  ;;  %9413 = vmatmul.msk.f32.gmra.mxu1 %vm3906_vm7, %v14286_v33  ;;  %v9537_v39 = vld [vmem:[%s19635_s9 + $0xc40] sm:$0xff] }
 0x616   : > { %4404 = vmatpush.msra.mxu2 %v3602_v48  ;;  %v9426_v48 = vld [vmem:[%s19635_s9 + $0x8c8] sm:$0xff] }
 0x617   : > { %4427 = vmatpush.msrb.mxu0 %v3666_v12  ;;  %v9533_v12 = vld [vmem:[%s19635_s9 + $0xc20] sm:$0xff] }
 0x618   : > { %4405 = vmatpush.msra.mxu2 %v3598_v56  ;;  %v9551_v56 = vld [vmem:[%s19635_s9 + $0xcb0] sm:$0xff] }
 0x619   : > { %4428 = vmatpush.msrb.mxu0 %v3662_v8  ;;  %4306 = vmatmul.f32.gmra.mxu2 %v14184_v61  ;;  %v9529_v8 = vld [vmem:[%s19635_s9 + $0xc00] sm:$0xff] }
 0x61a   : > { %4406 = vmatpush.msra.mxu2 %v3594_v2 }
 0x61b   : > { %4429 = vmatpush.msrb.mxu0 %v3658_v43 }
 0x61c   : > { %4407 = vmatpush.msra.mxu2 %v3590_v18  ;;  %9410 = vmatmul.msk.f32.vlgmr.msra.gmra.mxu0 %vm3906_vm7, %v14226_v34  ;;  %v3578_v34 = vld [vmem:[%s19635_s9 + $0xf8] sm:$0xff] }
 0x61d   : > { %4430 = vmatpush.msrb.mxu0 %v3654_v0  ;;  %9420 = vmatmul.msk.f32.vlgmr.msrb.gmra.mxu1 %vm3461_vm6, %v14442_v16  ;;  %v9547_v0 = vld [vmem:[%s19635_s9 + $0xc90] sm:$0xff] }
 0x61e   : > { %4408 = vmatpush.msra.mxu2 %v3586_v29  ;;  %v9543_v29 = vld [vmem:[%s19635_s9 + $0xc70] sm:$0xff] }
 0x61f   : > { %4431 = vmatpush.msrb.mxu0 %v3650_v46  ;;  %v9525_v46 = vld [vmem:[%s19635_s9 + $0xbe0] sm:$0xff] }
 0x620   : > { %4409 = vmatpush.msra.mxu2 %v3582_v4  ;;  %v9517_v4 = vld [vmem:[%s19635_s9 + $0xba0] sm:$0xff] }
 0x621   : > { %4432 = vmatpush.msrb.mxu0 %v3646_v26  ;;  %v9521_v26 = vld [vmem:[%s19635_s9 + $0xbc0] sm:$0xff] }
 0x622   : > { %4410 = vmatpush.msra.mxu2 %v3578_v34  ;;  %v14706_v7 = vpop.f32.mrf.mxu1  ;;  %v9535_v34 = vld [vmem:[%s19635_s9 + $0xc30] sm:$0xff] }
 0x623   : > { %4433 = vmatpush.msrb.mxu0 %v3642_v20  ;;  %v9539_v20 = vld [vmem:[%s19635_s9 + $0xc50] sm:$0xff] }
 0x624   : > { %4411 = vmatpush.msra.mxu2 %v3574_v55  ;;  %9411 = vmatmul.msk.f32.gmra.mxu0 %vm3906_vm7, %v14286_v33  ;;  %v3562_v33 = vld [vmem:[%s19635_s9 + $0x78] sm:$0xff]  ;;  %v9509_v55 = vld [vmem:[%s19635_s9 + $0xb60] sm:$0xff] }
 0x625   : > { %4434 = vmatpush.msrb.mxu0 %v3638_v44  ;;  %9421 = vmatmul.msk.f32.gmra.mxu1 %vm3461_vm6, %v14490_v3  ;;  %v9513_v44 = vld [vmem:[%s19635_s9 + $0xb80] sm:$0xff] }
 0x626   : > { %4412 = vmatpush.msra.mxu2 %v3570_v5  ;;  %v9505_v5 = vld [vmem:[%s19635_s9 + $0xb40] sm:$0xff] }
 0x627   : > { %4435 = vmatpush.msrb.mxu0 %v3634_v36  ;;  %v9531_v36 = vld [vmem:[%s19635_s9 + $0xc10] sm:$0xff] }
 0x628   : > { %v14695_v51 = vpop.f32.mrf.mxu3  ;;  %4413 = vmatpush.msra.mxu2 %v3566_v40 }
 0x629   : > { %4436 = vmatpush.msrb.mxu0 %v3630_v42 }
 0x62a   : > { %4414 = vmatpush.msra.mxu2 %v3562_v33  ;;  %v14730_v10 = vpop.f32.mrf.mxu1 }
 0x62b   : > { %4437 = vmatpush.msrb.mxu0 %v3626_v6  ;;  %v9527_v6 = vld [vmem:[%s19635_s9 + $0xbf0] sm:$0xff] }
 0x62c   : > { %4415 = vmatpush.msra.mxu2 %v3558_v63  ;;  %v9523_v63 = vld [vmem:[%s19635_s9 + $0xbd0] sm:$0xff] }
 0x62d   : > { %4438 = vmatpush.msrb.mxu0 %v3622_v23  ;;  %v9501_v23 = vld [vmem:[%s19635_s9 + $0xb20] sm:$0xff] }
 0x62e   : > { %4416 = vmatpush.msra.mxu2 %v3554_v19  ;;  %v9497_v19 = vld [vmem:[%s19635_s9 + $0xb00] sm:$0xff] }
 0x62f   : > { %4439 = vmatpush.msrb.mxu0 %v3618_v13  ;;  %v9519_v13 = vld [vmem:[%s19635_s9 + $0xbb0] sm:$0xff] }
 0x630   : > { %v14717_v9 = vpop.f32.mrf.mxu3  ;;  %4417 = vmatpush.msra.mxu2 %v3550_v59  ;;  %v9515_v59 = vld [vmem:[%s19635_s9 + $0xb90] sm:$0xff] }
 0x631   : > { %4440 = vmatpush.msrb.mxu0 %v3614_v38  ;;  %4418 = vmatmul.f32.vlgmr.msra.gmra.mxu2 %v14064_v41  ;;  %v9478_v41 = vld [vmem:[%s19635_s9 + $0xa68] sm:$0xff]  ;;  %v9493_v38 = vld [vmem:[%s19635_s9 + $0xae0] sm:$0xff] }
 0x632   : > { %4441 = vmatmul.f32.vlgmr.msrb.gmra.mxu0 %v14162_v31  ;;  %9422 = vmatpush.msk.msrb.mxu2 %vm3468_vm5, %v13743_v30  ;;  %v14748_v24 = vpop.f32.mrf.mxu1 }
 0x634   : > { %4541 = vmatpush.msrb.mxu2 %v13745_v15 }
 0x636   : > { %4765 = vmatpush.msra.mxu2 %v9486_v32  ;;  %v9489_v32 = vld [vmem:[%s19635_s9 + $0xac0] sm:$0xff] }
 0x638   : > { %4766 = vmatpush.msra.mxu2 %v9482_v53  ;;  %v14735_v31 = vpop.f32.mrf.mxu3  ;;  %v9511_v53 = vld [vmem:[%s19635_s9 + $0xb70] sm:$0xff] }
 0x639   : > { %4421 = vmatmul.f32.gmra.mxu2 %v14097_v45  ;;  %v9462_v45 = vld [vmem:[%s19635_s9 + $0x9e8] sm:$0xff] }
 0x63a   : > { %4444 = vmatmul.f32.gmra.mxu0 %v14184_v61  ;;  %4767 = vmatpush.msra.mxu2 %v9478_v41  ;;  %v14772_v21 = vpop.f32.mrf.mxu1  ;;  %v9487_v41 = vld [vmem:[%s19635_s9 + $0xab0] sm:$0xff] }
 0x63c   : > { %4768 = vmatpush.msra.mxu2 %v9474_v35 }
 0x63e   : > { %4769 = vmatpush.msra.mxu2 %v9470_v28 }
 0x640   : > { %4770 = vmatpush.msra.mxu2 %v9466_v62  ;;  %v14753_v61 = vpop.f32.mrf.mxu3 }
 0x641   : > { %9423 = vmatmul.msk.f32.vlgmr.msrb.gmra.mxu2 %vm3461_vm6, %v14442_v16  ;;  %v9549_v16 = vld [vmem:[%s19635_s9 + $0xca0] sm:$0xff] }
 0x642   : > { %4771 = vmatpush.msra.mxu2 %v9462_v45  ;;  %4719 = vmatpush.msra.mxu0 %v9549_v16  ;;  %v9507_v45 = vld [vmem:[%s19635_s9 + $0xb50] sm:$0xff] }
 0x643   : > { %v9475_v16 = vld [vmem:[%s19635_s9 + $0xa50] sm:$0xff] }
 0x644   : > { %4772 = vmatpush.msra.mxu2 %v9458_v17  ;;  %4720 = vmatpush.msra.mxu0 %v9545_v47  ;;  %v14811_v43 = vpop.f32.mrf.mxu1  ;;  %v9483_v17 = vld [vmem:[%s19635_s9 + $0xa90] sm:$0xff] }
 0x645   : > { %19746 = vst [vmem:[#allocation25_spill] sm:$0xff] %v14811_v43  ;;  %v9471_v47 = vld [vmem:[%s19635_s9 + $0xa30] sm:$0xff] }
 0x646   : > { %4773 = vmatpush.msra.mxu2 %v9454_v25  ;;  %v9503_v25 = vld [vmem:[%s19635_s9 + $0xb30] sm:$0xff] }
 0x648   : > { %4774 = vmatpush.msra.mxu2 %v9450_v1  ;;  %v14813_v2 = vpop.f32.mrf.mxu2  ;;  %v9479_v1 = vld [vmem:[%s19635_s9 + $0xa70] sm:$0xff] }
 0x649   : > { %9424 = vmatmul.msk.f32.gmra.mxu2 %vm3461_vm6, %v14490_v3  ;;  %v9541_v3 = vld [vmem:[%s19635_s9 + $0xc60] sm:$0xff] }
 0x64a   : > { %4775 = vmatpush.msra.mxu2 %v9446_v37  ;;  %v14782_v27 = vpop.f32.mrf.mxu3  ;;  %4721 = vmatpush.msra.mxu0 %v9541_v3  ;;  %v9499_v37 = vld [vmem:[%s19635_s9 + $0xb10] sm:$0xff] }
 0x64b   : > { %19745 = vst [vmem:[#allocation16_spill] sm:$0xff] %v14782_v27  ;;  %v9777_v27 = vld [vmem:[%s19635_s9 + $0x1290] sm:$0xff] }
 0x64c   : > { %4776 = vmatpush.msra.mxu2 %v9442_v22  ;;  %4722 = vmatpush.msra.mxu0 %v9537_v39  ;;  %v9495_v22 = vld [vmem:[%s19635_s9 + $0xaf0] sm:$0xff] }
 0x64e   : > { %4777 = vmatpush.msra.mxu2 %v9438_v58  ;;  %4723 = vmatpush.msra.mxu0 %v9533_v12  ;;  %v14850_v42 = vpop.f32.mrf.mxu1  ;;  %v9491_v58 = vld [vmem:[%s19635_s9 + $0xad0] sm:$0xff] }
 0x64f   : > { %19748 = vst [vmem:[#allocation27_spill] sm:$0xff] %v14850_v42  ;;  %v9463_v12 = vld [vmem:[%s19635_s9 + $0x9f0] sm:$0xff]  ;;  %v9653_v42 = vld [vmem:[%s19635_s9 + $0xf48] sm:$0xff] }
 0x650   : > { %4778 = vmatpush.msra.mxu2 %v9434_v54  ;;  %4724 = vmatpush.msra.mxu0 %v9529_v8  ;;  %v9459_v8 = vld [vmem:[%s19635_s9 + $0x9d0] sm:$0xff] }
 0x652   : > { %4779 = vmatpush.msra.mxu2 %v9430_v11  ;;  %4725 = vmatpush.msra.mxu0 %v9525_v46  ;;  %v14852_v40 = vpop.f32.mrf.mxu2  ;;  %v9467_v11 = vld [vmem:[%s19635_s9 + $0xa10] sm:$0xff] }
 0x654   : > { %4780 = vmatpush.msra.mxu2 %v9426_v48  ;;  %v14818_v18 = vpop.f32.mrf.mxu3  ;;  %4726 = vmatpush.msra.mxu0 %v9521_v26  ;;  %v9485_v48 = vld [vmem:[%s19635_s9 + $0xaa0] sm:$0xff] }
 0x655   : > { %19747 = vst [vmem:[#allocation17_spill] sm:$0xff] %v14818_v18  ;;  %4696 = vmatpush.msrb.mxu3 %v9485_v48  ;;  %v9477_v26 = vld [vmem:[%s19635_s9 + $0xa60] sm:$0xff]  ;;  %v9534_v48 = vld [vmem:[%s19635_s9 + $0xc28] sm:$0xff]  ;;  %v9703_v18 = vld [vmem:[%s19635_s9 + $0x10d8] sm:$0xff] }
 0x656   : > { %4857 = vmatpush.msrb.mxu2 %v9551_v56  ;;  %4727 = vmatpush.msra.mxu0 %v9517_v4  ;;  %v9481_v56 = vld [vmem:[%s19635_s9 + $0xa80] sm:$0xff]  ;;  %v9451_v4 = vld [vmem:[%s19635_s9 + $0x990] sm:$0xff] }
 0x657   : > { %4697 = vmatpush.msrb.mxu3 %v9481_v56  ;;  %v9530_v56 = vld [vmem:[%s19635_s9 + $0xc08] sm:$0xff] }
 0x658   : > { %4858 = vmatpush.msrb.mxu2 %v9547_v0  ;;  %4728 = vmatpush.msra.mxu0 %v9513_v44  ;;  %v9455_v0 = vld [vmem:[%s19635_s9 + $0x9b0] sm:$0xff] }
 0x659   : > { %v14886_v35 = vpop.f32.mrf.mxu1  ;;  %4698 = vmatpush.msrb.mxu3 %v9477_v26  ;;  %v9429_v26 = vld [vmem:[%s19635_s9 + $0x8e0] sm:$0xff] }
 0x65a   : > { %4859 = vmatpush.msrb.mxu2 %v9543_v29  ;;  %4729 = vmatpush.msra.mxu0 %v9509_v55  ;;  %v9469_v55 = vld [vmem:[%s19635_s9 + $0xa20] sm:$0xff] }
 0x65c   : > { %4860 = vmatpush.msrb.mxu2 %v9539_v20  ;;  %4730 = vmatpush.msra.mxu0 %v9505_v5  ;;  %v14890_v62 = vpop.f32.mrf.mxu2  ;;  %v9473_v20 = vld [vmem:[%s19635_s9 + $0xa40] sm:$0xff] }
 0x65d   : > { %4699 = vmatpush.msrb.mxu3 %v9473_v20  ;;  %v9465_v5 = vld [vmem:[%s19635_s9 + $0xa00] sm:$0xff] }
 0x65e   : > { %4861 = vmatpush.msrb.mxu2 %v9535_v34  ;;  %4731 = vmatpush.msra.mxu0 %v9501_v23  ;;  %v9447_v34 = vld [vmem:[%s19635_s9 + $0x970] sm:$0xff]  ;;  %v9561_v23 = vld [vmem:[%s19635_s9 + $0xd00] sm:$0xff] }
 0x65f   : > { %v14857_v33 = vpop.f32.mrf.mxu3  ;;  %4700 = vmatpush.msrb.mxu3 %v9469_v55  ;;  %4755 = vmatpush.msra.mxu1 %v9561_v23  ;;  %v9522_v55 = vld [vmem:[%s19635_s9 + $0xbc8] sm:$0xff]  ;;  %v9564_v23 = vld [vmem:[%s19635_s9 + $0xd18] sm:$0xff] }
 0x660   : > { %4862 = vmatpush.msrb.mxu2 %v9531_v36  ;;  %4732 = vmatpush.msra.mxu0 %v9497_v19  ;;  %v9443_v36 = vld [vmem:[%s19635_s9 + $0x950] sm:$0xff] }
 0x661   : > { %4701 = vmatpush.msrb.mxu3 %v9465_v5  ;;  %v9435_v19 = vld [vmem:[%s19635_s9 + $0x910] sm:$0xff]  ;;  %v9518_v5 = vld [vmem:[%s19635_s9 + $0xba8] sm:$0xff] }
 0x662   : > { %4863 = vmatpush.msrb.mxu2 %v9527_v6  ;;  %4733 = vmatpush.msra.mxu0 %v9493_v38  ;;  %v14919_v3 = vpop.f32.mrf.mxu1  ;;  %v9439_v6 = vld [vmem:[%s19635_s9 + $0x930] sm:$0xff]  ;;  %v9557_v38 = vld [vmem:[%s19635_s9 + $0xce0] sm:$0xff] }
 0x663   : > { %4756 = vmatpush.msra.mxu1 %v9557_v38 }
 0x664   : > { %4864 = vmatpush.msrb.mxu2 %v9523_v63  ;;  %4734 = vmatpush.msra.mxu0 %v9489_v32  ;;  %v9431_v32 = vld [vmem:[%s19635_s9 + $0x8f0] sm:$0xff] }
 0x665   : > { %v14923_v39 = vpop.f32.mrf.mxu2 }
 0x666   : > { %4865 = vmatpush.msrb.mxu2 %v9519_v13  ;;  %4834 = vmatpush.msrb.mxu0 %v9487_v41  ;;  %v9461_v13 = vld [vmem:[%s19635_s9 + $0x9e0] sm:$0xff] }
 0x667   : > { %4702 = vmatpush.msrb.mxu3 %v9461_v13  ;;  %v9453_v41 = vld [vmem:[%s19635_s9 + $0x9a0] sm:$0xff]  ;;  %v9510_v13 = vld [vmem:[%s19635_s9 + $0xb68] sm:$0xff] }
 0x668   : > { %4866 = vmatpush.msrb.mxu2 %v9515_v59  ;;  %v14888_v28 = vpop.f32.mrf.mxu3  ;;  %4835 = vmatpush.msrb.mxu0 %v9483_v17  ;;  %v9457_v59 = vld [vmem:[%s19635_s9 + $0x9c0] sm:$0xff]  ;;  %v9427_v17 = vld [vmem:[%s19635_s9 + $0x8d0] sm:$0xff] }
 0x669   : > { %4703 = vmatpush.msrb.mxu3 %v9457_v59  ;;  %v9560_v59 = vld [vmem:[%s19635_s9 + $0xcf8] sm:$0xff] }
 0x66a   : > { %4867 = vmatpush.msrb.mxu2 %v9511_v53  ;;  %4836 = vmatpush.msrb.mxu0 %v9479_v1  ;;  %v9553_v53 = vld [vmem:[%s19635_s9 + $0xcc0] sm:$0xff] }
 0x66b   : > { %4757 = vmatpush.msra.mxu1 %v9553_v53  ;;  %v9449_v1 = vld [vmem:[%s19635_s9 + $0x980] sm:$0xff]  ;;  %4704 = vmatpush.msrb.mxu3 %v9453_v41  ;;  %v9562_v53 = vld [vmem:[%s19635_s9 + $0xd08] sm:$0xff]  ;;  %v9556_v41 = vld [vmem:[%s19635_s9 + $0xcd8] sm:$0xff] }
 0x66c   : > { %4868 = vmatpush.msrb.mxu2 %v9507_v45  ;;  %4837 = vmatpush.msrb.mxu0 %v9475_v16  ;;  %v9550_v45 = vld [vmem:[%s19635_s9 + $0xca8] sm:$0xff]  ;;  %v9445_v16 = vld [vmem:[%s19635_s9 + $0x960] sm:$0xff] }
 0x66d   : > { %4788 = vmatpush.msrb.mxu1 %v9550_v45  ;;  %4705 = vmatpush.msrb.mxu3 %v9449_v1  ;;  %v9502_v45 = vld [vmem:[%s19635_s9 + $0xb28] sm:$0xff] }
 0x66e   : > { %4869 = vmatpush.msrb.mxu2 %v9503_v25  ;;  %4838 = vmatpush.msrb.mxu0 %v9471_v47  ;;  %v14964_v44 = vpop.f32.mrf.mxu2 }
 0x66f   : > { %19749 = vst [vmem:[#allocation30_spill] sm:$0xff] %v14964_v44  ;;  %4706 = vmatpush.msrb.mxu3 %v9445_v16  ;;  %v9554_v16 = vld [vmem:[%s19635_s9 + $0xcc8] sm:$0xff]  ;;  %v9683_v44 = vld [vmem:[%s19635_s9 + $0x1038] sm:$0xff] }
 0x670   : > { %4870 = vmatpush.msrb.mxu2 %v9499_v37  ;;  %4839 = vmatpush.msrb.mxu0 %v9467_v11  ;;  %v9546_v37 = vld [vmem:[%s19635_s9 + $0xc88] sm:$0xff] }
 0x671   : > { %4789 = vmatpush.msrb.mxu1 %v9546_v37  ;;  %v9538_v11 = vld [vmem:[%s19635_s9 + $0xc48] sm:$0xff] }
 0x672   : > { %4871 = vmatpush.msrb.mxu2 %v9495_v22  ;;  %v14921_v54 = vpop.f32.mrf.mxu3  ;;  %4840 = vmatpush.msrb.mxu0 %v9463_v12  ;;  %v9542_v22 = vld [vmem:[%s19635_s9 + $0xc68] sm:$0xff]  ;;  %v9437_v12 = vld [vmem:[%s19635_s9 + $0x920] sm:$0xff] }
 0x673   : > { %4781 = vmatmul.f32.vlgmr.msra.gmra.mxu2 %v14921_v54  ;;  %4790 = vmatpush.msrb.mxu1 %v9542_v22  ;;  %v9498_v37 = vld [vmem:[%s19635_s9 + $0xb08] sm:$0xff] }
 0x674   : > { %4872 = vmatpush.msrb.mxu2 %v9491_v58  ;;  %4841 = vmatpush.msrb.mxu0 %v9459_v8  ;;  %v9441_v58 = vld [vmem:[%s19635_s9 + $0x940] sm:$0xff]  ;;  %v9494_v22 = vld [vmem:[%s19635_s9 + $0xae8] sm:$0xff] }
 0x675   : > { %4707 = vmatpush.msrb.mxu3 %v9441_v58  ;;  %4791 = vmatpush.msrb.mxu1 %v9538_v11  ;;  %v9433_v8 = vld [vmem:[%s19635_s9 + $0x900] sm:$0xff] }
 0x676   : > { %9575 = vmatpush.msk.msra.mxu2 %vm3468_vm5, %v13667_v49  ;;  %4842 = vmatpush.msrb.mxu0 %v9455_v0  ;;  %v15010_v25 = vpop.f32.mrf.mxu2 }
 0x677   : > { %19750 = vst [vmem:[#allocation32_spill] sm:$0xff] %v15010_v25  ;;  %4708 = vmatpush.msrb.mxu3 %v9437_v12  ;;  %4792 = vmatpush.msrb.mxu1 %v9534_v48  ;;  %v9563_v12 = vld [vmem:[%s19635_s9 + $0xd10] sm:$0xff] }
 0x678   : > { %5004 = vmatpush.msra.mxu2 %v13669_v57  ;;  %4843 = vmatpush.msrb.mxu0 %v9451_v4  ;;  %v9526_v4 = vld [vmem:[%s19635_s9 + $0xbe8] sm:$0xff]  ;;  %v9559_v48 = vld [vmem:[%s19635_s9 + $0xcf0] sm:$0xff] }
 0x679   : > { %4709 = vmatpush.msrb.mxu3 %v9433_v8  ;;  %4793 = vmatpush.msrb.mxu1 %v9530_v56  ;;  %v9490_v8 = vld [vmem:[%s19635_s9 + $0xac8] sm:$0xff]  ;;  %v9555_v56 = vld [vmem:[%s19635_s9 + $0xcd0] sm:$0xff] }
 0x67a   : > { %v14947_v46 = vpop.f32.mrf.mxu1  ;;  %v14949_v29 = vpop.f32.mrf.mxu3  ;;  %4844 = vmatpush.msrb.mxu0 %v9447_v34  ;;  %v9425_v34 = vld [vmem:[%s19635_s9 + $0x8c0] sm:$0xff] }
 0x67b   : > { %4784 = vmatmul.f32.gmra.mxu2 %v14949_v29  ;;  %4710 = vmatpush.msrb.mxu3 %v9429_v26  ;;  %v15132_v26 = vld [vmem:[%s19634_s8 + $0x30] sm:$0xff] }
 0x67c   : > { %4845 = vmatpush.msrb.mxu0 %v9443_v36  ;;  %4794 = vmatpush.msrb.mxu1 %v9526_v4  ;;  %v15060_v36 = vpop.f32.mrf.mxu0 }
 0x67d   : > { %4711 = vmatpush.msrb.mxu3 %v9425_v34 }
 0x67e   : > { %4846 = vmatpush.msrb.mxu0 %v9439_v6  ;;  %v15044_v0 = vpop.f32.mrf.mxu2  ;;  %4795 = vmatpush.msrb.mxu1 %v9522_v55  ;;  %v9514_v6 = vld [vmem:[%s19635_s9 + $0xb88] sm:$0xff] }
 0x67f   : > { %4712 = vmatmul.f32.vlgmr.msrb.gmra.mxu3 %v14921_v54 }
 0x680   : > { %4847 = vmatpush.msrb.mxu0 %v9435_v19  ;;  %4796 = vmatpush.msrb.mxu1 %v9518_v5 }
 0x681   : > { %4824 = vmatpush.msra.mxu3 %v9562_v53  ;;  %v9552_v53 = vld [vmem:[%s19635_s9 + $0xcb8] sm:$0xff] }
 0x682   : > { %v14981_v63 = vpop.f32.mrf.mxu1  ;;  %4848 = vmatpush.msrb.mxu0 %v9431_v32  ;;  %4797 = vmatpush.msrb.mxu1 %v9514_v6  ;;  %v9506_v32 = vld [vmem:[%s19635_s9 + $0xb48] sm:$0xff] }
 0x684   : > { %4849 = vmatpush.msrb.mxu0 %v9427_v17  ;;  %4798 = vmatpush.msrb.mxu1 %v9510_v13  ;;  %v9558_v17 = vld [vmem:[%s19635_s9 + $0xce8] sm:$0xff]  ;;  %v15099_v1 = vpop.f32.mrf.mxu0  ;;  %v15156_v13 = vld [vmem:[%s19634_s8 + $0x38] sm:$0x3] }
 0x685   : > { %4825 = vmatpush.msra.mxu3 %v9558_v17 }
 0x686   : > { %v15075_v19 = vpop.f32.mrf.mxu2  ;;  %4799 = vmatpush.msrb.mxu1 %v9506_v32 }
 0x687   : > { %4715 = vmatmul.f32.gmra.mxu3 %v14949_v29 }
 0x688   : > { %4800 = vmatpush.msrb.mxu1 %v9502_v45  ;;  %4826 = vmatpush.msra.mxu3 %v9554_v16  ;;  %v9548_v45 = vld [vmem:[%s19635_s9 + $0xc98] sm:$0xff] }
 0x689   : > { %v9544_v16 = vld [vmem:[%s19635_s9 + $0xc78] sm:$0xff] }
 0x68a   : > { %v15024_v47 = vpop.f32.mrf.mxu1  ;;  %4801 = vmatpush.msrb.mxu1 %v9498_v37  ;;  %4893 = vmatpush.msrb.mxu3 %v9563_v12  ;;  %v9480_v37 = vld [vmem:[%s19635_s9 + $0xa78] sm:$0xff] }
 0x68b   : > { %19751 = vst [vmem:[#allocation19_spill] sm:$0xff] %v15024_v47  ;;  %v9540_v12 = vld [vmem:[%s19635_s9 + $0xc58] sm:$0xff]  ;;  %v9636_v47 = vld [vmem:[%s19635_s9 + $0xec0] sm:$0xff] }
 0x68c   : > { %4802 = vmatpush.msrb.mxu1 %v9494_v22  ;;  %4894 = vmatpush.msrb.mxu3 %v9559_v48  ;;  %v15134_v4 = vpop.f32.mrf.mxu0  ;;  %v9476_v22 = vld [vmem:[%s19635_s9 + $0xa58] sm:$0xff] }
 0x68d   : > { %v9472_v48 = vld [vmem:[%s19635_s9 + $0xa38] sm:$0xff] }
 0x68e   : > { %4803 = vmatpush.msrb.mxu1 %v9490_v8  ;;  %4895 = vmatpush.msrb.mxu3 %v9555_v56  ;;  %v9536_v56 = vld [vmem:[%s19635_s9 + $0xc38] sm:$0xff] }
 0x692   : > { %v15052_v20 = vpop.f32.mrf.mxu1 }
 0x693   : > { %19752 = vst [vmem:[#allocation34_spill] sm:$0xff] %v15052_v20 }
 0x694   : > { %v15111_v58 = vpop.f32.mrf.mxu2  ;;  %v15144_v55 = vpop.f32.mrf.mxu0 }
 0x695   : > { %19753 = vst [vmem:[#allocation21_spill] sm:$0xff] %v15111_v58  ;;  %v9828_v58 = vld [vmem:[%s19635_s9 + $0x1428] sm:$0xff] }
 0x69a   : > { %v15077_v38 = vpop.f32.mrf.mxu1 }
 0x69b   : > { %4735 = vmatmul.f32.vlgmr.msra.gmra.mxu0 %v15077_v38  ;;  %4873 = vmatmul.f32.vlgmr.msrb.gmra.mxu2 %v15077_v38 }
 0x69c   : > { %4962 = vmatpush.msra.mxu0 %v9564_v23  ;;  %v15139_v34 = vpop.f32.mrf.mxu2  ;;  %v15151_v23 = vpop.f32.mrf.mxu0 }
 0x69d   : > { %19754 = vst [vmem:[#allocation36_spill] sm:$0xff] %v15139_v34 }
 0x69e   : > { %4963 = vmatpush.msra.mxu0 %v9560_v59  ;;  %v9488_v59 = vld [vmem:[%s19635_s9 + $0xab8] sm:$0xff] }
 0x6a0   : > { %4964 = vmatpush.msra.mxu0 %v9556_v41  ;;  %v9484_v41 = vld [vmem:[%s19635_s9 + $0xa98] sm:$0xff] }
 0x6a2   : > { %v15113_v11 = vpop.f32.mrf.mxu1 }
 0x6a3   : > { %4738 = vmatmul.f32.gmra.mxu0 %v15113_v11  ;;  %4876 = vmatmul.f32.gmra.mxu2 %v15113_v11 }
 0x6a4   : > { %v15175_v17 = vpop.f32.mrf.mxu0 }
 0x6ab   : > { %4850 = vmatmul.f32.vlgmr.msrb.gmra.mxu0 %v14921_v54  ;;  %9576 = vmatmul.msk.f32.vlgmr.msra.gmra.mxu2 %vm3461_vm6, %v15132_v26 }
 0x6ac   : > { %9578 = vmatpush.msk.msrb.mxu0 %vm3468_vm5, %v13715_v50 }
 0x6ae   : > { %5027 = vmatpush.msrb.mxu0 %v13717_v52 }
 0x6b3   : > { %4853 = vmatmul.f32.gmra.mxu0 %v14949_v29  ;;  %9577 = vmatmul.msk.f32.gmra.mxu2 %vm3461_vm6, %v15156_v13 }
 0x6b4   : > { %v15147_v5 = vpop.f32.mrf.mxu2 }
 0x6b5   : > { %19755 = vst [vmem:[#allocation38_spill] sm:$0xff] %v15147_v5 }
 0x6bc   : > { %v15149_v6 = vpop.f32.mrf.mxu2 }
 0x6bd   : > { %19756 = vst [vmem:[#allocation39_spill] sm:$0xff] %v15149_v6  ;;  %v9610_v6 = vld [vmem:[%s19635_s9 + $0xdf0] sm:$0xff] }
 0x6c4   : > { %v4543_v32 = vpop.f32.mrf.mxu2 }
 0x6c5   : > { %9565 = vmatmul.msk.f32.vlgmr.msra.gmra.mxu1 %vm3906_vm7, %v4543_v32  ;;  %9567 = vmatmul.msk.f32.vlgmr.msra.gmra.mxu3 %vm3906_vm7, %v4543_v32 }
 0x6c6   : > { %4903 = vmatpush.msra.mxu1 %v9488_v59  ;;  %9571 = vmatmul.msk.f32.vlgmr.msra.gmra.mxu0 %vm3906_vm7, %v4543_v32  ;;  %v9468_v59 = vld [vmem:[%s19635_s9 + $0xa18] sm:$0xff] }
 0x6c7   : > { %4926 = vmatpush.msra.mxu3 %v9552_v53  ;;  %v9532_v53 = vld [vmem:[%s19635_s9 + $0xc18] sm:$0xff] }
 0x6c8   : > { %4904 = vmatpush.msra.mxu1 %v9484_v41  ;;  %v9464_v41 = vld [vmem:[%s19635_s9 + $0x9f8] sm:$0xff] }
 0x6c9   : > { %4927 = vmatpush.msra.mxu3 %v9548_v45  ;;  %v9528_v45 = vld [vmem:[%s19635_s9 + $0xbf8] sm:$0xff] }
 0x6ca   : > { %4905 = vmatpush.msra.mxu1 %v9480_v37  ;;  %v15210_v37 = vpop.f32.mrf.mxu0 }
 0x6cb   : > { %4928 = vmatpush.msra.mxu3 %v9544_v16  ;;  %19757 = vst [vmem:[#allocation40_spill] sm:$0xff] %v15210_v37  ;;  %v9460_v16 = vld [vmem:[%s19635_s9 + $0x9d8] sm:$0xff] }
 0x6cc   : > { %4906 = vmatpush.msra.mxu1 %v9476_v22  ;;  %v4546_v8 = vpop.f32.mrf.mxu2  ;;  %v9524_v22 = vld [vmem:[%s19635_s9 + $0xbd8] sm:$0xff] }
 0x6cd   : > { %4929 = vmatpush.msra.mxu3 %v9540_v12  ;;  %9566 = vmatmul.msk.f32.gmra.mxu1 %vm3906_vm7, %v4546_v8  ;;  %v9456_v12 = vld [vmem:[%s19635_s9 + $0x9b8] sm:$0xff] }
 0x6ce   : > { %9568 = vmatmul.msk.f32.gmra.mxu3 %vm3906_vm7, %v4546_v8  ;;  %4907 = vmatpush.msra.mxu1 %v9472_v48  ;;  %v9520_v48 = vld [vmem:[%s19635_s9 + $0xbb8] sm:$0xff] }
 0x6cf   : > { %9572 = vmatmul.msk.f32.gmra.mxu0 %vm3906_vm7, %v4546_v8  ;;  %4930 = vmatpush.msra.mxu3 %v9536_v56  ;;  %v9452_v56 = vld [vmem:[%s19635_s9 + $0x998] sm:$0xff] }
 0x6d0   : > { %4908 = vmatpush.msra.mxu1 %v9468_v59  ;;  %v9516_v59 = vld [vmem:[%s19635_s9 + $0xb98] sm:$0xff] }
 0x6d1   : > { %4931 = vmatpush.msra.mxu3 %v9532_v53  ;;  %v9448_v53 = vld [vmem:[%s19635_s9 + $0x978] sm:$0xff] }
 0x6d2   : > { %4909 = vmatpush.msra.mxu1 %v9464_v41  ;;  %v9512_v41 = vld [vmem:[%s19635_s9 + $0xb78] sm:$0xff] }
 0x6d3   : > { %4932 = vmatpush.msra.mxu3 %v9528_v45  ;;  %v9508_v45 = vld [vmem:[%s19635_s9 + $0xb58] sm:$0xff] }
 0x6d4   : > { %4910 = vmatpush.msra.mxu1 %v9460_v16  ;;  %v15246_v16 = vpop.f32.mrf.mxu0  ;;  %v9699_v37 = vld [vmem:[%s19635_s9 + $0x10b8] sm:$0xff] }
 0x6d5   : > { %4933 = vmatpush.msra.mxu3 %v9524_v22  ;;  %4804 = vmatmul.f32.vlgmr.msrb.gmra.mxu1 %v15077_v38  ;;  %19758 = vst [vmem:[#allocation41_spill] sm:$0xff] %v15246_v16  ;;  %v9440_v22 = vld [vmem:[%s19635_s9 + $0x938] sm:$0xff] }
 0x6d6   : > { %9569 = vmatmul.msk.f32.vlgmr.msrb.gmra.mxu3 %vm3906_vm7, %v4543_v32  ;;  %4911 = vmatpush.msra.mxu1 %v9456_v12  ;;  %v9444_v32 = vld [vmem:[%s19635_s9 + $0x958] sm:$0xff] }
 0x6d7   : > { %9579 = vmatmul.msk.f32.vlgmr.msrb.gmra.mxu0 %vm3461_vm6, %v15132_v26  ;;  %4934 = vmatpush.msra.mxu3 %v9520_v48  ;;  %v9504_v12 = vld [vmem:[%s19635_s9 + $0xb38] sm:$0xff] }
 0x6d8   : > { %4912 = vmatpush.msra.mxu1 %v9452_v56  ;;  %v9436_v48 = vld [vmem:[%s19635_s9 + $0x918] sm:$0xff] }
 0x6d9   : > { %4935 = vmatpush.msra.mxu3 %v9516_v59  ;;  %v9500_v56 = vld [vmem:[%s19635_s9 + $0xb18] sm:$0xff] }
 0x6da   : > { %4913 = vmatpush.msra.mxu1 %v9448_v53  ;;  %v9432_v59 = vld [vmem:[%s19635_s9 + $0x8f8] sm:$0xff] }
 0x6db   : > { %4936 = vmatpush.msra.mxu3 %v9512_v41  ;;  %v9496_v53 = vld [vmem:[%s19635_s9 + $0xaf8] sm:$0xff] }
 0x6dc   : > { %4914 = vmatpush.msra.mxu1 %v9444_v32  ;;  %v9492_v41 = vld [vmem:[%s19635_s9 + $0xad8] sm:$0xff]  ;;  %v15276_v32 = vpop.f32.mrf.mxu0 }
 0x6dd   : > { %4937 = vmatpush.msra.mxu3 %v9508_v45  ;;  %4807 = vmatmul.f32.gmra.mxu1 %v15113_v11  ;;  %19759 = vst [vmem:[#allocation14_spill] sm:$0xff] %v15276_v32  ;;  %v9645_v45 = vld [vmem:[%s19635_s9 + $0xf08] sm:$0xff] }
 0x6de   : > { %9570 = vmatmul.msk.f32.gmra.mxu3 %vm3906_vm7, %v4546_v8  ;;  %4915 = vmatpush.msra.mxu1 %v9440_v22  ;;  %v9428_v8 = vld [vmem:[%s19635_s9 + $0x8d8] sm:$0xff]  ;;  %v9641_v22 = vld [vmem:[%s19635_s9 + $0xee8] sm:$0xff] }
 0x6df   : > { %9580 = vmatmul.msk.f32.gmra.mxu0 %vm3461_vm6, %v15156_v13  ;;  %4938 = vmatpush.msra.mxu3 %v9504_v12  ;;  %v9637_v12 = vld [vmem:[%s19635_s9 + $0xec8] sm:$0xff] }
 0x6e0   : > { %4916 = vmatpush.msra.mxu1 %v9436_v48  ;;  %v9633_v48 = vld [vmem:[%s19635_s9 + $0xea8] sm:$0xff] }
 0x6e1   : > { %4939 = vmatpush.msra.mxu3 %v9500_v56  ;;  %v9625_v56 = vld [vmem:[%s19635_s9 + $0xe68] sm:$0xff] }
 0x6e2   : > { %4917 = vmatpush.msra.mxu1 %v9432_v59  ;;  %v9621_v59 = vld [vmem:[%s19635_s9 + $0xe48] sm:$0xff] }
 0x6e3   : > { %4940 = vmatpush.msra.mxu3 %v9496_v53 }
 0x6e4   : > { %4918 = vmatpush.msra.mxu1 %v9428_v8  ;;  %v9609_v8 = vld [vmem:[%s19635_s9 + $0xde8] sm:$0xff] }
 0x6e5   : > { %4941 = vmatpush.msra.mxu3 %v9492_v41  ;;  %4919 = vmatmul.f32.vlgmr.msra.gmra.mxu1 %v14921_v54  ;;  %v15295_v54 = vpop.f32.mrf.mxu0  ;;  %v9605_v41 = vld [vmem:[%s19635_s9 + $0xdc8] sm:$0xff] }
 0x6e6   : > { %9581 = vmatpush.msk.msrb.mxu1 %vm3468_vm5, %v13743_v30  ;;  %4942 = vmatmul.f32.vlgmr.msra.gmra.mxu3 %v15077_v38  ;;  %19760 = vst [vmem:[#allocation22_spill] sm:$0xff] %v15295_v54  ;;  %v9629_v38 = vld [vmem:[%s19635_s9 + $0xe88] sm:$0xff] }
 0x6e8   : > { %5050 = vmatpush.msrb.mxu1 %v13745_v15 }
 0x6ea   : > { %5274 = vmatpush.msra.mxu1 %v9645_v45  ;;  %v9597_v45 = vld [vmem:[%s19635_s9 + $0xd88] sm:$0xff] }
 0x6ec   : > { %5275 = vmatpush.msra.mxu1 %v9641_v22  ;;  %v9708_v22 = vld [vmem:[%s19635_s9 + $0x1100] sm:$0xff] }
 0x6ed   : > { %4922 = vmatmul.f32.gmra.mxu1 %v14949_v29  ;;  %v9617_v29 = vld [vmem:[%s19635_s9 + $0xe28] sm:$0xff]  ;;  %v15316_v53 = vpop.f32.mrf.mxu0  ;;  %5228 = vmatpush.msrb.mxu3 %v9708_v22 }
 0x6ee   : > { %5276 = vmatpush.msra.mxu1 %v9637_v12  ;;  %4945 = vmatmul.f32.gmra.mxu3 %v15113_v11  ;;  %v9613_v11 = vld [vmem:[%s19635_s9 + $0xe08] sm:$0xff]  ;;  %v9704_v12 = vld [vmem:[%s19635_s9 + $0x10e0] sm:$0xff] }
 0x6ef   : > { %5229 = vmatpush.msrb.mxu3 %v9704_v12  ;;  %v9702_v12 = vld [vmem:[%s19635_s9 + $0x10d0] sm:$0xff] }
 0x6f0   : > { %5277 = vmatpush.msra.mxu1 %v9633_v48  ;;  %v9593_v48 = vld [vmem:[%s19635_s9 + $0xd68] sm:$0xff] }
 0x6f2   : > { %5278 = vmatpush.msra.mxu1 %v9629_v38 }
 0x6f4   : > { %5279 = vmatpush.msra.mxu1 %v9625_v56  ;;  %v9589_v56 = vld [vmem:[%s19635_s9 + $0xd48] sm:$0xff] }
 0x6f5   : > { %9582 = vmatmul.msk.f32.vlgmr.msrb.gmra.mxu1 %vm3461_vm6, %v15132_v26  ;;  %v9601_v26 = vld [vmem:[%s19635_s9 + $0xda8] sm:$0xff]  ;;  %v15344_v38 = vpop.f32.mrf.mxu0 }
 0x6f6   : > { %5280 = vmatpush.msra.mxu1 %v9621_v59  ;;  %19761 = vst [vmem:[#allocation13_spill] sm:$0xff] %v15344_v38  ;;  %v9696_v59 = vld [vmem:[%s19635_s9 + $0x10a0] sm:$0xff] }
 0x6f8   : > { %5281 = vmatpush.msra.mxu1 %v9617_v29  ;;  %v9585_v29 = vld [vmem:[%s19635_s9 + $0xd28] sm:$0xff] }
 0x6fa   : > { %5282 = vmatpush.msra.mxu1 %v9613_v11  ;;  %v9710_v11 = vld [vmem:[%s19635_s9 + $0x1110] sm:$0xff] }
 0x6fc   : > { %5283 = vmatpush.msra.mxu1 %v9609_v8  ;;  %v9692_v8 = vld [vmem:[%s19635_s9 + $0x1080] sm:$0xff] }
 0x6fd   : > { %9583 = vmatmul.msk.f32.gmra.mxu1 %vm3461_vm6, %v15156_v13  ;;  %v9700_v13 = vld [vmem:[%s19635_s9 + $0x10c0] sm:$0xff]  ;;  %v15370_v22 = vpop.f32.mrf.mxu0 }
 0x6fe   : > { %5284 = vmatpush.msra.mxu1 %v9605_v41  ;;  %5230 = vmatpush.msrb.mxu3 %v9700_v13  ;;  %v9706_v41 = vld [vmem:[%s19635_s9 + $0x10f0] sm:$0xff]  ;;  %19762 = vst [vmem:[#allocation20_spill] sm:$0xff] %v15370_v22  ;;  %v9680_v13 = vld [vmem:[%s19635_s9 + $0x1020] sm:$0xff] }
 0x6ff   : > { %v9716_v22 = vld [vmem:[%s19635_s9 + $0x1140] sm:$0xff] }
 0x700   : > { %5285 = vmatpush.msra.mxu1 %v9601_v26  ;;  %5231 = vmatpush.msrb.mxu3 %v9696_v59  ;;  %v9688_v26 = vld [vmem:[%s19635_s9 + $0x1060] sm:$0xff]  ;;  %v9694_v59 = vld [vmem:[%s19635_s9 + $0x1090] sm:$0xff] }
 0x702   : > { %5286 = vmatpush.msra.mxu1 %v9597_v45  ;;  %5232 = vmatpush.msrb.mxu3 %v9692_v8  ;;  %v9684_v45 = vld [vmem:[%s19635_s9 + $0x1040] sm:$0xff] }
 0x703   : > { %v9672_v8 = vld [vmem:[%s19635_s9 + $0xfe0] sm:$0xff] }
 0x704   : > { %5287 = vmatpush.msra.mxu1 %v9593_v48  ;;  %5233 = vmatpush.msrb.mxu3 %v9688_v26  ;;  %v15375_v48 = vpop.f32.mrf.mxu2  ;;  %v9668_v26 = vld [vmem:[%s19635_s9 + $0xfc0] sm:$0xff] }
 0x705   : > { %19763 = vst [vmem:[#allocation15_spill] sm:$0xff] %v15375_v48 }
 0x706   : > { %5288 = vmatpush.msra.mxu1 %v9589_v56  ;;  %v9698_v56 = vld [vmem:[%s19635_s9 + $0x10b0] sm:$0xff]  ;;  %5234 = vmatpush.msrb.mxu3 %v9684_v45  ;;  %v9664_v45 = vld [vmem:[%s19635_s9 + $0xfa0] sm:$0xff] }
 0x708   : > { %5289 = vmatpush.msra.mxu1 %v9585_v29  ;;  %5235 = vmatpush.msrb.mxu3 %v9680_v13  ;;  %v9676_v29 = vld [vmem:[%s19635_s9 + $0x1000] sm:$0xff]  ;;  %v9682_v13 = vld [vmem:[%s19635_s9 + $0x1030] sm:$0xff] }
 0x70a   : > { %5366 = vmatpush.msrb.mxu1 %v9710_v11  ;;  %v9690_v11 = vld [vmem:[%s19635_s9 + $0x1070] sm:$0xff]  ;;  %5236 = vmatpush.msrb.mxu3 %v9676_v29 }
 0x70b   : > { %v9678_v29 = vld [vmem:[%s19635_s9 + $0x1010] sm:$0xff] }
 0x70c   : > { %5367 = vmatpush.msrb.mxu1 %v9706_v41  ;;  %v9686_v41 = vld [vmem:[%s19635_s9 + $0x1050] sm:$0xff]  ;;  %5237 = vmatpush.msrb.mxu3 %v9672_v8 }
 0x70d   : > { %v9674_v8 = vld [vmem:[%s19635_s9 + $0xff0] sm:$0xff] }
 0x70e   : > { %5368 = vmatpush.msrb.mxu1 %v9702_v12  ;;  %v15404_v12 = vpop.f32.mrf.mxu0  ;;  %5238 = vmatpush.msrb.mxu3 %v9668_v26  ;;  %v9670_v26 = vld [vmem:[%s19635_s9 + $0xfd0] sm:$0xff] }
 0x70f   : > { %19764 = vst [vmem:[#allocation23_spill] sm:$0xff] %v15404_v12  ;;  %v9626_v12 = vld [vmem:[%s19635_s9 + $0xe70] sm:$0xff] }
 0x710   : > { %5369 = vmatpush.msrb.mxu1 %v9698_v56  ;;  %v15409_v56 = vpop.f32.mrf.mxu2  ;;  %5239 = vmatpush.msrb.mxu3 %v9664_v45  ;;  %v9648_v45 = vld [vmem:[%s19635_s9 + $0xf20] sm:$0xff] }
 0x711   : > { %19765 = vst [vmem:[#allocation28_spill] sm:$0xff] %v15409_v56  ;;  %v9745_v56 = vld [vmem:[%s19635_s9 + $0x1190] sm:$0xff] }
 0x712   : > { %5370 = vmatpush.msrb.mxu1 %v9694_v59  ;;  %v9660_v59 = vld [vmem:[%s19635_s9 + $0xf80] sm:$0xff] }
 0x713   : > { %5240 = vmatpush.msrb.mxu3 %v9660_v59  ;;  %v9666_v59 = vld [vmem:[%s19635_s9 + $0xfb0] sm:$0xff] }
 0x714   : > { %5371 = vmatpush.msrb.mxu1 %v9690_v11  ;;  %v9656_v11 = vld [vmem:[%s19635_s9 + $0xf60] sm:$0xff] }
 0x715   : > { %5241 = vmatpush.msrb.mxu3 %v9656_v11  ;;  %v9662_v11 = vld [vmem:[%s19635_s9 + $0xf90] sm:$0xff] }
 0x716   : > { %5372 = vmatpush.msrb.mxu1 %v9686_v41  ;;  %v9652_v41 = vld [vmem:[%s19635_s9 + $0xf40] sm:$0xff] }
 0x717   : > { %5242 = vmatpush.msrb.mxu3 %v9652_v41  ;;  %v9658_v41 = vld [vmem:[%s19635_s9 + $0xf70] sm:$0xff] }
 0x718   : > { %5373 = vmatpush.msrb.mxu1 %v9682_v13  ;;  %v15432_v13 = vpop.f32.mrf.mxu0 }
 0x719   : > { %5243 = vmatpush.msrb.mxu3 %v9648_v45  ;;  %v9650_v45 = vld [vmem:[%s19635_s9 + $0xf30] sm:$0xff] }
 0x71a   : > { %5374 = vmatpush.msrb.mxu1 %v9678_v29  ;;  %v9646_v29 = vld [vmem:[%s19635_s9 + $0xf10] sm:$0xff] }
 0x71b   : > { %5343 = vmatpush.msra.mxu3 %v9646_v29 }
 0x71c   : > { %5375 = vmatpush.msrb.mxu1 %v9674_v8  ;;  %v9642_v8 = vld [vmem:[%s19635_s9 + $0xef0] sm:$0xff] }
 0x71d   : > { %5344 = vmatpush.msra.mxu3 %v9642_v8  ;;  %v9634_v8 = vld [vmem:[%s19635_s9 + $0xeb0] sm:$0xff] }
 0x71e   : > { %5376 = vmatpush.msrb.mxu1 %v9670_v26  ;;  %v15446_v20 = vpop.f32.mrf.mxu2  ;;  %v9654_v26 = vld [vmem:[%s19635_s9 + $0xf50] sm:$0xff] }
 0x720   : > { %5377 = vmatpush.msrb.mxu1 %v9666_v59  ;;  %v9638_v59 = vld [vmem:[%s19635_s9 + $0xed0] sm:$0xff]  ;;  %v15460_v29 = vpop.f32.mrf.mxu0 }
 0x721   : > { %5345 = vmatpush.msra.mxu3 %v9638_v59  ;;  %v9630_v59 = vld [vmem:[%s19635_s9 + $0xe90] sm:$0xff] }
 0x722   : > { %5378 = vmatpush.msrb.mxu1 %v9662_v11  ;;  %v9644_v11 = vld [vmem:[%s19635_s9 + $0xf00] sm:$0xff] }
 0x723   : > { %5205 = vmatpush.msrb.mxu2 %v9644_v11  ;;  %5346 = vmatpush.msra.mxu3 %v9634_v8  ;;  %v9622_v11 = vld [vmem:[%s19635_s9 + $0xe50] sm:$0xff]  ;;  %v9628_v8 = vld [vmem:[%s19635_s9 + $0xe80] sm:$0xff] }
 0x724   : > { %5379 = vmatpush.msrb.mxu1 %v9658_v41  ;;  %v9640_v41 = vld [vmem:[%s19635_s9 + $0xee0] sm:$0xff] }
 0x725   : > { %5206 = vmatpush.msrb.mxu2 %v9640_v41  ;;  %5347 = vmatpush.msra.mxu3 %v9630_v59  ;;  %v9618_v41 = vld [vmem:[%s19635_s9 + $0xe30] sm:$0xff]  ;;  %v9720_v59 = vld [vmem:[%s19635_s9 + $0x1160] sm:$0xff] }
 0x726   : > { %5380 = vmatpush.msrb.mxu1 %v9654_v26  ;;  %v15471_v26 = vpop.f32.mrf.mxu2  ;;  %5264 = vmatpush.msra.mxu0 %v9720_v59  ;;  %v9608_v59 = vld [vmem:[%s19635_s9 + $0xde0] sm:$0xff] }
 0x727   : > { %5207 = vmatpush.msrb.mxu2 %v9636_v47  ;;  %5348 = vmatpush.msra.mxu3 %v9626_v12  ;;  %v9624_v47 = vld [vmem:[%s19635_s9 + $0xe60] sm:$0xff] }
 0x728   : > { %5381 = vmatpush.msrb.mxu1 %v9650_v45  ;;  %v9632_v45 = vld [vmem:[%s19635_s9 + $0xea0] sm:$0xff]  ;;  %5265 = vmatpush.msra.mxu0 %v9716_v22  ;;  %v9602_v22 = vld [vmem:[%s19635_s9 + $0xdb0] sm:$0xff] }
 0x729   : > { %5208 = vmatpush.msrb.mxu2 %v9632_v45  ;;  %5349 = vmatpush.msra.mxu3 %v9622_v11  ;;  %v9614_v45 = vld [vmem:[%s19635_s9 + $0xe10] sm:$0xff]  ;;  %v15506_v11 = vpop.f32.mrf.mxu0 }
 0x72b   : > { %5209 = vmatpush.msrb.mxu2 %v9628_v8  ;;  %5350 = vmatpush.msra.mxu3 %v9618_v41  ;;  %v9620_v8 = vld [vmem:[%s19635_s9 + $0xe40] sm:$0xff] }
 0x72c   : > { %v9712_v41 = vld [vmem:[%s19635_s9 + $0x1120] sm:$0xff] }
 0x72d   : > { %5210 = vmatpush.msrb.mxu2 %v9624_v47  ;;  %5351 = vmatpush.msra.mxu3 %v9614_v45  ;;  %v9606_v47 = vld [vmem:[%s19635_s9 + $0xdd0] sm:$0xff]  ;;  %v9705_v45 = vld [vmem:[%s19635_s9 + $0x10e8] sm:$0xff] }
 0x72e   : > { %v15497_v12 = vpop.f32.mrf.mxu2  ;;  %5266 = vmatpush.msra.mxu0 %v9712_v41  ;;  %v9604_v41 = vld [vmem:[%s19635_s9 + $0xdc0] sm:$0xff] }
 0x72f   : > { %5290 = vmatmul.f32.vlgmr.msra.gmra.mxu1 %v15497_v12  ;;  %5211 = vmatpush.msrb.mxu2 %v9620_v8  ;;  %v9598_v8 = vld [vmem:[%s19635_s9 + $0xd90] sm:$0xff] }
 0x730   : > { %9734 = vmatpush.msk.msra.mxu1 %vm3468_vm5, %v13667_v49  ;;  %5352 = vmatpush.msra.mxu3 %v9610_v6  ;;  %v9616_v49 = vld [vmem:[%s19635_s9 + $0xe20] sm:$0xff]  ;;  %v9709_v6 = vld [vmem:[%s19635_s9 + $0x1108] sm:$0xff] }
 0x731   : > { %5212 = vmatpush.msrb.mxu2 %v9616_v49  ;;  %5297 = vmatpush.msrb.mxu0 %v9709_v6  ;;  %v15547_v49 = vpop.f32.mrf.mxu0  ;;  %v9600_v6 = vld [vmem:[%s19635_s9 + $0xda0] sm:$0xff] }
 0x732   : > { %5513 = vmatpush.msra.mxu1 %v13669_v57  ;;  %5353 = vmatpush.msra.mxu3 %v9606_v47  ;;  %v9612_v57 = vld [vmem:[%s19635_s9 + $0xe00] sm:$0xff]  ;;  %v9701_v47 = vld [vmem:[%s19635_s9 + $0x10c8] sm:$0xff] }
 0x733   : > { %5213 = vmatpush.msrb.mxu2 %v9612_v57  ;;  %5298 = vmatpush.msrb.mxu0 %v9705_v45  ;;  %v9594_v57 = vld [vmem:[%s19635_s9 + $0xd70] sm:$0xff]  ;;  %v9596_v45 = vld [vmem:[%s19635_s9 + $0xd80] sm:$0xff] }
 0x734   : > { %5354 = vmatpush.msra.mxu3 %v9602_v22  ;;  %v9697_v22 = vld [vmem:[%s19635_s9 + $0x10a8] sm:$0xff] }
 0x735   : > { %5214 = vmatpush.msrb.mxu2 %v9608_v59  ;;  %5299 = vmatpush.msrb.mxu0 %v9701_v47  ;;  %v9590_v59 = vld [vmem:[%s19635_s9 + $0xd50] sm:$0xff]  ;;  %v9592_v47 = vld [vmem:[%s19635_s9 + $0xd60] sm:$0xff] }
 0x736   : > { %5355 = vmatpush.msra.mxu3 %v9598_v8  ;;  %v9693_v8 = vld [vmem:[%s19635_s9 + $0x1088] sm:$0xff] }
 0x737   : > { %5215 = vmatpush.msrb.mxu2 %v9604_v41  ;;  %5300 = vmatpush.msrb.mxu0 %v9697_v22  ;;  %v9586_v41 = vld [vmem:[%s19635_s9 + $0xd30] sm:$0xff]  ;;  %v9685_v22 = vld [vmem:[%s19635_s9 + $0x1048] sm:$0xff] }
 0x738   : > { %5356 = vmatpush.msra.mxu3 %v9594_v57  ;;  %v9689_v57 = vld [vmem:[%s19635_s9 + $0x1068] sm:$0xff] }
 0x739   : > { %5216 = vmatpush.msrb.mxu2 %v9600_v6  ;;  %5301 = vmatpush.msrb.mxu0 %v9693_v8  ;;  %v9588_v6 = vld [vmem:[%s19635_s9 + $0xd40] sm:$0xff] }
 0x73a   : > { %5357 = vmatpush.msra.mxu3 %v9590_v59  ;;  %v9584_v8 = vld [vmem:[%s19635_s9 + $0xd20] sm:$0xff] }
 0x73b   : > { %5217 = vmatpush.msrb.mxu2 %v9596_v45  ;;  %5302 = vmatpush.msrb.mxu0 %v9689_v57  ;;  %v9677_v57 = vld [vmem:[%s19635_s9 + $0x1008] sm:$0xff] }
 0x73c   : > { %5358 = vmatpush.msra.mxu3 %v9586_v41  ;;  %v9681_v41 = vld [vmem:[%s19635_s9 + $0x1028] sm:$0xff] }
 0x73d   : > { %5218 = vmatpush.msrb.mxu2 %v9592_v47  ;;  %5303 = vmatpush.msrb.mxu0 %v9685_v22  ;;  %v15599_v47 = vpop.f32.mrf.mxu2 }
 0x73e   : > { %5293 = vmatmul.f32.gmra.mxu1 %v15599_v47 }
 0x73f   : > { %5219 = vmatpush.msrb.mxu2 %v9588_v6  ;;  %5304 = vmatpush.msrb.mxu0 %v9681_v41  ;;  %v9673_v6 = vld [vmem:[%s19635_s9 + $0xfe8] sm:$0xff] }
 0x741   : > { %5220 = vmatpush.msrb.mxu2 %v9584_v8  ;;  %5305 = vmatpush.msrb.mxu0 %v9677_v57  ;;  %v9669_v8 = vld [vmem:[%s19635_s9 + $0xfc8] sm:$0xff] }
 0x742   : > { %v15588_v59 = vpop.f32.mrf.mxu1  ;;  %5221 = vmatmul.f32.vlgmr.msrb.gmra.mxu2 %v15497_v12  ;;  %v9665_v57 = vld [vmem:[%s19635_s9 + $0xfa8] sm:$0xff] }
 0x743   : > { %v15590_v45 = vpop.f32.mrf.mxu0  ;;  %5306 = vmatpush.msrb.mxu0 %v9673_v6  ;;  %v9661_v6 = vld [vmem:[%s19635_s9 + $0xf88] sm:$0xff] }
 0x744   : > { %19766 = vst [vmem:[#allocation12_spill] sm:$0xff] %v15590_v45  ;;  %v9721_v45 = vld [vmem:[%s19635_s9 + $0x1168] sm:$0xff] }
 0x745   : > { %5307 = vmatpush.msrb.mxu0 %v9669_v8  ;;  %5333 = vmatpush.msra.mxu2 %v9721_v45  ;;  %v9717_v8 = vld [vmem:[%s19635_s9 + $0x1148] sm:$0xff] }
 0x746   : > { %v9713_v45 = vld [vmem:[%s19635_s9 + $0x1128] sm:$0xff] }
 0x747   : > { %5308 = vmatpush.msrb.mxu0 %v9665_v57  ;;  %5334 = vmatpush.msra.mxu2 %v9717_v8  ;;  %v9722_v57 = vld [vmem:[%s19635_s9 + $0x1170] sm:$0xff] }
 0x748   : > { %v9718_v8 = vld [vmem:[%s19635_s9 + $0x1150] sm:$0xff] }
 0x749   : > { %5309 = vmatpush.msrb.mxu0 %v9661_v6  ;;  %5335 = vmatpush.msra.mxu2 %v9713_v45  ;;  %v9723_v6 = vld [vmem:[%s19635_s9 + $0x1178] sm:$0xff] }
 0x74a   : > { %v15608_v22 = vpop.f32.mrf.mxu1  ;;  %5224 = vmatmul.f32.gmra.mxu2 %v15599_v47  ;;  %v9719_v45 = vld [vmem:[%s19635_s9 + $0x1158] sm:$0xff] }
 0x74b   : > { %5402 = vmatpush.msrb.mxu2 %v9722_v57  ;;  %v9715_v57 = vld [vmem:[%s19635_s9 + $0x1138] sm:$0xff] }
 0x74c   : > { %v15613_v41 = vpop.f32.mrf.mxu0 }
 0x74d   : > { %19767 = vst [vmem:[#allocation18_spill] sm:$0xff] %v15613_v41  ;;  %v9657_v41 = vld [vmem:[%s19635_s9 + $0xf68] sm:$0xff]  ;;  %5403 = vmatpush.msrb.mxu2 %v9718_v8 }
 0x74e   : > { %5310 = vmatpush.msrb.mxu0 %v9657_v41  ;;  %v9649_v41 = vld [vmem:[%s19635_s9 + $0xf28] sm:$0xff] }
 0x750   : > { %5311 = vmatpush.msrb.mxu0 %v9653_v42  ;;  %v9714_v42 = vld [vmem:[%s19635_s9 + $0x1130] sm:$0xff] }
 0x751   : > { %5404 = vmatpush.msrb.mxu2 %v9714_v42 }
 0x752   : > { %v15637_v5 = vpop.f32.mrf.mxu1  ;;  %5312 = vmatpush.msrb.mxu0 %v9649_v41 }
 0x753   : > { %19768 = vst [vmem:[#allocation26_spill] sm:$0xff] %v15637_v5  ;;  %v9877_v5 = vld [vmem:[%s19635_s9 + $0x15b0] sm:$0xff] }
 0x754   : > { %v15648_v43 = vpop.f32.mrf.mxu0 }
 0x755   : > { %5244 = vmatmul.f32.vlgmr.msrb.gmra.mxu3 %v15648_v43  ;;  %5382 = vmatmul.f32.vlgmr.msrb.gmra.mxu1 %v15648_v43 }
 0x756   : > { %5471 = vmatpush.msrb.mxu3 %v9723_v6  ;;  %v15676_v6 = vld [vmem:[%s19634_s8 + $0x40] sm:$0xff] }
 0x758   : > { %5472 = vmatpush.msrb.mxu3 %v9719_v45  ;;  %v15689_v45 = vld [vmem:[%s19634_s8 + $0x48] sm:$0x3] }
 0x75a   : > { %v15664_v8 = vpop.f32.mrf.mxu1  ;;  %5473 = vmatpush.msrb.mxu3 %v9715_v57  ;;  %v9643_v57 = vld [vmem:[%s19635_s9 + $0xef8] sm:$0xff] }
 0x75b   : > { %19769 = vst [vmem:[#allocation29_spill] sm:$0xff] %v15664_v8  ;;  %v9749_v8 = vld [vmem:[%s19635_s9 + $0x11b0] sm:$0xff] }
 0x75c   : > { %v15666_v16 = vpop.f32.mrf.mxu0 }
 0x75d   : > { %5247 = vmatmul.f32.gmra.mxu3 %v15666_v16  ;;  %5385 = vmatmul.f32.gmra.mxu1 %v15666_v16 }
 0x762   : > { %v15670_v25 = vpop.f32.mrf.mxu1 }
 0x763   : > { %19770 = vst [vmem:[#allocation35_spill] sm:$0xff] %v15670_v25  ;;  %v9639_v25 = vld [vmem:[%s19635_s9 + $0xed8] sm:$0xff] }
 0x765   : > { %5359 = vmatmul.f32.vlgmr.msra.gmra.mxu3 %v15497_v12  ;;  %9735 = vmatmul.msk.f32.vlgmr.msra.gmra.mxu1 %vm3461_vm6, %v15676_v6 }
 0x766   : > { %9737 = vmatpush.msk.msra.mxu3 %vm3468_vm5, %v13715_v50  ;;  %v9647_v50 = vld [vmem:[%s19635_s9 + $0xf18] sm:$0xff] }
 0x768   : > { %5536 = vmatpush.msra.mxu3 %v13717_v52  ;;  %v9711_v52 = vld [vmem:[%s19635_s9 + $0x1118] sm:$0xff] }
 0x76a   : > { %v15683_v41 = vpop.f32.mrf.mxu1 }
 0x76b   : > { %19771 = vst [vmem:[#allocation24_spill] sm:$0xff] %v15683_v41  ;;  %v9707_v41 = vld [vmem:[%s19635_s9 + $0x10f8] sm:$0xff] }
 0x76d   : > { %5362 = vmatmul.f32.gmra.mxu3 %v15599_v47  ;;  %9736 = vmatmul.msk.f32.gmra.mxu1 %vm3461_vm6, %v15689_v45 }
 0x772   : > { %v5052_v42 = vpop.f32.mrf.mxu1 }
 0x773   : > { %9724 = vmatmul.msk.f32.vlgmr.msra.gmra.mxu0 %vm3906_vm7, %v5052_v42  ;;  %9726 = vmatmul.msk.f32.vlgmr.msra.gmra.mxu2 %vm3906_vm7, %v5052_v42 }
 0x774   : > { %5412 = vmatpush.msra.mxu0 %v9647_v50  ;;  %5435 = vmatpush.msra.mxu2 %v9711_v52  ;;  %v9635_v50 = vld [vmem:[%s19635_s9 + $0xeb8] sm:$0xff] }
 0x775   : > { %9730 = vmatmul.msk.f32.vlgmr.msrb.gmra.mxu3 %vm3906_vm7, %v5052_v42  ;;  %v9631_v52 = vld [vmem:[%s19635_s9 + $0xe98] sm:$0xff] }
 0x776   : > { %5413 = vmatpush.msra.mxu0 %v9643_v57  ;;  %5436 = vmatpush.msra.mxu2 %v9707_v41  ;;  %v9695_v41 = vld [vmem:[%s19635_s9 + $0x1098] sm:$0xff] }
 0x778   : > { %5414 = vmatpush.msra.mxu0 %v9639_v25  ;;  %5437 = vmatpush.msra.mxu2 %v9703_v18  ;;  %v9627_v25 = vld [vmem:[%s19635_s9 + $0xe78] sm:$0xff] }
 0x779   : > { %v9691_v18 = vld [vmem:[%s19635_s9 + $0x1078] sm:$0xff] }
 0x77a   : > { %5415 = vmatpush.msra.mxu0 %v9635_v50  ;;  %v5055_v57 = vpop.f32.mrf.mxu1  ;;  %5438 = vmatpush.msra.mxu2 %v9699_v37  ;;  %v9623_v37 = vld [vmem:[%s19635_s9 + $0xe58] sm:$0xff] }
 0x77b   : > { %9725 = vmatmul.msk.f32.gmra.mxu0 %vm3906_vm7, %v5055_v57  ;;  %9727 = vmatmul.msk.f32.gmra.mxu2 %vm3906_vm7, %v5055_v57  ;;  %v9687_v50 = vld [vmem:[%s19635_s9 + $0x1058] sm:$0xff] }
 0x77c   : > { %5416 = vmatpush.msra.mxu0 %v9631_v52  ;;  %5439 = vmatpush.msra.mxu2 %v9695_v41  ;;  %v9619_v52 = vld [vmem:[%s19635_s9 + $0xe38] sm:$0xff] }
 0x77d   : > { %9731 = vmatmul.msk.f32.gmra.mxu3 %vm3906_vm7, %v5055_v57  ;;  %v9615_v41 = vld [vmem:[%s19635_s9 + $0xe18] sm:$0xff] }
 0x77e   : > { %5417 = vmatpush.msra.mxu0 %v9627_v25  ;;  %5440 = vmatpush.msra.mxu2 %v9691_v18  ;;  %v9679_v25 = vld [vmem:[%s19635_s9 + $0x1018] sm:$0xff] }
 0x77f   : > { %v9611_v18 = vld [vmem:[%s19635_s9 + $0xdf8] sm:$0xff] }
 0x780   : > { %5418 = vmatpush.msra.mxu0 %v9623_v37  ;;  %5441 = vmatpush.msra.mxu2 %v9687_v50  ;;  %v9675_v37 = vld [vmem:[%s19635_s9 + $0xff8] sm:$0xff] }
 0x781   : > { %v9671_v50 = vld [vmem:[%s19635_s9 + $0xfd8] sm:$0xff] }
 0x782   : > { %5419 = vmatpush.msra.mxu0 %v9619_v52  ;;  %5442 = vmatpush.msra.mxu2 %v9683_v44  ;;  %v9607_v44 = vld [vmem:[%s19635_s9 + $0xdd8] sm:$0xff] }
 0x783   : > { %5313 = vmatmul.f32.vlgmr.msrb.gmra.mxu0 %v15648_v43  ;;  %9728 = vmatmul.msk.f32.vlgmr.msrb.gmra.mxu2 %vm3906_vm7, %v5052_v42  ;;  %v9603_v42 = vld [vmem:[%s19635_s9 + $0xdb8] sm:$0xff] }
 0x784   : > { %5420 = vmatpush.msra.mxu0 %v9615_v41  ;;  %5443 = vmatpush.msra.mxu2 %v9679_v25  ;;  %v9667_v52 = vld [vmem:[%s19635_s9 + $0xfb8] sm:$0xff]  ;;  %v15775_v41 = vpop.f32.mrf.mxu3 }
 0x785   : > { %9738 = vmatmul.msk.f32.vlgmr.msra.gmra.mxu3 %vm3461_vm6, %v15676_v6  ;;  %v9599_v25 = vld [vmem:[%s19635_s9 + $0xd98] sm:$0xff] }
 0x786   : > { %5421 = vmatpush.msra.mxu0 %v9611_v18  ;;  %5444 = vmatpush.msra.mxu2 %v9675_v37  ;;  %v9663_v18 = vld [vmem:[%s19635_s9 + $0xf98] sm:$0xff] }
 0x787   : > { %v9595_v37 = vld [vmem:[%s19635_s9 + $0xd78] sm:$0xff] }
 0x788   : > { %5422 = vmatpush.msra.mxu0 %v9607_v44  ;;  %5445 = vmatpush.msra.mxu2 %v9671_v50  ;;  %v9659_v44 = vld [vmem:[%s19635_s9 + $0xf78] sm:$0xff] }
 0x789   : > { %v9591_v50 = vld [vmem:[%s19635_s9 + $0xd58] sm:$0xff] }
 0x78a   : > { %5423 = vmatpush.msra.mxu0 %v9603_v42  ;;  %5446 = vmatpush.msra.mxu2 %v9667_v52  ;;  %v9655_v42 = vld [vmem:[%s19635_s9 + $0xf58] sm:$0xff] }
 0x78b   : > { %5316 = vmatmul.f32.gmra.mxu0 %v15666_v16  ;;  %9729 = vmatmul.msk.f32.gmra.mxu2 %vm3906_vm7, %v5055_v57  ;;  %v9587_v57 = vld [vmem:[%s19635_s9 + $0xd38] sm:$0xff] }
 0x78c   : > { %5424 = vmatpush.msra.mxu0 %v9599_v25  ;;  %5447 = vmatpush.msra.mxu2 %v9663_v18  ;;  %v9651_v52 = vld [vmem:[%s19635_s9 + $0xf38] sm:$0xff]  ;;  %v15805_v25 = vpop.f32.mrf.mxu3 }
 0x78d   : > { %9739 = vmatmul.msk.f32.gmra.mxu3 %vm3461_vm6, %v15689_v45 }
 0x78e   : > { %5425 = vmatpush.msra.mxu0 %v9595_v37  ;;  %5448 = vmatpush.msra.mxu2 %v9659_v44  ;;  %v9800_v44 = vld [vmem:[%s19635_s9 + $0x1348] sm:$0xff] }
 0x790   : > { %5426 = vmatpush.msra.mxu0 %v9591_v50  ;;  %5449 = vmatpush.msra.mxu2 %v9655_v42  ;;  %v9847_v50 = vld [vmem:[%s19635_s9 + $0x14c0] sm:$0xff]  ;;  %v9796_v42 = vld [vmem:[%s19635_s9 + $0x1328] sm:$0xff] }
 0x792   : > { %5427 = vmatpush.msra.mxu0 %v9587_v57  ;;  %5450 = vmatpush.msra.mxu2 %v9651_v52  ;;  %v9843_v57 = vld [vmem:[%s19635_s9 + $0x14a0] sm:$0xff] }
 0x793   : > { %5428 = vmatmul.f32.vlgmr.msra.gmra.mxu0 %v15497_v12  ;;  %5451 = vmatmul.f32.vlgmr.msra.gmra.mxu2 %v15648_v43  ;;  %v9863_v43 = vld [vmem:[%s19635_s9 + $0x1540] sm:$0xff] }
 0x794   : > { %9740 = vmatpush.msk.msrb.mxu0 %vm3468_vm5, %v13743_v30  ;;  %v15814_v18 = vpop.f32.mrf.mxu3 }
 0x795   : > { %19772 = vst [vmem:[#allocation33_spill] sm:$0xff] %v15814_v18  ;;  %v9853_v18 = vld [vmem:[%s19635_s9 + $0x14f0] sm:$0xff] }
 0x796   : > { %5559 = vmatpush.msrb.mxu0 %v13745_v15  ;;  %v9867_v15 = vld [vmem:[%s19635_s9 + $0x1560] sm:$0xff] }
 0x797   : > { %5737 = vmatpush.msrb.mxu2 %v9867_v15  ;;  %v9839_v15 = vld [vmem:[%s19635_s9 + $0x1480] sm:$0xff] }
 0x799   : > { %5738 = vmatpush.msrb.mxu2 %v9863_v43  ;;  %v9792_v43 = vld [vmem:[%s19635_s9 + $0x1308] sm:$0xff] }
 0x79b   : > { %5431 = vmatmul.f32.gmra.mxu0 %v15599_v47  ;;  %5454 = vmatmul.f32.gmra.mxu2 %v15666_v16  ;;  %v9859_v16 = vld [vmem:[%s19635_s9 + $0x1520] sm:$0xff] }
 0x79c   : > { %v15818_v37 = vpop.f32.mrf.mxu3  ;;  %5739 = vmatpush.msrb.mxu2 %v9859_v16  ;;  %v9855_v47 = vld [vmem:[%s19635_s9 + $0x1500] sm:$0xff] }
 0x79d   : > { %19773 = vst [vmem:[#allocation37_spill] sm:$0xff] %v15818_v37  ;;  %v9835_v16 = vld [vmem:[%s19635_s9 + $0x1460] sm:$0xff]  ;;  %v9793_v37 = vld [vmem:[%s19635_s9 + $0x1310] sm:$0xff] }
 0x79e   : > { %5740 = vmatpush.msrb.mxu2 %v9855_v47  ;;  %v9788_v47 = vld [vmem:[%s19635_s9 + $0x12e8] sm:$0xff] }
 0x7a3   : > { %9741 = vmatmul.msk.f32.vlgmr.msrb.gmra.mxu0 %vm3461_vm6, %v15676_v6  ;;  %v9851_v6 = vld [vmem:[%s19635_s9 + $0x14e0] sm:$0xff] }
 0x7a4   : > { %v15822_v30 = vpop.f32.mrf.mxu3  ;;  %5741 = vmatpush.msrb.mxu2 %v9851_v6  ;;  %v9831_v6 = vld [vmem:[%s19635_s9 + $0x1440] sm:$0xff] }
 0x7a6   : > { %5742 = vmatpush.msrb.mxu2 %v9847_v50  ;;  %v9827_v50 = vld [vmem:[%s19635_s9 + $0x1420] sm:$0xff] }
 0x7a8   : > { %5743 = vmatpush.msrb.mxu2 %v9843_v57 }
 0x7aa   : > { %5744 = vmatpush.msrb.mxu2 %v9839_v15  ;;  %v9823_v15 = vld [vmem:[%s19635_s9 + $0x1400] sm:$0xff] }
 0x7ab   : > { %9742 = vmatmul.msk.f32.gmra.mxu0 %vm3461_vm6, %v15689_v45  ;;  %v9804_v45 = vld [vmem:[%s19635_s9 + $0x1368] sm:$0xff] }
 0x7ac   : > { %v15833_v12 = vpop.f32.mrf.mxu3  ;;  %5783 = vmatpush.msra.mxu0 %v9804_v45  ;;  %v9784_v45 = vld [vmem:[%s19635_s9 + $0x12c8] sm:$0xff]  ;;  %5745 = vmatpush.msrb.mxu2 %v9835_v16  ;;  %v9819_v16 = vld [vmem:[%s19635_s9 + $0x13e0] sm:$0xff] }
 0x7ae   : > { %5784 = vmatpush.msra.mxu0 %v9800_v44  ;;  %v15876_v44 = vpop.f32.mrf.mxu1  ;;  %5746 = vmatpush.msrb.mxu2 %v9831_v6  ;;  %v9803_v6 = vld [vmem:[%s19635_s9 + $0x1360] sm:$0xff] }
 0x7af   : > { %19775 = vst [vmem:[#allocation42_spill] sm:$0xff] %v15876_v44  ;;  %5714 = vmatpush.msrb.mxu1 %v9803_v6  ;;  %v9795_v6 = vld [vmem:[%s19635_s9 + $0x1320] sm:$0xff]  ;;  %v9757_v44 = vld [vmem:[%s19635_s9 + $0x11f0] sm:$0xff] }
 0x7b0   : > { %5785 = vmatpush.msra.mxu0 %v9796_v42  ;;  %v9780_v42 = vld [vmem:[%s19635_s9 + $0x12a8] sm:$0xff]  ;;  %5747 = vmatpush.msrb.mxu2 %v9827_v50 }
 0x7b1   : > { %v9768_v50 = vld [vmem:[%s19635_s9 + $0x1248] sm:$0xff] }
 0x7b2   : > { %5786 = vmatpush.msra.mxu0 %v9792_v43  ;;  %v9776_v43 = vld [vmem:[%s19635_s9 + $0x1288] sm:$0xff]  ;;  %5748 = vmatpush.msrb.mxu2 %v9823_v15  ;;  %v9799_v15 = vld [vmem:[%s19635_s9 + $0x1340] sm:$0xff] }
 0x7b3   : > { %5715 = vmatpush.msrb.mxu1 %v9799_v15  ;;  %v9756_v15 = vld [vmem:[%s19635_s9 + $0x11e8] sm:$0xff] }
 0x7b4   : > { %v15856_v52 = vpop.f32.mrf.mxu3  ;;  %5787 = vmatpush.msra.mxu0 %v9788_v47  ;;  %v9772_v47 = vld [vmem:[%s19635_s9 + $0x1268] sm:$0xff]  ;;  %5749 = vmatpush.msrb.mxu2 %v9819_v16 }
 0x7b5   : > { %19774 = vst [vmem:[#allocation31_spill] sm:$0xff] %v15856_v52  ;;  %v9764_v16 = vld [vmem:[%s19635_s9 + $0x1228] sm:$0xff]  ;;  %5716 = vmatpush.msrb.mxu1 %v9795_v6  ;;  %v9797_v6 = vld [vmem:[%s19635_s9 + $0x1330] sm:$0xff] }
 0x7b6   : > { %5788 = vmatpush.msra.mxu0 %v9784_v45  ;;  %v9815_v45 = vld [vmem:[%s19635_s9 + $0x13c0] sm:$0xff]  ;;  %v9760_v52 = vld [vmem:[%s19635_s9 + $0x1208] sm:$0xff] }
 0x7b7   : > { %5750 = vmatpush.msrb.mxu2 %v9815_v45  ;;  %v9791_v45 = vld [vmem:[%s19635_s9 + $0x1300] sm:$0xff] }
 0x7b8   : > { %5789 = vmatpush.msra.mxu0 %v9780_v42  ;;  %5717 = vmatpush.msrb.mxu1 %v9791_v45  ;;  %v9748_v45 = vld [vmem:[%s19635_s9 + $0x11a8] sm:$0xff] }
 0x7ba   : > { %5790 = vmatpush.msra.mxu0 %v9776_v43  ;;  %v9811_v43 = vld [vmem:[%s19635_s9 + $0x13a0] sm:$0xff] }
 0x7bb   : > { %v15907_v42 = vpop.f32.mrf.mxu1  ;;  %5751 = vmatpush.msrb.mxu2 %v9811_v43  ;;  %v9752_v43 = vld [vmem:[%s19635_s9 + $0x11c8] sm:$0xff] }
 0x7bc   : > { %v15884_v57 = vpop.f32.mrf.mxu3  ;;  %5791 = vmatpush.msra.mxu0 %v9772_v47  ;;  %19777 = vst [vmem:[#allocation44_spill] sm:$0xff] %v15907_v42  ;;  %v9773_v42 = vld [vmem:[%s19635_s9 + $0x1270] sm:$0xff] }
 0x7bd   : > { %19776 = vst [vmem:[#allocation43_spill] sm:$0xff] %v15884_v57  ;;  %v9807_v57 = vld [vmem:[%s19635_s9 + $0x1380] sm:$0xff] }
 0x7be   : > { %5792 = vmatpush.msra.mxu0 %v9768_v50  ;;  %5752 = vmatpush.msrb.mxu2 %v9807_v57  ;;  %v9805_v50 = vld [vmem:[%s19635_s9 + $0x1370] sm:$0xff]  ;;  %v9787_v57 = vld [vmem:[%s19635_s9 + $0x12e0] sm:$0xff] }
 0x7bf   : > { %5718 = vmatpush.msrb.mxu1 %v9787_v57  ;;  %v9779_v57 = vld [vmem:[%s19635_s9 + $0x12a0] sm:$0xff] }
 0x7c0   : > { %5793 = vmatpush.msra.mxu0 %v9764_v16  ;;  %5852 = vmatpush.msra.mxu2 %v9805_v50  ;;  %v9783_v16 = vld [vmem:[%s19635_s9 + $0x12c0] sm:$0xff] }
 0x7c1   : > { %5719 = vmatpush.msrb.mxu1 %v9783_v16  ;;  %v9775_v16 = vld [vmem:[%s19635_s9 + $0x1280] sm:$0xff] }
 0x7c2   : > { %5794 = vmatpush.msra.mxu0 %v9760_v52  ;;  %v9801_v52 = vld [vmem:[%s19635_s9 + $0x1350] sm:$0xff] }
 0x7c3   : > { %5853 = vmatpush.msra.mxu2 %v9801_v52  ;;  %v9879_v52 = vld [vmem:[%s19635_s9 + $0x15c0] sm:$0xff]  ;;  %5720 = vmatpush.msrb.mxu1 %v9779_v57  ;;  %v9869_v57 = vld [vmem:[%s19635_s9 + $0x1570] sm:$0xff] }
 0x7c4   : > { %5795 = vmatpush.msra.mxu0 %v9756_v15  ;;  %5773 = vmatpush.msrb.mxu3 %v9879_v52  ;;  %v9871_v52 = vld [vmem:[%s19635_s9 + $0x1580] sm:$0xff] }
 0x7c5   : > { %5854 = vmatpush.msra.mxu2 %v9797_v6  ;;  %v9875_v6 = vld [vmem:[%s19635_s9 + $0x15a0] sm:$0xff]  ;;  %5721 = vmatpush.msrb.mxu1 %v9775_v16  ;;  %v9865_v16 = vld [vmem:[%s19635_s9 + $0x1550] sm:$0xff] }
 0x7c6   : > { %5796 = vmatpush.msra.mxu0 %v9752_v43  ;;  %v9744_v43 = vld [vmem:[%s19635_s9 + $0x1188] sm:$0xff]  ;;  %5774 = vmatpush.msrb.mxu3 %v9875_v6 }
 0x7c7   : > { %5855 = vmatpush.msra.mxu2 %v9793_v37  ;;  %v9771_v37 = vld [vmem:[%s19635_s9 + $0x1260] sm:$0xff]  ;;  %v9868_v6 = vld [vmem:[%s19635_s9 + $0x1568] sm:$0xff] }
 0x7c8   : > { %5797 = vmatpush.msra.mxu0 %v9748_v45  ;;  %v9789_v45 = vld [vmem:[%s19635_s9 + $0x12f0] sm:$0xff]  ;;  %5722 = vmatpush.msrb.mxu1 %v9771_v37 }
 0x7c9   : > { %5856 = vmatpush.msra.mxu2 %v9789_v45  ;;  %5775 = vmatpush.msrb.mxu3 %v9871_v52  ;;  %v9767_v45 = vld [vmem:[%s19635_s9 + $0x1240] sm:$0xff]  ;;  %v9861_v37 = vld [vmem:[%s19635_s9 + $0x1530] sm:$0xff]  ;;  %v9864_v52 = vld [vmem:[%s19635_s9 + $0x1548] sm:$0xff] }
 0x7ca   : > { %5798 = vmatpush.msra.mxu0 %v9744_v43  ;;  %v9785_v43 = vld [vmem:[%s19635_s9 + $0x12d0] sm:$0xff]  ;;  %5723 = vmatpush.msrb.mxu1 %v9767_v45 }
 0x7cb   : > { %5857 = vmatpush.msra.mxu2 %v9785_v43  ;;  %5806 = vmatpush.msra.mxu3 %v9868_v6  ;;  %v9857_v6 = vld [vmem:[%s19635_s9 + $0x1510] sm:$0xff] }
 0x7cc   : > { %5875 = vmatpush.msrb.mxu0 %v9869_v57  ;;  %v9781_v57 = vld [vmem:[%s19635_s9 + $0x12b0] sm:$0xff] }
 0x7cd   : > { %5858 = vmatpush.msra.mxu2 %v9781_v57  ;;  %5807 = vmatpush.msra.mxu3 %v9864_v52  ;;  %v9860_v57 = vld [vmem:[%s19635_s9 + $0x1528] sm:$0xff] }
 0x7ce   : > { %5876 = vmatpush.msrb.mxu0 %v9865_v16  ;;  %v9763_v16 = vld [vmem:[%s19635_s9 + $0x1220] sm:$0xff]  ;;  %v9856_v52 = vld [vmem:[%s19635_s9 + $0x1508] sm:$0xff] }
 0x7cf   : > { %5724 = vmatpush.msrb.mxu1 %v9763_v16  ;;  %5859 = vmatpush.msra.mxu2 %v9777_v27  ;;  %v9755_v27 = vld [vmem:[%s19635_s9 + $0x11e0] sm:$0xff]  ;;  %v9769_v16 = vld [vmem:[%s19635_s9 + $0x1250] sm:$0xff] }
 0x7d0   : > { %5877 = vmatpush.msrb.mxu0 %v9861_v37  ;;  %v9759_v37 = vld [vmem:[%s19635_s9 + $0x1200] sm:$0xff]  ;;  %5808 = vmatpush.msra.mxu3 %v9860_v57  ;;  %v9852_v57 = vld [vmem:[%s19635_s9 + $0x14e8] sm:$0xff] }
 0x7d1   : > { %5725 = vmatpush.msrb.mxu1 %v9759_v37  ;;  %5860 = vmatpush.msra.mxu2 %v9773_v42  ;;  %v9765_v42 = vld [vmem:[%s19635_s9 + $0x1230] sm:$0xff] }
 0x7d2   : > { %v15956_v50 = vpop.f32.mrf.mxu1  ;;  %5878 = vmatpush.msrb.mxu0 %v9857_v6  ;;  %v9849_v6 = vld [vmem:[%s19635_s9 + $0x14d0] sm:$0xff]  ;;  %5809 = vmatpush.msra.mxu3 %v9856_v52  ;;  %v9848_v52 = vld [vmem:[%s19635_s9 + $0x14c8] sm:$0xff] }
 0x7d3   : > { %5726 = vmatpush.msrb.mxu1 %v9755_v27  ;;  %5861 = vmatpush.msra.mxu2 %v9769_v16  ;;  %v9845_v37 = vld [vmem:[%s19635_s9 + $0x14b0] sm:$0xff]  ;;  %v9747_v16 = vld [vmem:[%s19635_s9 + $0x11a0] sm:$0xff] }
 0x7d4   : > { %5879 = vmatpush.msrb.mxu0 %v9853_v18  ;;  %v9751_v18 = vld [vmem:[%s19635_s9 + $0x11c0] sm:$0xff]  ;;  %5810 = vmatpush.msra.mxu3 %v9852_v57  ;;  %v9841_v57 = vld [vmem:[%s19635_s9 + $0x1490] sm:$0xff] }
 0x7d5   : > { %5727 = vmatpush.msrb.mxu1 %v9751_v18  ;;  %5862 = vmatpush.msra.mxu2 %v9765_v42  ;;  %v9844_v42 = vld [vmem:[%s19635_s9 + $0x14a8] sm:$0xff] }
 0x7d6   : > { %5880 = vmatpush.msrb.mxu0 %v9849_v6  ;;  %v9761_v6 = vld [vmem:[%s19635_s9 + $0x1210] sm:$0xff]  ;;  %5811 = vmatpush.msra.mxu3 %v9848_v52 }
 0x7d7   : > { %5728 = vmatpush.msrb.mxu1 %v9747_v16  ;;  %5863 = vmatpush.msra.mxu2 %v9761_v6  ;;  %v9837_v52 = vld [vmem:[%s19635_s9 + $0x1470] sm:$0xff]  ;;  %v9840_v16 = vld [vmem:[%s19635_s9 + $0x1488] sm:$0xff] }
 0x7d8   : > { %v15918_v47 = vpop.f32.mrf.mxu3  ;;  %5881 = vmatpush.msrb.mxu0 %v9845_v37  ;;  %v9743_v37 = vld [vmem:[%s19635_s9 + $0x1180] sm:$0xff]  ;;  %5812 = vmatpush.msra.mxu3 %v9844_v42  ;;  %v9753_v6 = vld [vmem:[%s19635_s9 + $0x11d0] sm:$0xff]  ;;  %v9836_v42 = vld [vmem:[%s19635_s9 + $0x1468] sm:$0xff] }
 0x7d9   : > { %5729 = vmatpush.msrb.mxu1 %v9743_v37  ;;  %5864 = vmatpush.msra.mxu2 %v9757_v44  ;;  %v9829_v44 = vld [vmem:[%s19635_s9 + $0x1430] sm:$0xff]  ;;  %v9832_v37 = vld [vmem:[%s19635_s9 + $0x1448] sm:$0xff] }
 0x7da   : > { %v16022_v45 = vpop.f32.mrf.mxu1  ;;  %5882 = vmatpush.msrb.mxu0 %v9841_v57  ;;  %v9833_v57 = vld [vmem:[%s19635_s9 + $0x1450] sm:$0xff]  ;;  %5813 = vmatpush.msra.mxu3 %v9840_v16 }
 0x7db   : > { %5865 = vmatpush.msra.mxu2 %v9753_v6  ;;  %v9825_v16 = vld [vmem:[%s19635_s9 + $0x1410] sm:$0xff] }
 0x7dc   : > { %5883 = vmatpush.msrb.mxu0 %v9837_v52  ;;  %5814 = vmatpush.msra.mxu3 %v9836_v42  ;;  %v9821_v42 = vld [vmem:[%s19635_s9 + $0x13f0] sm:$0xff] }
 0x7dd   : > { %5866 = vmatpush.msra.mxu2 %v9749_v8  ;;  %v9880_v8 = vld [vmem:[%s19635_s9 + $0x15c8] sm:$0xff] }
 0x7de   : > { %5884 = vmatpush.msrb.mxu0 %v9833_v57  ;;  %5815 = vmatpush.msra.mxu3 %v9832_v37  ;;  %v9817_v37 = vld [vmem:[%s19635_s9 + $0x13d0] sm:$0xff] }
 0x7df   : > { %5867 = vmatpush.msra.mxu2 %v9745_v56  ;;  %5842 = vmatpush.msra.mxu1 %v9880_v8  ;;  %v9876_v56 = vld [vmem:[%s19635_s9 + $0x15a8] sm:$0xff] }
 0x7e0   : > { %v15958_v15 = vpop.f32.mrf.mxu3  ;;  %5885 = vmatpush.msrb.mxu0 %v9829_v44  ;;  %v9824_v44 = vld [vmem:[%s19635_s9 + $0x1408] sm:$0xff]  ;;  %5816 = vmatpush.msra.mxu3 %v9828_v58  ;;  %v9813_v58 = vld [vmem:[%s19635_s9 + $0x13b0] sm:$0xff] }
 0x7e1   : > { %v9872_v8 = vld [vmem:[%s19635_s9 + $0x1588] sm:$0xff]  ;;  %5843 = vmatpush.msra.mxu1 %v9876_v56 }
 0x7e2   : > { %v16076_v34 = vpop.f32.mrf.mxu1  ;;  %5886 = vmatpush.msrb.mxu0 %v9825_v16  ;;  %v9820_v16 = vld [vmem:[%s19635_s9 + $0x13e8] sm:$0xff]  ;;  %5817 = vmatpush.msra.mxu3 %v9824_v44  ;;  %v9809_v44 = vld [vmem:[%s19635_s9 + $0x1390] sm:$0xff] }
 0x7e3   : > { %5799 = vmatmul.f32.vlgmr.msra.gmra.mxu0 %v16076_v34  ;;  %5730 = vmatmul.f32.vlgmr.msrb.gmra.mxu1 %v16076_v34 }
 0x7e4   : > { %5887 = vmatpush.msrb.mxu0 %v9821_v42  ;;  %v9881_v42 = vld [vmem:[%s19635_s9 + $0x15d0] sm:$0xff]  ;;  %5818 = vmatpush.msra.mxu3 %v9820_v16  ;;  %v9808_v16 = vld [vmem:[%s19635_s9 + $0x1388] sm:$0xff] }
 0x7e5   : > { %5844 = vmatpush.msra.mxu1 %v9872_v8  ;;  %v9873_v8 = vld [vmem:[%s19635_s9 + $0x1590] sm:$0xff] }
 0x7e6   : > { %5888 = vmatpush.msrb.mxu0 %v9817_v37  ;;  %v9812_v37 = vld [vmem:[%s19635_s9 + $0x13a8] sm:$0xff] }
 0x7e7   : > { %5911 = vmatpush.msrb.mxu1 %v9881_v42 }
 0x7e8   : > { %v16011_v43 = vpop.f32.mrf.mxu3  ;;  %5889 = vmatpush.msrb.mxu0 %v9813_v58  ;;  %v9882_v58 = vld [vmem:[%s19635_s9 + $0x15d8] sm:$0xff] }
 0x7e9   : > { %5912 = vmatpush.msrb.mxu1 %v9877_v5  ;;  %v9878_v5 = vld [vmem:[%s19635_s9 + $0x15b8] sm:$0xff] }
 0x7ea   : > { %v16123_v57 = vpop.f32.mrf.mxu1  ;;  %5890 = vmatpush.msrb.mxu0 %v9809_v44  ;;  %v9874_v44 = vld [vmem:[%s19635_s9 + $0x1598] sm:$0xff] }
 0x7eb   : > { %5802 = vmatmul.f32.gmra.mxu0 %v16123_v57  ;;  %5733 = vmatmul.f32.gmra.mxu1 %v16123_v57 }
 0x7ec   : > { %5913 = vmatpush.msrb.mxu1 %v9873_v8 }
 0x7f0   : > { %v16063_v27 = vpop.f32.mrf.mxu3  ;;  %v16074_v18 = vpop.f32.mrf.mxu0 }
 0x7f8   : > { %v16113_v52 = vpop.f32.mrf.mxu3  ;;  %v16121_v6 = vpop.f32.mrf.mxu0 }
 0x7f9   : > { %19778 = vst [vmem:[#allocation45_spill] sm:$0xff] %v16113_v52  ;;  %v9816_v52 = vld [vmem:[%s19635_s9 + $0x13c8] sm:$0xff] }
 0x7fa   : > { %5819 = vmatpush.msra.mxu3 %v9816_v52 }
 0x7fc   : > { %5820 = vmatpush.msra.mxu3 %v9812_v37 }
 0x7fe   : > { %5821 = vmatpush.msra.mxu3 %v9808_v16 }
 0x800   : > { %v16163_v56 = vpop.f32.mrf.mxu3  ;;  %v16165_v38 = vpop.f32.mrf.mxu0 }
 0x801   : > { %19779 = vst [vmem:[#allocation46_spill] sm:$0xff] %v16163_v56  ;;  %v9802_v56 = vld [vmem:[%s19635_s9 + $0x1358] sm:$0xff] }
 0x802   : > { %19780 = vst [vmem:[#allocation47_spill] sm:$0xff] %v16165_v38  ;;  %v9794_v38 = vld [vmem:[%s19635_s9 + $0x1318] sm:$0xff] }
 0x808   : > { %v16182_v42 = vpop.f32.mrf.mxu3  ;;  %v16184_v52 = vpop.f32.mrf.mxu0 }
 0x809   : > { %19781 = vst [vmem:[#allocation48_spill] sm:$0xff] %v16184_v52  ;;  %5753 = vmatmul.f32.vlgmr.msrb.gmra.mxu2 %v16182_v42  ;;  %5891 = vmatmul.f32.vlgmr.msrb.gmra.mxu0 %v16182_v42  ;;  %v9862_v52 = vld [vmem:[%s19635_s9 + $0x1538] sm:$0xff] }
 0x80a   : > { %5980 = vmatpush.msrb.mxu2 %v9882_v58  ;;  %v9806_v58 = vld [vmem:[%s19635_s9 + $0x1378] sm:$0xff] }
 0x80c   : > { %5981 = vmatpush.msrb.mxu2 %v9878_v5  ;;  %v9870_v5 = vld [vmem:[%s19635_s9 + $0x1578] sm:$0xff] }
 0x80e   : > { %5982 = vmatpush.msrb.mxu2 %v9874_v44 }
 0x810   : > { %v16194_v37 = vpop.f32.mrf.mxu3  ;;  %v16197_v16 = vpop.f32.mrf.mxu0 }
 0x811   : > { %5756 = vmatmul.f32.gmra.mxu2 %v16194_v37  ;;  %19782 = vst [vmem:[#allocation49_spill] sm:$0xff] %v16197_v16  ;;  %5894 = vmatmul.f32.gmra.mxu0 %v16194_v37  ;;  %v9798_v16 = vld [vmem:[%s19635_s9 + $0x1338] sm:$0xff] }
 0x818   : > { %v16201_v8 = vpop.f32.mrf.mxu0 }
 0x819   : > { %5868 = vmatmul.f32.vlgmr.msra.gmra.mxu2 %v16076_v34  ;;  %19783 = vst [vmem:[#allocation50_spill] sm:$0xff] %v16201_v8  ;;  %v9866_v8 = vld [vmem:[%s19635_s9 + $0x1558] sm:$0xff] }
 0x820   : > { %v5561_v44 = vpop.f32.mrf.mxu0 }
 0x821   : > { %5871 = vmatmul.f32.gmra.mxu2 %v16123_v57  ;;  %9883 = vmatmul.msk.f32.vlgmr.msrb.gmra.mxu3 %vm3906_vm7, %v5561_v44 }
 0x822   : > { %9885 = vmatmul.msk.f32.vlgmr.msra.gmra.mxu1 %vm3906_vm7, %v5561_v44  ;;  %5921 = vmatpush.msrb.mxu3 %v9806_v58  ;;  %v9858_v58 = vld [vmem:[%s19635_s9 + $0x1518] sm:$0xff] }
 0x823   : > { %5944 = vmatpush.msra.mxu1 %v9870_v5  ;;  %v9790_v5 = vld [vmem:[%s19635_s9 + $0x12f8] sm:$0xff] }
 0x824   : > { %5922 = vmatpush.msrb.mxu3 %v9802_v56  ;;  %v9854_v56 = vld [vmem:[%s19635_s9 + $0x14f8] sm:$0xff] }
 0x825   : > { %5945 = vmatpush.msra.mxu1 %v9866_v8  ;;  %v9846_v8 = vld [vmem:[%s19635_s9 + $0x14b8] sm:$0xff] }
 0x826   : > { %5923 = vmatpush.msrb.mxu3 %v9798_v16  ;;  %v9850_v16 = vld [vmem:[%s19635_s9 + $0x14d8] sm:$0xff] }
 0x827   : > { %5946 = vmatpush.msra.mxu1 %v9862_v52  ;;  %v9786_v52 = vld [vmem:[%s19635_s9 + $0x12d8] sm:$0xff] }
 0x828   : > { %v5564_v48 = vpop.f32.mrf.mxu0  ;;  %5924 = vmatpush.msrb.mxu3 %v9794_v38  ;;  %v9782_v38 = vld [vmem:[%s19635_s9 + $0x12b8] sm:$0xff] }
 0x829   : > { %9889 = vmatmul.msk.f32.vlgmr.msrb.gmra.mxu2 %vm3906_vm7, %v5561_v44  ;;  %5947 = vmatpush.msra.mxu1 %v9858_v58  ;;  %v9778_v58 = vld [vmem:[%s19635_s9 + $0x1298] sm:$0xff] }
 0x82a   : > { %9884 = vmatmul.msk.f32.gmra.mxu3 %vm3906_vm7, %v5564_v48  ;;  %9886 = vmatmul.msk.f32.gmra.mxu1 %vm3906_vm7, %v5564_v48 }
 0x82b   : > { %5925 = vmatpush.msrb.mxu3 %v9790_v5  ;;  %5948 = vmatpush.msra.mxu1 %v9854_v56  ;;  %v9842_v5 = vld [vmem:[%s19635_s9 + $0x1498] sm:$0xff] }
 0x82c   : > { %v9774_v56 = vld [vmem:[%s19635_s9 + $0x1278] sm:$0xff] }
 0x82d   : > { %5926 = vmatpush.msrb.mxu3 %v9786_v52  ;;  %5949 = vmatpush.msra.mxu1 %v9850_v16  ;;  %v9838_v52 = vld [vmem:[%s19635_s9 + $0x1478] sm:$0xff] }
 0x82e   : > { %v9770_v16 = vld [vmem:[%s19635_s9 + $0x1258] sm:$0xff] }
 0x82f   : > { %5927 = vmatpush.msrb.mxu3 %v9782_v38  ;;  %5950 = vmatpush.msra.mxu1 %v9846_v8  ;;  %v9834_v38 = vld [vmem:[%s19635_s9 + $0x1458] sm:$0xff] }
 0x830   : > { %v9766_v8 = vld [vmem:[%s19635_s9 + $0x1238] sm:$0xff] }
 0x831   : > { %9890 = vmatmul.msk.f32.gmra.mxu2 %vm3906_vm7, %v5564_v48  ;;  %5928 = vmatpush.msrb.mxu3 %v9778_v58  ;;  %v9830_v58 = vld [vmem:[%s19635_s9 + $0x1438] sm:$0xff] }
 0x832   : > { %5951 = vmatpush.msra.mxu1 %v9842_v5  ;;  %5822 = vmatmul.f32.vlgmr.msra.gmra.mxu3 %v16182_v42  ;;  %v9826_v5 = vld [vmem:[%s19635_s9 + $0x1418] sm:$0xff] }
 0x833   : > { %9887 = vmatmul.msk.f32.vlgmr.msrb.gmra.mxu1 %vm3906_vm7, %v5561_v44  ;;  %5929 = vmatpush.msrb.mxu3 %v9774_v56  ;;  %v9762_v44 = vld [vmem:[%s19635_s9 + $0x1218] sm:$0xff] }
 0x834   : > { %5952 = vmatpush.msra.mxu1 %v9838_v52  ;;  %v9758_v56 = vld [vmem:[%s19635_s9 + $0x11f8] sm:$0xff] }
 0x835   : > { %5930 = vmatpush.msrb.mxu3 %v9770_v16  ;;  %v9822_v52 = vld [vmem:[%s19635_s9 + $0x13f8] sm:$0xff] }
 0x836   : > { %5953 = vmatpush.msra.mxu1 %v9834_v38  ;;  %v9754_v16 = vld [vmem:[%s19635_s9 + $0x11d8] sm:$0xff] }
 0x837   : > { %5931 = vmatpush.msrb.mxu3 %v9766_v8  ;;  %v9818_v38 = vld [vmem:[%s19635_s9 + $0x13d8] sm:$0xff] }
 0x838   : > { %5954 = vmatpush.msra.mxu1 %v9830_v58  ;;  %v9750_v8 = vld [vmem:[%s19635_s9 + $0x11b8] sm:$0xff] }
 0x839   : > { %5932 = vmatpush.msrb.mxu3 %v9762_v44  ;;  %v9814_v58 = vld [vmem:[%s19635_s9 + $0x13b8] sm:$0xff] }
 0x83a   : > { %5955 = vmatpush.msra.mxu1 %v9826_v5  ;;  %5825 = vmatmul.f32.gmra.mxu3 %v16194_v37  ;;  %v9810_v44 = vld [vmem:[%s19635_s9 + $0x1398] sm:$0xff]  ;;  %v5222_v5 = vpop.f32.mrf.mxu2 }
 0x83b   : > { %9888 = vmatmul.msk.f32.gmra.mxu1 %vm3906_vm7, %v5564_v48  ;;  %5933 = vmatpush.msrb.mxu3 %v9758_v56  ;;  %v9746_v48 = vld [vmem:[%s19635_s9 + $0x1198] sm:$0xff] }
 0x83c   : > { %5956 = vmatpush.msra.mxu1 %v9822_v52 }
 0x83d   : > { %5934 = vmatpush.msrb.mxu3 %v9754_v16 }
 0x83e   : > { %5957 = vmatpush.msra.mxu1 %v9818_v38 }
 0x83f   : > { %5935 = vmatpush.msrb.mxu3 %v9750_v8 }
 0x840   : > { %5958 = vmatpush.msra.mxu1 %v9814_v58 }
 0x841   : > { %5936 = vmatpush.msrb.mxu3 %v9746_v48 }
 0x842   : > { %5959 = vmatpush.msra.mxu1 %v9810_v44  ;;  %5937 = vmatmul.f32.vlgmr.msrb.gmra.mxu3 %v16076_v34  ;;  %v5225_v56 = vpop.f32.mrf.mxu2 }
 0x843   : > { %5960 = vmatmul.f32.vlgmr.msra.gmra.mxu1 %v16182_v42 }
 0x84a   : > { %5940 = vmatmul.f32.gmra.mxu3 %v16123_v57  ;;  %v16314_v52 = vpop.f32.mrf.mxu2 }
 0x84b   : > { %5963 = vmatmul.f32.gmra.mxu1 %v16194_v37  ;;  %19784 = vst [vmem:[#allocation51_spill] sm:$0xff] %v16314_v52  ;;  %v3954_v37 = vadd.f32 %v14706_v7, %v15060_v36  ;;  %v3957_v52 = vadd.f32 %v14730_v10, %v15099_v1 }
 0x84d   : > { %v3977_v54 = vadd.f32 %v14813_v2, %v3954_v37  ;;  %v4740_v2 = vadd.f32 %v15460_v29, %v15805_v25  ;;  %v4095_v29 = vadd.f32 %v14717_v9, %v14772_v21  ;;  %v19793_v37 = vld [vmem:[#allocation22_spill] sm:$0xff] }
 0x852   : > { %v16316_v16 = vpop.f32.mrf.mxu2 }
 0x853   : > { %19785 = vst [vmem:[#allocation52_spill] sm:$0xff] %v16316_v16 }
 0x85a   : > { %v16318_v38 = vpop.f32.mrf.mxu2 }
 0x85b   : > { %19786 = vst [vmem:[#allocation53_spill] sm:$0xff] %v16318_v38  ;;  %v5246_v38 = vadd.f32 %v15918_v47, %v5222_v5 }
 0x860   : > { %v5731_v48 = vpop.f32.mrf.mxu1  ;;  %v16326_v44 = vpop.f32.mrf.mxu0 }
 0x861   : > { %19790 = vst [vmem:[#allocation57_spill] sm:$0xff] %v16326_v44  ;;  %v4737_v44 = vadd.f32 %v15432_v13, %v15775_v41  ;;  %v4763_v41 = vadd.f32 %v15608_v22, %v4740_v2  ;;  %v4118_v22 = vadd.f32 %v15175_v17, %v4095_v29  ;;  %v19801_v29 = vld [vmem:[#allocation42_spill] sm:$0xff] }
 0x862   : > { %v16320_v8 = vpop.f32.mrf.mxu2 }
 0x863   : > { %19787 = vst [vmem:[#allocation54_spill] sm:$0xff] %v16320_v8  ;;  %v4760_v1 = vadd.f32 %v15588_v59, %v4737_v44  ;;  %v5384_v44 = vadd.f32 %v15956_v50, %v16011_v43  ;;  %v19794_v50 = vld [vmem:[#allocation15_spill] sm:$0xff]  ;;  %v19795_v43 = vld [vmem:[#allocation26_spill] sm:$0xff] }
 0x868   : > { %v5734_v42 = vpop.f32.mrf.mxu1  ;;  %v16335_v8 = vpop.f32.mrf.mxu0 }
 0x86a   : > { %v16322_v58 = vpop.f32.mrf.mxu2 }
 0x86b   : > { %19788 = vst [vmem:[#allocation55_spill] sm:$0xff] %v16322_v58  ;;  %v3980_v58 = vadd.f32 %v14852_v40, %v3957_v52  ;;  %v5249_v40 = vadd.f32 %v15958_v15, %v5225_v56  ;;  %v4354_v56 = vadd.f32 %v14981_v63, %v4118_v22 }
 0x86d   : > { %v4216_v7 = vadd.f32 %v14753_v61, %v3980_v58  ;;  %v5269_v61 = vadd.f32 %v16074_v18, %v5246_v38  ;;  %v16367_v18 = vld [vmem:[%s19636_s10] sm:$0xf]  ;;  %v4875_v58 = vadd.f32 %v15446_v20, %v15506_v11  ;;  %v4377_v63 = vadd.f32 %v14888_v28, %v4354_v56  ;;  %v19792_v28 = vld [vmem:[#allocation14_spill] sm:$0xff]  ;;  %v19807_v56 = vld [vmem:[#allocation57_spill] sm:$0xff] }
 0x86e   : > { %v6000_v38 = vperm.slane %v16367_v18, 0 }
 0x872   : > { %v16324_v34 = vpop.f32.mrf.mxu2 }
 0x873   : > { %19789 = vst [vmem:[#allocation56_spill] sm:$0xff] %v16324_v34  ;;  %v4213_v34 = vadd.f32 %v14735_v31, %v3977_v54  ;;  %v4092_v31 = vadd.f32 %v14695_v51, %v14748_v24  ;;  %v4239_v54 = vadd.f32 %v14919_v3, %v4216_v7  ;;  %v5272_v51 = vadd.f32 %v16121_v6, %v5249_v40  ;;  %v19797_v40 = vld [vmem:[#allocation54_spill] sm:$0xff] }
 0x874   : > { %v4026_v6 = vadd.f32 %v14923_v39, %v14659_v14 }
 0x875   : > { %v4236_v10 = vadd.f32 %v14886_v35, %v4213_v34  ;;  %v4115_v59 = vadd.f32 %v15151_v23, %v4092_v31  ;;  %v4262_v25 = vadd.f32 %v15075_v19, %v4239_v54  ;;  %v19798_v54 = vld [vmem:[#allocation21_spill] sm:$0xff] }
 0x876   : > { %v4049_v39 = vadd.f32 %v15144_v55, %v4026_v6 }
 0x877   : > { %v4259_v13 = vadd.f32 %v15044_v0, %v4236_v10  ;;  %v4023_v0 = vadd.f32 %v14890_v62, %v14619_v60  ;;  %v4351_v9 = vadd.f32 %v14947_v46, %v4115_v59  ;;  %v4976_v21 = vadd.f32 %v4763_v41, %v4262_v25  ;;  %v19796_v10 = vld [vmem:[#allocation13_spill] sm:$0xff]  ;;  %v19799_v41 = vld [vmem:[#allocation28_spill] sm:$0xff]  ;;  %v19802_v59 = vld [vmem:[#allocation47_spill] sm:$0xff] }
 0x878   : > { %v4285_v7 = vadd.f32 %v19793_v37, %v4049_v39  ;;  %v4400_v2 = vadd.f32 %v19796_v10, %v4377_v63  ;;  %v5315_v25 = vadd.f32 %v19802_v59, %v19801_v29  ;;  %v19810_v39 = vld [vmem:[#allocation51_spill] sm:$0xff]  ;;  %v19815_v37 = vld [vmem:[#allocation32_spill] sm:$0xff]  ;;  %v19819_v29 = vld [vmem:[#allocation38_spill] sm:$0xff] }
 0x879   : > { %v4972_v15 = vadd.f32 %v4760_v1, %v4259_v13  ;;  %v5485_v60 = vadd.f32 %v5272_v51, %v4976_v21  ;;  %v4046_v46 = vadd.f32 %v15134_v4, %v4023_v0  ;;  %v19804_v21 = vld [vmem:[#allocation33_spill] sm:$0xff] }
 0x87a   : > { %v5338_v63 = vadd.f32 %v19810_v39, %v5315_v25  ;;  %v19820_v25 = vld [vmem:[#allocation39_spill] sm:$0xff]  ;;  %v19831_v39 = vld [vmem:[#allocation56_spill] sm:$0xff] }
 0x87b   : > { %v5481_v23 = vadd.f32 %v5269_v61, %v4972_v15  ;;  %v19800_v61 = vld [vmem:[#allocation29_spill] sm:$0xff] }
 0x886   : > { %v5892_v24 = vpop.f32.mrf.mxu0 }
 0x88c   : > { %v5754_v57 = vpop.f32.mrf.mxu2 }
 0x88d   : > { %v5755_v47 = vadd.f32 %v5754_v57, %v5731_v48  ;;  %v4374_v48 = vadd.f32 %v14857_v33, %v4351_v9 }
 0x88f   : > { %v4397_v20 = vadd.f32 %v15316_v53, %v4374_v48  ;;  %v4806_v53 = vadd.f32 %v19795_v43, %v19794_v50  ;;  %v19808_v48 = vld [vmem:[#allocation16_spill] sm:$0xff] }
 0x894   : > { %v5757_v32 = vpop.f32.mrf.mxu2 }
 0x895   : > { %v5758_v19 = vadd.f32 %v5757_v32, %v5734_v42  ;;  %v4878_v32 = vadd.f32 %v15471_v26, %v15547_v49  ;;  %v4898_v42 = vadd.f32 %v15822_v30, %v4875_v58  ;;  %v5387_v26 = vadd.f32 %v16022_v45, %v16063_v27  ;;  %v19791_v49 = vld [vmem:[#allocation53_spill] sm:$0xff] }
 0x896   : > { %v5407_v55 = vadd.f32 %v19791_v49, %v5384_v44  ;;  %v4282_v30 = vadd.f32 %v19792_v28, %v4046_v46  ;;  %v6002_v46 = vperm.slane %v16367_v18, 2  ;;  %v19812_v44 = vld [vmem:[#allocation40_spill] sm:$0xff] }
 0x897   : > { %v4901_v4 = vadd.f32 %v15833_v12, %v4878_v32  ;;  %v4974_v1 = vadd.f32 %v4898_v42, %v4397_v20  ;;  %v5410_v31 = vadd.f32 %v19797_v40, %v5387_v26  ;;  %v19811_v42 = vld [vmem:[#allocation30_spill] sm:$0xff]  ;;  %v19813_v26 = vld [vmem:[#allocation17_spill] sm:$0xff] }
 0x898   : > { %v4305_v13 = vadd.f32 %v19798_v54, %v4282_v30  ;;  %v4161_v20 = vadd.f32 %v19812_v44, %v19811_v42  ;;  %v19817_v40 = vld [vmem:[#allocation25_spill] sm:$0xff] }
 0x899   : > { %v4978_v0 = vadd.f32 %v4901_v4, %v4400_v2  ;;  %v5483_v22 = vadd.f32 %v5407_v55, %v4974_v1 }
 0x89a   : > { %v4328_v32 = vadd.f32 %v19808_v48, %v4305_v13  ;;  %v6001_v13 = vperm.slane %v16367_v18, 1 }
 0x89c   : > { %v5869_v5 = vpop.f32.mrf.mxu2 }
 0x89d   : > { %v5893_v57 = vadd.f32 %v5892_v24, %v5869_v5  ;;  %v19803_v24 = vld [vmem:[#allocation36_spill] sm:$0xff] }
 0x89e   : > { %v19806_v5 = vld [vmem:[#allocation48_spill] sm:$0xff] }
 0x89f   : > { %v16332_v16 = vpop.f32.mrf.mxu1 }
 0x8a4   : > { %v5777_v36 = vpop.f32.mrf.mxu3  ;;  %v5872_v15 = vpop.f32.mrf.mxu2 }
 0x8a5   : > { %v5778_v3 = vadd.f32 %v5777_v36, %v5755_v47  ;;  %v5895_v36 = vpop.f32.mrf.mxu0  ;;  %v4809_v47 = vadd.f32 %v19800_v61, %v19799_v41  ;;  %v19818_v41 = vld [vmem:[#allocation27_spill] sm:$0xff] }
 0x8a6   : > { %v5896_v9 = vadd.f32 %v5895_v36, %v5872_v15 }
 0x8a7   : > { %v16354_v35 = vpop.f32.mrf.mxu1  ;;  %v5990_v62 = vadd.f32 %v5778_v3, %v5481_v23  ;;  %v4308_v3 = vadd.f32 %v19803_v24, %v4285_v7  ;;  %v4829_v23 = vadd.f32 %v19804_v21, %v4806_v53  ;;  %v19816_v7 = vld [vmem:[#allocation41_spill] sm:$0xff] }
 0x8a8   : > { %v4164_v50 = vadd.f32 %v19816_v7, %v19815_v37  ;;  %v6270_v37 = vld [vmem:[%s19639_s13 + $0x1e0] sm:$0xff]  ;;  %v19835_v7 = vld [vmem:[#allocation34_spill] sm:$0xff] }
 0x8a9   : > { %v16389_v33 = vadd.f32 %v6000_v38, %v5990_v62  ;;  %v16420_v62 = vld [vmem:[%s19637_s11] sm:$0x1f]  ;;  %v4331_v49 = vadd.f32 %v19813_v26, %v4308_v3  ;;  %v4973_v55 = vadd.f32 %v4829_v23, %v4328_v32 }
 0x8aa   : > { %v4187_v61 = vadd.f32 %v19818_v41, %v4164_v50  ;;  %v19822_v3 = vld [vmem:[#allocation31_spill] sm:$0xff]  ;;  %v19829_v32 = vld [vmem:[#allocation12_spill] sm:$0xff] }
 0x8ab   : > { %v6016_v51 = vmax.f32 %v16389_v33, 0.0  ;;  %v5482_v2 = vadd.f32 %v5338_v63, %v4973_v55  ;;  %v19832_v26 = vld [vmem:[#allocation19_spill] sm:$0xff]  ;;  %v19833_v55 = vld [vmem:[#allocation18_spill] sm:$0xff] }
 0x8ac   : > { %v4423_v15 = vadd.f32 %v19820_v25, %v4187_v61  ;;  %v5984_v21 = vpop.f32.mrf.mxu2  ;;  %v6003_v25 = vperm.slane %v16367_v18, 3  ;;  %v6264_v33 = vld [vmem:[%s19639_s13 + $0x1b0] sm:$0xff]  ;;  %v6234_v18 = vld [vmem:[%s19639_s13 + $0xc0] sm:$0xff] }
 0x8ad   : > { %v5780_v52 = vpop.f32.mrf.mxu3 }
 0x8ae   : > { %v5781_v17 = vadd.f32 %v5780_v52, %v5758_v19  ;;  %v19805_v19 = vld [vmem:[#allocation44_spill] sm:$0xff] }
 0x8af   : > { %v5318_v6 = vadd.f32 %v19806_v5, %v19805_v19  ;;  %v19823_v19 = vld [vmem:[#allocation20_spill] sm:$0xff] }
 0x8b0   : > { %v5994_v34 = vadd.f32 %v5781_v17, %v5485_v60  ;;  %v5915_v14 = vpop.f32.mrf.mxu1  ;;  %v5487_v17 = vadd.f32 %v5410_v31, %v4978_v0  ;;  %v4184_v31 = vadd.f32 %v19817_v40, %v4161_v20  ;;  %v6272_v20 = vld [vmem:[%s19639_s13 + $0x1f0] sm:$0xff] }
 0x8b1   : > { %v5916_v45 = vadd.f32 %v5915_v14, %v5893_v57  ;;  %v19814_v57 = vld [vmem:[#allocation52_spill] sm:$0xff]  ;;  %v6268_v40 = vld [vmem:[%s19639_s13 + $0x1d0] sm:$0xff] }
 0x8b2   : > { %v16387_v11 = vadd.f32 %v6000_v38, %v5994_v34  ;;  %v19809_v34 = vld [vmem:[#allocation37_spill] sm:$0xff]  ;;  %v5341_v28 = vadd.f32 %v19814_v57, %v5318_v6  ;;  %v19824_v6 = vld [vmem:[#allocation24_spill] sm:$0xff] }
 0x8b3   : > { %v5992_v38 = vadd.f32 %v5916_v45, %v5483_v22  ;;  %v4832_v14 = vadd.f32 %v19809_v34, %v4809_v47 }
 0x8b4   : > { %v6020_v12 = vmax.f32 %v16387_v11, 0.0  ;;  %v6266_v11 = vld [vmem:[%s19639_s13 + $0x1c0] sm:$0xff]  ;;  %v5987_v61 = vpop.f32.mrf.mxu2 }
 0x8b5   : > { %v5823_v27 = vpop.f32.mrf.mxu3  ;;  %v16437_v36 = vadd.f32 %v6002_v46, %v5992_v38  ;;  %v4977_v10 = vadd.f32 %v4832_v14, %v4331_v49  ;;  %v19830_v14 = vld [vmem:[#allocation50_spill] sm:$0xff] }
 0x8b6   : > { %9891 = vmatpush.msk.msra.mxu0 %vm6029_vm8, %v6020_v12  ;;  %v5824_v52 = vadd.f32 %v5823_v27, %v19807_v56  ;;  %v19825_v56 = vld [vmem:[#allocation43_spill] sm:$0xff]  ;;  %v5456_v63 = vadd.f32 %v19831_v39, %v19830_v14 }
 0x8b7   : > { %v5486_v27 = vadd.f32 %v5341_v28, %v4977_v10  ;;  %v6018_v47 = vmax.f32 %v16437_v36, 0.0  ;;  %v19834_v28 = vld [vmem:[#allocation45_spill] sm:$0xff]  ;;  %v19836_v10 = vld [vmem:[#allocation46_spill] sm:$0xff]  ;;  %v6302_v36 = vld [vmem:[%s19639_s13 + $0x2e0] sm:$0xff] }
 0x8b8   : > { %v5918_v60 = vpop.f32.mrf.mxu1  ;;  %6057 = vmatpush.msra.mxu0 %v6016_v51  ;;  %v5847_v30 = vadd.f32 %v16332_v16, %v5824_v52  ;;  %v4947_v52 = vadd.f32 %v19825_v56, %v19824_v6  ;;  %v6230_v6 = vld [vmem:[%s19639_s13 + $0xa0] sm:$0xff]  ;;  %v6332_v56 = vld [vmem:[%s19639_s13 + $0x3d0] sm:$0xff] }
 0x8b9   : > { %v5919_v58 = vadd.f32 %v5918_v60, %v5896_v9  ;;  %9892 = vmatmul.msk.f32.vlgmr.msra.gmra.mxu0 %vm6025_vm9, %v16420_v62  ;;  %v19826_v60 = vld [vmem:[#allocation49_spill] sm:$0xff]  ;;  %v6222_v14 = vld [vmem:[%s19639_s13 + $0x60] sm:$0xff] }
 0x8ba   : > { %v5991_v54 = vadd.f32 %v5847_v30, %v5482_v2  ;;  %v4970_v57 = vadd.f32 %v19833_v55, %v4947_v52  ;;  %v5479_v2 = vadd.f32 %v19836_v10, %v5456_v63  ;;  %v6254_v52 = vld [vmem:[%s19639_s13 + $0x160] sm:$0xff] }
 0x8bb   : > { %v5996_v4 = vadd.f32 %v5919_v58, %v5487_v17  ;;  %v19827_v17 = vld [vmem:[#allocation55_spill] sm:$0xff] }
 0x8bc   : > { %v6009_v9 = vadd.f32 %v6001_v13, %v5991_v54  ;;  %v5453_v38 = vadd.f32 %v19827_v17, %v19826_v60  ;;  %v6330_v60 = vld [vmem:[%s19639_s13 + $0x3c0] sm:$0xff] }
 0x8bd   : > { %v16435_v43 = vadd.f32 %v6002_v46, %v5996_v4  ;;  %v5826_v53 = vpop.f32.mrf.mxu3  ;;  %v19828_v46 = vld [vmem:[#allocation23_spill] sm:$0xff] }
 0x8be   : > { %v5827_v1 = vadd.f32 %v5826_v53, %v16335_v8  ;;  %v4420_v8 = vadd.f32 %v19819_v29, %v4184_v31  ;;  %v4446_v48 = vadd.f32 %v19828_v46, %v4423_v15  ;;  %v6017_v44 = vmax.f32 %v6009_v9, 0.0  ;;  %v16474_v4 = vld [vmem:[%s19638_s12] sm:$0x1f]  ;;  %v6240_v31 = vld [vmem:[%s19639_s13 + $0xf0] sm:$0xff] }
 0x8bf   : > { %v6022_v45 = vmax.f32 %v16435_v43, 0.0  ;;  %v5476_v30 = vadd.f32 %v19834_v28, %v5453_v38  ;;  %v6258_v9 = vld [vmem:[%s19639_s13 + $0x180] sm:$0xff]  ;;  %v6304_v43 = vld [vmem:[%s19639_s13 + $0x2f0] sm:$0xff] }
 0x8c0   : > { %v5850_v16 = vadd.f32 %v16354_v35, %v5827_v1  ;;  %v5961_v24 = vpop.f32.mrf.mxu1  ;;  %v19821_v35 = vld [vmem:[#allocation35_spill] sm:$0xff]  ;;  %v4443_v5 = vadd.f32 %v19823_v19, %v4420_v8  ;;  %v4469_v50 = vadd.f32 %v19835_v7, %v4446_v48  ;;  %v6328_v38 = vld [vmem:[%s19639_s13 + $0x3b0] sm:$0xff] }
 0x8c1   : > { %9895 = vmatpush.msk.msra.mxu3 %vm6029_vm8, %v6022_v45  ;;  %v4944_v0 = vadd.f32 %v19822_v3, %v19821_v35  ;;  %v6334_v19 = vld [vmem:[%s19639_s13 + $0x3e0] sm:$0xf]  ;;  %v6224_v46 = vld [vmem:[%s19639_s13 + $0x70] sm:$0xff] }
 0x8c2   : > { %v5995_v59 = vadd.f32 %v5850_v16, %v5486_v27  ;;  %v4466_v49 = vadd.f32 %v19832_v26, %v4443_v5  ;;  %v4979_v16 = vadd.f32 %v4970_v57, %v4469_v50  ;;  %v6256_v5 = vld [vmem:[%s19639_s13 + $0x170] sm:$0xff]  ;;  %v6226_v17 = vld [vmem:[%s19639_s13 + $0x80] sm:$0xff] }
 0x8c3   : > { %6097 = vmatpush.msra.mxu3 %v6018_v47  ;;  %v4967_v34 = vadd.f32 %v19829_v32, %v4944_v0  ;;  %v6260_v0 = vld [vmem:[%s19639_s13 + $0x190] sm:$0xff]  ;;  %v6246_v39 = vld [vmem:[%s19639_s13 + $0x120] sm:$0xff] }
 0x8c4   : > { %v6013_v22 = vadd.f32 %v6001_v13, %v5995_v59  ;;  %9896 = vmatmul.msk.f32.vlgmr.msra.gmra.mxu3 %vm6025_vm9, %v16420_v62  ;;  %v5488_v29 = vadd.f32 %v5479_v2, %v4979_v16  ;;  %v6248_v48 = vld [vmem:[%s19639_s13 + $0x130] sm:$0xff]  ;;  %v6298_v63 = vld [vmem:[%s19639_s13 + $0x2c0] sm:$0xff]  ;;  %v6267_v16 = vld [vmem:[%s19639_s13 + $0x1c8] sm:$0xff] }
 0x8c5   : > { %v5938_v23 = vpop.f32.mrf.mxu3  ;;  %v4975_v53 = vadd.f32 %v4967_v34, %v4466_v49  ;;  %v6300_v32 = vld [vmem:[%s19639_s13 + $0x2d0] sm:$0xff]  ;;  %v6218_v49 = vld [vmem:[%s19639_s13 + $0x40] sm:$0xff] }
 0x8c6   : > { %v6021_v58 = vmax.f32 %v6013_v22, 0.0  ;;  %v5962_v42 = vadd.f32 %v5961_v24, %v5938_v23  ;;  %v6262_v24 = vld [vmem:[%s19639_s13 + $0x1a0] sm:$0xff]  ;;  %v6324_v34 = vld [vmem:[%s19639_s13 + $0x390] sm:$0xff] }
 0x8c7   : > { %v5484_v13 = vadd.f32 %v5476_v30, %v4975_v53  ;;  %v6320_v26 = vld [vmem:[%s19639_s13 + $0x370] sm:$0xff]  ;;  %v6242_v55 = vld [vmem:[%s19639_s13 + $0x100] sm:$0xff]  ;;  %v6273_v30 = vld [vmem:[%s19639_s13 + $0x1f8] sm:$0xff] }
 0x8c8   : > { %9893 = vmatpush.msk.msra.mxu2 %vm6029_vm8, %v6021_v58  ;;  %9901 = vmatpush.msk.msrb.mxu3 %vm6029_vm8, %v6021_v58  ;;  %v5985_v1 = vadd.f32 %v5984_v21, %v5962_v42  ;;  %v5964_v27 = vpop.f32.mrf.mxu1  ;;  %v6232_v21 = vld [vmem:[%s19639_s13 + $0xb0] sm:$0xff]  ;;  %v6326_v58 = vld [vmem:[%s19639_s13 + $0x3a0] sm:$0xff]  ;;  %v6271_v53 = vld [vmem:[%s19639_s13 + $0x1e8] sm:$0xff] }
 0x8c9   : > { %v6322_v42 = vld [vmem:[%s19639_s13 + $0x380] sm:$0xff]  ;;  %v6292_v7 = vld [vmem:[%s19639_s13 + $0x290] sm:$0xff] }
 0x8ca   : > { %6077 = vmatpush.msra.mxu2 %v6017_v44  ;;  %6161 = vmatpush.msrb.mxu3 %v6017_v44  ;;  %v5993_v8 = vadd.f32 %v5985_v1, %v5484_v13  ;;  %v6220_v44 = vld [vmem:[%s19639_s13 + $0x50] sm:$0xff]  ;;  %v6294_v57 = vld [vmem:[%s19639_s13 + $0x2a0] sm:$0xff] }
 0x8cb   : > { %9894 = vmatmul.msk.f32.vlgmr.msra.gmra.mxu2 %vm6025_vm9, %v16420_v62  ;;  %v6318_v28 = vld [vmem:[%s19639_s13 + $0x360] sm:$0xff]  ;;  %v6316_v50 = vld [vmem:[%s19639_s13 + $0x350] sm:$0xff] }
 0x8cc   : > { %6366 = vmatpush.msra.mxu3 %v6272_v20  ;;  %9899 = vmatpush.msk.msrb.mxu2 %vm6029_vm8, %v6020_v12  ;;  %v6238_v12 = vld [vmem:[%s19639_s13 + $0xe0] sm:$0xff]  ;;  %v6011_v3 = vadd.f32 %v6003_v25, %v5993_v8  ;;  %v6244_v20 = vld [vmem:[%s19639_s13 + $0x110] sm:$0xff] }
 0x8cd   : > { %9902 = vmatmul.msk.f32.vlgmr.msrb.gmra.mxu3 %vm6025_vm9, %v16474_v4  ;;  %v5941_v54 = vpop.f32.mrf.mxu3  ;;  %v6214_v10 = vld [vmem:[%s19639_s13 + $0x20] sm:$0xff]  ;;  %v6308_v8 = vld [vmem:[%s19639_s13 + $0x310] sm:$0xff] }
 0x8ce   : > { %6367 = vmatpush.msra.mxu3 %v6270_v37  ;;  %v5965_v41 = vadd.f32 %v5964_v27, %v5941_v54  ;;  %6141 = vmatpush.msrb.mxu2 %v6016_v51  ;;  %v6236_v51 = vld [vmem:[%s19639_s13 + $0xd0] sm:$0xff]  ;;  %v6019_v23 = vmax.f32 %v6011_v3, 0.0  ;;  %v6290_v2 = vld [vmem:[%s19639_s13 + $0x280] sm:$0xff]  ;;  %v6235_v3 = vld [vmem:[%s19639_s13 + $0xc8] sm:$0xff] }
 0x8cf   : > { %v6216_v37 = vld [vmem:[%s19639_s13 + $0x30] sm:$0xff]  ;;  %v6314_v1 = vld [vmem:[%s19639_s13 + $0x340] sm:$0xff] }
 0x8d0   : > { %6368 = vmatpush.msra.mxu3 %v6268_v40  ;;  %6346 = vmatpush.msra.mxu2 %v6240_v31  ;;  %v5988_v59 = vadd.f32 %v5987_v61, %v5965_v41  ;;  %v6269_v40 = vld [vmem:[%s19639_s13 + $0x1d8] sm:$0xff]  ;;  %v6212_v31 = vld [vmem:[%s19639_s13 + $0x10] sm:$0xff]  ;;  %v6210_v13 = vld [vmem:[%s19639_s13] sm:$0xff] }
 0x8d1   : > { %v6288_v27 = vld [vmem:[%s19639_s13 + $0x270] sm:$0xff]  ;;  %v6286_v41 = vld [vmem:[%s19639_s13 + $0x260] sm:$0xff]  ;;  %v6265_v61 = vld [vmem:[%s19639_s13 + $0x1b8] sm:$0xff] }
 0x8d2   : > { %6369 = vmatpush.msra.mxu3 %v6266_v11  ;;  %6347 = vmatpush.msra.mxu2 %v6238_v12  ;;  %v5997_v15 = vadd.f32 %v5988_v59, %v5488_v29  ;;  %v6312_v54 = vld [vmem:[%s19639_s13 + $0x330] sm:$0xff]  ;;  %v6310_v11 = vld [vmem:[%s19639_s13 + $0x320] sm:$0xff]  ;;  %v6241_v12 = vld [vmem:[%s19639_s13 + $0xf8] sm:$0xff] }
 0x8d3   : > { %9900 = vmatmul.msk.f32.vlgmr.msrb.gmra.mxu2 %vm6025_vm9, %v16474_v4  ;;  %v6284_v29 = vld [vmem:[%s19639_s13 + $0x250] sm:$0xff]  ;;  %v6239_v59 = vld [vmem:[%s19639_s13 + $0xe8] sm:$0xff] }
 0x8d4   : > { %6370 = vmatpush.msra.mxu3 %v6264_v33  ;;  %v6015_v35 = vadd.f32 %v6003_v25, %v5997_v15  ;;  %6348 = vmatpush.msra.mxu2 %v6236_v51  ;;  %v6263_v25 = vld [vmem:[%s19639_s13 + $0x1a8] sm:$0xff]  ;;  %v6282_v33 = vld [vmem:[%s19639_s13 + $0x240] sm:$0xff]  ;;  %v6237_v15 = vld [vmem:[%s19639_s13 + $0xd8] sm:$0xff] }
 0x8d5   : > { %v6306_v51 = vld [vmem:[%s19639_s13 + $0x300] sm:$0xff] }
 0x8d6   : > { %6371 = vmatpush.msra.mxu3 %v6262_v24  ;;  %v6023_v22 = vmax.f32 %v6015_v35, 0.0  ;;  %6349 = vmatpush.msra.mxu2 %v6234_v18  ;;  %v6305_v24 = vld [vmem:[%s19639_s13 + $0x2f8] sm:$0xff]  ;;  %v6280_v35 = vld [vmem:[%s19639_s13 + $0x230] sm:$0xff] }
 0x8d7   : > { %v6261_v18 = vld [vmem:[%s19639_s13 + $0x198] sm:$0xff] }
 0x8d8   : > { %6372 = vmatpush.msra.mxu3 %v6260_v0  ;;  %9897 = vmatpush.msk.msrb.mxu0 %vm6029_vm8, %v6023_v22  ;;  %v6303_v0 = vld [vmem:[%s19639_s13 + $0x2e8] sm:$0xff] }
 0x8d9   : > { %9905 = vmatpush.msk.msrb.mxu1 %vm6029_vm8, %v6023_v22  ;;  %6350 = vmatpush.msra.mxu2 %v6232_v21  ;;  %v6259_v22 = vld [vmem:[%s19639_s13 + $0x188] sm:$0xff]  ;;  %v6233_v21 = vld [vmem:[%s19639_s13 + $0xb8] sm:$0xff] }
 0x8da   : > { %6373 = vmatpush.msra.mxu3 %v6258_v9  ;;  %6117 = vmatpush.msrb.mxu0 %v6019_v23  ;;  %v6278_v9 = vld [vmem:[%s19639_s13 + $0x220] sm:$0xff] }
 0x8db   : > { %6201 = vmatpush.msrb.mxu1 %v6019_v23  ;;  %9898 = vmatmul.msk.f32.vlgmr.msrb.gmra.mxu0 %vm6025_vm9, %v16420_v62  ;;  %v6228_v62 = vld [vmem:[%s19639_s13 + $0x90] sm:$0xff]  ;;  %v6301_v23 = vld [vmem:[%s19639_s13 + $0x2d8] sm:$0xff] }
 0x8dc   : > { %9906 = vmatmul.msk.f32.vlgmr.msrb.gmra.mxu1 %vm6025_vm9, %v16474_v4  ;;  %9903 = vmatpush.msk.msra.mxu0 %vm6029_vm8, %v6022_v45  ;;  %v6252_v45 = vld [vmem:[%s19639_s13 + $0x150] sm:$0xff] }
 0x8dd   : > { %9907 = vmatpush.msk.msra.mxu1 %vm2072_vm2, %v6334_v19  ;;  %6374 = vmatpush.msra.mxu3 %v6256_v5  ;;  %v6257_v19 = vld [vmem:[%s19639_s13 + $0x178] sm:$0xff]  ;;  %v6276_v5 = vld [vmem:[%s19639_s13 + $0x210] sm:$0xff] }
 0x8de   : > { %6351 = vmatpush.msra.mxu2 %v6230_v6  ;;  %6181 = vmatpush.msra.mxu0 %v6018_v47  ;;  %v6250_v47 = vld [vmem:[%s19639_s13 + $0x140] sm:$0xff]  ;;  %v6231_v6 = vld [vmem:[%s19639_s13 + $0xa8] sm:$0xff] }
 0x8df   : > { %6408 = vmatpush.msra.mxu1 %v6332_v56  ;;  %6375 = vmatpush.msra.mxu3 %v6254_v52  ;;  %v6299_v56 = vld [vmem:[%s19639_s13 + $0x2c8] sm:$0xff] }
 0x8e0   : > { %6352 = vmatpush.msra.mxu2 %v6228_v62  ;;  %6386 = vmatpush.msrb.mxu0 %v6304_v43  ;;  %v6255_v52 = vld [vmem:[%s19639_s13 + $0x168] sm:$0xff]  ;;  %v6274_v62 = vld [vmem:[%s19639_s13 + $0x200] sm:$0xff]  ;;  %v6229_v43 = vld [vmem:[%s19639_s13 + $0x98] sm:$0xff] }
 0x8e1   : > { %6409 = vmatpush.msra.mxu1 %v6330_v60  ;;  %6376 = vmatpush.msra.mxu3 %v6252_v45  ;;  %v6297_v60 = vld [vmem:[%s19639_s13 + $0x2b8] sm:$0xff] }
 0x8e2   : > { %6353 = vmatpush.msra.mxu2 %v6226_v17  ;;  %6387 = vmatpush.msrb.mxu0 %v6302_v36  ;;  %v6253_v45 = vld [vmem:[%s19639_s13 + $0x158] sm:$0xff]  ;;  %v6295_v17 = vld [vmem:[%s19639_s13 + $0x2a8] sm:$0xff] }
 0x8e3   : > { %6410 = vmatpush.msra.mxu1 %v6328_v38  ;;  %9904 = vmatmul.msk.f32.vlgmr.msra.gmra.mxu0 %vm6025_vm9, %v16474_v4  ;;  %v6296_v4 = vld [vmem:[%s19639_s13 + $0x2b0] sm:$0xff]  ;;  %v6335_v38 = vld [vmem:[%s19639_s13 + $0x3e8] sm:$0xf] }
 0x8e4   : > { %6377 = vmatpush.msra.mxu3 %v6250_v47  ;;  %6354 = vmatpush.msra.mxu2 %v6224_v46  ;;  %v6227_v36 = vld [vmem:[%s19639_s13 + $0x88] sm:$0xff]  ;;  %v6333_v46 = vld [vmem:[%s19639_s13 + $0x3d8] sm:$0xff] }
 0x8e5   : > { %6411 = vmatpush.msra.mxu1 %v6326_v58  ;;  %6388 = vmatpush.msrb.mxu0 %v6300_v32  ;;  %v6251_v47 = vld [vmem:[%s19639_s13 + $0x148] sm:$0xff]  ;;  %v6293_v58 = vld [vmem:[%s19639_s13 + $0x298] sm:$0xff] }
 0x8e6   : > { %6378 = vmatpush.msra.mxu3 %v6248_v48  ;;  %6355 = vmatpush.msra.mxu2 %v6222_v14  ;;  %v6225_v48 = vld [vmem:[%s19639_s13 + $0x78] sm:$0xff]  ;;  %v6331_v14 = vld [vmem:[%s19639_s13 + $0x3c8] sm:$0xff] }
 0x8e7   : > { %6412 = vmatpush.msra.mxu1 %v6324_v34  ;;  %6389 = vmatpush.msrb.mxu0 %v6298_v63  ;;  %v6249_v32 = vld [vmem:[%s19639_s13 + $0x138] sm:$0xff]  ;;  %v6291_v34 = vld [vmem:[%s19639_s13 + $0x288] sm:$0xff] }
 0x8e8   : > { %6379 = vmatpush.msra.mxu3 %v6246_v39  ;;  %6356 = vmatpush.msra.mxu2 %v6220_v44  ;;  %v6223_v39 = vld [vmem:[%s19639_s13 + $0x68] sm:$0xff]  ;;  %v6329_v44 = vld [vmem:[%s19639_s13 + $0x3b8] sm:$0xff] }
 0x8e9   : > { %6413 = vmatpush.msra.mxu1 %v6322_v42  ;;  %6390 = vmatpush.msrb.mxu0 %v6296_v4  ;;  %v6247_v63 = vld [vmem:[%s19639_s13 + $0x128] sm:$0xff]  ;;  %v6289_v42 = vld [vmem:[%s19639_s13 + $0x278] sm:$0xff] }
 0x8ea   : > { %6380 = vmatpush.msra.mxu3 %v6244_v20  ;;  %6357 = vmatpush.msra.mxu2 %v6218_v49  ;;  %v6221_v20 = vld [vmem:[%s19639_s13 + $0x58] sm:$0xff]  ;;  %v6327_v49 = vld [vmem:[%s19639_s13 + $0x3a8] sm:$0xff] }
 0x8eb   : > { %6414 = vmatpush.msra.mxu1 %v6320_v26  ;;  %6391 = vmatpush.msrb.mxu0 %v6294_v57  ;;  %v6245_v4 = vld [vmem:[%s19639_s13 + $0x118] sm:$0xff]  ;;  %v6287_v26 = vld [vmem:[%s19639_s13 + $0x268] sm:$0xff] }
 0x8ec   : > { %6381 = vmatpush.msra.mxu3 %v6242_v55  ;;  %6358 = vmatpush.msra.mxu2 %v6216_v37  ;;  %v6219_v55 = vld [vmem:[%s19639_s13 + $0x48] sm:$0xff]  ;;  %v6217_v37 = vld [vmem:[%s19639_s13 + $0x38] sm:$0xff] }
 0x8ed   : > { %6415 = vmatpush.msra.mxu1 %v6318_v28  ;;  %6392 = vmatpush.msrb.mxu0 %v6292_v7  ;;  %v6243_v57 = vld [vmem:[%s19639_s13 + $0x108] sm:$0xff]  ;;  %v6285_v28 = vld [vmem:[%s19639_s13 + $0x258] sm:$0xff] }
 0x8ee   : > { %6446 = vmatpush.msrb.mxu3 %v6273_v30  ;;  %6359 = vmatpush.msra.mxu2 %v6214_v10  ;;  %v6325_v30 = vld [vmem:[%s19639_s13 + $0x398] sm:$0xff]  ;;  %v6283_v7 = vld [vmem:[%s19639_s13 + $0x248] sm:$0xff] }
 0x8ef   : > { %6416 = vmatpush.msra.mxu1 %v6316_v50  ;;  %6393 = vmatpush.msrb.mxu0 %v6290_v2  ;;  %v6323_v50 = vld [vmem:[%s19639_s13 + $0x388] sm:$0xff]  ;;  %v6281_v10 = vld [vmem:[%s19639_s13 + $0x238] sm:$0xff] }
 0x8f0   : > { %6447 = vmatpush.msrb.mxu3 %v6271_v53  ;;  %6360 = vmatpush.msra.mxu2 %v6212_v31  ;;  %v6215_v53 = vld [vmem:[%s19639_s13 + $0x28] sm:$0xff]  ;;  %v6321_v2 = vld [vmem:[%s19639_s13 + $0x378] sm:$0xff] }
 0x8f1   : > { %6417 = vmatpush.msra.mxu1 %v6314_v1  ;;  %6394 = vmatpush.msrb.mxu0 %v6288_v27  ;;  %v6213_v1 = vld [vmem:[%s19639_s13 + $0x18] sm:$0xff]  ;;  %v6319_v31 = vld [vmem:[%s19639_s13 + $0x368] sm:$0xff] }
 0x8f2   : > { %6448 = vmatpush.msrb.mxu3 %v6269_v40  ;;  %6361 = vmatpush.msra.mxu2 %v6210_v13  ;;  %v6279_v40 = vld [vmem:[%s19639_s13 + $0x228] sm:$0xff] }
 0x8f3   : > { %6418 = vmatpush.msra.mxu1 %v6312_v54  ;;  %6395 = vmatpush.msrb.mxu0 %v6286_v41  ;;  %v6211_v27 = vld [vmem:[%s19639_s13 + $0x8] sm:$0xff]  ;;  %v6277_v54 = vld [vmem:[%s19639_s13 + $0x218] sm:$0xff] }
 0x8f4   : > { %6449 = vmatpush.msrb.mxu3 %v6267_v16  ;;  %6426 = vmatpush.msrb.mxu2 %v6241_v12  ;;  %v6317_v16 = vld [vmem:[%s19639_s13 + $0x358] sm:$0xff]  ;;  %v6275_v13 = vld [vmem:[%s19639_s13 + $0x208] sm:$0xff] }
 0x8f5   : > { %6419 = vmatpush.msra.mxu1 %v6310_v11  ;;  %6396 = vmatpush.msrb.mxu0 %v6284_v29  ;;  %v6315_v41 = vld [vmem:[%s19639_s13 + $0x348] sm:$0xff]  ;;  %v6313_v11 = vld [vmem:[%s19639_s13 + $0x338] sm:$0xff] }
 0x8f6   : > { %6450 = vmatpush.msrb.mxu3 %v6265_v61  ;;  %6427 = vmatpush.msrb.mxu2 %v6239_v59  ;;  %v6311_v12 = vld [vmem:[%s19639_s13 + $0x328] sm:$0xff]  ;;  %v6309_v61 = vld [vmem:[%s19639_s13 + $0x318] sm:$0xff] }
 0x8f7   : > { %6420 = vmatpush.msra.mxu1 %v6308_v8  ;;  %6397 = vmatpush.msrb.mxu0 %v6282_v33  ;;  %v6307_v29 = vld [vmem:[%s19639_s13 + $0x308] sm:$0xff] }
 0x8f8   : > { %6451 = vmatpush.msrb.mxu3 %v6263_v25  ;;  %6428 = vmatpush.msrb.mxu2 %v6237_v15  ;;  %v6568_v15 = vld [vmem:[%s19640_s14 + $0x1f0] sm:$0xff] }
 0x8f9   : > { %6421 = vmatpush.msra.mxu1 %v6306_v51  ;;  %6398 = vmatpush.msrb.mxu0 %v6280_v35 }
 0x8fa   : > { %6452 = vmatpush.msrb.mxu3 %v6261_v18  ;;  %6429 = vmatpush.msrb.mxu2 %v6235_v3  ;;  %v6564_v18 = vld [vmem:[%s19640_s14 + $0x1d0] sm:$0xff]  ;;  %v6562_v3 = vld [vmem:[%s19640_s14 + $0x1c0] sm:$0xff] }
 0x8fb   : > { %6466 = vmatpush.msrb.mxu1 %v6305_v24  ;;  %6399 = vmatpush.msrb.mxu0 %v6278_v9  ;;  %v6566_v24 = vld [vmem:[%s19640_s14 + $0x1e0] sm:$0xff] }
 0x8fc   : > { %6453 = vmatpush.msrb.mxu3 %v6259_v22  ;;  %6430 = vmatpush.msrb.mxu2 %v6233_v21  ;;  %v6536_v22 = vld [vmem:[%s19640_s14 + $0xf0] sm:$0xff] }
 0x8fd   : > { %6467 = vmatpush.msrb.mxu1 %v6303_v0  ;;  %6400 = vmatpush.msrb.mxu0 %v6276_v5  ;;  %v6534_v5 = vld [vmem:[%s19640_s14 + $0xe0] sm:$0xff] }
 0x8fe   : > { %6454 = vmatpush.msrb.mxu3 %v6257_v19  ;;  %6431 = vmatpush.msrb.mxu2 %v6231_v6  ;;  %v6630_v6 = vld [vmem:[%s19640_s14 + $0x3e0] sm:$0xf] }
 0x8ff   : > { %6468 = vmatpush.msrb.mxu1 %v6301_v23  ;;  %6401 = vmatpush.msrb.mxu0 %v6274_v62  ;;  %v6560_v23 = vld [vmem:[%s19640_s14 + $0x1b0] sm:$0xff] }
 0x900   : > { %6455 = vmatpush.msrb.mxu3 %v6255_v52  ;;  %6432 = vmatpush.msrb.mxu2 %v6229_v43  ;;  %v6532_v52 = vld [vmem:[%s19640_s14 + $0xd0] sm:$0xff]  ;;  %v6530_v43 = vld [vmem:[%s19640_s14 + $0xc0] sm:$0xff] }
 0x901   : > { %6469 = vmatpush.msrb.mxu1 %v6299_v56  ;;  %9909 = vmatpush.msk.msra.mxu0 %vm2072_vm2, %v6335_v38  ;;  %v6558_v56 = vld [vmem:[%s19640_s14 + $0x1a0] sm:$0xff]  ;;  %v6628_v62 = vld [vmem:[%s19640_s14 + $0x3d0] sm:$0xff] }
 0x902   : > { %6456 = vmatpush.msrb.mxu3 %v6253_v45  ;;  %6433 = vmatpush.msrb.mxu2 %v6227_v36  ;;  %v6626_v45 = vld [vmem:[%s19640_s14 + $0x3c0] sm:$0xff]  ;;  %v6528_v38 = vld [vmem:[%s19640_s14 + $0xb0] sm:$0xff] }
 0x903   : > { %6470 = vmatpush.msrb.mxu1 %v6297_v60  ;;  %6488 = vmatpush.msra.mxu0 %v6333_v46  ;;  %v6556_v60 = vld [vmem:[%s19640_s14 + $0x190] sm:$0xff] }
 0x904   : > { %6457 = vmatpush.msrb.mxu3 %v6251_v47  ;;  %6434 = vmatpush.msrb.mxu2 %v6225_v48  ;;  %v6624_v36 = vld [vmem:[%s19640_s14 + $0x3b0] sm:$0xff]  ;;  %v6526_v48 = vld [vmem:[%s19640_s14 + $0xa0] sm:$0xff] }
 0x905   : > { %6471 = vmatpush.msrb.mxu1 %v6295_v17  ;;  %6489 = vmatpush.msra.mxu0 %v6331_v14  ;;  %v6554_v17 = vld [vmem:[%s19640_s14 + $0x180] sm:$0xff] }
 0x906   : > { %6458 = vmatpush.msrb.mxu3 %v6249_v32  ;;  %6435 = vmatpush.msrb.mxu2 %v6223_v39  ;;  %v6550_v32 = vld [vmem:[%s19640_s14 + $0x160] sm:$0xff]  ;;  %v6524_v39 = vld [vmem:[%s19640_s14 + $0x90] sm:$0xff] }
 0x907   : > { %6472 = vmatpush.msrb.mxu1 %v6293_v58  ;;  %6490 = vmatpush.msra.mxu0 %v6329_v44  ;;  %v6552_v58 = vld [vmem:[%s19640_s14 + $0x170] sm:$0xff]  ;;  %v6622_v14 = vld [vmem:[%s19640_s14 + $0x3a0] sm:$0xff] }
 0x908   : > { %6459 = vmatpush.msrb.mxu3 %v6247_v63  ;;  %6436 = vmatpush.msrb.mxu2 %v6221_v20  ;;  %v6548_v63 = vld [vmem:[%s19640_s14 + $0x150] sm:$0xff]  ;;  %v6522_v20 = vld [vmem:[%s19640_s14 + $0x80] sm:$0xff] }
 0x909   : > { %6473 = vmatpush.msrb.mxu1 %v6291_v34  ;;  %6491 = vmatpush.msra.mxu0 %v6327_v49  ;;  %v6600_v34 = vld [vmem:[%s19640_s14 + $0x2f0] sm:$0xff]  ;;  %v6618_v49 = vld [vmem:[%s19640_s14 + $0x380] sm:$0xff] }
 0x90a   : > { %6460 = vmatpush.msrb.mxu3 %v6245_v4  ;;  %6437 = vmatpush.msrb.mxu2 %v6219_v55  ;;  %v6620_v44 = vld [vmem:[%s19640_s14 + $0x390] sm:$0xff]  ;;  %v6546_v4 = vld [vmem:[%s19640_s14 + $0x140] sm:$0xff] }
 0x90b   : > { %6474 = vmatpush.msrb.mxu1 %v6289_v42  ;;  %6492 = vmatpush.msra.mxu0 %v6325_v30  ;;  %v6598_v42 = vld [vmem:[%s19640_s14 + $0x2e0] sm:$0xff]  ;;  %v6520_v55 = vld [vmem:[%s19640_s14 + $0x70] sm:$0xff] }
 0x90c   : > { %6461 = vmatpush.msrb.mxu3 %v6243_v57  ;;  %6438 = vmatpush.msrb.mxu2 %v6217_v37  ;;  %v6544_v57 = vld [vmem:[%s19640_s14 + $0x130] sm:$0xff]  ;;  %v6518_v37 = vld [vmem:[%s19640_s14 + $0x60] sm:$0xff] }
 0x90d   : > { %6475 = vmatpush.msrb.mxu1 %v6287_v26  ;;  %6493 = vmatpush.msra.mxu0 %v6323_v50  ;;  %v6596_v26 = vld [vmem:[%s19640_s14 + $0x2d0] sm:$0xff] }
 0x90e   : > { %6439 = vmatpush.msrb.mxu2 %v6215_v53  ;;  %v6616_v30 = vld [vmem:[%s19640_s14 + $0x370] sm:$0xff]  ;;  %v6614_v53 = vld [vmem:[%s19640_s14 + $0x360] sm:$0xff] }
 0x90f   : > { %6476 = vmatpush.msrb.mxu1 %v6285_v28  ;;  %6494 = vmatpush.msra.mxu0 %v6321_v2  ;;  %v6594_v28 = vld [vmem:[%s19640_s14 + $0x2c0] sm:$0xff]  ;;  %v6592_v50 = vld [vmem:[%s19640_s14 + $0x2b0] sm:$0xff] }
 0x910   : > { %6440 = vmatpush.msrb.mxu2 %v6213_v1  ;;  %v6540_v2 = vld [vmem:[%s19640_s14 + $0x110] sm:$0xff]  ;;  %v6590_v1 = vld [vmem:[%s19640_s14 + $0x2a0] sm:$0xff] }
 0x911   : > { %6477 = vmatpush.msrb.mxu1 %v6283_v7  ;;  %6495 = vmatpush.msra.mxu0 %v6319_v31  ;;  %v6542_v7 = vld [vmem:[%s19640_s14 + $0x120] sm:$0xff] }
 0x912   : > { %6441 = vmatpush.msrb.mxu2 %v6211_v27  ;;  %v6514_v31 = vld [vmem:[%s19640_s14 + $0x40] sm:$0xff] }
 0x913   : > { %6478 = vmatpush.msrb.mxu1 %v6281_v10  ;;  %6496 = vmatpush.msra.mxu0 %v6317_v16  ;;  %v6516_v10 = vld [vmem:[%s19640_s14 + $0x50] sm:$0xff]  ;;  %v6538_v27 = vld [vmem:[%s19640_s14 + $0x100] sm:$0xff] }
 0x914   : > { %v6610_v16 = vld [vmem:[%s19640_s14 + $0x340] sm:$0xff] }
 0x915   : > { %6479 = vmatpush.msrb.mxu1 %v6279_v40  ;;  %6497 = vmatpush.msra.mxu0 %v6315_v41  ;;  %v6612_v40 = vld [vmem:[%s19640_s14 + $0x350] sm:$0xff]  ;;  %v6569_v41 = vld [vmem:[%s19640_s14 + $0x1f8] sm:$0xff] }
 0x917   : > { %6480 = vmatpush.msrb.mxu1 %v6277_v54  ;;  %6498 = vmatpush.msra.mxu0 %v6313_v11  ;;  %v6588_v54 = vld [vmem:[%s19640_s14 + $0x290] sm:$0xff]  ;;  %v6586_v11 = vld [vmem:[%s19640_s14 + $0x280] sm:$0xff] }
 0x919   : > { %6481 = vmatpush.msrb.mxu1 %v6275_v13  ;;  %6499 = vmatpush.msra.mxu0 %v6311_v12  ;;  %v6512_v13 = vld [vmem:[%s19640_s14 + $0x30] sm:$0xff] }
 0x91a   : > { %v6608_v12 = vld [vmem:[%s19640_s14 + $0x330] sm:$0xff] }
 0x91b   : > { %6500 = vmatpush.msra.mxu0 %v6309_v61  ;;  %v6510_v61 = vld [vmem:[%s19640_s14 + $0x20] sm:$0xff] }
 0x91d   : > { %6501 = vmatpush.msra.mxu0 %v6307_v29  ;;  %v6567_v29 = vld [vmem:[%s19640_s14 + $0x1e8] sm:$0xff] }
 0x936   : > { %v6059_v25 = vpop.f32.mrf.mxu0 }
 0x947   : > { %v6099_v8 = vpop.f32.mrf.mxu3 }
 0x94e   : > { %v6079_v59 = vpop.f32.mrf.mxu2 }
 0x950   : > { %v6163_v33 = vpop.f32.mrf.mxu3 }
 0x951   : > { %v16883_v51 = vmax.f32 %v6079_v59, %v6163_v33  ;;  %v6606_v59 = vld [vmem:[%s19640_s14 + $0x320] sm:$0xff]  ;;  %v6565_v33 = vld [vmem:[%s19640_s14 + $0x1d8] sm:$0xff] }
 0x953   : > { %6382 = vmatmul.f32.vlgmr.msra.gmra.mxu3 %v16883_v51 }
 0x954   : > { %6658 = vmatpush.msra.mxu3 %v6568_v15  ;;  %v6582_v15 = vld [vmem:[%s19640_s14 + $0x260] sm:$0xff] }
 0x956   : > { %6659 = vmatpush.msra.mxu3 %v6566_v24  ;;  %v6143_v35 = vpop.f32.mrf.mxu2  ;;  %v6604_v24 = vld [vmem:[%s19640_s14 + $0x310] sm:$0xff] }
 0x957   : > { %v16898_v0 = vmax.f32 %v6059_v25, %v6143_v35  ;;  %v6508_v25 = vld [vmem:[%s19640_s14 + $0x10] sm:$0xff]  ;;  %v6563_v35 = vld [vmem:[%s19640_s14 + $0x1c8] sm:$0xff] }
 0x958   : > { %6660 = vmatpush.msra.mxu3 %v6564_v18  ;;  %v6119_v9 = vpop.f32.mrf.mxu0  ;;  %v6506_v18 = vld [vmem:[%s19640_s14] sm:$0xff] }
 0x959   : > { %v6203_v21 = vpop.f32.mrf.mxu1  ;;  %6362 = vmatmul.f32.vlgmr.msra.gmra.mxu2 %v16898_v0 }
 0x95a   : > { %6661 = vmatpush.msra.mxu3 %v6562_v3  ;;  %v16906_v19 = vmax.f32 %v6119_v9, %v6203_v21  ;;  %6638 = vmatpush.msra.mxu2 %v6536_v22  ;;  %v6580_v3 = vld [vmem:[%s19640_s14 + $0x250] sm:$0xff]  ;;  %v6602_v22 = vld [vmem:[%s19640_s14 + $0x300] sm:$0xff]  ;;  %v6537_v9 = vld [vmem:[%s19640_s14 + $0xf8] sm:$0xff] }
 0x95b   : > { %6462 = vmatmul.f32.vlgmr.msrb.gmra.mxu3 %v16883_v51  ;;  %v6561_v21 = vld [vmem:[%s19640_s14 + $0x1b8] sm:$0xff] }
 0x95c   : > { %6662 = vmatpush.msra.mxu3 %v6560_v23  ;;  %9908 = vmatmul.msk.f32.vlgmr.msra.gmra.mxu1 %vm6336_vm10, %v16906_v19  ;;  %v6601_v23 = vld [vmem:[%s19640_s14 + $0x2f8] sm:$0xff] }
 0x95d   : > { %6639 = vmatpush.msra.mxu2 %v6534_v5  ;;  %9911 = vmatpush.msk.msra.mxu1 %vm2072_vm2, %v6630_v6  ;;  %v6578_v5 = vld [vmem:[%s19640_s14 + $0x240] sm:$0xff]  ;;  %v6535_v6 = vld [vmem:[%s19640_s14 + $0xe8] sm:$0xff] }
 0x95e   : > { %6663 = vmatpush.msra.mxu3 %v6558_v56  ;;  %v6559_v56 = vld [vmem:[%s19640_s14 + $0x1a8] sm:$0xff] }
 0x95f   : > { %6640 = vmatpush.msra.mxu2 %v6532_v52  ;;  %6700 = vmatpush.msra.mxu1 %v6628_v62  ;;  %v6599_v52 = vld [vmem:[%s19640_s14 + $0x2e8] sm:$0xff]  ;;  %v6576_v62 = vld [vmem:[%s19640_s14 + $0x230] sm:$0xff] }
 0x960   : > { %6664 = vmatpush.msra.mxu3 %v6556_v60  ;;  %v6183_v47 = vpop.f32.mrf.mxu0  ;;  %v6533_v60 = vld [vmem:[%s19640_s14 + $0xd8] sm:$0xff] }
 0x961   : > { %6641 = vmatpush.msra.mxu2 %v6530_v43  ;;  %6701 = vmatpush.msra.mxu1 %v6626_v45  ;;  %v16949_v46 = vmax.f32 %v6099_v8, %v6183_v47  ;;  %v6584_v8 = vld [vmem:[%s19640_s14 + $0x270] sm:$0xff]  ;;  %v6557_v43 = vld [vmem:[%s19640_s14 + $0x198] sm:$0xff]  ;;  %v6595_v47 = vld [vmem:[%s19640_s14 + $0x2c8] sm:$0xff] }
 0x962   : > { %6665 = vmatpush.msra.mxu3 %v6554_v17  ;;  %6442 = vmatmul.f32.vlgmr.msrb.gmra.mxu2 %v16898_v0  ;;  %v6597_v45 = vld [vmem:[%s19640_s14 + $0x2d8] sm:$0xff]  ;;  %v6574_v17 = vld [vmem:[%s19640_s14 + $0x220] sm:$0xff] }
 0x963   : > { %6642 = vmatpush.msra.mxu2 %v6528_v38  ;;  %6702 = vmatpush.msra.mxu1 %v6624_v36  ;;  %v6531_v38 = vld [vmem:[%s19640_s14 + $0xc8] sm:$0xff] }
 0x964   : > { %6666 = vmatpush.msra.mxu3 %v6552_v58  ;;  %6402 = vmatmul.f32.vlgmr.msrb.gmra.mxu0 %v16949_v46  ;;  %v6555_v36 = vld [vmem:[%s19640_s14 + $0x188] sm:$0xff]  ;;  %v6572_v58 = vld [vmem:[%s19640_s14 + $0x210] sm:$0xff] }
 0x965   : > { %6482 = vmatmul.f32.vlgmr.msrb.gmra.mxu1 %v16949_v46  ;;  %6643 = vmatpush.msra.mxu2 %v6526_v48  ;;  %v6529_v48 = vld [vmem:[%s19640_s14 + $0xb8] sm:$0xff] }
 0x966   : > { %6667 = vmatpush.msra.mxu3 %v6550_v32  ;;  %6678 = vmatpush.msrb.mxu0 %v6600_v34  ;;  %v6553_v32 = vld [vmem:[%s19640_s14 + $0x178] sm:$0xff] }
 0x967   : > { %6703 = vmatpush.msra.mxu1 %v6622_v14  ;;  %6644 = vmatpush.msra.mxu2 %v6524_v39  ;;  %v6593_v34 = vld [vmem:[%s19640_s14 + $0x2b8] sm:$0xff]  ;;  %v6570_v14 = vld [vmem:[%s19640_s14 + $0x200] sm:$0xff]  ;;  %v6527_v39 = vld [vmem:[%s19640_s14 + $0xa8] sm:$0xff] }
 0x968   : > { %6668 = vmatpush.msra.mxu3 %v6548_v63  ;;  %6679 = vmatpush.msrb.mxu0 %v6598_v42  ;;  %v6551_v63 = vld [vmem:[%s19640_s14 + $0x168] sm:$0xff] }
 0x969   : > { %6704 = vmatpush.msra.mxu1 %v6620_v44  ;;  %6645 = vmatpush.msra.mxu2 %v6522_v20  ;;  %v6591_v42 = vld [vmem:[%s19640_s14 + $0x2a8] sm:$0xff]  ;;  %v6525_v20 = vld [vmem:[%s19640_s14 + $0x98] sm:$0xff] }
 0x96a   : > { %6669 = vmatpush.msra.mxu3 %v6546_v4  ;;  %6680 = vmatpush.msrb.mxu0 %v6596_v26  ;;  %v6631_v44 = vld [vmem:[%s19640_s14 + $0x3e8] sm:$0xf]  ;;  %v6549_v4 = vld [vmem:[%s19640_s14 + $0x158] sm:$0xff] }
 0x96b   : > { %6705 = vmatpush.msra.mxu1 %v6618_v49  ;;  %6646 = vmatpush.msra.mxu2 %v6520_v55  ;;  %v6589_v26 = vld [vmem:[%s19640_s14 + $0x298] sm:$0xff]  ;;  %v6523_v55 = vld [vmem:[%s19640_s14 + $0x88] sm:$0xff] }
 0x96c   : > { %6670 = vmatpush.msra.mxu3 %v6544_v57  ;;  %6681 = vmatpush.msrb.mxu0 %v6594_v28  ;;  %v6629_v49 = vld [vmem:[%s19640_s14 + $0x3d8] sm:$0xff]  ;;  %v6547_v57 = vld [vmem:[%s19640_s14 + $0x148] sm:$0xff] }
 0x96d   : > { %6706 = vmatpush.msra.mxu1 %v6616_v30  ;;  %9910 = vmatmul.msk.f32.vlgmr.msra.gmra.mxu0 %vm6336_vm10, %v16906_v19  ;;  %v6587_v28 = vld [vmem:[%s19640_s14 + $0x288] sm:$0xff] }
 0x96e   : > { %6647 = vmatpush.msra.mxu2 %v6518_v37  ;;  %6671 = vmatpush.msra.mxu3 %v6542_v7  ;;  %v6627_v30 = vld [vmem:[%s19640_s14 + $0x3c8] sm:$0xff]  ;;  %v6521_v37 = vld [vmem:[%s19640_s14 + $0x78] sm:$0xff] }
 0x96f   : > { %6682 = vmatpush.msrb.mxu0 %v6592_v50  ;;  %6707 = vmatpush.msra.mxu1 %v6614_v53  ;;  %v6545_v7 = vld [vmem:[%s19640_s14 + $0x138] sm:$0xff] }
 0x970   : > { %6648 = vmatpush.msra.mxu2 %v6516_v10  ;;  %6672 = vmatpush.msra.mxu3 %v6540_v2  ;;  %v6585_v50 = vld [vmem:[%s19640_s14 + $0x278] sm:$0xff]  ;;  %v6519_v10 = vld [vmem:[%s19640_s14 + $0x68] sm:$0xff] }
 0x971   : > { %6683 = vmatpush.msrb.mxu0 %v6590_v1  ;;  %6708 = vmatpush.msra.mxu1 %v6612_v40  ;;  %v6625_v53 = vld [vmem:[%s19640_s14 + $0x3b8] sm:$0xff]  ;;  %v6543_v2 = vld [vmem:[%s19640_s14 + $0x128] sm:$0xff] }
 0x972   : > { %6649 = vmatpush.msra.mxu2 %v6514_v31  ;;  %6673 = vmatpush.msra.mxu3 %v6538_v27  ;;  %v6583_v1 = vld [vmem:[%s19640_s14 + $0x268] sm:$0xff]  ;;  %v6517_v31 = vld [vmem:[%s19640_s14 + $0x58] sm:$0xff] }
 0x973   : > { %6684 = vmatpush.msrb.mxu0 %v6588_v54  ;;  %6709 = vmatpush.msra.mxu1 %v6610_v16  ;;  %v6623_v40 = vld [vmem:[%s19640_s14 + $0x3a8] sm:$0xff]  ;;  %v6541_v27 = vld [vmem:[%s19640_s14 + $0x118] sm:$0xff] }
 0x974   : > { %6674 = vmatmul.f32.vlgmr.msra.gmra.mxu3 %v16883_v51  ;;  %6650 = vmatpush.msra.mxu2 %v6512_v13  ;;  %v6581_v54 = vld [vmem:[%s19640_s14 + $0x258] sm:$0xff]  ;;  %v6515_v13 = vld [vmem:[%s19640_s14 + $0x48] sm:$0xff] }
 0x975   : > { %6738 = vmatpush.msrb.mxu3 %v6569_v41  ;;  %6685 = vmatpush.msrb.mxu0 %v6586_v11  ;;  %v6621_v16 = vld [vmem:[%s19640_s14 + $0x398] sm:$0xff]  ;;  %v6539_v41 = vld [vmem:[%s19640_s14 + $0x108] sm:$0xff] }
 0x976   : > { %6710 = vmatpush.msra.mxu1 %v6608_v12  ;;  %6651 = vmatpush.msra.mxu2 %v6510_v61  ;;  %v6579_v11 = vld [vmem:[%s19640_s14 + $0x248] sm:$0xff]  ;;  %v6513_v61 = vld [vmem:[%s19640_s14 + $0x38] sm:$0xff] }
 0x977   : > { %6739 = vmatpush.msrb.mxu3 %v6567_v29  ;;  %6686 = vmatpush.msrb.mxu0 %v6584_v8  ;;  %v6619_v12 = vld [vmem:[%s19640_s14 + $0x388] sm:$0xff]  ;;  %v6577_v29 = vld [vmem:[%s19640_s14 + $0x238] sm:$0xff] }
 0x978   : > { %6711 = vmatpush.msra.mxu1 %v6606_v59  ;;  %6652 = vmatpush.msra.mxu2 %v6508_v25  ;;  %v6617_v8 = vld [vmem:[%s19640_s14 + $0x378] sm:$0xff]  ;;  %v6511_v59 = vld [vmem:[%s19640_s14 + $0x28] sm:$0xff] }
 0x979   : > { %6740 = vmatpush.msrb.mxu3 %v6565_v33  ;;  %6687 = vmatpush.msrb.mxu0 %v6582_v15  ;;  %v6575_v25 = vld [vmem:[%s19640_s14 + $0x228] sm:$0xff]  ;;  %v6509_v15 = vld [vmem:[%s19640_s14 + $0x18] sm:$0xff] }
 0x97a   : > { %6712 = vmatpush.msra.mxu1 %v6604_v24  ;;  %6653 = vmatpush.msra.mxu2 %v6506_v18  ;;  %v6615_v33 = vld [vmem:[%s19640_s14 + $0x368] sm:$0xff]  ;;  %v6613_v24 = vld [vmem:[%s19640_s14 + $0x358] sm:$0xff] }
 0x97b   : > { %6741 = vmatpush.msrb.mxu3 %v6563_v35  ;;  %6688 = vmatpush.msrb.mxu0 %v6580_v3  ;;  %v6507_v18 = vld [vmem:[%s19640_s14 + $0x8] sm:$0xff] }
 0x97c   : > { %6713 = vmatpush.msra.mxu1 %v6602_v22  ;;  %6654 = vmatmul.f32.vlgmr.msra.gmra.mxu2 %v16898_v0  ;;  %v6571_v35 = vld [vmem:[%s19640_s14 + $0x208] sm:$0xff]  ;;  %v6609_v22 = vld [vmem:[%s19640_s14 + $0x338] sm:$0xff] }
 0x97d   : > { %9912 = vmatmul.msk.f32.vlgmr.msra.gmra.mxu1 %vm6336_vm10, %v16906_v19  ;;  %6718 = vmatpush.msrb.mxu2 %v6537_v9  ;;  %v6611_v3 = vld [vmem:[%s19640_s14 + $0x348] sm:$0xff] }
 0x97e   : > { %6742 = vmatpush.msrb.mxu3 %v6561_v21  ;;  %6758 = vmatpush.msrb.mxu1 %v6601_v23  ;;  %v6607_v9 = vld [vmem:[%s19640_s14 + $0x328] sm:$0xff]  ;;  %v6605_v21 = vld [vmem:[%s19640_s14 + $0x318] sm:$0xff] }
 0x97f   : > { %6689 = vmatpush.msrb.mxu0 %v6578_v5  ;;  %6719 = vmatpush.msrb.mxu2 %v6535_v6  ;;  %v6603_v23 = vld [vmem:[%s19640_s14 + $0x308] sm:$0xff] }
 0x980   : > { %6743 = vmatpush.msrb.mxu3 %v6559_v56  ;;  %6759 = vmatpush.msrb.mxu1 %v6599_v52 }
 0x981   : > { %6690 = vmatpush.msrb.mxu0 %v6576_v62  ;;  %6720 = vmatpush.msrb.mxu2 %v6533_v60 }
 0x982   : > { %6744 = vmatpush.msrb.mxu3 %v6557_v43  ;;  %6760 = vmatpush.msrb.mxu1 %v6597_v45 }
 0x983   : > { %6691 = vmatpush.msrb.mxu0 %v6574_v17  ;;  %6721 = vmatpush.msrb.mxu2 %v6531_v38 }
 0x984   : > { %6745 = vmatpush.msrb.mxu3 %v6555_v36  ;;  %6761 = vmatpush.msrb.mxu1 %v6595_v47 }
 0x985   : > { %6692 = vmatpush.msrb.mxu0 %v6572_v58  ;;  %6722 = vmatpush.msrb.mxu2 %v6529_v48 }
 0x986   : > { %6746 = vmatpush.msrb.mxu3 %v6553_v32  ;;  %6762 = vmatpush.msrb.mxu1 %v6593_v34 }
 0x987   : > { %6693 = vmatpush.msrb.mxu0 %v6570_v14  ;;  %6723 = vmatpush.msrb.mxu2 %v6527_v39  ;;  %v17300_v14 = vld [vmem:[%s19641_s15 + $0x1] sm:$0x1]  ;;  %v17305_v39 = vld [vmem:[%s19641_s15] sm:$0x1] }
 0x988   : > { %6694 = vmatmul.f32.vlgmr.msrb.gmra.mxu0 %v16949_v46  ;;  %6747 = vmatpush.msrb.mxu3 %v6551_v63  ;;  %v9984_v63 = vld [vmem:[%s19642_s16 + $0x5e0] sm:$0xff] }
 0x989   : > { %6763 = vmatpush.msrb.mxu1 %v6591_v42  ;;  %9913 = vmatpush.msk.msra.mxu0 %vm2072_vm2, %v6631_v44  ;;  %v9985_v42 = vld [vmem:[%s19642_s16 + $0x5e8] sm:$0xff]  ;;  %v9980_v44 = vld [vmem:[%s19642_s16 + $0x5c0] sm:$0xff] }
 0x98a   : > { %6724 = vmatpush.msrb.mxu2 %v6525_v20  ;;  %6748 = vmatpush.msrb.mxu3 %v6549_v4  ;;  %v9981_v20 = vld [vmem:[%s19642_s16 + $0x5c8] sm:$0xff]  ;;  %v9976_v4 = vld [vmem:[%s19642_s16 + $0x5a0] sm:$0xff] }
 0x98b   : > { %6764 = vmatpush.msrb.mxu1 %v6589_v26  ;;  %6780 = vmatpush.msra.mxu0 %v6629_v49  ;;  %v9977_v26 = vld [vmem:[%s19642_s16 + $0x5a8] sm:$0xff]  ;;  %v9972_v49 = vld [vmem:[%s19642_s16 + $0x580] sm:$0xff] }
 0x98c   : > { %6725 = vmatpush.msrb.mxu2 %v6523_v55  ;;  %6749 = vmatpush.msrb.mxu3 %v6547_v57  ;;  %v9973_v55 = vld [vmem:[%s19642_s16 + $0x588] sm:$0xff]  ;;  %v9968_v57 = vld [vmem:[%s19642_s16 + $0x560] sm:$0xff] }
 0x98d   : > { %6765 = vmatpush.msrb.mxu1 %v6587_v28  ;;  %6781 = vmatpush.msra.mxu0 %v6627_v30  ;;  %v9969_v28 = vld [vmem:[%s19642_s16 + $0x568] sm:$0xff]  ;;  %v9964_v30 = vld [vmem:[%s19642_s16 + $0x540] sm:$0xff] }
 0x98e   : > { %6726 = vmatpush.msrb.mxu2 %v6521_v37  ;;  %6750 = vmatpush.msrb.mxu3 %v6545_v7  ;;  %v9965_v37 = vld [vmem:[%s19642_s16 + $0x548] sm:$0xff]  ;;  %v9960_v7 = vld [vmem:[%s19642_s16 + $0x520] sm:$0xff] }
 0x98f   : > { %6766 = vmatpush.msrb.mxu1 %v6585_v50  ;;  %6782 = vmatpush.msra.mxu0 %v6625_v53  ;;  %v9961_v50 = vld [vmem:[%s19642_s16 + $0x528] sm:$0xff]  ;;  %v9956_v53 = vld [vmem:[%s19642_s16 + $0x500] sm:$0xff] }
 0x990   : > { %6727 = vmatpush.msrb.mxu2 %v6519_v10  ;;  %6751 = vmatpush.msrb.mxu3 %v6543_v2  ;;  %v9957_v10 = vld [vmem:[%s19642_s16 + $0x508] sm:$0xff]  ;;  %v9952_v2 = vld [vmem:[%s19642_s16 + $0x4e0] sm:$0xff] }
 0x991   : > { %6767 = vmatpush.msrb.mxu1 %v6583_v1  ;;  %6783 = vmatpush.msra.mxu0 %v6623_v40  ;;  %v9953_v1 = vld [vmem:[%s19642_s16 + $0x4e8] sm:$0xff]  ;;  %v9948_v40 = vld [vmem:[%s19642_s16 + $0x4c0] sm:$0xff] }
 0x992   : > { %6728 = vmatpush.msrb.mxu2 %v6517_v31  ;;  %6752 = vmatpush.msrb.mxu3 %v6541_v27  ;;  %v9949_v31 = vld [vmem:[%s19642_s16 + $0x4c8] sm:$0xff] }
 0x993   : > { %6768 = vmatpush.msrb.mxu1 %v6581_v54  ;;  %6784 = vmatpush.msra.mxu0 %v6621_v16  ;;  %v9944_v54 = vld [vmem:[%s19642_s16 + $0x4a0] sm:$0xff]  ;;  %v9945_v16 = vld [vmem:[%s19642_s16 + $0x4a8] sm:$0xff] }
 0x994   : > { %6729 = vmatpush.msrb.mxu2 %v6515_v13  ;;  %6753 = vmatpush.msrb.mxu3 %v6539_v41 }
 0x995   : > { %6769 = vmatpush.msrb.mxu1 %v6579_v11  ;;  %6785 = vmatpush.msra.mxu0 %v6619_v12  ;;  %v9940_v11 = vld [vmem:[%s19642_s16 + $0x480] sm:$0xff]  ;;  %v9941_v12 = vld [vmem:[%s19642_s16 + $0x488] sm:$0xff] }
 0x996   : > { %6754 = vmatmul.f32.vlgmr.msrb.gmra.mxu3 %v16883_v51  ;;  %6730 = vmatpush.msrb.mxu2 %v6513_v61  ;;  %v6573_v51 = vld [vmem:[%s19640_s14 + $0x218] sm:$0xff] }
 0x997   : > { %6770 = vmatpush.msrb.mxu1 %v6577_v29  ;;  %6786 = vmatpush.msra.mxu0 %v6617_v8 }
 0x998   : > { %6731 = vmatpush.msrb.mxu2 %v6511_v59  ;;  %v9936_v59 = vld [vmem:[%s19642_s16 + $0x460] sm:$0xff] }
 0x999   : > { %6771 = vmatpush.msrb.mxu1 %v6575_v25  ;;  %6787 = vmatpush.msra.mxu0 %v6615_v33  ;;  %v9937_v25 = vld [vmem:[%s19642_s16 + $0x468] sm:$0xff] }
 0x99a   : > { %6732 = vmatpush.msrb.mxu2 %v6509_v15 }
 0x99b   : > { %6772 = vmatpush.msrb.mxu1 %v6573_v51  ;;  %6788 = vmatpush.msra.mxu0 %v6613_v24  ;;  %v9932_v51 = vld [vmem:[%s19642_s16 + $0x440] sm:$0xff]  ;;  %v9933_v24 = vld [vmem:[%s19642_s16 + $0x448] sm:$0xff] }
 0x99c   : > { %6733 = vmatpush.msrb.mxu2 %v6507_v18 }
 0x99d   : > { %6773 = vmatpush.msrb.mxu1 %v6571_v35  ;;  %6789 = vmatpush.msra.mxu0 %v6611_v3 }
 0x99e   : > { %6734 = vmatmul.f32.vlgmr.msrb.gmra.mxu2 %v16898_v0  ;;  %6774 = vmatmul.f32.vlgmr.msrb.gmra.mxu1 %v16949_v46 }
 0x99f   : > { %6790 = vmatpush.msra.mxu0 %v6609_v22  ;;  %v9928_v22 = vld [vmem:[%s19642_s16 + $0x420] sm:$0xff] }
 0x9a1   : > { %6791 = vmatpush.msra.mxu0 %v6607_v9  ;;  %v9929_v9 = vld [vmem:[%s19642_s16 + $0x428] sm:$0xff] }
 0x9a3   : > { %6792 = vmatpush.msra.mxu0 %v6605_v21  ;;  %v10048_v21 = vld [vmem:[%s19642_s16 + $0x7e0] sm:$0x3] }
 0x9a5   : > { %6793 = vmatpush.msra.mxu0 %v6603_v23  ;;  %v10049_v23 = vld [vmem:[%s19642_s16 + $0x7e8] sm:$0x3] }
 0x9a6   : > { %9914 = vmatmul.msk.f32.vlgmr.msra.gmra.mxu0 %vm6336_vm10, %v16906_v19 }
 0x9d6   : > { %v6383_v46 = vpop.f32.mrf.mxu3 }
 0x9d9   : > { %v6423_v6 = vpop.f32.mrf.mxu1 }
 0x9dc   : > { %v6363_v0 = vpop.f32.mrf.mxu2 }
 0x9dd   : > { %v6384_v45 = vadd.f32 %v6383_v46, %v6363_v0  ;;  %v9924_v0 = vld [vmem:[%s19642_s16 + $0x400] sm:$0xff]  ;;  %v9925_v46 = vld [vmem:[%s19642_s16 + $0x408] sm:$0xff] }
 0x9de   : > { %v6463_v52 = vpop.f32.mrf.mxu3 }
 0x9e1   : > { %v6403_v5 = vpop.f32.mrf.mxu0 }
 0x9e2   : > { %v17293_v60 = vpop.f32.mrf.mxu1  ;;  %v6404_v38 = vadd.f32 %v6403_v5, %v6384_v45  ;;  %v10044_v5 = vld [vmem:[%s19642_s16 + $0x7c0] sm:$0xff]  ;;  %v9983_v45 = vld [vmem:[%s19642_s16 + $0x5d8] sm:$0xff] }
 0x9e4   : > { %v6424_v32 = vadd.f32 %v6423_v6, %v6404_v38  ;;  %v10045_v6 = vld [vmem:[%s19642_s16 + $0x7c8] sm:$0xff] }
 0x9e5   : > { %v6443_v56 = vpop.f32.mrf.mxu2  ;;  %v10037_v38 = vld [vmem:[%s19642_s16 + $0x788] sm:$0xff] }
 0x9e6   : > { %v6464_v27 = vadd.f32 %v6463_v52, %v6443_v56  ;;  %v9986_v56 = vld [vmem:[%s19642_s16 + $0x5f0] sm:$0xff]  ;;  %v9987_v52 = vld [vmem:[%s19642_s16 + $0x5f8] sm:$0xff] }
 0x9e8   : > { %v6484_v61 = vadd.f32 %v17293_v60, %v6464_v27  ;;  %v10041_v60 = vld [vmem:[%s19642_s16 + $0x7a8] sm:$0xff]  ;;  %v9950_v27 = vld [vmem:[%s19642_s16 + $0x4d0] sm:$0xff] }
 0x9ea   : > { %v17291_v62 = vpop.f32.mrf.mxu0 }
 0x9eb   : > { %v6504_v18 = vadd.f32 %v17291_v62, %v6484_v61  ;;  %v10040_v62 = vld [vmem:[%s19642_s16 + $0x7a0] sm:$0xff]  ;;  %v10001_v61 = vld [vmem:[%s19642_s16 + $0x668] sm:$0xff] }
 0x9f7   : > { %v6675_v17 = vpop.f32.mrf.mxu3 }
 0x9fa   : > { %v6715_v48 = vpop.f32.mrf.mxu1 }
 0x9ff   : > { %v6655_v43 = vpop.f32.mrf.mxu2 }
 0xa00   : > { %v6676_v36 = vadd.f32 %v6675_v17, %v6655_v43  ;;  %v9982_v43 = vld [vmem:[%s19642_s16 + $0x5d0] sm:$0xff]  ;;  %v10036_v17 = vld [vmem:[%s19642_s16 + $0x780] sm:$0xff] }
 0xa05   : > { %v6695_v47 = vpop.f32.mrf.mxu0 }
 0xa06   : > { %v6696_v58 = vadd.f32 %v6695_v47, %v6676_v36  ;;  %v9978_v36 = vld [vmem:[%s19642_s16 + $0x5b0] sm:$0xff]  ;;  %v9979_v47 = vld [vmem:[%s19642_s16 + $0x5b8] sm:$0xff] }
 0xa08   : > { %v6716_v19 = vadd.f32 %v6715_v48, %v6696_v58  ;;  %v10032_v58 = vld [vmem:[%s19642_s16 + $0x760] sm:$0xff]  ;;  %v10033_v48 = vld [vmem:[%s19642_s16 + $0x768] sm:$0xff] }
 0xa0a   : > { %v17295_v34 = vmax.f32 %v6424_v32, %v6716_v19  ;;  %v9974_v32 = vld [vmem:[%s19642_s16 + $0x590] sm:$0xff]  ;;  %v9975_v19 = vld [vmem:[%s19642_s16 + $0x598] sm:$0xff] }
 0xa0c   : > { %9915 = vmatpush.msk.msra.mxu2 %vm6805_vm11, %v17295_v34  ;;  %9920 = vmatpush.msk.msrb.mxu0 %vm6805_vm11, %v17295_v34 }
 0xa0d   : > { %9921 = vmatmul.msk.f32.vlgmr.msrb.gmra.mxu0 %vm6801_vm12, %v17300_v14  ;;  %9916 = vmatmul.msk.f32.vlgmr.msra.gmra.mxu2 %vm6801_vm12, %v17305_v39 }
 0xa0e   : > { %7170 = vmatpush.msrb.mxu2 %v9984_v63  ;;  %7210 = vmatpush.msra.mxu0 %v9985_v42  ;;  %v9970_v63 = vld [vmem:[%s19642_s16 + $0x570] sm:$0xff]  ;;  %v9971_v42 = vld [vmem:[%s19642_s16 + $0x578] sm:$0xff] }
 0xa10   : > { %7171 = vmatpush.msrb.mxu2 %v9980_v44  ;;  %7211 = vmatpush.msra.mxu0 %v9981_v20  ;;  %v10024_v44 = vld [vmem:[%s19642_s16 + $0x720] sm:$0xff]  ;;  %v10025_v20 = vld [vmem:[%s19642_s16 + $0x728] sm:$0xff] }
 0xa12   : > { %7172 = vmatpush.msrb.mxu2 %v9976_v4  ;;  %7212 = vmatpush.msra.mxu0 %v9977_v26  ;;  %v9966_v4 = vld [vmem:[%s19642_s16 + $0x550] sm:$0xff]  ;;  %v9967_v26 = vld [vmem:[%s19642_s16 + $0x558] sm:$0xff] }
 0xa14   : > { %7173 = vmatpush.msrb.mxu2 %v9972_v49  ;;  %7213 = vmatpush.msra.mxu0 %v9973_v55  ;;  %v10020_v49 = vld [vmem:[%s19642_s16 + $0x700] sm:$0xff]  ;;  %v10021_v55 = vld [vmem:[%s19642_s16 + $0x708] sm:$0xff] }
 0xa16   : > { %7174 = vmatpush.msrb.mxu2 %v9968_v57  ;;  %7214 = vmatpush.msra.mxu0 %v9969_v28  ;;  %v9962_v57 = vld [vmem:[%s19642_s16 + $0x530] sm:$0xff]  ;;  %v9963_v28 = vld [vmem:[%s19642_s16 + $0x538] sm:$0xff] }
 0xa18   : > { %7175 = vmatpush.msrb.mxu2 %v9964_v30  ;;  %7215 = vmatpush.msra.mxu0 %v9965_v37  ;;  %v10016_v30 = vld [vmem:[%s19642_s16 + $0x6e0] sm:$0xff]  ;;  %v10017_v37 = vld [vmem:[%s19642_s16 + $0x6e8] sm:$0xff] }
 0xa19   : > { %v6755_v13 = vpop.f32.mrf.mxu3 }
 0xa1a   : > { %7176 = vmatpush.msrb.mxu2 %v9960_v7  ;;  %7216 = vmatpush.msra.mxu0 %v9961_v50  ;;  %v9958_v7 = vld [vmem:[%s19642_s16 + $0x510] sm:$0xff]  ;;  %v9959_v50 = vld [vmem:[%s19642_s16 + $0x518] sm:$0xff] }
 0xa1b   : > { %v6775_v8 = vpop.f32.mrf.mxu1 }
 0xa1c   : > { %7177 = vmatpush.msrb.mxu2 %v9956_v53  ;;  %7217 = vmatpush.msra.mxu0 %v9957_v10  ;;  %v10012_v53 = vld [vmem:[%s19642_s16 + $0x6c0] sm:$0xff]  ;;  %v10013_v10 = vld [vmem:[%s19642_s16 + $0x6c8] sm:$0xff] }
 0xa1e   : > { %7178 = vmatpush.msrb.mxu2 %v9952_v2  ;;  %7218 = vmatpush.msra.mxu0 %v9953_v1  ;;  %v9954_v2 = vld [vmem:[%s19642_s16 + $0x4f0] sm:$0xff]  ;;  %v9955_v1 = vld [vmem:[%s19642_s16 + $0x4f8] sm:$0xff] }
 0xa20   : > { %7179 = vmatpush.msrb.mxu2 %v9948_v40  ;;  %7219 = vmatpush.msra.mxu0 %v9949_v31  ;;  %v10008_v40 = vld [vmem:[%s19642_s16 + $0x6a0] sm:$0xff]  ;;  %v10009_v31 = vld [vmem:[%s19642_s16 + $0x6a8] sm:$0xff] }
 0xa21   : > { %v6735_v41 = vpop.f32.mrf.mxu2 }
 0xa22   : > { %v6756_v29 = vadd.f32 %v6755_v13, %v6735_v41  ;;  %7180 = vmatpush.msrb.mxu2 %v9944_v54  ;;  %7220 = vmatpush.msra.mxu0 %v9945_v16  ;;  %v9951_v54 = vld [vmem:[%s19642_s16 + $0x4d8] sm:$0xff]  ;;  %v10004_v16 = vld [vmem:[%s19642_s16 + $0x680] sm:$0xff]  ;;  %v10005_v13 = vld [vmem:[%s19642_s16 + $0x688] sm:$0xff] }
 0xa23   : > { %v6795_v15 = vpop.f32.mrf.mxu0  ;;  %v9946_v41 = vld [vmem:[%s19642_s16 + $0x4b0] sm:$0xff] }
 0xa24   : > { %v6776_v33 = vadd.f32 %v6775_v8, %v6756_v29  ;;  %7181 = vmatpush.msrb.mxu2 %v9940_v11  ;;  %7221 = vmatpush.msra.mxu0 %v9941_v12  ;;  %v9947_v11 = vld [vmem:[%s19642_s16 + $0x4b8] sm:$0xff]  ;;  %v10000_v12 = vld [vmem:[%s19642_s16 + $0x660] sm:$0xff]  ;;  %v9942_v29 = vld [vmem:[%s19642_s16 + $0x490] sm:$0xff] }
 0xa25   : > { %v9943_v8 = vld [vmem:[%s19642_s16 + $0x498] sm:$0xff] }
 0xa26   : > { %v6796_v35 = vadd.f32 %v6795_v15, %v6776_v33  ;;  %7182 = vmatpush.msrb.mxu2 %v9936_v59  ;;  %7222 = vmatpush.msra.mxu0 %v9937_v25  ;;  %v9996_v59 = vld [vmem:[%s19642_s16 + $0x640] sm:$0xff]  ;;  %v9997_v25 = vld [vmem:[%s19642_s16 + $0x648] sm:$0xff]  ;;  %v9938_v33 = vld [vmem:[%s19642_s16 + $0x470] sm:$0xff] }
 0xa27   : > { %v9939_v15 = vld [vmem:[%s19642_s16 + $0x478] sm:$0xff] }
 0xa28   : > { %v17401_v3 = vmax.f32 %v6504_v18, %v6796_v35  ;;  %7183 = vmatpush.msrb.mxu2 %v9932_v51  ;;  %7223 = vmatpush.msra.mxu0 %v9933_v24  ;;  %v9992_v51 = vld [vmem:[%s19642_s16 + $0x620] sm:$0xff]  ;;  %v9993_v24 = vld [vmem:[%s19642_s16 + $0x628] sm:$0xff]  ;;  %v9934_v18 = vld [vmem:[%s19642_s16 + $0x450] sm:$0xff] }
 0xa29   : > { %v9935_v35 = vld [vmem:[%s19642_s16 + $0x458] sm:$0xff] }
 0xa2a   : > { %9917 = vmatpush.msk.msra.mxu3 %vm6805_vm11, %v17401_v3  ;;  %9922 = vmatpush.msk.msra.mxu1 %vm6805_vm11, %v17401_v3 }
 0xa2b   : > { %9923 = vmatmul.msk.f32.vlgmr.msra.gmra.mxu1 %vm6801_vm12, %v17300_v14  ;;  %9918 = vmatmul.msk.f32.vlgmr.msra.gmra.mxu3 %vm6801_vm12, %v17305_v39  ;;  %v10028_v14 = vld [vmem:[%s19642_s16 + $0x740] sm:$0xff]  ;;  %v10029_v39 = vld [vmem:[%s19642_s16 + $0x748] sm:$0xff] }
 0xa2c   : > { %7184 = vmatpush.msrb.mxu2 %v9928_v22  ;;  %7224 = vmatpush.msra.mxu0 %v9929_v9  ;;  %v9988_v22 = vld [vmem:[%s19642_s16 + $0x600] sm:$0xff]  ;;  %v9989_v9 = vld [vmem:[%s19642_s16 + $0x608] sm:$0xff] }
 0xa2d   : > { %10052 = vmatpush.msk.msrb.mxu3 %vm6029_vm8, %v10048_v21  ;;  %10054 = vmatpush.msk.msrb.mxu1 %vm6029_vm8, %v10049_v23  ;;  %v9930_v21 = vld [vmem:[%s19642_s16 + $0x430] sm:$0xff]  ;;  %v9931_v23 = vld [vmem:[%s19642_s16 + $0x438] sm:$0xff] }
 0xa2e   : > { %7185 = vmatpush.msrb.mxu2 %v9924_v0  ;;  %7225 = vmatpush.msra.mxu0 %v9925_v46  ;;  %v10050_v0 = vld [vmem:[%s19642_s16 + $0x7f0] sm:$0x3]  ;;  %v10051_v46 = vld [vmem:[%s19642_s16 + $0x7f8] sm:$0x3] }
 0xa2f   : > { %7191 = vmatpush.msrb.mxu3 %v10044_v5  ;;  %7231 = vmatpush.msrb.mxu1 %v10045_v6  ;;  %v9926_v5 = vld [vmem:[%s19642_s16 + $0x410] sm:$0xff]  ;;  %v9927_v6 = vld [vmem:[%s19642_s16 + $0x418] sm:$0xff] }
 0xa30   : > { %7250 = vmatpush.msra.mxu2 %v9986_v56  ;;  %7290 = vmatpush.msrb.mxu0 %v9987_v52  ;;  %v10046_v56 = vld [vmem:[%s19642_s16 + $0x7d0] sm:$0xff]  ;;  %v10047_v52 = vld [vmem:[%s19642_s16 + $0x7d8] sm:$0xff] }
 0xa31   : > { %7192 = vmatpush.msrb.mxu3 %v10040_v62  ;;  %7232 = vmatpush.msrb.mxu1 %v10041_v60  ;;  %v10042_v62 = vld [vmem:[%s19642_s16 + $0x7b0] sm:$0xff]  ;;  %v10043_v60 = vld [vmem:[%s19642_s16 + $0x7b8] sm:$0xff] }
 0xa32   : > { %7251 = vmatpush.msra.mxu2 %v9982_v43  ;;  %7291 = vmatpush.msrb.mxu0 %v9983_v45  ;;  %v10038_v43 = vld [vmem:[%s19642_s16 + $0x790] sm:$0xff]  ;;  %v10039_v45 = vld [vmem:[%s19642_s16 + $0x798] sm:$0xff] }
 0xa33   : > { %7193 = vmatpush.msrb.mxu3 %v10036_v17  ;;  %7233 = vmatpush.msrb.mxu1 %v10037_v38  ;;  %v10034_v17 = vld [vmem:[%s19642_s16 + $0x770] sm:$0xff]  ;;  %v10035_v38 = vld [vmem:[%s19642_s16 + $0x778] sm:$0xff] }
 0xa34   : > { %7252 = vmatpush.msra.mxu2 %v9978_v36  ;;  %7292 = vmatpush.msrb.mxu0 %v9979_v47  ;;  %v10030_v36 = vld [vmem:[%s19642_s16 + $0x750] sm:$0xff]  ;;  %v10031_v47 = vld [vmem:[%s19642_s16 + $0x758] sm:$0xff] }
 0xa35   : > { %7194 = vmatpush.msrb.mxu3 %v10032_v58  ;;  %7234 = vmatpush.msrb.mxu1 %v10033_v48  ;;  %v10026_v58 = vld [vmem:[%s19642_s16 + $0x730] sm:$0xff]  ;;  %v10027_v48 = vld [vmem:[%s19642_s16 + $0x738] sm:$0xff] }
 0xa36   : > { %7253 = vmatpush.msra.mxu2 %v9974_v32  ;;  %7293 = vmatpush.msrb.mxu0 %v9975_v19  ;;  %v10022_v32 = vld [vmem:[%s19642_s16 + $0x710] sm:$0xff]  ;;  %v10023_v19 = vld [vmem:[%s19642_s16 + $0x718] sm:$0xff] }
 0xa37   : > { %7195 = vmatpush.msrb.mxu3 %v10028_v14  ;;  %7235 = vmatpush.msrb.mxu1 %v10029_v39  ;;  %v10018_v14 = vld [vmem:[%s19642_s16 + $0x6f0] sm:$0xff]  ;;  %v10019_v39 = vld [vmem:[%s19642_s16 + $0x6f8] sm:$0xff] }
 0xa38   : > { %7254 = vmatpush.msra.mxu2 %v9970_v63  ;;  %7294 = vmatpush.msrb.mxu0 %v9971_v42  ;;  %v10014_v63 = vld [vmem:[%s19642_s16 + $0x6d0] sm:$0xff]  ;;  %v10015_v42 = vld [vmem:[%s19642_s16 + $0x6d8] sm:$0xff] }
 0xa39   : > { %7196 = vmatpush.msrb.mxu3 %v10024_v44  ;;  %7236 = vmatpush.msrb.mxu1 %v10025_v20  ;;  %v10010_v44 = vld [vmem:[%s19642_s16 + $0x6b0] sm:$0xff]  ;;  %v10011_v20 = vld [vmem:[%s19642_s16 + $0x6b8] sm:$0xff] }
 0xa3a   : > { %7255 = vmatpush.msra.mxu2 %v9966_v4  ;;  %7295 = vmatpush.msrb.mxu0 %v9967_v26  ;;  %v10006_v4 = vld [vmem:[%s19642_s16 + $0x690] sm:$0xff]  ;;  %v10007_v26 = vld [vmem:[%s19642_s16 + $0x698] sm:$0xff] }
 0xa3b   : > { %7197 = vmatpush.msrb.mxu3 %v10020_v49  ;;  %7237 = vmatpush.msrb.mxu1 %v10021_v55  ;;  %v10002_v49 = vld [vmem:[%s19642_s16 + $0x670] sm:$0xff]  ;;  %v10003_v55 = vld [vmem:[%s19642_s16 + $0x678] sm:$0xff] }
 0xa3c   : > { %7256 = vmatpush.msra.mxu2 %v9962_v57  ;;  %7296 = vmatpush.msrb.mxu0 %v9963_v28  ;;  %v9998_v57 = vld [vmem:[%s19642_s16 + $0x650] sm:$0xff]  ;;  %v9999_v28 = vld [vmem:[%s19642_s16 + $0x658] sm:$0xff] }
 0xa3d   : > { %7198 = vmatpush.msrb.mxu3 %v10016_v30  ;;  %7238 = vmatpush.msrb.mxu1 %v10017_v37  ;;  %v9994_v30 = vld [vmem:[%s19642_s16 + $0x630] sm:$0xff]  ;;  %v9995_v37 = vld [vmem:[%s19642_s16 + $0x638] sm:$0xff] }
 0xa3e   : > { %7257 = vmatpush.msra.mxu2 %v9958_v7  ;;  %7297 = vmatpush.msrb.mxu0 %v9959_v50  ;;  %v9990_v7 = vld [vmem:[%s19642_s16 + $0x610] sm:$0xff]  ;;  %v9991_v50 = vld [vmem:[%s19642_s16 + $0x618] sm:$0xff] }
 0xa3f   : > { %7199 = vmatpush.msrb.mxu3 %v10012_v53  ;;  %7239 = vmatpush.msrb.mxu1 %v10013_v10  ;;  %v6912_v53 = vld [vmem:[%s19642_s16 + $0x1e0] sm:$0xff]  ;;  %v6913_v10 = vld [vmem:[%s19642_s16 + $0x1e8] sm:$0xff] }
 0xa40   : > { %7258 = vmatpush.msra.mxu2 %v9954_v2  ;;  %7298 = vmatpush.msrb.mxu0 %v9955_v1  ;;  %v6908_v1 = vld [vmem:[%s19642_s16 + $0x1c0] sm:$0xff] }
 0xa41   : > { %7200 = vmatpush.msrb.mxu3 %v10008_v40  ;;  %7240 = vmatpush.msrb.mxu1 %v10009_v31  ;;  %v6909_v40 = vld [vmem:[%s19642_s16 + $0x1c8] sm:$0xff]  ;;  %v6904_v31 = vld [vmem:[%s19642_s16 + $0x1a0] sm:$0xff] }
 0xa42   : > { %7259 = vmatpush.msra.mxu2 %v9950_v27  ;;  %7299 = vmatpush.msrb.mxu0 %v9951_v54  ;;  %v6905_v27 = vld [vmem:[%s19642_s16 + $0x1a8] sm:$0xff]  ;;  %v6900_v54 = vld [vmem:[%s19642_s16 + $0x180] sm:$0xff] }
 0xa43   : > { %7201 = vmatpush.msrb.mxu3 %v10004_v16  ;;  %7241 = vmatpush.msrb.mxu1 %v10005_v13  ;;  %v6901_v16 = vld [vmem:[%s19642_s16 + $0x188] sm:$0xff]  ;;  %v6896_v13 = vld [vmem:[%s19642_s16 + $0x160] sm:$0xff] }
 0xa44   : > { %7260 = vmatpush.msra.mxu2 %v9946_v41  ;;  %7300 = vmatpush.msrb.mxu0 %v9947_v11  ;;  %v6897_v41 = vld [vmem:[%s19642_s16 + $0x168] sm:$0xff]  ;;  %v6892_v11 = vld [vmem:[%s19642_s16 + $0x140] sm:$0xff] }
 0xa45   : > { %7202 = vmatpush.msrb.mxu3 %v10000_v12  ;;  %7242 = vmatpush.msrb.mxu1 %v10001_v61  ;;  %v6893_v12 = vld [vmem:[%s19642_s16 + $0x148] sm:$0xff]  ;;  %v6888_v61 = vld [vmem:[%s19642_s16 + $0x120] sm:$0xff] }
 0xa46   : > { %7261 = vmatpush.msra.mxu2 %v9942_v29  ;;  %7301 = vmatpush.msrb.mxu0 %v9943_v8  ;;  %v6889_v29 = vld [vmem:[%s19642_s16 + $0x128] sm:$0xff]  ;;  %v6884_v8 = vld [vmem:[%s19642_s16 + $0x100] sm:$0xff] }
 0xa47   : > { %7203 = vmatpush.msrb.mxu3 %v9996_v59  ;;  %7243 = vmatpush.msrb.mxu1 %v9997_v25  ;;  %v6885_v59 = vld [vmem:[%s19642_s16 + $0x108] sm:$0xff]  ;;  %v6880_v25 = vld [vmem:[%s19642_s16 + $0xe0] sm:$0xff] }
 0xa48   : > { %7262 = vmatpush.msra.mxu2 %v9938_v33  ;;  %7302 = vmatpush.msrb.mxu0 %v9939_v15  ;;  %v6881_v33 = vld [vmem:[%s19642_s16 + $0xe8] sm:$0xff]  ;;  %v6876_v15 = vld [vmem:[%s19642_s16 + $0xc0] sm:$0xff] }
 0xa49   : > { %7204 = vmatpush.msrb.mxu3 %v9992_v51  ;;  %7244 = vmatpush.msrb.mxu1 %v9993_v24  ;;  %v6877_v51 = vld [vmem:[%s19642_s16 + $0xc8] sm:$0xff]  ;;  %v6872_v24 = vld [vmem:[%s19642_s16 + $0xa0] sm:$0xff] }
 0xa4a   : > { %7263 = vmatpush.msra.mxu2 %v9934_v18  ;;  %7303 = vmatpush.msrb.mxu0 %v9935_v35  ;;  %v6873_v18 = vld [vmem:[%s19642_s16 + $0xa8] sm:$0xff]  ;;  %v6868_v35 = vld [vmem:[%s19642_s16 + $0x80] sm:$0xff] }
 0xa4b   : > { %7205 = vmatpush.msrb.mxu3 %v9988_v22  ;;  %7245 = vmatpush.msrb.mxu1 %v9989_v9  ;;  %v6869_v22 = vld [vmem:[%s19642_s16 + $0x88] sm:$0xff]  ;;  %v6864_v9 = vld [vmem:[%s19642_s16 + $0x60] sm:$0xff] }
 0xa4c   : > { %7264 = vmatpush.msra.mxu2 %v9930_v21  ;;  %7304 = vmatpush.msrb.mxu0 %v9931_v23  ;;  %v6865_v21 = vld [vmem:[%s19642_s16 + $0x68] sm:$0xff]  ;;  %v6860_v23 = vld [vmem:[%s19642_s16 + $0x40] sm:$0xff] }
 0xa4d   : > { %10056 = vmatpush.msk.msra.mxu3 %vm6029_vm8, %v10050_v0  ;;  %10058 = vmatpush.msk.msra.mxu1 %vm6029_vm8, %v10051_v46  ;;  %v6861_v0 = vld [vmem:[%s19642_s16 + $0x48] sm:$0xff]  ;;  %v6856_v46 = vld [vmem:[%s19642_s16 + $0x20] sm:$0xff] }
 0xa4e   : > { %7265 = vmatpush.msra.mxu2 %v9926_v5  ;;  %7305 = vmatpush.msrb.mxu0 %v9927_v6  ;;  %v6857_v5 = vld [vmem:[%s19642_s16 + $0x28] sm:$0xff]  ;;  %v6976_v6 = vld [vmem:[%s19642_s16 + $0x3e0] sm:$0x3] }
 0xa4f   : > { %7271 = vmatpush.msra.mxu3 %v10046_v56  ;;  %7311 = vmatpush.msra.mxu1 %v10047_v52  ;;  %v6977_v56 = vld [vmem:[%s19642_s16 + $0x3e8] sm:$0x3] }
 0xa51   : > { %7272 = vmatpush.msra.mxu3 %v10042_v62  ;;  %7312 = vmatpush.msra.mxu1 %v10043_v60  ;;  %v6852_v62 = vld [vmem:[%s19642_s16] sm:$0xff]  ;;  %v6853_v60 = vld [vmem:[%s19642_s16 + $0x8] sm:$0xff] }
 0xa53   : > { %7273 = vmatpush.msra.mxu3 %v10038_v43  ;;  %7313 = vmatpush.msra.mxu1 %v10039_v45  ;;  %v6972_v45 = vld [vmem:[%s19642_s16 + $0x3c0] sm:$0xff] }
 0xa55   : > { %7274 = vmatpush.msra.mxu3 %v10034_v17  ;;  %7314 = vmatpush.msra.mxu1 %v10035_v38  ;;  %v6973_v17 = vld [vmem:[%s19642_s16 + $0x3c8] sm:$0xff]  ;;  %v6914_v38 = vld [vmem:[%s19642_s16 + $0x1f0] sm:$0xff] }
 0xa57   : > { %7275 = vmatpush.msra.mxu3 %v10030_v36  ;;  %7315 = vmatpush.msra.mxu1 %v10031_v47  ;;  %v6915_v36 = vld [vmem:[%s19642_s16 + $0x1f8] sm:$0xff]  ;;  %v6968_v47 = vld [vmem:[%s19642_s16 + $0x3a0] sm:$0xff] }
 0xa59   : > { %7276 = vmatpush.msra.mxu3 %v10026_v58  ;;  %7316 = vmatpush.msra.mxu1 %v10027_v48  ;;  %v6969_v58 = vld [vmem:[%s19642_s16 + $0x3a8] sm:$0xff]  ;;  %v6910_v48 = vld [vmem:[%s19642_s16 + $0x1d0] sm:$0xff] }
 0xa5b   : > { %7277 = vmatpush.msra.mxu3 %v10022_v32  ;;  %7317 = vmatpush.msra.mxu1 %v10023_v19  ;;  %v6911_v32 = vld [vmem:[%s19642_s16 + $0x1d8] sm:$0xff]  ;;  %v6964_v19 = vld [vmem:[%s19642_s16 + $0x380] sm:$0xff] }
 0xa5d   : > { %7278 = vmatpush.msra.mxu3 %v10018_v14  ;;  %7318 = vmatpush.msra.mxu1 %v10019_v39  ;;  %v6965_v14 = vld [vmem:[%s19642_s16 + $0x388] sm:$0xff]  ;;  %v6906_v39 = vld [vmem:[%s19642_s16 + $0x1b0] sm:$0xff] }
 0xa5f   : > { %7279 = vmatpush.msra.mxu3 %v10014_v63  ;;  %7319 = vmatpush.msra.mxu1 %v10015_v42  ;;  %v6907_v63 = vld [vmem:[%s19642_s16 + $0x1b8] sm:$0xff]  ;;  %v6960_v42 = vld [vmem:[%s19642_s16 + $0x360] sm:$0xff] }
 0xa61   : > { %7280 = vmatpush.msra.mxu3 %v10010_v44  ;;  %7320 = vmatpush.msra.mxu1 %v10011_v20  ;;  %v6961_v44 = vld [vmem:[%s19642_s16 + $0x368] sm:$0xff]  ;;  %v6902_v20 = vld [vmem:[%s19642_s16 + $0x190] sm:$0xff] }
 0xa63   : > { %7281 = vmatpush.msra.mxu3 %v10006_v4  ;;  %7321 = vmatpush.msra.mxu1 %v10007_v26  ;;  %v6903_v4 = vld [vmem:[%s19642_s16 + $0x198] sm:$0xff]  ;;  %v6956_v26 = vld [vmem:[%s19642_s16 + $0x340] sm:$0xff] }
 0xa65   : > { %7282 = vmatpush.msra.mxu3 %v10002_v49  ;;  %7322 = vmatpush.msra.mxu1 %v10003_v55  ;;  %v6957_v49 = vld [vmem:[%s19642_s16 + $0x348] sm:$0xff]  ;;  %v6898_v55 = vld [vmem:[%s19642_s16 + $0x170] sm:$0xff] }
 0xa67   : > { %7283 = vmatpush.msra.mxu3 %v9998_v57  ;;  %7323 = vmatpush.msra.mxu1 %v9999_v28  ;;  %v6899_v57 = vld [vmem:[%s19642_s16 + $0x178] sm:$0xff]  ;;  %v6952_v28 = vld [vmem:[%s19642_s16 + $0x320] sm:$0xff] }
 0xa69   : > { %7284 = vmatpush.msra.mxu3 %v9994_v30  ;;  %7324 = vmatpush.msra.mxu1 %v9995_v37  ;;  %v6953_v30 = vld [vmem:[%s19642_s16 + $0x328] sm:$0xff]  ;;  %v6894_v37 = vld [vmem:[%s19642_s16 + $0x150] sm:$0xff] }
 0xa6b   : > { %7285 = vmatpush.msra.mxu3 %v9990_v7  ;;  %7325 = vmatpush.msra.mxu1 %v9991_v50  ;;  %v6895_v7 = vld [vmem:[%s19642_s16 + $0x158] sm:$0xff]  ;;  %v6948_v50 = vld [vmem:[%s19642_s16 + $0x300] sm:$0xff] }
 0xa8a   : > { %v7002_v2 = vpop.f32.mrf.mxu0 }
 0xa8b   : > { %7186 = vmatmul.f32.vlgmr.msrb.gmra.mxu2 %v7002_v2  ;;  %7226 = vmatmul.f32.vlgmr.msra.gmra.mxu0 %v7002_v2 }
 0xa8c   : > { %7345 = vmatpush.msrb.mxu2 %v6912_v53  ;;  %7385 = vmatpush.msra.mxu0 %v6913_v10  ;;  %v6949_v53 = vld [vmem:[%s19642_s16 + $0x308] sm:$0xff]  ;;  %v6890_v10 = vld [vmem:[%s19642_s16 + $0x130] sm:$0xff] }
 0xa8e   : > { %7346 = vmatpush.msrb.mxu2 %v6908_v1  ;;  %7386 = vmatpush.msra.mxu0 %v6909_v40  ;;  %v6944_v1 = vld [vmem:[%s19642_s16 + $0x2e0] sm:$0xff]  ;;  %v6945_v40 = vld [vmem:[%s19642_s16 + $0x2e8] sm:$0xff] }
 0xa90   : > { %7347 = vmatpush.msrb.mxu2 %v6904_v31  ;;  %7387 = vmatpush.msra.mxu0 %v6905_v27  ;;  %v17819_v43 = vpop.f32.mrf.mxu2  ;;  %v6886_v31 = vld [vmem:[%s19642_s16 + $0x110] sm:$0xff]  ;;  %v6887_v27 = vld [vmem:[%s19642_s16 + $0x118] sm:$0xff] }
 0xa92   : > { %7348 = vmatpush.msrb.mxu2 %v6900_v54  ;;  %7388 = vmatpush.msra.mxu0 %v6901_v16  ;;  %v6940_v54 = vld [vmem:[%s19642_s16 + $0x2c0] sm:$0xff]  ;;  %v6941_v16 = vld [vmem:[%s19642_s16 + $0x2c8] sm:$0xff] }
 0xa93   : > { %7266 = vmatmul.f32.vlgmr.msra.gmra.mxu2 %v7002_v2  ;;  %7306 = vmatmul.f32.vlgmr.msrb.gmra.mxu0 %v7002_v2  ;;  %v6891_v2 = vld [vmem:[%s19642_s16 + $0x138] sm:$0xff] }
 0xa94   : > { %7349 = vmatpush.msrb.mxu2 %v6896_v13  ;;  %7389 = vmatpush.msra.mxu0 %v6897_v41  ;;  %v6882_v13 = vld [vmem:[%s19642_s16 + $0xf0] sm:$0xff]  ;;  %v6883_v41 = vld [vmem:[%s19642_s16 + $0xf8] sm:$0xff] }
 0xa96   : > { %7350 = vmatpush.msrb.mxu2 %v6892_v11  ;;  %7390 = vmatpush.msra.mxu0 %v6893_v12  ;;  %v6936_v11 = vld [vmem:[%s19642_s16 + $0x2a0] sm:$0xff]  ;;  %v6937_v12 = vld [vmem:[%s19642_s16 + $0x2a8] sm:$0xff] }
 0xa98   : > { %7351 = vmatpush.msrb.mxu2 %v6888_v61  ;;  %7391 = vmatpush.msra.mxu0 %v6889_v29  ;;  %v6878_v61 = vld [vmem:[%s19642_s16 + $0xd0] sm:$0xff]  ;;  %v6879_v29 = vld [vmem:[%s19642_s16 + $0xd8] sm:$0xff] }
 0xa9a   : > { %7352 = vmatpush.msrb.mxu2 %v6884_v8  ;;  %7392 = vmatpush.msra.mxu0 %v6885_v59  ;;  %v6932_v8 = vld [vmem:[%s19642_s16 + $0x280] sm:$0xff]  ;;  %v6933_v59 = vld [vmem:[%s19642_s16 + $0x288] sm:$0xff] }
 0xa9c   : > { %7353 = vmatpush.msrb.mxu2 %v6880_v25  ;;  %7393 = vmatpush.msra.mxu0 %v6881_v33  ;;  %v6874_v25 = vld [vmem:[%s19642_s16 + $0xb0] sm:$0xff]  ;;  %v6875_v33 = vld [vmem:[%s19642_s16 + $0xb8] sm:$0xff] }
 0xa9e   : > { %7354 = vmatpush.msrb.mxu2 %v6876_v15  ;;  %7394 = vmatpush.msra.mxu0 %v6877_v51  ;;  %v6928_v15 = vld [vmem:[%s19642_s16 + $0x260] sm:$0xff]  ;;  %v6929_v51 = vld [vmem:[%s19642_s16 + $0x268] sm:$0xff] }
 0xaa0   : > { %7355 = vmatpush.msrb.mxu2 %v6872_v24  ;;  %7395 = vmatpush.msra.mxu0 %v6873_v18  ;;  %v6870_v24 = vld [vmem:[%s19642_s16 + $0x90] sm:$0xff]  ;;  %v6871_v18 = vld [vmem:[%s19642_s16 + $0x98] sm:$0xff] }
 0xaa2   : > { %7356 = vmatpush.msrb.mxu2 %v6868_v35  ;;  %7396 = vmatpush.msra.mxu0 %v6869_v22  ;;  %v6924_v35 = vld [vmem:[%s19642_s16 + $0x240] sm:$0xff]  ;;  %v6925_v22 = vld [vmem:[%s19642_s16 + $0x248] sm:$0xff] }
 0xaa4   : > { %7357 = vmatpush.msrb.mxu2 %v6864_v9  ;;  %7397 = vmatpush.msra.mxu0 %v6865_v21  ;;  %v6866_v9 = vld [vmem:[%s19642_s16 + $0x70] sm:$0xff]  ;;  %v6867_v21 = vld [vmem:[%s19642_s16 + $0x78] sm:$0xff] }
 0xaa6   : > { %7358 = vmatpush.msrb.mxu2 %v6860_v23  ;;  %7398 = vmatpush.msra.mxu0 %v6861_v0  ;;  %v6920_v23 = vld [vmem:[%s19642_s16 + $0x220] sm:$0xff]  ;;  %v6921_v0 = vld [vmem:[%s19642_s16 + $0x228] sm:$0xff] }
 0xaa8   : > { %v7022_v52 = vpop.f32.mrf.mxu1  ;;  %7359 = vmatpush.msrb.mxu2 %v6856_v46  ;;  %7399 = vmatpush.msra.mxu0 %v6857_v5  ;;  %v6862_v46 = vld [vmem:[%s19642_s16 + $0x50] sm:$0xff]  ;;  %v6863_v5 = vld [vmem:[%s19642_s16 + $0x58] sm:$0xff] }
 0xaa9   : > { %10053 = vmatmul.msk.f32.vlgmr.msrb.gmra.mxu3 %vm7154_vm13, %v7022_v52  ;;  %10055 = vmatmul.msk.f32.vlgmr.msrb.gmra.mxu1 %vm7154_vm13, %v7022_v52 }
 0xaaa   : > { %10060 = vmatpush.msk.msrb.mxu3 %vm6029_vm8, %v6976_v6  ;;  %10062 = vmatpush.msk.msrb.mxu1 %vm6029_vm8, %v6977_v56  ;;  %v6916_v6 = vld [vmem:[%s19642_s16 + $0x200] sm:$0xff]  ;;  %v6917_v56 = vld [vmem:[%s19642_s16 + $0x208] sm:$0xff] }
 0xaab   : > { %7360 = vmatpush.msrb.mxu2 %v6852_v62  ;;  %7400 = vmatpush.msra.mxu0 %v6853_v60  ;;  %v6859_v62 = vld [vmem:[%s19642_s16 + $0x38] sm:$0xff] }
 0xaac   : > { %7361 = vmatmul.f32.vlgmr.msrb.gmra.mxu2 %v17819_v43  ;;  %7366 = vmatpush.msrb.mxu3 %v6972_v45  ;;  %v6978_v45 = vld [vmem:[%s19642_s16 + $0x3f0] sm:$0x3] }
 0xaad   : > { %7401 = vmatmul.f32.vlgmr.msra.gmra.mxu0 %v17819_v43  ;;  %7406 = vmatpush.msrb.mxu1 %v6973_v17  ;;  %v6979_v17 = vld [vmem:[%s19642_s16 + $0x3f8] sm:$0x3] }
 0xaae   : > { %7425 = vmatpush.msra.mxu2 %v6914_v38  ;;  %7465 = vmatpush.msrb.mxu0 %v6915_v36  ;;  %v18007_v60 = vpop.f32.mrf.mxu3  ;;  %v6854_v38 = vld [vmem:[%s19642_s16 + $0x10] sm:$0xff]  ;;  %v6855_v36 = vld [vmem:[%s19642_s16 + $0x18] sm:$0xff] }
 0xaaf   : > { %7367 = vmatpush.msrb.mxu3 %v6968_v47  ;;  %7407 = vmatpush.msrb.mxu1 %v6969_v58  ;;  %v6974_v47 = vld [vmem:[%s19642_s16 + $0x3d0] sm:$0xff]  ;;  %v6975_v58 = vld [vmem:[%s19642_s16 + $0x3d8] sm:$0xff] }
 0xab0   : > { %7426 = vmatpush.msra.mxu2 %v6910_v48  ;;  %7466 = vmatpush.msrb.mxu0 %v6911_v32  ;;  %v6970_v48 = vld [vmem:[%s19642_s16 + $0x3b0] sm:$0xff]  ;;  %v6971_v32 = vld [vmem:[%s19642_s16 + $0x3b8] sm:$0xff] }
 0xab1   : > { %7368 = vmatpush.msrb.mxu3 %v6964_v19  ;;  %7408 = vmatpush.msrb.mxu1 %v6965_v14  ;;  %v6966_v19 = vld [vmem:[%s19642_s16 + $0x390] sm:$0xff]  ;;  %v6967_v14 = vld [vmem:[%s19642_s16 + $0x398] sm:$0xff] }
 0xab2   : > { %7427 = vmatpush.msra.mxu2 %v6906_v39  ;;  %7467 = vmatpush.msrb.mxu0 %v6907_v63  ;;  %v6962_v39 = vld [vmem:[%s19642_s16 + $0x370] sm:$0xff] }
 0xab3   : > { %10057 = vmatmul.msk.f32.vlgmr.msra.gmra.mxu3 %vm7154_vm13, %v7022_v52  ;;  %10059 = vmatmul.msk.f32.vlgmr.msra.gmra.mxu1 %vm7154_vm13, %v7022_v52  ;;  %v6858_v52 = vld [vmem:[%s19642_s16 + $0x30] sm:$0xff] }
 0xab4   : > { %7369 = vmatpush.msrb.mxu3 %v6960_v42  ;;  %7409 = vmatpush.msrb.mxu1 %v6961_v44  ;;  %v6958_v63 = vld [vmem:[%s19642_s16 + $0x350] sm:$0xff]  ;;  %v10068_v42 = vld [vmem:[%s19641_s15 + $0x2] sm:$0x1]  ;;  %v6959_v44 = vld [vmem:[%s19642_s16 + $0x358] sm:$0xff] }
 0xab5   : > { %7428 = vmatpush.msra.mxu2 %v6902_v20  ;;  %7468 = vmatpush.msrb.mxu0 %v6903_v4  ;;  %v6954_v20 = vld [vmem:[%s19642_s16 + $0x330] sm:$0xff]  ;;  %v6955_v4 = vld [vmem:[%s19642_s16 + $0x338] sm:$0xff] }
 0xab6   : > { %7370 = vmatpush.msrb.mxu3 %v6956_v26  ;;  %7410 = vmatpush.msrb.mxu1 %v6957_v49  ;;  %v6950_v26 = vld [vmem:[%s19642_s16 + $0x310] sm:$0xff]  ;;  %v6951_v49 = vld [vmem:[%s19642_s16 + $0x318] sm:$0xff] }
 0xab7   : > { %7429 = vmatpush.msra.mxu2 %v6898_v55  ;;  %7469 = vmatpush.msrb.mxu0 %v6899_v57  ;;  %v6946_v55 = vld [vmem:[%s19642_s16 + $0x2f0] sm:$0xff]  ;;  %v6947_v57 = vld [vmem:[%s19642_s16 + $0x2f8] sm:$0xff] }
 0xab8   : > { %7371 = vmatpush.msrb.mxu3 %v6952_v28  ;;  %7411 = vmatpush.msrb.mxu1 %v6953_v30  ;;  %v6942_v28 = vld [vmem:[%s19642_s16 + $0x2d0] sm:$0xff]  ;;  %v6943_v30 = vld [vmem:[%s19642_s16 + $0x2d8] sm:$0xff] }
 0xab9   : > { %7430 = vmatpush.msra.mxu2 %v6894_v37  ;;  %7470 = vmatpush.msrb.mxu0 %v6895_v7  ;;  %v6938_v37 = vld [vmem:[%s19642_s16 + $0x2b0] sm:$0xff]  ;;  %v6939_v7 = vld [vmem:[%s19642_s16 + $0x2b8] sm:$0xff] }
 0xaba   : > { %7372 = vmatpush.msrb.mxu3 %v6948_v50  ;;  %7412 = vmatpush.msrb.mxu1 %v6949_v53  ;;  %v6934_v50 = vld [vmem:[%s19642_s16 + $0x290] sm:$0xff]  ;;  %v6935_v53 = vld [vmem:[%s19642_s16 + $0x298] sm:$0xff] }
 0xabb   : > { %7431 = vmatpush.msra.mxu2 %v6890_v10  ;;  %7471 = vmatpush.msrb.mxu0 %v6891_v2  ;;  %v6930_v10 = vld [vmem:[%s19642_s16 + $0x270] sm:$0xff]  ;;  %v6931_v2 = vld [vmem:[%s19642_s16 + $0x278] sm:$0xff] }
 0xabc   : > { %7373 = vmatpush.msrb.mxu3 %v6944_v1  ;;  %7413 = vmatpush.msrb.mxu1 %v6945_v40  ;;  %v6926_v1 = vld [vmem:[%s19642_s16 + $0x250] sm:$0xff]  ;;  %v6927_v40 = vld [vmem:[%s19642_s16 + $0x258] sm:$0xff] }
 0xabd   : > { %7432 = vmatpush.msra.mxu2 %v6886_v31  ;;  %7472 = vmatpush.msrb.mxu0 %v6887_v27  ;;  %v6922_v31 = vld [vmem:[%s19642_s16 + $0x230] sm:$0xff]  ;;  %v6923_v27 = vld [vmem:[%s19642_s16 + $0x238] sm:$0xff] }
 0xabe   : > { %7374 = vmatpush.msrb.mxu3 %v6940_v54  ;;  %7414 = vmatpush.msrb.mxu1 %v6941_v16  ;;  %v6918_v54 = vld [vmem:[%s19642_s16 + $0x210] sm:$0xff]  ;;  %v10133_v16 = vld [vmem:[%s19642_s16 + $0x9e0] sm:$0xff] }
 0xabf   : > { %7433 = vmatpush.msra.mxu2 %v6882_v13  ;;  %7473 = vmatpush.msrb.mxu0 %v6883_v41  ;;  %v10129_v13 = vld [vmem:[%s19642_s16 + $0x9c0] sm:$0xff]  ;;  %v6919_v41 = vld [vmem:[%s19642_s16 + $0x218] sm:$0xff] }
 0xac0   : > { %7375 = vmatpush.msrb.mxu3 %v6936_v11  ;;  %7415 = vmatpush.msrb.mxu1 %v6937_v12  ;;  %v10125_v11 = vld [vmem:[%s19642_s16 + $0x9a0] sm:$0xff] }
 0xac1   : > { %7434 = vmatpush.msra.mxu2 %v6878_v61  ;;  %7474 = vmatpush.msrb.mxu0 %v6879_v29  ;;  %v10121_v12 = vld [vmem:[%s19642_s16 + $0x980] sm:$0xff] }
 0xac2   : > { %7376 = vmatpush.msrb.mxu3 %v6932_v8  ;;  %7416 = vmatpush.msrb.mxu1 %v6933_v59  ;;  %v10117_v61 = vld [vmem:[%s19642_s16 + $0x960] sm:$0xff] }
 0xac3   : > { %7435 = vmatpush.msra.mxu2 %v6874_v25  ;;  %7475 = vmatpush.msrb.mxu0 %v6875_v33  ;;  %v10113_v29 = vld [vmem:[%s19642_s16 + $0x940] sm:$0xff] }
 0xac4   : > { %7377 = vmatpush.msrb.mxu3 %v6928_v15  ;;  %7417 = vmatpush.msrb.mxu1 %v6929_v51  ;;  %v10109_v8 = vld [vmem:[%s19642_s16 + $0x920] sm:$0xff] }
 0xac5   : > { %7436 = vmatpush.msra.mxu2 %v6870_v24  ;;  %7476 = vmatpush.msrb.mxu0 %v6871_v18  ;;  %v10105_v59 = vld [vmem:[%s19642_s16 + $0x900] sm:$0xff] }
 0xac6   : > { %7378 = vmatpush.msrb.mxu3 %v6924_v35  ;;  %7418 = vmatpush.msrb.mxu1 %v6925_v22  ;;  %v10101_v25 = vld [vmem:[%s19642_s16 + $0x8e0] sm:$0xff] }
 0xac7   : > { %7437 = vmatpush.msra.mxu2 %v6866_v9  ;;  %7477 = vmatpush.msrb.mxu0 %v6867_v21  ;;  %v10097_v33 = vld [vmem:[%s19642_s16 + $0x8c0] sm:$0xff]  ;;  %v10134_v21 = vld [vmem:[%s19642_s16 + $0x9e8] sm:$0xff] }
 0xac8   : > { %7379 = vmatpush.msrb.mxu3 %v6920_v23  ;;  %7419 = vmatpush.msrb.mxu1 %v6921_v0  ;;  %v10093_v15 = vld [vmem:[%s19642_s16 + $0x8a0] sm:$0xff] }
 0xac9   : > { %7438 = vmatpush.msra.mxu2 %v6862_v46  ;;  %7478 = vmatpush.msrb.mxu0 %v6863_v5  ;;  %v10089_v51 = vld [vmem:[%s19642_s16 + $0x880] sm:$0xff]  ;;  %v10130_v46 = vld [vmem:[%s19642_s16 + $0x9c8] sm:$0xff]  ;;  %v10135_v5 = vld [vmem:[%s19642_s16 + $0x9f0] sm:$0xff] }
 0xaca   : > { %7380 = vmatpush.msrb.mxu3 %v6916_v6  ;;  %7420 = vmatpush.msrb.mxu1 %v6917_v56  ;;  %v10085_v24 = vld [vmem:[%s19642_s16 + $0x860] sm:$0xff]  ;;  %v10126_v56 = vld [vmem:[%s19642_s16 + $0x9a8] sm:$0xff] }
 0xacb   : > { %7439 = vmatpush.msra.mxu2 %v6858_v52  ;;  %7479 = vmatpush.msrb.mxu0 %v6859_v62  ;;  %v10081_v18 = vld [vmem:[%s19642_s16 + $0x840] sm:$0xff]  ;;  %v10131_v52 = vld [vmem:[%s19642_s16 + $0x9d0] sm:$0xff] }
 0xacc   : > { %10061 = vmatmul.msk.f32.vlgmr.msrb.gmra.mxu3 %vm7154_vm13, %v18007_v60  ;;  %10063 = vmatmul.msk.f32.vlgmr.msrb.gmra.mxu1 %vm7154_vm13, %v18007_v60  ;;  %v10077_v22 = vld [vmem:[%s19642_s16 + $0x820] sm:$0xff] }
 0xacd   : > { %10064 = vmatpush.msk.msra.mxu3 %vm6029_vm8, %v6978_v45  ;;  %10066 = vmatpush.msk.msra.mxu1 %vm6029_vm8, %v6979_v17  ;;  %v10197_v9 = vld [vmem:[%s19642_s16 + $0xbe0] sm:$0x3]  ;;  %v10122_v45 = vld [vmem:[%s19642_s16 + $0x988] sm:$0xff]  ;;  %v10127_v17 = vld [vmem:[%s19642_s16 + $0x9b0] sm:$0xff] }
 0xace   : > { %7440 = vmatpush.msra.mxu2 %v6854_v38  ;;  %7480 = vmatpush.msrb.mxu0 %v6855_v36  ;;  %v10073_v23 = vld [vmem:[%s19642_s16 + $0x800] sm:$0xff]  ;;  %v10198_v38 = vld [vmem:[%s19642_s16 + $0xbe8] sm:$0x3] }
 0xacf   : > { %7441 = vmatmul.f32.vlgmr.msra.gmra.mxu2 %v17819_v43  ;;  %7446 = vmatpush.msra.mxu3 %v6974_v47  ;;  %v10193_v0 = vld [vmem:[%s19642_s16 + $0xbc0] sm:$0xff]  ;;  %v10194_v47 = vld [vmem:[%s19642_s16 + $0xbc8] sm:$0xff] }
 0xad0   : > { %7481 = vmatmul.f32.vlgmr.msrb.gmra.mxu0 %v17819_v43  ;;  %7486 = vmatpush.msra.mxu1 %v6975_v58  ;;  %v6963_v43 = vld [vmem:[%s19642_s16 + $0x378] sm:$0xff]  ;;  %v10189_v6 = vld [vmem:[%s19642_s16 + $0xba0] sm:$0xff]  ;;  %v10118_v58 = vld [vmem:[%s19642_s16 + $0x968] sm:$0xff] }
 0xad1   : > { %10069 = vmatpush.msk.msrb.mxu2 %vm6805_vm11, %v17295_v34  ;;  %7447 = vmatpush.msra.mxu3 %v6970_v48  ;;  %v10181_v36 = vld [vmem:[%s19642_s16 + $0xb60] sm:$0xff]  ;;  %v10123_v48 = vld [vmem:[%s19642_s16 + $0x990] sm:$0xff] }
 0xad2   : > { %7487 = vmatpush.msra.mxu1 %v6971_v32  ;;  %7694 = vmatpush.msra.mxu0 %v10133_v16  ;;  %v10177_v32 = vld [vmem:[%s19642_s16 + $0xb40] sm:$0xff] }
 0xad3   : > { %7448 = vmatpush.msra.mxu3 %v6966_v19  ;;  %7734 = vmatpush.msra.mxu2 %v10134_v21  ;;  %v10190_v19 = vld [vmem:[%s19642_s16 + $0xba8] sm:$0xff]  ;;  %v10157_v16 = vld [vmem:[%s19642_s16 + $0xaa0] sm:$0xff] }
 0xad4   : > { %7488 = vmatpush.msra.mxu1 %v6967_v14  ;;  %7695 = vmatpush.msra.mxu0 %v10129_v13  ;;  %v10094_v13 = vld [vmem:[%s19642_s16 + $0x8a8] sm:$0xff] }
 0xad5   : > { %7449 = vmatpush.msra.mxu3 %v6962_v39  ;;  %7735 = vmatpush.msra.mxu2 %v10130_v46  ;;  %v10114_v39 = vld [vmem:[%s19642_s16 + $0x948] sm:$0xff] }
 0xad6   : > { %7489 = vmatpush.msra.mxu1 %v6963_v43  ;;  %7696 = vmatpush.msra.mxu0 %v10125_v11  ;;  %v10119_v43 = vld [vmem:[%s19642_s16 + $0x970] sm:$0xff]  ;;  %v10174_v11 = vld [vmem:[%s19642_s16 + $0xb28] sm:$0xff] }
 0xad7   : > { %7450 = vmatpush.msra.mxu3 %v6958_v63  ;;  %10070 = vmatmul.msk.f32.vlgmr.msrb.gmra.mxu2 %vm6801_vm12, %v10068_v42  ;;  %v10173_v63 = vld [vmem:[%s19642_s16 + $0xb20] sm:$0xff]  ;;  %v10162_v21 = vld [vmem:[%s19642_s16 + $0xac8] sm:$0xff] }
 0xad8   : > { %7490 = vmatpush.msra.mxu1 %v6959_v44  ;;  %7697 = vmatpush.msra.mxu0 %v10121_v12  ;;  %v10110_v44 = vld [vmem:[%s19642_s16 + $0x928] sm:$0xff]  ;;  %v10099_v12 = vld [vmem:[%s19642_s16 + $0x8d0] sm:$0xff] }
 0xad9   : > { %7451 = vmatpush.msra.mxu3 %v6954_v20  ;;  %7736 = vmatpush.msra.mxu2 %v10126_v56  ;;  %v10115_v20 = vld [vmem:[%s19642_s16 + $0x950] sm:$0xff] }
 0xada   : > { %7491 = vmatpush.msra.mxu1 %v6955_v4  ;;  %7698 = vmatpush.msra.mxu0 %v10117_v61  ;;  %v10169_v4 = vld [vmem:[%s19642_s16 + $0xb00] sm:$0xff]  ;;  %v10083_v56 = vld [vmem:[%s19642_s16 + $0x850] sm:$0xff] }
 0xadb   : > { %7452 = vmatpush.msra.mxu3 %v6950_v26  ;;  %7737 = vmatpush.msra.mxu2 %v10122_v45  ;;  %v10106_v26 = vld [vmem:[%s19642_s16 + $0x908] sm:$0xff] }
 0xadc   : > { %7492 = vmatpush.msra.mxu1 %v6951_v49  ;;  %7699 = vmatpush.msra.mxu0 %v10113_v29  ;;  %v10111_v49 = vld [vmem:[%s19642_s16 + $0x930] sm:$0xff]  ;;  %v10154_v45 = vld [vmem:[%s19642_s16 + $0xa88] sm:$0xff] }
 0xadd   : > { %7453 = vmatpush.msra.mxu3 %v6946_v55  ;;  %7738 = vmatpush.msra.mxu2 %v10118_v58  ;;  %v10075_v58 = vld [vmem:[%s19642_s16 + $0x810] sm:$0xff] }
 0xade   : > { %7493 = vmatpush.msra.mxu1 %v6947_v57  ;;  %7700 = vmatpush.msra.mxu0 %v10109_v8  ;;  %v10153_v8 = vld [vmem:[%s19642_s16 + $0xa80] sm:$0xff] }
 0xadf   : > { %7454 = vmatpush.msra.mxu3 %v6942_v28  ;;  %7739 = vmatpush.msra.mxu2 %v10114_v39  ;;  %v10128_v39 = vld [vmem:[%s19642_s16 + $0x9b8] sm:$0xff] }
 0xae0   : > { %7494 = vmatpush.msra.mxu1 %v6943_v30  ;;  %7701 = vmatpush.msra.mxu0 %v10105_v59  ;;  %v10090_v59 = vld [vmem:[%s19642_s16 + $0x888] sm:$0xff] }
 0xae1   : > { %7455 = vmatpush.msra.mxu3 %v6938_v37  ;;  %7740 = vmatpush.msra.mxu2 %v10110_v44  ;;  %v10165_v37 = vld [vmem:[%s19642_s16 + $0xae0] sm:$0xff]  ;;  %v10138_v44 = vld [vmem:[%s19642_s16 + $0xa08] sm:$0xff] }
 0xae2   : > { %7495 = vmatpush.msra.mxu1 %v6939_v7  ;;  %7702 = vmatpush.msra.mxu0 %v10101_v25  ;;  %v10102_v7 = vld [vmem:[%s19642_s16 + $0x8e8] sm:$0xff] }
 0xae3   : > { %7456 = vmatpush.msra.mxu3 %v6934_v50  ;;  %7741 = vmatpush.msra.mxu2 %v10106_v26  ;;  %v10182_v50 = vld [vmem:[%s19642_s16 + $0xb68] sm:$0xff]  ;;  %v10200_v26 = vld [vmem:[%s19642_s16 + $0xbf8] sm:$0x3] }
 0xae4   : > { %7496 = vmatpush.msra.mxu1 %v6935_v53  ;;  %7703 = vmatpush.msra.mxu0 %v10097_v33  ;;  %v10170_v25 = vld [vmem:[%s19642_s16 + $0xb08] sm:$0xff] }
 0xae5   : > { %7457 = vmatpush.msra.mxu3 %v6930_v10  ;;  %7742 = vmatpush.msra.mxu2 %v10102_v7  ;;  %v10107_v10 = vld [vmem:[%s19642_s16 + $0x910] sm:$0xff] }
 0xae6   : > { %7497 = vmatpush.msra.mxu1 %v6931_v2  ;;  %7704 = vmatpush.msra.mxu0 %v10093_v15  ;;  %v10095_v15 = vld [vmem:[%s19642_s16 + $0x8b0] sm:$0xff] }
 0xae7   : > { %7458 = vmatpush.msra.mxu3 %v6926_v1  ;;  %v10171_v7 = vld [vmem:[%s19642_s16 + $0xb10] sm:$0xff] }
 0xae8   : > { %7498 = vmatpush.msra.mxu1 %v6927_v40  ;;  %7705 = vmatpush.msra.mxu0 %v10089_v51  ;;  %v10161_v40 = vld [vmem:[%s19642_s16 + $0xac0] sm:$0xff] }
 0xae9   : > { %7459 = vmatpush.msra.mxu3 %v6922_v31  ;;  %v10098_v31 = vld [vmem:[%s19642_s16 + $0x8c8] sm:$0xff]  ;;  %v10149_v51 = vld [vmem:[%s19642_s16 + $0xa60] sm:$0xff] }
 0xaea   : > { %7499 = vmatpush.msra.mxu1 %v6923_v27  ;;  %7706 = vmatpush.msra.mxu0 %v10085_v24  ;;  %v10178_v27 = vld [vmem:[%s19642_s16 + $0xb48] sm:$0xff] }
 0xaeb   : > { %7460 = vmatpush.msra.mxu3 %v6918_v54  ;;  %7743 = vmatpush.msra.mxu2 %v10098_v31  ;;  %v10103_v54 = vld [vmem:[%s19642_s16 + $0x8f0] sm:$0xff]  ;;  %v10086_v24 = vld [vmem:[%s19642_s16 + $0x868] sm:$0xff]  ;;  %v10104_v31 = vld [vmem:[%s19642_s16 + $0x8f8] sm:$0xff] }
 0xaec   : > { %7500 = vmatpush.msra.mxu1 %v6919_v41  ;;  %10065 = vmatmul.msk.f32.vlgmr.msra.gmra.mxu3 %vm7154_vm13, %v18007_v60 }
 0xaed   : > { %10067 = vmatmul.msk.f32.vlgmr.msra.gmra.mxu1 %vm7154_vm13, %v18007_v60  ;;  %10071 = vmatpush.msk.msrb.mxu3 %vm6805_vm11, %v17401_v3  ;;  %v10185_v60 = vld [vmem:[%s19642_s16 + $0xb80] sm:$0xff] }
 0xaee   : > { %7707 = vmatpush.msra.mxu0 %v10081_v18  ;;  %10201 = vmatpush.msk.msrb.mxu1 %vm6029_vm8, %v10197_v9  ;;  %v10166_v18 = vld [vmem:[%s19642_s16 + $0xae8] sm:$0xff] }
 0xaef   : > { %10203 = vmatpush.msk.msra.mxu3 %vm6029_vm8, %v10198_v38  ;;  %7744 = vmatpush.msra.mxu2 %v10094_v13  ;;  %v10082_v9 = vld [vmem:[%s19642_s16 + $0x848] sm:$0xff]  ;;  %v10199_v38 = vld [vmem:[%s19642_s16 + $0xbf0] sm:$0x3] }
 0xaf0   : > { %7708 = vmatpush.msra.mxu0 %v10077_v22  ;;  %7715 = vmatpush.msrb.mxu1 %v10193_v0  ;;  %v10145_v22 = vld [vmem:[%s19642_s16 + $0xa40] sm:$0xff]  ;;  %v10159_v13 = vld [vmem:[%s19642_s16 + $0xab0] sm:$0xff] }
 0xaf1   : > { %7755 = vmatpush.msra.mxu3 %v10194_v47  ;;  %7745 = vmatpush.msra.mxu2 %v10090_v59  ;;  %v10141_v0 = vld [vmem:[%s19642_s16 + $0xa20] sm:$0xff]  ;;  %v10150_v47 = vld [vmem:[%s19642_s16 + $0xa68] sm:$0xff]  ;;  %v10092_v59 = vld [vmem:[%s19642_s16 + $0x898] sm:$0xff] }
 0xaf2   : > { %7709 = vmatpush.msra.mxu0 %v10073_v23  ;;  %7716 = vmatpush.msrb.mxu1 %v10189_v6  ;;  %v10087_v23 = vld [vmem:[%s19642_s16 + $0x870] sm:$0xff]  ;;  %v10158_v6 = vld [vmem:[%s19642_s16 + $0xaa8] sm:$0xff] }
 0xaf3   : > { %7756 = vmatpush.msra.mxu3 %v10190_v19  ;;  %7746 = vmatpush.msra.mxu2 %v10086_v24  ;;  %v10146_v19 = vld [vmem:[%s19642_s16 + $0xa48] sm:$0xff]  ;;  %v10168_v24 = vld [vmem:[%s19642_s16 + $0xaf8] sm:$0xff] }
 0xaf4   : > { %10072 = vmatmul.msk.f32.vlgmr.msrb.gmra.mxu3 %vm6801_vm12, %v10068_v42  ;;  %7774 = vmatpush.msrb.mxu0 %v10135_v5  ;;  %v10186_v42 = vld [vmem:[%s19642_s16 + $0xb88] sm:$0xff] }
 0xaf5   : > { %7717 = vmatpush.msrb.mxu1 %v10185_v60  ;;  %7757 = vmatpush.msra.mxu3 %v10186_v42  ;;  %v10078_v5 = vld [vmem:[%s19642_s16 + $0x828] sm:$0xff]  ;;  %v10124_v42 = vld [vmem:[%s19642_s16 + $0x998] sm:$0xff] }
 0xaf6   : > { %7775 = vmatpush.msrb.mxu0 %v10131_v52  ;;  %7747 = vmatpush.msra.mxu2 %v10082_v9  ;;  %v10074_v60 = vld [vmem:[%s19642_s16 + $0x808] sm:$0xff]  ;;  %v10164_v9 = vld [vmem:[%s19642_s16 + $0xad8] sm:$0xff] }
 0xaf7   : > { %7718 = vmatpush.msrb.mxu1 %v10181_v36  ;;  %7758 = vmatpush.msra.mxu3 %v10182_v50  ;;  %v10136_v36 = vld [vmem:[%s19642_s16 + $0x9f8] sm:$0xff] }
 0xaf8   : > { %7776 = vmatpush.msrb.mxu0 %v10127_v17  ;;  %7748 = vmatpush.msra.mxu2 %v10078_v5  ;;  %v10079_v17 = vld [vmem:[%s19642_s16 + $0x830] sm:$0xff]  ;;  %v10108_v50 = vld [vmem:[%s19642_s16 + $0x918] sm:$0xff] }
 0xaf9   : > { %7719 = vmatpush.msrb.mxu1 %v10177_v32  ;;  %7759 = vmatpush.msra.mxu3 %v10178_v27  ;;  %v10132_v32 = vld [vmem:[%s19642_s16 + $0x9d8] sm:$0xff] }
 0xafa   : > { %7777 = vmatpush.msrb.mxu0 %v10123_v48  ;;  %7749 = vmatpush.msra.mxu2 %v10074_v60  ;;  %v10195_v48 = vld [vmem:[%s19642_s16 + $0xbd0] sm:$0xff]  ;;  %v10184_v27 = vld [vmem:[%s19642_s16 + $0xb78] sm:$0xff] }
 0xafb   : > { %7720 = vmatpush.msrb.mxu1 %v10173_v63  ;;  %7760 = vmatpush.msra.mxu3 %v10174_v11  ;;  %v10187_v63 = vld [vmem:[%s19642_s16 + $0xb90] sm:$0xff]  ;;  %v10176_v11 = vld [vmem:[%s19642_s16 + $0xb38] sm:$0xff] }
 0xafc   : > { %7778 = vmatpush.msrb.mxu0 %v10119_v43  ;;  %7814 = vmatpush.msrb.mxu2 %v10136_v36  ;;  %v10142_v43 = vld [vmem:[%s19642_s16 + $0xa28] sm:$0xff]  ;;  %v10076_v5 = vld [vmem:[%s19642_s16 + $0x818] sm:$0xff]  ;;  %v10270_v36 = vld [vmem:[%s19642_s16 + $0xdc0] sm:$0xff] }
 0xafd   : > { %7721 = vmatpush.msrb.mxu1 %v10169_v4  ;;  %7761 = vmatpush.msra.mxu3 %v10170_v25  ;;  %v10120_v4 = vld [vmem:[%s19642_s16 + $0x978] sm:$0xff] }
 0xafe   : > { %7779 = vmatpush.msrb.mxu0 %v10115_v20  ;;  %7815 = vmatpush.msrb.mxu2 %v10132_v32  ;;  %v10183_v20 = vld [vmem:[%s19642_s16 + $0xb70] sm:$0xff]  ;;  %v10172_v25 = vld [vmem:[%s19642_s16 + $0xb18] sm:$0xff]  ;;  %v10258_v32 = vld [vmem:[%s19642_s16 + $0xd60] sm:$0xff] }
 0xaff   : > { %7722 = vmatpush.msrb.mxu1 %v10165_v37  ;;  %7762 = vmatpush.msra.mxu3 %v10166_v18  ;;  %v10192_v37 = vld [vmem:[%s19642_s16 + $0xbb8] sm:$0xff] }
 0xb00   : > { %7780 = vmatpush.msrb.mxu0 %v10111_v49  ;;  %7816 = vmatpush.msrb.mxu2 %v10128_v39  ;;  %v10179_v49 = vld [vmem:[%s19642_s16 + $0xb50] sm:$0xff]  ;;  %v10144_v60 = vld [vmem:[%s19642_s16 + $0xa38] sm:$0xff]  ;;  %v10267_v39 = vld [vmem:[%s19642_s16 + $0xda8] sm:$0xff] }
 0xb01   : > { %7723 = vmatpush.msrb.mxu1 %v10161_v40  ;;  %7763 = vmatpush.msra.mxu3 %v10162_v21  ;;  %v10167_v40 = vld [vmem:[%s19642_s16 + $0xaf0] sm:$0xff] }
 0xb02   : > { %7781 = vmatpush.msrb.mxu0 %v10107_v10  ;;  %7817 = vmatpush.msrb.mxu2 %v10124_v42  ;;  %v10188_v10 = vld [vmem:[%s19642_s16 + $0xb98] sm:$0xff]  ;;  %v10143_v21 = vld [vmem:[%s19642_s16 + $0xa30] sm:$0xff]  ;;  %v10263_v42 = vld [vmem:[%s19642_s16 + $0xd88] sm:$0xff] }
 0xb03   : > { %7724 = vmatpush.msrb.mxu1 %v10157_v16  ;;  %7764 = vmatpush.msra.mxu3 %v10158_v6  ;;  %v10180_v16 = vld [vmem:[%s19642_s16 + $0xb58] sm:$0xff] }
 0xb04   : > { %7782 = vmatpush.msrb.mxu0 %v10103_v54  ;;  %7818 = vmatpush.msrb.mxu2 %v10120_v4  ;;  %v10100_v54 = vld [vmem:[%s19642_s16 + $0x8d8] sm:$0xff]  ;;  %v10246_v4 = vld [vmem:[%s19642_s16 + $0xd00] sm:$0xff] }
 0xb05   : > { %7725 = vmatpush.msrb.mxu1 %v10153_v8  ;;  %7765 = vmatpush.msra.mxu3 %v10154_v45  ;;  %v10155_v8 = vld [vmem:[%s19642_s16 + $0xa90] sm:$0xff]  ;;  %v10156_v6 = vld [vmem:[%s19642_s16 + $0xa98] sm:$0xff] }
 0xb06   : > { %7783 = vmatpush.msrb.mxu0 %v10099_v12  ;;  %v10140_v45 = vld [vmem:[%s19642_s16 + $0xa18] sm:$0xff] }
 0xb07   : > { %7726 = vmatpush.msrb.mxu1 %v10149_v51  ;;  %7766 = vmatpush.msra.mxu3 %v10150_v47  ;;  %v10266_v47 = vld [vmem:[%s19642_s16 + $0xda0] sm:$0xff] }
 0xb08   : > { %v7227_v35 = vpop.f32.mrf.mxu0  ;;  %7784 = vmatpush.msrb.mxu0 %v10095_v15  ;;  %v10088_v15 = vld [vmem:[%s19642_s16 + $0x878] sm:$0xff] }
 0xb09   : > { %7727 = vmatpush.msrb.mxu1 %v10145_v22  ;;  %7767 = vmatpush.msra.mxu3 %v10146_v19  ;;  %v10084_v22 = vld [vmem:[%s19642_s16 + $0x858] sm:$0xff]  ;;  %v10271_v19 = vld [vmem:[%s19642_s16 + $0xdc8] sm:$0xff] }
 0xb0b   : > { %7728 = vmatpush.msrb.mxu1 %v10141_v0  ;;  %7768 = vmatpush.msra.mxu3 %v10142_v43  ;;  %v10160_v0 = vld [vmem:[%s19642_s16 + $0xab8] sm:$0xff] }
 0xb0d   : > { %7769 = vmatpush.msra.mxu3 %v10138_v44  ;;  %v10250_v44 = vld [vmem:[%s19642_s16 + $0xd20] sm:$0xff] }
 0xb0e   : > { %v7187_v62 = vpop.f32.mrf.mxu2 }
 0xb0f   : > { %10207 = vmatpush.msk.msrb.mxu3 %vm6029_vm8, %v10200_v26  ;;  %v10242_v26 = vld [vmem:[%s19642_s16 + $0xce0] sm:$0xff] }
 0xb10   : > { %v7307_v14 = vpop.f32.mrf.mxu0 }
 0xb16   : > { %v18263_v55 = vpop.f32.mrf.mxu2 }
 0xb26   : > { %v7247_v57 = vpop.f32.mrf.mxu1 }
 0xb27   : > { %v7248_v28 = vadd.f32 %v7247_v57, %v7227_v35  ;;  %v10091_v35 = vld [vmem:[%s19642_s16 + $0x890] sm:$0xff]  ;;  %v10196_v57 = vld [vmem:[%s19642_s16 + $0xbd8] sm:$0xff] }
 0xb28   : > { %7785 = vmatpush.msrb.mxu0 %v10091_v35  ;;  %7835 = vmatpush.msrb.mxu3 %v10196_v57  ;;  %v10147_v35 = vld [vmem:[%s19642_s16 + $0xa50] sm:$0xff]  ;;  %v10255_v57 = vld [vmem:[%s19642_s16 + $0xd48] sm:$0xff] }
 0xb2a   : > { %v7402_v30 = vpop.f32.mrf.mxu0  ;;  %7786 = vmatpush.msrb.mxu0 %v10087_v23  ;;  %7836 = vmatpush.msrb.mxu3 %v10192_v37  ;;  %v10080_v23 = vld [vmem:[%s19642_s16 + $0x838] sm:$0xff]  ;;  %v10251_v37 = vld [vmem:[%s19642_s16 + $0xd28] sm:$0xff] }
 0xb2b   : > { %v18274_v53 = vadd.f32 %v7402_v30, %v7248_v28  ;;  %v10175_v28 = vld [vmem:[%s19642_s16 + $0xb30] sm:$0xff]  ;;  %v10112_v30 = vld [vmem:[%s19642_s16 + $0x938] sm:$0xff] }
 0xb2c   : > { %v7207_v2 = vpop.f32.mrf.mxu3  ;;  %7787 = vmatpush.msrb.mxu0 %v10083_v56  ;;  %7837 = vmatpush.msrb.mxu3 %v10188_v10  ;;  %v10247_v10 = vld [vmem:[%s19642_s16 + $0xd08] sm:$0xff] }
 0xb2d   : > { %v7208_v1 = vadd.f32 %v7207_v2, %v7187_v62  ;;  %v10137_v62 = vld [vmem:[%s19642_s16 + $0xa00] sm:$0xff] }
 0xb2e   : > { %7729 = vmatpush.msrb.mxu1 %v10137_v62  ;;  %7788 = vmatpush.msrb.mxu0 %v10079_v17  ;;  %v10148_v62 = vld [vmem:[%s19642_s16 + $0xa58] sm:$0xff]  ;;  %v18543_v17 = vld [vmem:[%s19641_s15 + $0x3] sm:$0x1] }
 0xb2f   : > { %v7362_v41 = vpop.f32.mrf.mxu2  ;;  %7838 = vmatpush.msrb.mxu3 %v10184_v27  ;;  %v10339_v27 = vld [vmem:[%s19642_s16 + $0xfe8] sm:$0x3] }
 0xb30   : > { %v7327_v61 = vpop.f32.mrf.mxu1  ;;  %v18303_v29 = vadd.f32 %v7362_v41, %v7208_v1  ;;  %10205 = vmatpush.msk.msra.mxu1 %vm6029_vm8, %v10199_v38  ;;  %7789 = vmatpush.msrb.mxu0 %v10075_v58  ;;  %v10096_v41 = vld [vmem:[%s19642_s16 + $0x8b8] sm:$0xff]  ;;  %v10274_v38 = vld [vmem:[%s19642_s16 + $0xde0] sm:$0xff] }
 0xb31   : > { %v18314_v33 = vadd.f32 %v7327_v61, %v7307_v14  ;;  %v10191_v14 = vld [vmem:[%s19642_s16 + $0xbb0] sm:$0xff]  ;;  %7839 = vmatpush.msrb.mxu3 %v10180_v16  ;;  %v10262_v58 = vld [vmem:[%s19642_s16 + $0xd80] sm:$0xff]  ;;  %v10335_v16 = vld [vmem:[%s19642_s16 + $0xfc8] sm:$0xff] }
 0xb32   : > { %7795 = vmatpush.msra.mxu1 %v10195_v48  ;;  %v10275_v48 = vld [vmem:[%s19642_s16 + $0xde8] sm:$0xff] }
 0xb33   : > { %7840 = vmatpush.msrb.mxu3 %v10176_v11  ;;  %v10331_v11 = vld [vmem:[%s19642_s16 + $0xfa8] sm:$0xff] }
 0xb34   : > { %7796 = vmatpush.msra.mxu1 %v10191_v14 }
 0xb35   : > { %7841 = vmatpush.msrb.mxu3 %v10172_v25  ;;  %v10310_v25 = vld [vmem:[%s19642_s16 + $0xf00] sm:$0xff] }
 0xb36   : > { %v7287_v46 = vpop.f32.mrf.mxu3  ;;  %7797 = vmatpush.msra.mxu1 %v10187_v63  ;;  %v10254_v63 = vld [vmem:[%s19642_s16 + $0xd40] sm:$0xff] }
 0xb37   : > { %v18356_v52 = vadd.f32 %v7287_v46, %v18263_v55  ;;  %v10116_v55 = vld [vmem:[%s19642_s16 + $0x958] sm:$0xff]  ;;  %7842 = vmatpush.msrb.mxu3 %v10168_v24  ;;  %v10139_v46 = vld [vmem:[%s19642_s16 + $0xa10] sm:$0xff] }
 0xb38   : > { %7798 = vmatpush.msra.mxu1 %v10183_v20  ;;  %7819 = vmatpush.msrb.mxu2 %v10116_v55  ;;  %v10259_v20 = vld [vmem:[%s19642_s16 + $0xd68] sm:$0xff]  ;;  %v10338_v55 = vld [vmem:[%s19642_s16 + $0xfe0] sm:$0x3]  ;;  %v10264_v24 = vld [vmem:[%s19642_s16 + $0xd90] sm:$0xff] }
 0xb39   : > { %7843 = vmatpush.msrb.mxu3 %v10164_v9  ;;  %v10306_v9 = vld [vmem:[%s19642_s16 + $0xee0] sm:$0xff] }
 0xb3a   : > { %7799 = vmatpush.msra.mxu1 %v10179_v49  ;;  %7820 = vmatpush.msrb.mxu2 %v10112_v30  ;;  %v10334_v30 = vld [vmem:[%s19642_s16 + $0xfc0] sm:$0xff] }
 0xb3b   : > { %7844 = vmatpush.msrb.mxu3 %v10160_v0  ;;  %v10248_v0 = vld [vmem:[%s19642_s16 + $0xd10] sm:$0xff] }
 0xb3c   : > { %7800 = vmatpush.msra.mxu1 %v10175_v28  ;;  %7821 = vmatpush.msrb.mxu2 %v10108_v50  ;;  %v10238_v28 = vld [vmem:[%s19642_s16 + $0xcc0] sm:$0xff] }
 0xb3d   : > { %7845 = vmatpush.msrb.mxu3 %v10156_v6  ;;  %v10330_v50 = vld [vmem:[%s19642_s16 + $0xfa0] sm:$0xff]  ;;  %v10319_v6 = vld [vmem:[%s19642_s16 + $0xf48] sm:$0xff] }
 0xb3e   : > { %7801 = vmatpush.msra.mxu1 %v10171_v7  ;;  %7822 = vmatpush.msrb.mxu2 %v10104_v31  ;;  %v10234_v7 = vld [vmem:[%s19642_s16 + $0xca0] sm:$0xff] }
 0xb3f   : > { %v10326_v31 = vld [vmem:[%s19642_s16 + $0xf80] sm:$0xff] }
 0xb40   : > { %7802 = vmatpush.msra.mxu1 %v10167_v40  ;;  %7823 = vmatpush.msrb.mxu2 %v10100_v54  ;;  %v10226_v40 = vld [vmem:[%s19642_s16 + $0xc60] sm:$0xff] }
 0xb41   : > { %v10322_v54 = vld [vmem:[%s19642_s16 + $0xf60] sm:$0xff] }
 0xb42   : > { %7824 = vmatpush.msrb.mxu2 %v10096_v41  ;;  %v10318_v41 = vld [vmem:[%s19642_s16 + $0xf40] sm:$0xff] }
 0xb44   : > { %7825 = vmatpush.msrb.mxu2 %v10092_v59  ;;  %v10276_v59 = vld [vmem:[%s19642_s16 + $0xdf0] sm:$0xff] }
 0xb46   : > { %7826 = vmatpush.msrb.mxu2 %v10088_v15  ;;  %v10272_v15 = vld [vmem:[%s19642_s16 + $0xdd0] sm:$0xff] }
 0xb48   : > { %7827 = vmatpush.msrb.mxu2 %v10084_v22  ;;  %v10252_v22 = vld [vmem:[%s19642_s16 + $0xd30] sm:$0xff] }
 0xb49   : > { %v7422_v2 = vpop.f32.mrf.mxu1 }
 0xb4a   : > { %v18448_v1 = vadd.f32 %v7422_v2, %v18274_v53  ;;  %v10163_v53 = vld [vmem:[%s19642_s16 + $0xad0] sm:$0xff]  ;;  %7828 = vmatpush.msrb.mxu2 %v10080_v23  ;;  %v10230_v2 = vld [vmem:[%s19642_s16 + $0xc80] sm:$0xff]  ;;  %v10323_v23 = vld [vmem:[%s19642_s16 + $0xf68] sm:$0xff] }
 0xb4b   : > { %7803 = vmatpush.msra.mxu1 %v10163_v53  ;;  %v10222_v53 = vld [vmem:[%s19642_s16 + $0xc40] sm:$0xff] }
 0xb4c   : > { %7829 = vmatpush.msrb.mxu2 %v10076_v5  ;;  %v10239_v5 = vld [vmem:[%s19642_s16 + $0xcc8] sm:$0xff] }
 0xb4d   : > { %7804 = vmatpush.msra.mxu1 %v10159_v13  ;;  %v10218_v13 = vld [vmem:[%s19642_s16 + $0xc20] sm:$0xff] }
 0xb4f   : > { %v7382_v12 = vpop.f32.mrf.mxu3  ;;  %7805 = vmatpush.msra.mxu1 %v10155_v8  ;;  %v10314_v8 = vld [vmem:[%s19642_s16 + $0xf20] sm:$0xff] }
 0xb50   : > { %v18478_v61 = vadd.f32 %v7382_v12, %v18303_v29  ;;  %v10151_v29 = vld [vmem:[%s19642_s16 + $0xa70] sm:$0xff]  ;;  %v10214_v12 = vld [vmem:[%s19642_s16 + $0xc00] sm:$0xff] }
 0xb51   : > { %7806 = vmatpush.msra.mxu1 %v10151_v29  ;;  %v10327_v29 = vld [vmem:[%s19642_s16 + $0xf88] sm:$0xff] }
 0xb52   : > { %v7442_v51 = vpop.f32.mrf.mxu2 }
 0xb53   : > { %v7443_v18 = vadd.f32 %v7442_v51, %v18356_v52  ;;  %7807 = vmatpush.msra.mxu1 %v10147_v35  ;;  %v10152_v52 = vld [vmem:[%s19642_s16 + $0xa78] sm:$0xff]  ;;  %v10268_v51 = vld [vmem:[%s19642_s16 + $0xdb0] sm:$0xff] }
 0xb54   : > { %7846 = vmatpush.msrb.mxu3 %v10152_v52  ;;  %v10256_v35 = vld [vmem:[%s19642_s16 + $0xd50] sm:$0xff]  ;;  %v10298_v52 = vld [vmem:[%s19642_s16 + $0xea0] sm:$0xff] }
 0xb55   : > { %7808 = vmatpush.msra.mxu1 %v10143_v21  ;;  %v10243_v21 = vld [vmem:[%s19642_s16 + $0xce8] sm:$0xff] }
 0xb56   : > { %7847 = vmatpush.msrb.mxu3 %v10148_v62  ;;  %v10235_v62 = vld [vmem:[%s19642_s16 + $0xca8] sm:$0xff] }
 0xb57   : > { %7809 = vmatpush.msra.mxu1 %v10139_v46  ;;  %v10302_v46 = vld [vmem:[%s19642_s16 + $0xec0] sm:$0xff] }
 0xb58   : > { %7848 = vmatpush.msrb.mxu3 %v10144_v60  ;;  %v10315_v60 = vld [vmem:[%s19642_s16 + $0xf28] sm:$0xff] }
 0xb5a   : > { %v7527_v56 = vpop.f32.mrf.mxu2  ;;  %7849 = vmatpush.msrb.mxu3 %v10140_v45  ;;  %v10240_v45 = vld [vmem:[%s19642_s16 + $0xcd0] sm:$0xff] }
 0xb5b   : > { %7710 = vmatmul.f32.vlgmr.msra.gmra.mxu0 %v7527_v56  ;;  %7750 = vmatmul.f32.vlgmr.msra.gmra.mxu2 %v7527_v56 }
 0xb5c   : > { %10210 = vmatpush.msk.msra.mxu0 %vm6805_vm11, %v17295_v34  ;;  %8047 = vmatpush.msra.mxu2 %v10274_v38  ;;  %v10231_v38 = vld [vmem:[%s19642_s16 + $0xc88] sm:$0xff] }
 0xb5e   : > { %8048 = vmatpush.msra.mxu2 %v10270_v36  ;;  %v10311_v36 = vld [vmem:[%s19642_s16 + $0xf08] sm:$0xff] }
 0xb60   : > { %8049 = vmatpush.msra.mxu2 %v10266_v47  ;;  %v10236_v47 = vld [vmem:[%s19642_s16 + $0xcb0] sm:$0xff] }
 0xb62   : > { %8050 = vmatpush.msra.mxu2 %v10262_v58  ;;  %v10290_v58 = vld [vmem:[%s19642_s16 + $0xe60] sm:$0xff] }
 0xb63   : > { %7790 = vmatmul.f32.vlgmr.msrb.gmra.mxu0 %v7527_v56  ;;  %7830 = vmatmul.f32.vlgmr.msrb.gmra.mxu2 %v7527_v56  ;;  %v10244_v56 = vld [vmem:[%s19642_s16 + $0xcf0] sm:$0xff] }
 0xb64   : > { %8087 = vmatpush.msrb.mxu0 %v10275_v48  ;;  %8051 = vmatpush.msra.mxu2 %v10258_v32  ;;  %v10227_v48 = vld [vmem:[%s19642_s16 + $0xc68] sm:$0xff] }
 0xb65   : > { %v10307_v32 = vld [vmem:[%s19642_s16 + $0xee8] sm:$0xff] }
 0xb66   : > { %8088 = vmatpush.msrb.mxu0 %v10271_v19  ;;  %8052 = vmatpush.msra.mxu2 %v10254_v63  ;;  %v10232_v19 = vld [vmem:[%s19642_s16 + $0xc90] sm:$0xff]  ;;  %v10303_v63 = vld [vmem:[%s19642_s16 + $0xec8] sm:$0xff] }
 0xb68   : > { %8089 = vmatpush.msrb.mxu0 %v10267_v39  ;;  %8053 = vmatpush.msra.mxu2 %v10250_v44  ;;  %v10223_v39 = vld [vmem:[%s19642_s16 + $0xc48] sm:$0xff]  ;;  %v10282_v44 = vld [vmem:[%s19642_s16 + $0xe20] sm:$0xff] }
 0xb6a   : > { %8090 = vmatpush.msrb.mxu0 %v10263_v42  ;;  %8054 = vmatpush.msra.mxu2 %v10246_v4  ;;  %v10228_v42 = vld [vmem:[%s19642_s16 + $0xc70] sm:$0xff]  ;;  %v10299_v4 = vld [vmem:[%s19642_s16 + $0xea8] sm:$0xff] }
 0xb6b   : > { %10211 = vmatmul.msk.f32.vlgmr.msra.gmra.mxu0 %vm6801_vm12, %v18543_v17 }
 0xb6c   : > { %8091 = vmatpush.msrb.mxu0 %v10259_v20  ;;  %8055 = vmatpush.msra.mxu2 %v10242_v26  ;;  %v10219_v20 = vld [vmem:[%s19642_s16 + $0xc28] sm:$0xff]  ;;  %v10224_v26 = vld [vmem:[%s19642_s16 + $0xc50] sm:$0xff] }
 0xb6e   : > { %8092 = vmatpush.msrb.mxu0 %v10255_v57  ;;  %8056 = vmatpush.msra.mxu2 %v10238_v28  ;;  %v10295_v57 = vld [vmem:[%s19642_s16 + $0xe88] sm:$0xff]  ;;  %v10220_v28 = vld [vmem:[%s19642_s16 + $0xc30] sm:$0xff] }
 0xb6f   : > { %v7462_v14 = vpop.f32.mrf.mxu3 }
 0xb70   : > { %v18571_v43 = vadd.f32 %v7462_v14, %v7443_v18  ;;  %8093 = vmatpush.msrb.mxu0 %v10251_v37  ;;  %8057 = vmatpush.msra.mxu2 %v10234_v7  ;;  %v10260_v18 = vld [vmem:[%s19642_s16 + $0xd70] sm:$0xff]  ;;  %v10286_v14 = vld [vmem:[%s19642_s16 + $0xe40] sm:$0xff]  ;;  %v10277_v37 = vld [vmem:[%s19642_s16 + $0xdf8] sm:$0xff] }
 0xb71   : > { %v10291_v7 = vld [vmem:[%s19642_s16 + $0xe68] sm:$0xff] }
 0xb72   : > { %8094 = vmatpush.msrb.mxu0 %v10247_v10  ;;  %8058 = vmatpush.msra.mxu2 %v10230_v2  ;;  %v10336_v10 = vld [vmem:[%s19642_s16 + $0xfd0] sm:$0xff]  ;;  %v10273_v2 = vld [vmem:[%s19642_s16 + $0xdd8] sm:$0xff] }
 0xb74   : > { %8059 = vmatpush.msra.mxu2 %v10226_v40  ;;  %8095 = vmatpush.msrb.mxu0 %v10243_v21  ;;  %v10287_v40 = vld [vmem:[%s19642_s16 + $0xe48] sm:$0xff]  ;;  %v10308_v21 = vld [vmem:[%s19642_s16 + $0xef0] sm:$0xff] }
 0xb76   : > { %8060 = vmatpush.msra.mxu2 %v10222_v53  ;;  %8096 = vmatpush.msrb.mxu0 %v10239_v5  ;;  %v10283_v53 = vld [vmem:[%s19642_s16 + $0xe28] sm:$0xff]  ;;  %v10241_v5 = vld [vmem:[%s19642_s16 + $0xcd8] sm:$0xff] }
 0xb77   : > { %v7547_v49 = vpop.f32.mrf.mxu3 }
 0xb78   : > { %10202 = vmatmul.msk.f32.vlgmr.msrb.gmra.mxu1 %vm7154_vm13, %v7547_v49  ;;  %10204 = vmatmul.msk.f32.vlgmr.msra.gmra.mxu3 %vm7154_vm13, %v7547_v49 }
 0xb79   : > { %10212 = vmatpush.msk.msrb.mxu1 %vm6805_vm11, %v17401_v3  ;;  %10342 = vmatpush.msk.msra.mxu3 %vm6029_vm8, %v10338_v55  ;;  %v10215_v55 = vld [vmem:[%s19642_s16 + $0xc08] sm:$0xff] }
 0xb7a   : > { %8061 = vmatpush.msra.mxu2 %v10218_v13  ;;  %8097 = vmatpush.msrb.mxu0 %v10235_v62  ;;  %v10279_v13 = vld [vmem:[%s19642_s16 + $0xe08] sm:$0xff]  ;;  %v10317_v62 = vld [vmem:[%s19642_s16 + $0xf38] sm:$0xff] }
 0xb7b   : > { %8068 = vmatpush.msra.mxu3 %v10334_v30  ;;  %v10340_v30 = vld [vmem:[%s19642_s16 + $0xff0] sm:$0x3] }
 0xb7c   : > { %8062 = vmatpush.msra.mxu2 %v10214_v12  ;;  %8098 = vmatpush.msrb.mxu0 %v10231_v38  ;;  %v10341_v12 = vld [vmem:[%s19642_s16 + $0xff8] sm:$0x3] }
 0xb7d   : > { %8069 = vmatpush.msra.mxu3 %v10330_v50  ;;  %v10216_v50 = vld [vmem:[%s19642_s16 + $0xc10] sm:$0xff] }
 0xb7e   : > { %8127 = vmatpush.msrb.mxu2 %v10276_v59  ;;  %8099 = vmatpush.msrb.mxu0 %v10227_v48  ;;  %v10320_v59 = vld [vmem:[%s19642_s16 + $0xf50] sm:$0xff] }
 0xb7f   : > { %8070 = vmatpush.msra.mxu3 %v10326_v31  ;;  %v10332_v31 = vld [vmem:[%s19642_s16 + $0xfb0] sm:$0xff] }
 0xb80   : > { %10206 = vmatmul.msk.f32.vlgmr.msra.gmra.mxu1 %vm7154_vm13, %v7547_v49  ;;  %10208 = vmatmul.msk.f32.vlgmr.msrb.gmra.mxu3 %vm7154_vm13, %v7547_v49  ;;  %v10278_v49 = vld [vmem:[%s19642_s16 + $0xe00] sm:$0xff]  ;;  %v10288_v48 = vld [vmem:[%s19642_s16 + $0xe50] sm:$0xff] }
 0xb81   : > { %10344 = vmatpush.msk.msra.mxu1 %vm6029_vm8, %v10339_v27  ;;  %8071 = vmatpush.msra.mxu3 %v10322_v54  ;;  %v10269_v27 = vld [vmem:[%s19642_s16 + $0xdb8] sm:$0xff]  ;;  %v10328_v54 = vld [vmem:[%s19642_s16 + $0xf90] sm:$0xff] }
 0xb82   : > { %8128 = vmatpush.msrb.mxu2 %v10272_v15  ;;  %8100 = vmatpush.msrb.mxu0 %v10223_v39  ;;  %v10316_v15 = vld [vmem:[%s19642_s16 + $0xf30] sm:$0xff]  ;;  %v10221_v39 = vld [vmem:[%s19642_s16 + $0xc38] sm:$0xff] }
 0xb83   : > { %8108 = vmatpush.msra.mxu1 %v10335_v16  ;;  %8072 = vmatpush.msra.mxu3 %v10318_v41  ;;  %v10265_v16 = vld [vmem:[%s19642_s16 + $0xd98] sm:$0xff]  ;;  %v10324_v41 = vld [vmem:[%s19642_s16 + $0xf70] sm:$0xff] }
 0xb84   : > { %8129 = vmatpush.msrb.mxu2 %v10268_v51  ;;  %8101 = vmatpush.msrb.mxu0 %v10219_v20  ;;  %v10253_v51 = vld [vmem:[%s19642_s16 + $0xd38] sm:$0xff] }
 0xb85   : > { %8109 = vmatpush.msra.mxu1 %v10331_v11  ;;  %8073 = vmatpush.msra.mxu3 %v10314_v8  ;;  %v10261_v11 = vld [vmem:[%s19642_s16 + $0xd78] sm:$0xff]  ;;  %v18833_v8 = vpop.f32.mrf.mxu0 }
 0xb86   : > { %8130 = vmatpush.msrb.mxu2 %v10264_v24  ;;  %8102 = vmatpush.msrb.mxu0 %v10215_v55  ;;  %v10333_v24 = vld [vmem:[%s19642_s16 + $0xfb8] sm:$0xff] }
 0xb87   : > { %8074 = vmatpush.msra.mxu3 %v10310_v25  ;;  %8110 = vmatpush.msra.mxu1 %v10327_v29  ;;  %v10257_v25 = vld [vmem:[%s19642_s16 + $0xd58] sm:$0xff] }
 0xb88   : > { %10213 = vmatmul.msk.f32.vlgmr.msrb.gmra.mxu1 %vm6801_vm12, %v18543_v17  ;;  %8131 = vmatpush.msrb.mxu2 %v10260_v18  ;;  %v10294_v17 = vld [vmem:[%s19642_s16 + $0xe80] sm:$0xff]  ;;  %v10337_v29 = vld [vmem:[%s19642_s16 + $0xfd8] sm:$0xff]  ;;  %v10312_v18 = vld [vmem:[%s19642_s16 + $0xf10] sm:$0xff] }
 0xb89   : > { %8075 = vmatpush.msra.mxu3 %v10306_v9  ;;  %8111 = vmatpush.msra.mxu1 %v10323_v23  ;;  %v10245_v23 = vld [vmem:[%s19642_s16 + $0xcf8] sm:$0xff] }
 0xb8a   : > { %8132 = vmatpush.msrb.mxu2 %v10256_v35  ;;  %8167 = vmatpush.msra.mxu0 %v10277_v37  ;;  %v10249_v35 = vld [vmem:[%s19642_s16 + $0xd18] sm:$0xff] }
 0xb8b   : > { %8076 = vmatpush.msra.mxu3 %v10302_v46  ;;  %8112 = vmatpush.msra.mxu1 %v10319_v6  ;;  %v10304_v46 = vld [vmem:[%s19642_s16 + $0xed0] sm:$0xff]  ;;  %v10321_v6 = vld [vmem:[%s19642_s16 + $0xf58] sm:$0xff] }
 0xb8c   : > { %8133 = vmatpush.msrb.mxu2 %v10252_v22  ;;  %8168 = vmatpush.msra.mxu0 %v10273_v2  ;;  %v10329_v22 = vld [vmem:[%s19642_s16 + $0xf98] sm:$0xff]  ;;  %v10412_v2 = vld [vmem:[%s19642_s16 + $0x11c8] sm:$0xff] }
 0xb8d   : > { %8077 = vmatpush.msra.mxu3 %v10298_v52  ;;  %8113 = vmatpush.msra.mxu1 %v10315_v60  ;;  %v10237_v52 = vld [vmem:[%s19642_s16 + $0xcb8] sm:$0xff]  ;;  %v10296_v60 = vld [vmem:[%s19642_s16 + $0xe90] sm:$0xff] }
 0xb8e   : > { %8134 = vmatpush.msrb.mxu2 %v10248_v0  ;;  %8169 = vmatpush.msra.mxu0 %v10269_v27  ;;  %v10325_v0 = vld [vmem:[%s19642_s16 + $0xf78] sm:$0xff]  ;;  %v10408_v27 = vld [vmem:[%s19642_s16 + $0x11a8] sm:$0xff] }
 0xb8f   : > { %8078 = vmatpush.msra.mxu3 %v10294_v17  ;;  %8114 = vmatpush.msra.mxu1 %v10311_v36  ;;  %v10313_v17 = vld [vmem:[%s19642_s16 + $0xf18] sm:$0xff]  ;;  %v10292_v36 = vld [vmem:[%s19642_s16 + $0xe70] sm:$0xff] }
 0xb90   : > { %8135 = vmatpush.msrb.mxu2 %v10244_v56  ;;  %8170 = vmatpush.msra.mxu0 %v10265_v16  ;;  %v10300_v56 = vld [vmem:[%s19642_s16 + $0xeb0] sm:$0xff]  ;;  %v10297_v20 = vld [vmem:[%s19642_s16 + $0xe98] sm:$0xff]  ;;  %v10404_v16 = vld [vmem:[%s19642_s16 + $0x1188] sm:$0xff] }
 0xb91   : > { %8079 = vmatpush.msra.mxu3 %v10290_v58  ;;  %8115 = vmatpush.msra.mxu1 %v10307_v32  ;;  %v10309_v58 = vld [vmem:[%s19642_s16 + $0xef8] sm:$0xff] }
 0xb92   : > { %8136 = vmatpush.msrb.mxu2 %v10240_v45  ;;  %8171 = vmatpush.msra.mxu0 %v10261_v11  ;;  %v10233_v45 = vld [vmem:[%s19642_s16 + $0xc98] sm:$0xff] }
 0xb93   : > { %8080 = vmatpush.msra.mxu3 %v10286_v14  ;;  %8116 = vmatpush.msra.mxu1 %v10303_v63  ;;  %v10225_v32 = vld [vmem:[%s19642_s16 + $0xc58] sm:$0xff]  ;;  %v10284_v14 = vld [vmem:[%s19642_s16 + $0xe30] sm:$0xff] }
 0xb94   : > { %8137 = vmatpush.msrb.mxu2 %v10236_v47  ;;  %8172 = vmatpush.msra.mxu0 %v10257_v25  ;;  %v10229_v47 = vld [vmem:[%s19642_s16 + $0xc78] sm:$0xff] }
 0xb95   : > { %8081 = vmatpush.msra.mxu3 %v10282_v44  ;;  %8117 = vmatpush.msra.mxu1 %v10299_v4  ;;  %v10301_v63 = vld [vmem:[%s19642_s16 + $0xeb8] sm:$0xff] }
 0xb96   : > { %8138 = vmatpush.msrb.mxu2 %v10232_v19  ;;  %8173 = vmatpush.msra.mxu0 %v10253_v51  ;;  %v10305_v19 = vld [vmem:[%s19642_s16 + $0xed8] sm:$0xff] }
 0xb97   : > { %8082 = vmatpush.msra.mxu3 %v10278_v49  ;;  %8118 = vmatpush.msra.mxu1 %v10295_v57  ;;  %v10217_v44 = vld [vmem:[%s19642_s16 + $0xc18] sm:$0xff]  ;;  %v18950_v57 = vpop.f32.mrf.mxu1 }
 0xb98   : > { %8139 = vmatpush.msrb.mxu2 %v10228_v42  ;;  %8174 = vmatpush.msra.mxu0 %v10249_v35  ;;  %v10280_v42 = vld [vmem:[%s19642_s16 + $0xe10] sm:$0xff]  ;;  %v10293_v4 = vld [vmem:[%s19642_s16 + $0xe78] sm:$0xff] }
 0xb99   : > { %10346 = vmatpush.msk.msrb.mxu3 %vm6029_vm8, %v10340_v30  ;;  %8119 = vmatpush.msra.mxu1 %v10291_v7  ;;  %v10289_v49 = vld [vmem:[%s19642_s16 + $0xe58] sm:$0xff]  ;;  %v10415_v7 = vld [vmem:[%s19642_s16 + $0x11e0] sm:$0xff] }
 0xb9a   : > { %8140 = vmatpush.msrb.mxu2 %v10224_v26  ;;  %8175 = vmatpush.msra.mxu0 %v10245_v23  ;;  %v10285_v55 = vld [vmem:[%s19642_s16 + $0xe38] sm:$0xff]  ;;  %v10384_v23 = vld [vmem:[%s19642_s16 + $0x10e8] sm:$0xff] }
 0xb9b   : > { %8148 = vmatpush.msrb.mxu3 %v10336_v10  ;;  %8120 = vmatpush.msra.mxu1 %v10287_v40  ;;  %v10411_v10 = vld [vmem:[%s19642_s16 + $0x11c0] sm:$0xff] }
 0xb9c   : > { %8141 = vmatpush.msrb.mxu2 %v10220_v28  ;;  %8176 = vmatpush.msra.mxu0 %v10241_v5  ;;  %v10281_v28 = vld [vmem:[%s19642_s16 + $0xe18] sm:$0xff]  ;;  %v10375_v5 = vld [vmem:[%s19642_s16 + $0x10a0] sm:$0xff] }
 0xb9d   : > { %8149 = vmatpush.msrb.mxu3 %v10332_v31  ;;  %8121 = vmatpush.msra.mxu1 %v10283_v53  ;;  %v10407_v31 = vld [vmem:[%s19642_s16 + $0x11a0] sm:$0xff] }
 0xb9e   : > { %8142 = vmatpush.msrb.mxu2 %v10216_v50  ;;  %8177 = vmatpush.msra.mxu0 %v10237_v52  ;;  %v10416_v50 = vld [vmem:[%s19642_s16 + $0x11e8] sm:$0xff]  ;;  %v10403_v53 = vld [vmem:[%s19642_s16 + $0x1180] sm:$0xff] }
 0xb9f   : > { %8150 = vmatpush.msrb.mxu3 %v10328_v54  ;;  %8122 = vmatpush.msra.mxu1 %v10279_v13  ;;  %v10463_v52 = vld [vmem:[%s19642_s16 + $0x1360] sm:$0xff] }
 0xba0   : > { %8178 = vmatpush.msra.mxu0 %v10233_v45  ;;  %v10476_v45 = vld [vmem:[%s19642_s16 + $0x13c8] sm:$0xff] }
 0xba1   : > { %8151 = vmatpush.msrb.mxu3 %v10324_v41  ;;  %10348 = vmatpush.msk.msrb.mxu1 %vm6029_vm8, %v10341_v12  ;;  %v10399_v41 = vld [vmem:[%s19642_s16 + $0x1160] sm:$0xff]  ;;  %v10400_v12 = vld [vmem:[%s19642_s16 + $0x1168] sm:$0xff] }
 0xba2   : > { %8179 = vmatpush.msra.mxu0 %v10229_v47  ;;  %v10472_v47 = vld [vmem:[%s19642_s16 + $0x13a8] sm:$0xff] }
 0xba3   : > { %8152 = vmatpush.msrb.mxu3 %v10320_v59  ;;  %8188 = vmatpush.msrb.mxu1 %v10337_v29  ;;  %v10395_v29 = vld [vmem:[%s19642_s16 + $0x1140] sm:$0xff] }
 0xba4   : > { %8180 = vmatpush.msra.mxu0 %v10225_v32  ;;  %v10363_v32 = vld [vmem:[%s19642_s16 + $0x1040] sm:$0xff] }
 0xba5   : > { %8153 = vmatpush.msrb.mxu3 %v10316_v15  ;;  %8189 = vmatpush.msrb.mxu1 %v10333_v24  ;;  %v10396_v15 = vld [vmem:[%s19642_s16 + $0x1148] sm:$0xff] }
 0xba6   : > { %8181 = vmatpush.msra.mxu0 %v10221_v39  ;;  %v10392_v24 = vld [vmem:[%s19642_s16 + $0x1128] sm:$0xff] }
 0xba7   : > { %8154 = vmatpush.msrb.mxu3 %v10312_v18  ;;  %8190 = vmatpush.msrb.mxu1 %v10329_v22  ;;  %v10387_v18 = vld [vmem:[%s19642_s16 + $0x1100] sm:$0xff]  ;;  %v10388_v22 = vld [vmem:[%s19642_s16 + $0x1108] sm:$0xff] }
 0xba8   : > { %8182 = vmatpush.msra.mxu0 %v10217_v44  ;;  %v10364_v39 = vld [vmem:[%s19642_s16 + $0x1048] sm:$0xff]  ;;  %v10359_v44 = vld [vmem:[%s19642_s16 + $0x1020] sm:$0xff] }
 0xba9   : > { %8155 = vmatpush.msrb.mxu3 %v10308_v21  ;;  %8191 = vmatpush.msrb.mxu1 %v10325_v0  ;;  %v10475_v21 = vld [vmem:[%s19642_s16 + $0x13c0] sm:$0xff] }
 0xbaa   : > { %v10379_v0 = vld [vmem:[%s19642_s16 + $0x10c0] sm:$0xff] }
 0xbab   : > { %8156 = vmatpush.msrb.mxu3 %v10304_v46  ;;  %8192 = vmatpush.msrb.mxu1 %v10321_v6  ;;  %v10471_v46 = vld [vmem:[%s19642_s16 + $0x13a0] sm:$0xff] }
 0xbac   : > { %v10467_v6 = vld [vmem:[%s19642_s16 + $0x1380] sm:$0xff] }
 0xbad   : > { %8157 = vmatpush.msrb.mxu3 %v10300_v56  ;;  %8193 = vmatpush.msrb.mxu1 %v10317_v62  ;;  %v10480_v56 = vld [vmem:[%s19642_s16 + $0x13e8] sm:$0x3] }
 0xbae   : > { %v10376_v62 = vld [vmem:[%s19642_s16 + $0x10a8] sm:$0xff] }
 0xbaf   : > { %8158 = vmatpush.msrb.mxu3 %v10296_v60  ;;  %8194 = vmatpush.msrb.mxu1 %v10313_v17  ;;  %v10371_v60 = vld [vmem:[%s19642_s16 + $0x1080] sm:$0xff] }
 0xbb0   : > { %v10459_v17 = vld [vmem:[%s19642_s16 + $0x1340] sm:$0xff] }
 0xbb1   : > { %8159 = vmatpush.msrb.mxu3 %v10292_v36  ;;  %8195 = vmatpush.msrb.mxu1 %v10309_v58  ;;  %v10367_v36 = vld [vmem:[%s19642_s16 + $0x1060] sm:$0xff] }
 0xbb2   : > { %v10455_v58 = vld [vmem:[%s19642_s16 + $0x1320] sm:$0xff] }
 0xbb3   : > { %8160 = vmatpush.msrb.mxu3 %v10288_v48  ;;  %8196 = vmatpush.msrb.mxu1 %v10305_v19  ;;  %v10368_v48 = vld [vmem:[%s19642_s16 + $0x1068] sm:$0xff] }
 0xbb4   : > { %v10468_v19 = vld [vmem:[%s19642_s16 + $0x1388] sm:$0xff] }
 0xbb5   : > { %8161 = vmatpush.msrb.mxu3 %v10284_v14  ;;  %8197 = vmatpush.msrb.mxu1 %v10301_v63  ;;  %v10451_v14 = vld [vmem:[%s19642_s16 + $0x1300] sm:$0xff]  ;;  %v10464_v63 = vld [vmem:[%s19642_s16 + $0x1368] sm:$0xff] }
 0xbb7   : > { %8162 = vmatpush.msrb.mxu3 %v10280_v42  ;;  %8198 = vmatpush.msrb.mxu1 %v10297_v20  ;;  %v10447_v42 = vld [vmem:[%s19642_s16 + $0x12e0] sm:$0xff]  ;;  %v10360_v20 = vld [vmem:[%s19642_s16 + $0x1028] sm:$0xff] }
 0xbb9   : > { %8199 = vmatpush.msrb.mxu1 %v10293_v4  ;;  %v10460_v4 = vld [vmem:[%s19642_s16 + $0x1348] sm:$0xff] }
 0xbbb   : > { %8200 = vmatpush.msrb.mxu1 %v10289_v49  ;;  %v10355_v49 = vld [vmem:[%s19642_s16 + $0x1000] sm:$0xff] }
 0xbbd   : > { %8201 = vmatpush.msrb.mxu1 %v10285_v55  ;;  %v10356_v55 = vld [vmem:[%s19642_s16 + $0x1008] sm:$0xff] }
 0xbbf   : > { %8202 = vmatpush.msrb.mxu1 %v10281_v28  ;;  %v10456_v28 = vld [vmem:[%s19642_s16 + $0x1328] sm:$0xff] }
 0xbd8   : > { %v18863_v9 = vpop.f32.mrf.mxu0 }
 0xbde   : > { %v7751_v54 = vpop.f32.mrf.mxu2 }
 0xbe0   : > { %v18901_v38 = vpop.f32.mrf.mxu0 }
 0xbe8   : > { %v7880_v26 = vpop.f32.mrf.mxu0 }
 0xbe9   : > { %8063 = vmatmul.f32.vlgmr.msra.gmra.mxu2 %v7880_v26  ;;  %8103 = vmatmul.f32.vlgmr.msrb.gmra.mxu0 %v7880_v26 }
 0xbea   : > { %10351 = vmatpush.msk.msra.mxu2 %vm6805_vm11, %v17295_v34  ;;  %v18958_v34 = vld [vmem:[%s19641_s15 + $0x4] sm:$0x1]  ;;  %8400 = vmatpush.msrb.mxu0 %v10415_v7  ;;  %v10448_v7 = vld [vmem:[%s19642_s16 + $0x12e8] sm:$0xff] }
 0xbec   : > { %8401 = vmatpush.msrb.mxu0 %v10411_v10  ;;  %v10440_v10 = vld [vmem:[%s19642_s16 + $0x12a8] sm:$0xff] }
 0xbee   : > { %8402 = vmatpush.msrb.mxu0 %v10407_v31  ;;  %v10417_v31 = vld [vmem:[%s19642_s16 + $0x11f0] sm:$0xff] }
 0xbf0   : > { %8403 = vmatpush.msrb.mxu0 %v10403_v53  ;;  %v10431_v53 = vld [vmem:[%s19642_s16 + $0x1260] sm:$0xff] }
 0xbf1   : > { %8143 = vmatmul.f32.vlgmr.msrb.gmra.mxu2 %v7880_v26  ;;  %8183 = vmatmul.f32.vlgmr.msra.gmra.mxu0 %v7880_v26  ;;  %v10443_v26 = vld [vmem:[%s19642_s16 + $0x12c0] sm:$0xff] }
 0xbf2   : > { %8440 = vmatpush.msrb.mxu2 %v10416_v50  ;;  %8404 = vmatpush.msrb.mxu0 %v10399_v41  ;;  %v10444_v50 = vld [vmem:[%s19642_s16 + $0x12c8] sm:$0xff] }
 0xbf3   : > { %v10428_v41 = vld [vmem:[%s19642_s16 + $0x1248] sm:$0xff] }
 0xbf4   : > { %8441 = vmatpush.msrb.mxu2 %v10412_v2  ;;  %8405 = vmatpush.msrb.mxu0 %v10395_v29  ;;  %v10436_v2 = vld [vmem:[%s19642_s16 + $0x1288] sm:$0xff] }
 0xbf5   : > { %v7731_v30 = vpop.f32.mrf.mxu1  ;;  %v10424_v29 = vld [vmem:[%s19642_s16 + $0x1228] sm:$0xff] }
 0xbf6   : > { %v7732_v37 = vadd.f32 %v7731_v30, %v18863_v9  ;;  %8442 = vmatpush.msrb.mxu2 %v10408_v27  ;;  %v10383_v9 = vld [vmem:[%s19642_s16 + $0x10e0] sm:$0xff]  ;;  %v10418_v27 = vld [vmem:[%s19642_s16 + $0x11f8] sm:$0xff] }
 0xbf7   : > { %v10439_v30 = vld [vmem:[%s19642_s16 + $0x12a0] sm:$0xff] }
 0xbf8   : > { %v18974_v40 = vadd.f32 %v7732_v37, %v18478_v61  ;;  %8443 = vmatpush.msrb.mxu2 %v10404_v16  ;;  %v10435_v37 = vld [vmem:[%s19642_s16 + $0x1280] sm:$0xff]  ;;  %v10414_v16 = vld [vmem:[%s19642_s16 + $0x11d8] sm:$0xff] }
 0xbf9   : > { %10352 = vmatmul.msk.f32.vlgmr.msra.gmra.mxu2 %vm6801_vm12, %v18958_v34 }
 0xbfa   : > { %8444 = vmatpush.msrb.mxu2 %v10400_v12  ;;  %v10410_v12 = vld [vmem:[%s19642_s16 + $0x11b8] sm:$0xff] }
 0xbfb   : > { %v7771_v61 = vpop.f32.mrf.mxu3 }
 0xbfc   : > { %v7772_v13 = vadd.f32 %v7771_v61, %v7751_v54  ;;  %8445 = vmatpush.msrb.mxu2 %v10396_v15  ;;  %v10432_v54 = vld [vmem:[%s19642_s16 + $0x1268] sm:$0xff]  ;;  %v10413_v61 = vld [vmem:[%s19642_s16 + $0x11d0] sm:$0xff] }
 0xbfd   : > { %v7811_v11 = vpop.f32.mrf.mxu1  ;;  %v10405_v15 = vld [vmem:[%s19642_s16 + $0x1190] sm:$0xff] }
 0xbfe   : > { %v18997_v59 = vadd.f32 %v7772_v13, %v18448_v1  ;;  %v7812_v25 = vadd.f32 %v7811_v11, %v18901_v38  ;;  %v10391_v1 = vld [vmem:[%s19642_s16 + $0x1120] sm:$0xff]  ;;  %8446 = vmatpush.msrb.mxu2 %v10392_v24  ;;  %v10372_v38 = vld [vmem:[%s19642_s16 + $0x1088] sm:$0xff]  ;;  %v10409_v11 = vld [vmem:[%s19642_s16 + $0x11b0] sm:$0xff] }
 0xbff   : > { %8406 = vmatpush.msrb.mxu0 %v10391_v1  ;;  %v10427_v13 = vld [vmem:[%s19642_s16 + $0x1240] sm:$0xff]  ;;  %v10406_v1 = vld [vmem:[%s19642_s16 + $0x1198] sm:$0xff] }
 0xc00   : > { %v19007_v51 = vadd.f32 %v7812_v25, %v18571_v43  ;;  %v10479_v43 = vld [vmem:[%s19642_s16 + $0x13e0] sm:$0x3]  ;;  %8447 = vmatpush.msrb.mxu2 %v10388_v22  ;;  %v10481_v22 = vld [vmem:[%s19642_s16 + $0x13f0] sm:$0x3] }
 0xc01   : > { %8407 = vmatpush.msrb.mxu0 %v10387_v18  ;;  %v10423_v25 = vld [vmem:[%s19642_s16 + $0x1220] sm:$0xff]  ;;  %v10420_v18 = vld [vmem:[%s19642_s16 + $0x1208] sm:$0xff] }
 0xc02   : > { %8448 = vmatpush.msrb.mxu2 %v10384_v23  ;;  %v10419_v24 = vld [vmem:[%s19642_s16 + $0x1200] sm:$0xff]  ;;  %v10397_v23 = vld [vmem:[%s19642_s16 + $0x1150] sm:$0xff] }
 0xc03   : > { %8408 = vmatpush.msrb.mxu0 %v10383_v9  ;;  %v10402_v9 = vld [vmem:[%s19642_s16 + $0x1178] sm:$0xff] }
 0xc05   : > { %v7900_v35 = vpop.f32.mrf.mxu1  ;;  %8409 = vmatpush.msrb.mxu0 %v10379_v0  ;;  %v10477_v0 = vld [vmem:[%s19642_s16 + $0x13d0] sm:$0xff] }
 0xc06   : > { %10343 = vmatmul.msk.f32.vlgmr.msra.gmra.mxu3 %vm7154_vm13, %v7900_v35  ;;  %10345 = vmatmul.msk.f32.vlgmr.msra.gmra.mxu1 %vm7154_vm13, %v7900_v35 }
 0xc07   : > { %10353 = vmatpush.msk.msra.mxu3 %vm6805_vm11, %v17401_v3  ;;  %10483 = vmatpush.msk.msra.mxu1 %vm6029_vm8, %v10479_v43  ;;  %v10380_v3 = vld [vmem:[%s19642_s16 + $0x10c8] sm:$0xff]  ;;  %v19199_v43 = vpop.f32.mrf.mxu2 }
 0xc08   : > { %8449 = vmatpush.msrb.mxu2 %v10380_v3  ;;  %8410 = vmatpush.msrb.mxu0 %v10375_v5  ;;  %v10478_v3 = vld [vmem:[%s19642_s16 + $0x13d8] sm:$0xff]  ;;  %v10393_v5 = vld [vmem:[%s19642_s16 + $0x1130] sm:$0xff] }
 0xc09   : > { %8421 = vmatpush.msra.mxu1 %v10475_v21  ;;  %v10482_v21 = vld [vmem:[%s19642_s16 + $0x13f8] sm:$0x3] }
 0xc0a   : > { %8450 = vmatpush.msrb.mxu2 %v10376_v62  ;;  %8411 = vmatpush.msrb.mxu0 %v10371_v60  ;;  %v10389_v62 = vld [vmem:[%s19642_s16 + $0x1110] sm:$0xff] }
 0xc0b   : > { %8422 = vmatpush.msra.mxu1 %v10471_v46  ;;  %v10398_v46 = vld [vmem:[%s19642_s16 + $0x1158] sm:$0xff]  ;;  %v10469_v60 = vld [vmem:[%s19642_s16 + $0x1390] sm:$0xff] }
 0xc0c   : > { %8451 = vmatpush.msrb.mxu2 %v10372_v38  ;;  %8412 = vmatpush.msrb.mxu0 %v10367_v36  ;;  %v10385_v36 = vld [vmem:[%s19642_s16 + $0x10f0] sm:$0xff] }
 0xc0d   : > { %8423 = vmatpush.msra.mxu1 %v10467_v6  ;;  %v10473_v6 = vld [vmem:[%s19642_s16 + $0x13b0] sm:$0xff] }
 0xc0e   : > { %10347 = vmatmul.msk.f32.vlgmr.msrb.gmra.mxu3 %vm7154_vm13, %v7900_v35  ;;  %10349 = vmatmul.msk.f32.vlgmr.msrb.gmra.mxu1 %vm7154_vm13, %v7900_v35  ;;  %v10401_v35 = vld [vmem:[%s19642_s16 + $0x1170] sm:$0xff] }
 0xc0f   : > { %10485 = vmatpush.msk.msrb.mxu3 %vm6029_vm8, %v10480_v56  ;;  %8424 = vmatpush.msra.mxu1 %v10463_v52  ;;  %v10394_v56 = vld [vmem:[%s19642_s16 + $0x1138] sm:$0xff] }
 0xc10   : > { %8452 = vmatpush.msrb.mxu2 %v10368_v48  ;;  %8413 = vmatpush.msrb.mxu0 %v10363_v32  ;;  %v10474_v52 = vld [vmem:[%s19642_s16 + $0x13b8] sm:$0xff]  ;;  %v10381_v32 = vld [vmem:[%s19642_s16 + $0x10d0] sm:$0xff] }
 0xc11   : > { %8461 = vmatpush.msrb.mxu3 %v10476_v45  ;;  %8425 = vmatpush.msra.mxu1 %v10459_v17  ;;  %v10390_v45 = vld [vmem:[%s19642_s16 + $0x1118] sm:$0xff] }
 0xc12   : > { %8453 = vmatpush.msrb.mxu2 %v10364_v39  ;;  %8414 = vmatpush.msrb.mxu0 %v10359_v44  ;;  %v10470_v17 = vld [vmem:[%s19642_s16 + $0x1398] sm:$0xff] }
 0xc13   : > { %8462 = vmatpush.msrb.mxu3 %v10472_v47  ;;  %8426 = vmatpush.msra.mxu1 %v10455_v58  ;;  %v10465_v47 = vld [vmem:[%s19642_s16 + $0x1370] sm:$0xff]  ;;  %v10386_v58 = vld [vmem:[%s19642_s16 + $0x10f8] sm:$0xff] }
 0xc14   : > { %8454 = vmatpush.msrb.mxu2 %v10360_v20  ;;  %8415 = vmatpush.msrb.mxu0 %v10355_v49  ;;  %v10466_v48 = vld [vmem:[%s19642_s16 + $0x1378] sm:$0xff] }
 0xc15   : > { %8463 = vmatpush.msrb.mxu3 %v10468_v19  ;;  %8427 = vmatpush.msra.mxu1 %v10451_v14  ;;  %v10461_v19 = vld [vmem:[%s19642_s16 + $0x1350] sm:$0xff]  ;;  %v10382_v14 = vld [vmem:[%s19642_s16 + $0x10d8] sm:$0xff] }
 0xc16   : > { %10354 = vmatmul.msk.f32.vlgmr.msra.gmra.mxu3 %vm6801_vm12, %v18958_v34  ;;  %v10452_v34 = vld [vmem:[%s19642_s16 + $0x1308] sm:$0xff]  ;;  %8455 = vmatpush.msrb.mxu2 %v10356_v55  ;;  %v10462_v39 = vld [vmem:[%s19642_s16 + $0x1358] sm:$0xff] }
 0xc17   : > { %8464 = vmatpush.msrb.mxu3 %v10464_v63  ;;  %8428 = vmatpush.msra.mxu1 %v10447_v42  ;;  %v10377_v63 = vld [vmem:[%s19642_s16 + $0x10b0] sm:$0xff]  ;;  %v10378_v44 = vld [vmem:[%s19642_s16 + $0x10b8] sm:$0xff] }
 0xc18   : > { %8480 = vmatpush.msra.mxu0 %v10417_v31  ;;  %8520 = vmatpush.msra.mxu2 %v10418_v27  ;;  %v10457_v42 = vld [vmem:[%s19642_s16 + $0x1330] sm:$0xff]  ;;  %v10458_v20 = vld [vmem:[%s19642_s16 + $0x1338] sm:$0xff] }
 0xc19   : > { %8465 = vmatpush.msrb.mxu3 %v10460_v4  ;;  %8429 = vmatpush.msra.mxu1 %v10443_v26  ;;  %v10373_v4 = vld [vmem:[%s19642_s16 + $0x1090] sm:$0xff]  ;;  %v10374_v49 = vld [vmem:[%s19642_s16 + $0x1098] sm:$0xff] }
 0xc1a   : > { %8481 = vmatpush.msra.mxu0 %v10413_v61  ;;  %8521 = vmatpush.msra.mxu2 %v10414_v16  ;;  %v10453_v26 = vld [vmem:[%s19642_s16 + $0x1310] sm:$0xff]  ;;  %v10454_v55 = vld [vmem:[%s19642_s16 + $0x1318] sm:$0xff] }
 0xc1b   : > { %8466 = vmatpush.msrb.mxu3 %v10456_v28  ;;  %8430 = vmatpush.msra.mxu1 %v10439_v30  ;;  %v10369_v30 = vld [vmem:[%s19642_s16 + $0x1070] sm:$0xff]  ;;  %v10446_v31 = vld [vmem:[%s19642_s16 + $0x12d8] sm:$0xff] }
 0xc1c   : > { %8482 = vmatpush.msra.mxu0 %v10409_v11  ;;  %8522 = vmatpush.msra.mxu2 %v10410_v12  ;;  %v10361_v27 = vld [vmem:[%s19642_s16 + $0x1030] sm:$0xff]  ;;  %v10442_v61 = vld [vmem:[%s19642_s16 + $0x12b8] sm:$0xff] }
 0xc1d   : > { %8467 = vmatpush.msrb.mxu3 %v10452_v34  ;;  %8431 = vmatpush.msra.mxu1 %v10435_v37  ;;  %v10449_v34 = vld [vmem:[%s19642_s16 + $0x12f0] sm:$0xff]  ;;  %v10370_v37 = vld [vmem:[%s19642_s16 + $0x1078] sm:$0xff] }
 0xc1e   : > { %8483 = vmatpush.msra.mxu0 %v10405_v15  ;;  %8523 = vmatpush.msra.mxu2 %v10406_v1  ;;  %v10357_v16 = vld [vmem:[%s19642_s16 + $0x1010] sm:$0xff]  ;;  %v10438_v11 = vld [vmem:[%s19642_s16 + $0x1298] sm:$0xff] }
 0xc1f   : > { %8468 = vmatpush.msrb.mxu3 %v10448_v7  ;;  %8432 = vmatpush.msra.mxu1 %v10431_v53  ;;  %v10450_v7 = vld [vmem:[%s19642_s16 + $0x12f8] sm:$0xff]  ;;  %v10441_v53 = vld [vmem:[%s19642_s16 + $0x12b0] sm:$0xff] }
 0xc20   : > { %8484 = vmatpush.msra.mxu0 %v10401_v35  ;;  %8524 = vmatpush.msra.mxu2 %v10402_v9  ;;  %v10433_v12 = vld [vmem:[%s19642_s16 + $0x1270] sm:$0xff]  ;;  %v10430_v1 = vld [vmem:[%s19642_s16 + $0x1258] sm:$0xff]  ;;  %v19369_v35 = vpop.f32.mrf.mxu3 }
 0xc21   : > { %8469 = vmatpush.msrb.mxu3 %v10444_v50  ;;  %8433 = vmatpush.msra.mxu1 %v10427_v13  ;;  %v10365_v50 = vld [vmem:[%s19642_s16 + $0x1050] sm:$0xff]  ;;  %v10422_v9 = vld [vmem:[%s19642_s16 + $0x1218] sm:$0xff] }
 0xc22   : > { %8485 = vmatpush.msra.mxu0 %v10397_v23  ;;  %8525 = vmatpush.msra.mxu2 %v10398_v46  ;;  %v10437_v13 = vld [vmem:[%s19642_s16 + $0x1290] sm:$0xff]  ;;  %v8595_v46 = vld [vmem:[%s19644_s18 + $0x68] sm:$0xff] }
 0xc23   : > { %8470 = vmatpush.msrb.mxu3 %v10440_v10  ;;  %8434 = vmatpush.msra.mxu1 %v10423_v25  ;;  %v10445_v10 = vld [vmem:[%s19642_s16 + $0x12d0] sm:$0xff]  ;;  %v10434_v25 = vld [vmem:[%s19642_s16 + $0x1278] sm:$0xff] }
 0xc24   : > { %8486 = vmatpush.msra.mxu0 %v10393_v5  ;;  %8526 = vmatpush.msra.mxu2 %v10394_v56  ;;  %v10429_v15 = vld [vmem:[%s19642_s16 + $0x1250] sm:$0xff]  ;;  %v8594_v5 = vld [vmem:[%s19644_s18 + $0x60] sm:$0xff] }
 0xc25   : > { %8471 = vmatpush.msrb.mxu3 %v10436_v2  ;;  %8435 = vmatpush.msra.mxu1 %v10419_v24  ;;  %v10366_v2 = vld [vmem:[%s19642_s16 + $0x1058] sm:$0xff]  ;;  %v10425_v24 = vld [vmem:[%s19642_s16 + $0x1230] sm:$0xff] }
 0xc26   : > { %8487 = vmatpush.msra.mxu0 %v10389_v62  ;;  %8527 = vmatpush.msra.mxu2 %v10390_v45  ;;  %v8596_v23 = vld [vmem:[%s19644_s18 + $0x70] sm:$0xff] }
 0xc27   : > { %8472 = vmatpush.msrb.mxu3 %v10432_v54  ;;  %10487 = vmatpush.msk.msrb.mxu1 %vm6029_vm8, %v10481_v22  ;;  %v10362_v54 = vld [vmem:[%s19642_s16 + $0x1038] sm:$0xff]  ;;  %v10421_v22 = vld [vmem:[%s19642_s16 + $0x1210] sm:$0xff] }
 0xc28   : > { %8488 = vmatpush.msra.mxu0 %v10385_v36  ;;  %8528 = vmatpush.msra.mxu2 %v10386_v58  ;;  %v8613_v58 = vld [vmem:[%s19644_s18 + $0xf8] sm:$0xff] }
 0xc29   : > { %8473 = vmatpush.msrb.mxu3 %v10428_v41  ;;  %8501 = vmatpush.msrb.mxu1 %v10477_v0  ;;  %v10358_v41 = vld [vmem:[%s19642_s16 + $0x1018] sm:$0xff] }
 0xc2a   : > { %8489 = vmatpush.msra.mxu0 %v10381_v32  ;;  %8529 = vmatpush.msra.mxu2 %v10382_v14  ;;  %v8629_v0 = vld [vmem:[%s19644_s18 + $0x178] sm:$0xff]  ;;  %v8611_v32 = vld [vmem:[%s19644_s18 + $0xe8] sm:$0xff] }
 0xc2b   : > { %8474 = vmatpush.msrb.mxu3 %v10424_v29  ;;  %8502 = vmatpush.msrb.mxu1 %v10473_v6  ;;  %v8627_v6 = vld [vmem:[%s19644_s18 + $0x168] sm:$0xff]  ;;  %v8609_v14 = vld [vmem:[%s19644_s18 + $0xd8] sm:$0xff] }
 0xc2c   : > { %8490 = vmatpush.msra.mxu0 %v10377_v63  ;;  %8530 = vmatpush.msra.mxu2 %v10378_v44  ;;  %v8589_v63 = vld [vmem:[%s19644_s18 + $0x38] sm:$0xff] }
 0xc2d   : > { %8475 = vmatpush.msrb.mxu3 %v10420_v18  ;;  %8503 = vmatpush.msrb.mxu1 %v10469_v60  ;;  %v10426_v18 = vld [vmem:[%s19642_s16 + $0x1238] sm:$0xff]  ;;  %v8592_v60 = vld [vmem:[%s19644_s18 + $0x50] sm:$0xff] }
 0xc2e   : > { %8491 = vmatpush.msra.mxu0 %v10373_v4  ;;  %8531 = vmatpush.msra.mxu2 %v10374_v49  ;;  %v8625_v44 = vld [vmem:[%s19644_s18 + $0x158] sm:$0xff]  ;;  %v8588_v4 = vld [vmem:[%s19644_s18 + $0x30] sm:$0xff] }
 0xc2f   : > { %10489 = vmatpush.msk.msra.mxu3 %vm6029_vm8, %v10482_v21  ;;  %8504 = vmatpush.msrb.mxu1 %v10465_v47  ;;  %v8597_v21 = vld [vmem:[%s19644_s18 + $0x78] sm:$0xff]  ;;  %v8624_v49 = vld [vmem:[%s19644_s18 + $0x150] sm:$0xff] }
 0xc30   : > { %8492 = vmatpush.msra.mxu0 %v10369_v30  ;;  %8532 = vmatpush.msra.mxu2 %v10370_v37  ;;  %v8606_v30 = vld [vmem:[%s19644_s18 + $0xc0] sm:$0xff] }
 0xc31   : > { %8541 = vmatpush.msra.mxu3 %v10478_v3  ;;  %8505 = vmatpush.msrb.mxu1 %v10461_v19  ;;  %v8628_v3 = vld [vmem:[%s19644_s18 + $0x170] sm:$0xff]  ;;  %v8590_v19 = vld [vmem:[%s19644_s18 + $0x40] sm:$0xff] }
 0xc32   : > { %8493 = vmatpush.msra.mxu0 %v10365_v50  ;;  %8533 = vmatpush.msra.mxu2 %v10366_v2  ;;  %v8642_v37 = vld [vmem:[%s19644_s18 + $0x1e0] sm:$0xff]  ;;  %v8605_v50 = vld [vmem:[%s19644_s18 + $0xb8] sm:$0xff] }
 0xc33   : > { %8542 = vmatpush.msra.mxu3 %v10474_v52  ;;  %8506 = vmatpush.msrb.mxu1 %v10457_v42  ;;  %v8593_v52 = vld [vmem:[%s19644_s18 + $0x58] sm:$0xff]  ;;  %v8608_v42 = vld [vmem:[%s19644_s18 + $0xd0] sm:$0xff] }
 0xc34   : > { %8494 = vmatpush.msra.mxu0 %v10361_v27  ;;  %8534 = vmatpush.msra.mxu2 %v10362_v54  ;;  %v8641_v2 = vld [vmem:[%s19644_s18 + $0x1d8] sm:$0xff]  ;;  %v8604_v27 = vld [vmem:[%s19644_s18 + $0xb0] sm:$0xff] }
 0xc35   : > { %8543 = vmatpush.msra.mxu3 %v10470_v17  ;;  %8507 = vmatpush.msrb.mxu1 %v10453_v26  ;;  %v8591_v17 = vld [vmem:[%s19644_s18 + $0x48] sm:$0xff]  ;;  %v8640_v54 = vld [vmem:[%s19644_s18 + $0x1d0] sm:$0xff] }
 0xc36   : > { %8495 = vmatpush.msra.mxu0 %v10357_v16  ;;  %8535 = vmatpush.msra.mxu2 %v10358_v41  ;;  %v8607_v26 = vld [vmem:[%s19644_s18 + $0xc8] sm:$0xff] }
 0xc37   : > { %8544 = vmatpush.msra.mxu3 %v10466_v48  ;;  %8508 = vmatpush.msrb.mxu1 %v10449_v34  ;;  %v8623_v34 = vld [vmem:[%s19644_s18 + $0x148] sm:$0xff] }
 0xc38   : > { %v8603_v16 = vld [vmem:[%s19644_s18 + $0xa8] sm:$0xff] }
 0xc39   : > { %8545 = vmatpush.msra.mxu3 %v10462_v39  ;;  %8509 = vmatpush.msrb.mxu1 %v10445_v10  ;;  %v8626_v39 = vld [vmem:[%s19644_s18 + $0x160] sm:$0xff]  ;;  %v8639_v41 = vld [vmem:[%s19644_s18 + $0x1c8] sm:$0xff] }
 0xc3a   : > { %v8622_v10 = vld [vmem:[%s19644_s18 + $0x140] sm:$0xff] }
 0xc3b   : > { %8546 = vmatpush.msra.mxu3 %v10458_v20  ;;  %8510 = vmatpush.msrb.mxu1 %v10441_v53  ;;  %v8644_v20 = vld [vmem:[%s19644_s18 + $0x1f0] sm:$0xf]  ;;  %v8621_v53 = vld [vmem:[%s19644_s18 + $0x138] sm:$0xff] }
 0xc3d   : > { %8547 = vmatpush.msra.mxu3 %v10454_v55  ;;  %8511 = vmatpush.msrb.mxu1 %v10437_v13  ;;  %v8643_v55 = vld [vmem:[%s19644_s18 + $0x1e8] sm:$0xff]  ;;  %v8620_v13 = vld [vmem:[%s19644_s18 + $0x130] sm:$0xff] }
 0xc3f   : > { %8548 = vmatpush.msra.mxu3 %v10450_v7  ;;  %8512 = vmatpush.msrb.mxu1 %v10433_v12  ;;  %v8586_v7 = vld [vmem:[%s19644_s18 + $0x20] sm:$0xff] }
 0xc40   : > { %v8602_v12 = vld [vmem:[%s19644_s18 + $0xa0] sm:$0xff] }
 0xc41   : > { %8549 = vmatpush.msra.mxu3 %v10446_v31  ;;  %8513 = vmatpush.msrb.mxu1 %v10429_v15  ;;  %v8585_v31 = vld [vmem:[%s19644_s18 + $0x18] sm:$0xff]  ;;  %v8582_v15 = vld [vmem:[%s19644_s18] sm:$0xff] }
 0xc43   : > { %8550 = vmatpush.msra.mxu3 %v10442_v61  ;;  %8514 = vmatpush.msrb.mxu1 %v10425_v24  ;;  %v8584_v61 = vld [vmem:[%s19644_s18 + $0x10] sm:$0xff]  ;;  %v8618_v24 = vld [vmem:[%s19644_s18 + $0x120] sm:$0xff] }
 0xc45   : > { %8551 = vmatpush.msra.mxu3 %v10438_v11  ;;  %8515 = vmatpush.msrb.mxu1 %v10421_v22  ;;  %v8583_v11 = vld [vmem:[%s19644_s18 + $0x8] sm:$0xff]  ;;  %v8600_v22 = vld [vmem:[%s19644_s18 + $0x90] sm:$0xff] }
 0xc47   : > { %8552 = vmatpush.msra.mxu3 %v10434_v25  ;;  %v8619_v25 = vld [vmem:[%s19644_s18 + $0x128] sm:$0xff] }
 0xc49   : > { %8553 = vmatpush.msra.mxu3 %v10430_v1  ;;  %v8601_v1 = vld [vmem:[%s19644_s18 + $0x98] sm:$0xff] }
 0xc4b   : > { %8554 = vmatpush.msra.mxu3 %v10426_v18  ;;  %v8637_v18 = vld [vmem:[%s19644_s18 + $0x1b8] sm:$0xff] }
 0xc4d   : > { %8555 = vmatpush.msra.mxu3 %v10422_v9  ;;  %v8617_v9 = vld [vmem:[%s19644_s18 + $0x118] sm:$0xff] }
 0xc6c   : > { %v19251_v38 = vpop.f32.mrf.mxu2 }
 0xc74   : > { %v19301_v28 = vpop.f32.mrf.mxu2 }
 0xc7c   : > { %v8233_v29 = vpop.f32.mrf.mxu2 }
 0xc7d   : > { %8416 = vmatmul.f32.vlgmr.msrb.gmra.mxu0 %v8233_v29  ;;  %8456 = vmatmul.f32.vlgmr.msrb.gmra.mxu2 %v8233_v29 }
 0xc7e   : > { %8652 = vmatpush.msrb.mxu0 %v8597_v21  ;;  %8692 = vmatpush.msrb.mxu2 %v8629_v0  ;;  %v8636_v21 = vld [vmem:[%s19644_s18 + $0x1b0] sm:$0xff]  ;;  %v8599_v0 = vld [vmem:[%s19644_s18 + $0x88] sm:$0xff] }
 0xc80   : > { %8653 = vmatpush.msrb.mxu0 %v8596_v23  ;;  %8693 = vmatpush.msrb.mxu2 %v8628_v3  ;;  %v8104_v23 = vpop.f32.mrf.mxu0  ;;  %v8635_v3 = vld [vmem:[%s19644_s18 + $0x1a8] sm:$0xff] }
 0xc82   : > { %8654 = vmatpush.msrb.mxu0 %v8595_v46  ;;  %8694 = vmatpush.msrb.mxu2 %v8627_v6  ;;  %v8616_v46 = vld [vmem:[%s19644_s18 + $0x110] sm:$0xff]  ;;  %v8598_v6 = vld [vmem:[%s19644_s18 + $0x80] sm:$0xff] }
 0xc84   : > { %8655 = vmatpush.msrb.mxu0 %v8594_v5  ;;  %8695 = vmatpush.msrb.mxu2 %v8626_v39  ;;  %v8124_v5 = vpop.f32.mrf.mxu1 }
 0xc85   : > { %8496 = vmatmul.f32.vlgmr.msra.gmra.mxu0 %v8233_v29  ;;  %8536 = vmatmul.f32.vlgmr.msra.gmra.mxu2 %v8233_v29  ;;  %v8638_v29 = vld [vmem:[%s19644_s18 + $0x1c0] sm:$0xff]  ;;  %v8125_v39 = vadd.f32 %v8124_v5, %v8104_v23 }
 0xc86   : > { %8656 = vmatpush.msrb.mxu0 %v8593_v52  ;;  %8696 = vmatpush.msrb.mxu2 %v8625_v44  ;;  %v8634_v52 = vld [vmem:[%s19644_s18 + $0x1a0] sm:$0xff] }
 0xc88   : > { %8657 = vmatpush.msrb.mxu0 %v8592_v60  ;;  %8697 = vmatpush.msrb.mxu2 %v8624_v49  ;;  %v8633_v60 = vld [vmem:[%s19644_s18 + $0x198] sm:$0xff] }
 0xc89   : > { %v8084_v56 = vpop.f32.mrf.mxu3 }
 0xc8a   : > { %v8085_v62 = vadd.f32 %v8084_v56, %v19251_v38  ;;  %8658 = vmatpush.msrb.mxu0 %v8591_v17  ;;  %8698 = vmatpush.msrb.mxu2 %v8623_v34  ;;  %v8615_v56 = vld [vmem:[%s19644_s18 + $0x108] sm:$0xff]  ;;  %v8632_v17 = vld [vmem:[%s19644_s18 + $0x190] sm:$0xff] }
 0xc8c   : > { %v19406_v45 = vadd.f32 %v8085_v62, %v18974_v40  ;;  %v8612_v40 = vld [vmem:[%s19644_s18 + $0xf0] sm:$0xff]  ;;  %8659 = vmatpush.msrb.mxu0 %v8590_v19  ;;  %8699 = vmatpush.msrb.mxu2 %v8622_v10  ;;  %v8614_v62 = vld [vmem:[%s19644_s18 + $0x100] sm:$0xff] }
 0xc8e   : > { %8660 = vmatpush.msrb.mxu0 %v8589_v63  ;;  %8700 = vmatpush.msrb.mxu2 %v8621_v53 }
 0xc90   : > { %8661 = vmatpush.msrb.mxu0 %v8588_v4  ;;  %8701 = vmatpush.msrb.mxu2 %v8620_v13  ;;  %v8208_v4 = vadd.f32 %v8125_v39, %v18997_v59 }
 0xc91   : > { %v8164_v36 = vpop.f32.mrf.mxu3 }
 0xc92   : > { %v8165_v47 = vadd.f32 %v8164_v36, %v19301_v28  ;;  %v8587_v28 = vld [vmem:[%s19644_s18 + $0x28] sm:$0xff]  ;;  %8702 = vmatpush.msrb.mxu2 %v8619_v25 }
 0xc93   : > { %8662 = vmatpush.msrb.mxu0 %v8587_v28  ;;  %v8631_v36 = vld [vmem:[%s19644_s18 + $0x188] sm:$0xff]  ;;  %v7483_v28 = vadd.f32 %v18833_v8, %v18314_v33 }
 0xc94   : > { %v19413_v38 = vadd.f32 %v8165_v47, %v19007_v51  ;;  %v8610_v51 = vld [vmem:[%s19644_s18 + $0xe0] sm:$0xff]  ;;  %8703 = vmatpush.msrb.mxu2 %v8618_v24  ;;  %v8184_v47 = vpop.f32.mrf.mxu0 }
 0xc95   : > { %8663 = vmatpush.msrb.mxu0 %v8586_v7 }
 0xc96   : > { %8704 = vmatpush.msrb.mxu2 %v8617_v9 }
 0xc97   : > { %8664 = vmatpush.msrb.mxu0 %v8585_v31 }
 0xc98   : > { %8705 = vmatpush.msrb.mxu2 %v8616_v46 }
 0xc99   : > { %v8253_v48 = vpop.f32.mrf.mxu3  ;;  %8665 = vmatpush.msrb.mxu0 %v8584_v61 }
 0xc9a   : > { %10484 = vmatmul.msk.f32.vlgmr.msra.gmra.mxu1 %vm7154_vm13, %v8253_v48  ;;  %10486 = vmatmul.msk.f32.vlgmr.msrb.gmra.mxu3 %vm7154_vm13, %v8253_v48 }
 0xc9b   : > { %8672 = vmatpush.msra.mxu1 %v8613_v58  ;;  %10491 = vmatpush.msk.msrb.mxu3 %vm2072_vm2, %v8644_v20  ;;  %v8630_v58 = vld [vmem:[%s19644_s18 + $0x180] sm:$0xff] }
 0xc9c   : > { %8666 = vmatpush.msrb.mxu0 %v8583_v11  ;;  %8706 = vmatpush.msrb.mxu2 %v8615_v56 }
 0xc9d   : > { %8673 = vmatpush.msra.mxu1 %v8612_v40  ;;  %8714 = vmatpush.msrb.mxu3 %v8643_v55 }
 0xc9e   : > { %8667 = vmatpush.msrb.mxu0 %v8582_v15  ;;  %8707 = vmatpush.msrb.mxu2 %v8614_v62 }
 0xc9f   : > { %8674 = vmatpush.msra.mxu1 %v8611_v32  ;;  %8715 = vmatpush.msrb.mxu3 %v8642_v37  ;;  %v8564_v32 = vld [vmem:[%s19643_s17] sm:$0xf]  ;;  %v7852_v37 = vadd.f32 %v19369_v35, %v19199_v43 }
 0xca0   : > { %v8567_v55 = vperm.slane %v8564_v32, 1  ;;  %v8568_v10 = vperm.slane %v8564_v32, 2 }
 0xca1   : > { %8675 = vmatpush.msra.mxu1 %v8610_v51  ;;  %8716 = vmatpush.msrb.mxu3 %v8641_v2 }
 0xca2   : > { %10488 = vmatmul.msk.f32.vlgmr.msrb.gmra.mxu1 %vm7154_vm13, %v8253_v48  ;;  %10490 = vmatmul.msk.f32.vlgmr.msra.gmra.mxu3 %vm7154_vm13, %v8253_v48  ;;  %v8204_v48 = vpop.f32.mrf.mxu1 }
 0xca3   : > { %8676 = vmatpush.msra.mxu1 %v8609_v14  ;;  %8717 = vmatpush.msrb.mxu3 %v8640_v54  ;;  %v8566_v14 = vperm.slane %v8564_v32, 0  ;;  %v8205_v2 = vadd.f32 %v8204_v48, %v8184_v47 }
 0xca5   : > { %8677 = vmatpush.msra.mxu1 %v8608_v42  ;;  %8718 = vmatpush.msrb.mxu3 %v8639_v41  ;;  %v8569_v41 = vperm.slane %v8564_v32, 3 }
 0xca7   : > { %8678 = vmatpush.msra.mxu1 %v8607_v26  ;;  %8719 = vmatpush.msrb.mxu3 %v8638_v29 }
 0xca9   : > { %8679 = vmatpush.msra.mxu1 %v8606_v30  ;;  %8720 = vmatpush.msrb.mxu3 %v8637_v18 }
 0xcab   : > { %8680 = vmatpush.msra.mxu1 %v8605_v50  ;;  %8721 = vmatpush.msrb.mxu3 %v8636_v21 }
 0xcad   : > { %8681 = vmatpush.msra.mxu1 %v8604_v27  ;;  %8722 = vmatpush.msrb.mxu3 %v8635_v3 }
 0xcaf   : > { %8682 = vmatpush.msra.mxu1 %v8603_v16  ;;  %8723 = vmatpush.msrb.mxu3 %v8634_v52 }
 0xcb1   : > { %8683 = vmatpush.msra.mxu1 %v8602_v12  ;;  %8724 = vmatpush.msrb.mxu3 %v8633_v60 }
 0xcb3   : > { %8684 = vmatpush.msra.mxu1 %v8601_v1  ;;  %8725 = vmatpush.msrb.mxu3 %v8632_v17 }
 0xcb5   : > { %8685 = vmatpush.msra.mxu1 %v8600_v22  ;;  %8726 = vmatpush.msrb.mxu3 %v8631_v36 }
 0xcb7   : > { %8686 = vmatpush.msra.mxu1 %v8599_v0  ;;  %8727 = vmatpush.msrb.mxu3 %v8630_v58 }
 0xcb9   : > { %8687 = vmatpush.msra.mxu1 %v8598_v6 }
 0xcfa   : > { %v8417_v40 = vpop.f32.mrf.mxu0 }
 0xd00   : > { %v8457_v42 = vpop.f32.mrf.mxu2 }
 0xd02   : > { %v8497_v30 = vpop.f32.mrf.mxu0 }
 0xd08   : > { %v8537_v61 = vpop.f32.mrf.mxu2 }
 0xd17   : > { %v8437_v51 = vpop.f32.mrf.mxu1 }
 0xd18   : > { %v8438_v19 = vadd.f32 %v8437_v51, %v8417_v40 }
 0xd1a   : > { %v8560_v63 = vadd.f32 %v8438_v19, %v19406_v45  ;;  %v7503_v45 = vadd.f32 %v18950_v57, %v7483_v28  ;;  %v8645_v57 = vld [vmem:[%s19645_s19] sm:$0x1] }
 0xd1c   : > { %v8574_v44 = vadd.f32 %v8566_v14, %v8560_v63  ;;  %v7857_v27 = vadd.f32 %v7852_v37, %v7503_v45 }
 0xd1d   : > { %v8477_v20 = vpop.f32.mrf.mxu3 }
 0xd1e   : > { %v8578_v26 = vmax.f32 %v8574_v44, 0.0  ;;  %v8478_v49 = vadd.f32 %v8477_v20, %v8457_v42  ;;  %v8210_v8 = vadd.f32 %v8205_v2, %v7857_v27 }
 0xd1f   : > { %v8517_v34 = vpop.f32.mrf.mxu1 }
 0xd20   : > { %v8561_v7 = vadd.f32 %v8478_v49, %v8208_v4  ;;  %v8518_v50 = vadd.f32 %v8517_v34, %v8497_v30  ;;  %8668 = vmatmul.f32.vlgmr.msrb.gmra.mxu0 %v8578_v26 }
 0xd22   : > { %v8575_v31 = vadd.f32 %v8567_v55, %v8561_v7  ;;  %v8562_v59 = vadd.f32 %v8518_v50, %v19413_v38 }
 0xd24   : > { %v8579_v53 = vmax.f32 %v8575_v31, 0.0  ;;  %v8576_v54 = vadd.f32 %v8568_v10, %v8562_v59 }
 0xd25   : > { %v8557_v33 = vpop.f32.mrf.mxu3 }
 0xd26   : > { %v8580_v16 = vmax.f32 %v8576_v54, 0.0  ;;  %v8558_v13 = vadd.f32 %v8557_v33, %v8537_v61  ;;  %8688 = vmatmul.f32.vlgmr.msra.gmra.mxu1 %v8579_v53 }
 0xd28   : > { %v8563_v43 = vadd.f32 %v8558_v13, %v8210_v8  ;;  %8708 = vmatmul.f32.vlgmr.msrb.gmra.mxu2 %v8580_v16 }
 0xd2a   : > { %v8577_v35 = vadd.f32 %v8569_v41, %v8563_v43 }
 0xd2c   : > { %v8581_v11 = vmax.f32 %v8577_v35, 0.0 }
 0xd2e   : > { %10492 = vmatmul.msk.f32.vlgmr.msrb.gmra.mxu3 %vm6336_vm10, %v8581_v11 }
 0xd9d   : > { %v8669_v38 = vpop.f32.mrf.mxu0 }
 0xd9e   : > { %v8670_v25 = vadd.f32 %v8669_v38, %v8645_v57 }
 0xda3   : > { %v8689_v12 = vpop.f32.mrf.mxu1 }
 0xda4   : > { %v8690_v15 = vadd.f32 %v8689_v12, %v8670_v25 }
 0xdab   : > { %v8709_v29 = vpop.f32.mrf.mxu2 }
 0xdac   : > { %v8710_v1 = vadd.f32 %v8709_v29, %v8690_v15 }
 0xdb1   : > { %v8729_v24 = vpop.f32.mrf.mxu3 }
 0xdb2   : > { %v8730_v18 = vadd.f32 %v8729_v24, %v8710_v1 }
 0xdb4   : > { %v8733_v22 = vsel %vm8732_vm14, %v8730_v18, -inf }
 0xdb5   : > { %8734 = vmax.xlane.f32.xlu0 %v8733_v22 }
 0xe28   : > { %v8735_v9 = vpop.xlane.xlu0 %8734 }
 0xe29   : > { %v8736_v21 = vsub.f32 %v8730_v18, %v8735_v9 }
 0xe2b   : > { %v8737_v23 = vmul.f32 1.442695, %v8736_v21 }
 0xe2d   : > { %10535 = vpow2.f32 %v8737_v23 }
 0xe33   : > { %v10536_v0 = vpop.eup %10535 }
 0xe34   : > { %v8739_v46 = vsel %vm8732_vm14, %v10536_v0, 0.0 }
 0xe35   : > { %8740 = vadd.xlane.f32.xlu0 %v8739_v46 }
 0xea8   : > { %v8741_v3 = vpop.xlane.xlu0 %8740 }
 0xea9   : > { %10537 = vlog2.f32 %v8741_v3 }
 0xeaf   : > { %v10538_v5 = vpop.eup %10537 }
 0xeb0   : > { %v8743_v6 = vmul.f32 0.6931472, %v10538_v5 }
 0xeb2   : > { %v8744_v56 = vsub.f32 %v8736_v21, %v8743_v6 }
 0xeb4   : > { %8745 = vst [vmem:[%s621_s1] sm:$0x1] %v8744_v56 }
 0xeb5   : > { %10570 = shalt.err (!%p10567_p3)
}
 0xeb6   : > { %10496 = dma.vmem_to_hbm [thread:$0]  (%p10750_p5), %s8758_s27, 16, %s8760_s29, %s8747_s23  }
 0xeb7 PF: > { %s19838_s4 = sld [smem:[#allocation7_spill]] }
 0xeb8   : > { %s19839_s26 = sld [smem:[#allocation5_spill]] }
 0xebd   : > { %p10502_p4 = scmp.ge.s32.totalorder %s19838_s4, 2 }
 0xebe   : > { %s8771_s7 = sand.u32 1, %s19839_s26  }
 0xebf   : > { %p10499_p7 = pnand %p10502_p4, %p10754_p6  ;;  %s8772_s0 = scalar_lea.sflag [#allocation3], %s8771_s7 }
 0xec1   : > { %p10500_p8 = pneg %p10499_p7 }
 0xec3   : > { %10588 = dma.done.wait (%p10500_p8), %s8772_s0, 16  }
 0xec4   : > { %10590 = vsyncadd (%p10500_p8), %s8772_s0, 4294967280  ;;  %s19841_s24 = sld [smem:[#allocation8_spill]]  ;;  %s19844_s1 = smov %s10597_s22 }
 0xec5   : > { %s19842_s5 = sld [smem:[#allocation6_spill]] }
 0xec6   : > { %s19843_s23 = sld [smem:[#allocation9_spill]] }
 0xeca   : > { %p30_p9 = scmp.ge.s32.totalorder %s19841_s24, 4  }
 0xecb   : > { %s19845_s22 = smov %s19842_s5 }
 0xecc   :  { %32 = sbr.rel (!%p30_p9) target bundleno = 12 (0xc), region = 159 }
 0xed1   :  { %8777 = vsyncpa [#allocation3], 1 }
 0xed2   :  { %8779 = vsyncpa [#allocation3 + $0x1], 1 }

</bundles_post_ra>
